<compile_context>
chip_gen: v6e
topology: v6e:2x2x1
jax: 0.10.0
libtpu: 0.0.40
codegen_flags: <defaults>
</compile_context>

<pallas_src>
import functools

import jax
import jax.numpy as jnp
import numpy as np
from jax.experimental import pallas as pl
from jax.experimental.pallas import tpu as pltpu


_MEAN_RGB = (0.485, 0.456, 0.406)
_STD_RGB = (0.229, 0.224, 0.225)


# ----------------------------------------------------------------------------
# Chip detection & generation-aware VMEM budget
# ----------------------------------------------------------------------------
def _detect_tpu():
    kind = ""
    try:
        kind = jax.devices()[0].device_kind.lower()
    except Exception:
        pass
    vmem = None
    try:
        info = pltpu.get_tpu_info()
        for attr in ("vmem_capacity_bytes", "vmem_bytes", "vmem_size_bytes"):
            v = getattr(info, attr, None)
            if isinstance(v, (int, np.integer)) and int(v) > 0:
                vmem = int(v)
                break
    except Exception:
        pass
    if vmem is None:
        if "v7" in kind:
            vmem = 64 * 1024 * 1024
        elif ("v5" in kind) or ("v6" in kind):
            vmem = 128 * 1024 * 1024
        else:
            vmem = 64 * 1024 * 1024            # conservative default
    return kind, vmem, ("v5" in kind)


_TPU_KIND, _VMEM_PHYS_BYTES, _IS_V5 = _detect_tpu()

if _VMEM_PHYS_BYTES >= 128 * 1024 * 1024:      # v5e / v6e class (128 MiB VMEM)
    _VMEM_LIMIT_BYTES = 100 * 1024 * 1024
    _VMEM_BUDGET_BYTES = 84 * 1024 * 1024
else:                                          # v7x class (64 MiB VMEM)
    _VMEM_LIMIT_BYTES = 48 * 1024 * 1024
    _VMEM_BUDGET_BYTES = 40 * 1024 * 1024


# ----------------------------------------------------------------------------
# Feature probes (cheap one-off compiles; fall back to known-good paths)
# ----------------------------------------------------------------------------
def _try(fn):
    try:
        fn()
        return True
    except Exception:
        return False


def _probe_buffered_one():
    def k(x_ref, o_ref):
        o_ref[...] = x_ref[...] + 1.0

    x = jnp.zeros((8, 128), jnp.float32)
    out = pl.pallas_call(
        k,
        out_shape=jax.ShapeDtypeStruct((8, 128), jnp.float32),
        grid=(1,),
        in_specs=[pl.BlockSpec((8, 128), lambda i: (0, 0),
                               pipeline_mode=pl.Buffered(1))],
        out_specs=pl.BlockSpec((8, 128), lambda i: (0, 0)),
    )(x)
    jax.block_until_ready(out)


def _probe_sublane_concat():
    def k(x_ref, o_ref):
        y = x_ref[:, 0:6, :].astype(jnp.float32)
        z = jnp.zeros((8, 1, 128), jnp.float32)
        o_ref[...] = jnp.concatenate([z, y, z], axis=1).astype(o_ref.dtype)

    x = jnp.ones((8, 8, 128), jnp.bfloat16)
    out = pl.pallas_call(
        k, out_shape=jax.ShapeDtypeStruct((8, 8, 128), jnp.bfloat16))(x)
    jax.block_until_ready(out)


_BUFFERED1_OK = _try(_probe_buffered_one)
_ALIGNED_STORE_OK = _try(_probe_sublane_concat)


def _const_spec(shape, index_map):
    """BlockSpec for a block whose index never changes (weights / bias)."""
    if _BUFFERED1_OK:
        return pl.BlockSpec(shape, index_map, pipeline_mode=pl.Buffered(1))
    return pl.BlockSpec(shape, index_map)


# ----------------------------------------------------------------------------
# Tile-size heuristics (lane/sublane-padded VMEM accounting)
# ----------------------------------------------------------------------------
def _round_up(v, m):
    return ((v + m - 1) // m) * m


def _block_vmem_bytes(shape, itemsize):
    """Approx VMEM footprint of one buffer of a block: last dim padded to 128
    lanes, second-to-last to the native sublane tile (8 for 4B, 16 for 2B)."""
    s = list(shape)
    sub = 8 * max(1, 4 // itemsize)
    lane = _round_up(s[-1], 128)
    subl = _round_up(s[-2], sub) if len(s) >= 2 else 1
    lead = 1
    for d in s[:-2]:
        lead *= d
    return lead * subl * lane * itemsize


def _pick_tile_h(hin, fixed_bytes, per_row_bytes, pool, budget, max_tile_h=None):
    """Largest row-tile height dividing `hin` whose working set fits budget."""
    cap = hin if max_tile_h is None else max(1, min(hin, int(max_tile_h)))
    smallest_valid = None
    for th in range(cap, 0, -1):
        if hin % th:
            continue
        if pool and th % 2:
            continue
        smallest_valid = th
        if fixed_bytes + th * per_row_bytes <= budget:
            return th
    # TODO(synk): nothing fits -> the per-sample activation must be halo-tiled
    # with manual DMA; fall back to the smallest legal tile for now.
    return smallest_valid if smallest_valid is not None else (2 if pool else 1)


def _pick_tile_h_loss(hf, wf, c, act_bytes, max_tile_h=None):
    cap = hf if max_tile_h is None else max(1, min(hf, int(max_tile_h)))
    fallback = 1
    for tl in range(cap, 0, -1):
        if hf % tl:
            continue
        fallback = tl
        need = (4 * _block_vmem_bytes((1, tl, wf, c), act_bytes)
                + 4 * _block_vmem_bytes((tl, wf, c), 4))
        if need <= _VMEM_BUDGET_BYTES:
            return tl
    return fallback


# ----------------------------------------------------------------------------
# Pallas kernels
# ----------------------------------------------------------------------------
def _conv3x3_kernel(x_ref, w_ref, b_ref, o_ref, *, th, pool, pad_out, fold,
                    aligned_store):
    # x_ref:
    #   fold == "1x1": (1, Hin, Win, 9*Cin)  bf16 host-side im2col (no halo)
    #   else         : (1, Hin+2, Win+2, Cin) bf16 with a zero halo ring
    # w_ref: "1x1" -> (1, 9*Cin, Cout);  else -> (3, 3*Cin, Cout) [dx, dy*Cin+c, o]
    # b_ref: (1, Cout) f32
    # o_ref: pad_out -> (1, Hout+2, Wout+2, Cout) resident per sample
    #        else    -> (1, th_out, Wout, Cout)   row-tiled
    t = pl.program_id(1)
    cout = o_ref.shape[-1]
    if fold == "1x1":
        w_log = x_ref.shape[2]
    else:
        w_log = x_ref.shape[2] - 2
        cin = x_ref.shape[-1]
    m = th * w_log
    row0 = pl.multiple_of(t * th, th)

    def tap(dy, dx):
        # TODO(synk): dx=1/2 are sublane-misaligned loads; a pltpu.roll-based
        # shift of a once-loaded full-width block would move this to the XLU.
        return x_ref[0, pl.ds(row0 + dy, th), pl.ds(dx, w_log), :]

    # bf16 x bf16 -> f32 accumulation in a local value (single epilogue write;
    # no per-matmul VMEM scratch read-modify-write).
    if fold == "1x1":
        lhs = x_ref[0, pl.ds(row0, th), :, :].reshape(m, x_ref.shape[-1])
        acc = jnp.dot(lhs, w_ref[0], preferred_element_type=jnp.float32)
    elif fold == "dy":
        acc = None
        for dx in range(3):
            lhs = jnp.concatenate([tap(0, dx), tap(1, dx), tap(2, dx)],
                                  axis=-1).reshape(m, 3 * cin)
            contrib = jnp.dot(lhs, w_ref[dx], preferred_element_type=jnp.float32)
            acc = contrib if acc is None else acc + contrib
    else:
        acc = None
        for dx in range(3):
            for dy in range(3):
                lhs = tap(dy, dx).reshape(m, cin)
                rhs = w_ref[dx, pl.ds(dy * cin, cin), :]
                contrib = jnp.dot(lhs, rhs, preferred_element_type=jnp.float32)
                acc = contrib if acc is None else acc + contrib

    y = jnp.maximum(acc + b_ref[...], 0.0).reshape(th, w_log, cout)

    if pool:                                  # fused 2x2 / stride-2 max pool
        y = jnp.max(y.reshape(th // 2, 2, w_log, cout), axis=1)
        y = jnp.max(y.reshape(th // 2, w_log // 2, 2, cout), axis=2)
        th_out, w_out = th // 2, w_log // 2
    else:
        th_out, w_out = th, w_log

    if pad_out:
        hp_out = o_ref.shape[1]
        wp_out = o_ref.shape[2]
        if aligned_store:
            # Only the top/bottom halo rows need explicit zeroing; the halo
            # columns are written as part of every full-width interior store.
            @pl.when(t == 0)
            def _zero_halo_rows():
                zrow = jnp.zeros((1, wp_out, cout), o_ref.dtype)
                o_ref[0, pl.ds(0, 1), :, :] = zrow
                o_ref[0, pl.ds(hp_out - 1, 1), :, :] = zrow

            zcol = jnp.zeros((th_out, 1, cout), jnp.float32)
            y_full = jnp.concatenate([zcol, y, zcol], axis=1).astype(o_ref.dtype)
            # Sublane-aligned (offset-0, full padded width) interior store.
            o_ref[0, pl.ds(t * th_out + 1, th_out), :, :] = y_full
        else:
            @pl.when(t == 0)
            def _zero_all():
                o_ref[...] = jnp.zeros_like(o_ref)

            o_ref[0, pl.ds(t * th_out + 1, th_out), pl.ds(1, w_out), :] = (
                y.astype(o_ref.dtype))
    else:
        o_ref[0] = y.astype(o_ref.dtype)


def _maxpool2x2_kernel(x_ref, o_ref):
    # Standalone pool (only used when an intermediate feature level is
    # explicitly requested; default path fuses pooling into the conv).
    _, hp, wp, c = x_ref.shape
    h, w = hp - 2, wp - 2
    x = x_ref[0, pl.ds(1, h), pl.ds(1, w), :].astype(jnp.float32)
    x = jnp.max(x.reshape(h // 2, 2, w, c), axis=1)
    x = jnp.max(x.reshape(h // 2, w // 2, 2, c), axis=2)
    o_ref[...] = jnp.zeros_like(o_ref)
    o_ref[0, pl.ds(1, h // 2), pl.ds(1, w // 2), :] = x.astype(o_ref.dtype)


def _level_loss_kernel(f1_ref, f2_ref, o_ref, *, normalize_features):
    # f1_ref / f2_ref: (1, tile_h, Wf, C) bf16;  o_ref: (1, n_tiles, 128) f32
    t = pl.program_id(1)
    f1 = f1_ref[0].astype(jnp.float32)
    f2 = f2_ref[0].astype(jnp.float32)
    if normalize_features:
        n1 = jnp.sum(f1 * f1, axis=-1, keepdims=True)
        n2 = jnp.sum(f2 * f2, axis=-1, keepdims=True)
        # EUP rsqrt instead of sqrt + divide (matches x/(||x||+1e-10) to ~1e-10).
        f1 = f1 * jax.lax.rsqrt(n1 + 1e-20)
        f2 = f2 * jax.lax.rsqrt(n2 + 1e-20)
    d = (f1 - f2) ** 2
    # Reduce major/sublane axes first; single cross-lane (channel) reduce last.
    s = jnp.sum(d, axis=0)                     # (Wf, C)
    s = jnp.sum(s, axis=0, keepdims=True)      # (1, C)
    total = jnp.sum(s, axis=1, keepdims=True)  # (1, 1) per-tile partial sum
    o_ref[0, pl.ds(t, 1), :] = jnp.broadcast_to(total, (1, 128))


# ----------------------------------------------------------------------------
# Pallas wrappers
# ----------------------------------------------------------------------------
def conv3x3_relu(x, w, b, *, pool=False, pad_out=True, im2col=False,
                 max_tile_h=None):
    """3x3 same-conv + bias + ReLU (+ optional fused 2x2 maxpool).

    x: (N, Hin+2, Win+2, Cin) bf16 with a zero halo ring, or (when im2col=True)
       a host-side im2col'd (N, Hin, Win, 9*Cin) block (first layer, Cin=3).
    Returns a padded (N, Hout+2, Wout+2, Cout) activation (pad_out=True) or an
    unpadded (N, Hout, Wout, Cout) feature map (pad_out=False).
    """
    n = x.shape[0]
    cin, cout = w.shape[2], w.shape[3]
    act_dtype = x.dtype
    act_bytes = jnp.dtype(act_dtype).itemsize

    if im2col:
        _, hin, win, k_eff = x.shape
        assert k_eff == 9 * cin
        wk = jnp.transpose(w, (1, 0, 2, 3)).reshape(1, 9 * cin, cout)
        wk = wk.astype(act_dtype)
        fold = "1x1"
        in_block = (1, hin, win, k_eff)
        w_block = (1, 9 * cin, cout)
    else:
        _, hp, wp, cin_x = x.shape
        assert cin_x == cin
        hin, win = hp - 2, wp - 2
        # Weight layout [dx, dy*Cin + c, o] so dy can be folded into K.
        wk = jnp.transpose(w, (1, 0, 2, 3)).reshape(3, 3 * cin, cout)
        wk = wk.astype(act_dtype)
        # Fatter K=3*Cin only where it is lane-aligned AND the MXU is 256-deep
        # (v6e/v7x); on v5-class chips the concat buys nothing.
        fold = "dy" if (cin % 128 == 0 and not _IS_V5) else "none"
        in_block = (1, hp, wp, cin)
        w_block = (3, 3 * cin, cout)

    if pool:
        assert hin % 2 == 0 and win % 2 == 0, "fused 2x2 pool needs even H, W"
        hout, wout = hin // 2, win // 2
    else:
        hout, wout = hin, win

    b2 = b.reshape(1, cout).astype(jnp.float32)

    # --- VMEM accounting (lane/sublane padded) -> row-tile height -------------
    wbufs = 1 if _BUFFERED1_OK else 2
    fixed = 2 * _block_vmem_bytes(in_block, act_bytes)
    fixed += wbufs * (_block_vmem_bytes(w_block, act_bytes)
                      + _block_vmem_bytes((1, cout), 4))
    if pad_out:
        fixed += 2 * _block_vmem_bytes((1, hout + 2, wout + 2, cout), act_bytes)
    cpad_out = _round_up(cout, 128)
    k_lhs = in_block[-1] if fold == "1x1" else 3 * cin
    per_row = win * (8 * cpad_out + _round_up(k_lhs, 128) * act_bytes)
    if not pad_out:
        per_row += 2 * win * cpad_out * act_bytes
    th = _pick_tile_h(hin, fixed, per_row, pool, _VMEM_BUDGET_BYTES, max_tile_h)
    n_t = hin // th
    th_out = th // 2 if pool else th

    if pad_out:
        out_shape = jax.ShapeDtypeStruct((n, hout + 2, wout + 2, cout), act_dtype)
        out_spec = pl.BlockSpec((1, hout + 2, wout + 2, cout),
                                lambda i, t: (i, 0, 0, 0))
        dims = ("parallel", "arbitrary")        # output revisited across tiles
    else:
        out_shape = jax.ShapeDtypeStruct((n, hout, wout, cout), act_dtype)
        out_spec = pl.BlockSpec((1, th_out, wout, cout),
                                lambda i, t: (i, t, 0, 0))
        dims = ("parallel", "parallel")         # fully independent tiles

    kernel = functools.partial(_conv3x3_kernel, th=th, pool=pool,
                               pad_out=pad_out, fold=fold,
                               aligned_store=_ALIGNED_STORE_OK)
    return pl.pallas_call(
        kernel,
        out_shape=out_shape,
        grid=(n, n_t),
        in_specs=[
            # Whole (padded / im2col'd) sample: constant along the tile axis ->
            # resident in VMEM across the row tiles, DMA'd once per sample.
            pl.BlockSpec(in_block, lambda i, t: (i, 0, 0, 0)),
            # Weights / bias: constant index -> fetched once, kept resident;
            # Buffered(1) drops the spare pipeline buffer when supported.
            _const_spec(w_block, lambda i, t: (0, 0, 0)),
            _const_spec((1, cout), lambda i, t: (0, 0)),
        ],
        out_specs=out_spec,
        compiler_params=pltpu.CompilerParams(
            dimension_semantics=dims,
            vmem_limit_bytes=_VMEM_LIMIT_BYTES),
    )(x, wk, b2)


def maxpool2x2(x):
    """Standalone padded 2x2/stride-2 max pool (non-default feature-level path)."""
    n, hp, wp, c = x.shape
    h, w = hp - 2, wp - 2
    assert h % 2 == 0 and w % 2 == 0, "2x2 pool needs even H, W"
    return pl.pallas_call(
        _maxpool2x2_kernel,
        out_shape=jax.ShapeDtypeStruct((n, h // 2 + 2, w // 2 + 2, c), x.dtype),
        grid=(n,),
        in_specs=[pl.BlockSpec((1, hp, wp, c), lambda i: (i, 0, 0, 0))],
        out_specs=pl.BlockSpec((1, h // 2 + 2, w // 2 + 2, c),
                               lambda i: (i, 0, 0, 0)),
        compiler_params=pltpu.CompilerParams(
            dimension_semantics=("parallel",),
            vmem_limit_bytes=_VMEM_LIMIT_BYTES),
    )(x)


def level_loss(f1, f2, normalize_features=True, max_tile_h=None):
    """Per-sample mean of (optionally channel-normalized) squared feature diff."""
    b, hf, wf, c = f1.shape
    act_bytes = jnp.dtype(f1.dtype).itemsize
    tl = _pick_tile_h_loss(hf, wf, c, act_bytes, max_tile_h)
    n_t = hf // tl
    kernel = functools.partial(_level_loss_kernel,
                               normalize_features=normalize_features)
    part = pl.pallas_call(
        kernel,
        out_shape=jax.ShapeDtypeStruct((b, n_t, 128), jnp.float32),
        grid=(b, n_t),
        in_specs=[pl.BlockSpec((1, tl, wf, c), lambda i, t: (i, t, 0, 0)),
                  pl.BlockSpec((1, tl, wf, c), lambda i, t: (i, t, 0, 0))],
        out_specs=pl.BlockSpec((1, n_t, 128), lambda i, t: (i, 0, 0)),
        compiler_params=pltpu.CompilerParams(
            dimension_semantics=("parallel", "arbitrary"),
            vmem_limit_bytes=_VMEM_LIMIT_BYTES),
    )(f1, f2)
    return jnp.sum(part[:, :, 0], axis=1) / float(hf * wf * c)


# ----------------------------------------------------------------------------
# Host-side 3x3 im2col for the Cin=3 first layer (single K=27 matmul in-kernel)
# ----------------------------------------------------------------------------
def _im2col_3x3(x):
    """x: (N, H, W, C) -> (N, H, W, 9*C), channel order [dx, dy, c] to match
    the flattened weight layout transpose(w, (1,0,2,3)).reshape(9*C, Cout)."""
    n, h, w, c = x.shape
    xp = jnp.pad(x, ((0, 0), (1, 1), (1, 1), (0, 0)))
    cols = []
    for dx in range(3):
        for dy in range(3):
            cols.append(xp[:, dy:dy + h, dx:dx + w, :])
    return jnp.concatenate(cols, axis=-1)


# ----------------------------------------------------------------------------
# Parameters (deterministic synthetic VGG16 slice1..slice3 weights)
# ----------------------------------------------------------------------------
_CONV_CFG = [
    ("s1c1", 3, 64), ("s1c2", 64, 64),                            # slice1
    ("s2c1", 64, 128), ("s2c2", 128, 128),                        # slice2
    ("s3c1", 128, 256), ("s3c2", 256, 256), ("s3c3", 256, 256),   # slice3
]


def init_params(key):
    params = {}
    for name, cin, cout in _CONV_CFG:
        key, kw, kb = jax.random.split(key, 3)
        scale = (2.0 / (9.0 * cin)) ** 0.5
        w = jax.random.normal(kw, (3, 3, cin, cout), jnp.float32) * scale
        b = jax.random.normal(kb, (cout,), jnp.float32) * 0.01
        params[name] = (w, b)
    return params


# ----------------------------------------------------------------------------
# Forward pass (matches PerceptualLoss.forward semantics, mask=None)
# ----------------------------------------------------------------------------
def perceptual_loss_forward(im1, im2, params, feature_levels=(3,),
                            normalize_input=True, normalize_features=True,
                            sum_channels=False, mask=None,
                            act_dtype=jnp.bfloat16, max_tile_h=None):
    """im1, im2: (B, 3, H, W) float32 (PyTorch NCHW). Returns (B,) loss."""
    if mask is not None:
        raise NotImplementedError("mask branch not implemented")  # TODO(synk)
    if sum_channels:
        raise NotImplementedError("sum_channels=True not implemented")  # TODO(synk)
    feature_levels = tuple(feature_levels)
    max_level = max(feature_levels)
    if max_level > 3:
        raise NotImplementedError("only VGG slices 1-3 are built")  # TODO(synk)
    assert im1.shape == im2.shape and im1.shape[1] == 3

    b = im1.shape[0]
    inp = jnp.concatenate([im1, im2], axis=0)          # (2B, 3, H, W)
    inp = jnp.transpose(inp, (0, 2, 3, 1))             # NCHW -> NHWC
    if normalize_input:
        mean = jnp.asarray(_MEAN_RGB, jnp.float32).reshape(1, 1, 1, 3)
        std = jnp.asarray(_STD_RGB, jnp.float32).reshape(1, 1, 1, 3)
        inp = (inp - mean) / std

    # Host-side im2col of the tiny 3-channel input -> the first layer becomes
    # one K=27 matmul per tile; every later layer's halo ring is written by the
    # producing kernel (no per-layer jnp.pad, no HBM round trips for padding).
    x27 = _im2col_3x3(inp).astype(act_dtype)

    conv = functools.partial(conv3x3_relu, max_tile_h=max_tile_h)
    feats = {}

    # ---- slice1: conv,relu,conv,relu ---------------------------------------
    x = conv(x27, *params["s1c1"], im2col=True)
    if max_level == 1:
        feats[1] = conv(x, *params["s1c2"], pad_out=False)
    elif 1 in feature_levels:
        x = conv(x, *params["s1c2"])
        feats[1] = x[:, 1:-1, 1:-1]                    # strip halo for the loss
        x = maxpool2x2(x)
    else:
        x = conv(x, *params["s1c2"], pool=True)        # fused conv+pool (default)

    # ---- slice2: (pool),conv,relu,conv,relu --------------------------------
    if max_level >= 2:
        x = conv(x, *params["s2c1"])
        if max_level == 2:
            feats[2] = conv(x, *params["s2c2"], pad_out=False)
        elif 2 in feature_levels:
            x = conv(x, *params["s2c2"])
            feats[2] = x[:, 1:-1, 1:-1]
            x = maxpool2x2(x)
        else:
            x = conv(x, *params["s2c2"], pool=True)    # fused conv+pool (default)

    # ---- slice3: (pool),conv,relu x3 ----------------------------------------
    if max_level >= 3:
        x = conv(x, *params["s3c1"])
        x = conv(x, *params["s3c2"])
        feats[3] = conv(x, *params["s3c3"], pad_out=False)

    losses = []
    for k in sorted(set(feature_levels)):
        f = feats[k]
        losses.append(level_loss(f[:b], f[b:], normalize_features,
                                 max_tile_h=max_tile_h))
    return sum(losses)


# ----------------------------------------------------------------------------
# Pure-JAX reference with matching quantization points (for validation)
# ----------------------------------------------------------------------------
def _conv_ref(x, w, b, act_dtype):
    y = jax.lax.conv_general_dilated(
        x.astype(act_dtype), w.astype(act_dtype), (1, 1), "SAME",
        dimension_numbers=("NHWC", "HWIO", "NHWC"),
        preferred_element_type=jnp.float32)
    return jnp.maximum(y + b.astype(jnp.float32), 0.0)          # f32


def _pool_ref(y):
    return jax.lax.reduce_window(y, -jnp.inf, jax.lax.max,
                                 (1, 2, 2, 1), (1, 2, 2, 1), "VALID")


def reference_forward(im1, im2, params, feature_levels=(3,),
                      normalize_input=True, normalize_features=True,
                      act_dtype=jnp.bfloat16):
    feature_levels = tuple(feature_levels)
    b = im1.shape[0]
    inp = jnp.transpose(jnp.concatenate([im1, im2], 0), (0, 2, 3, 1))
    if normalize_input:
        mean = jnp.asarray(_MEAN_RGB, jnp.float32).reshape(1, 1, 1, 3)
        std = jnp.asarray(_STD_RGB, jnp.float32).reshape(1, 1, 1, 3)
        inp = (inp - mean) / std
    x = inp.astype(act_dtype)

    feats = {}
    y = _conv_ref(x, *params["s1c1"], act_dtype)
    y = _conv_ref(y.astype(act_dtype), *params["s1c2"], act_dtype)
    feats[1] = y.astype(act_dtype)
    y = _conv_ref(_pool_ref(y).astype(act_dtype), *params["s2c1"], act_dtype)
    y = _conv_ref(y.astype(act_dtype), *params["s2c2"], act_dtype)
    feats[2] = y.astype(act_dtype)
    y = _conv_ref(_pool_ref(y).astype(act_dtype), *params["s3c1"], act_dtype)
    y = _conv_ref(y.astype(act_dtype), *params["s3c2"], act_dtype)
    y = _conv_ref(y.astype(act_dtype), *params["s3c3"], act_dtype)
    feats[3] = y.astype(act_dtype)

    losses = []
    for k in sorted(set(feature_levels)):
        f = feats[k]
        f1 = f[:b].astype(jnp.float32)
        f2 = f[b:].astype(jnp.float32)
        if normalize_features:
            n1 = jnp.sqrt(jnp.sum(f1 * f1, axis=-1, keepdims=True))
            n2 = jnp.sqrt(jnp.sum(f2 * f2, axis=-1, keepdims=True))
            f1 = f1 / (n1 + 1e-10)
            f2 = f2 / (n2 + 1e-10)
        d = (f1 - f2) ** 2
        losses.append(jnp.mean(d.reshape(b, -1), axis=1))
    return sum(losses)


# ----------------------------------------------------------------------------
if __name__ == "__main__":
    key = jax.random.PRNGKey(0)
    kp, k1, k2 = jax.random.split(key, 3)
    params = init_params(kp)

    # small shapes: batch=2, 3-channel RGB, 16x16 spatial
    im1 = jax.random.uniform(k1, (2, 3, 16, 16), jnp.float32)
    im2 = jax.random.uniform(k2, (2, 3, 16, 16), jnp.float32)

    # max_tile_h=2 forces multi-row-tile grids even at this toy resolution so
    # the tiled paths (halo-row zeroing, aligned full-width stores, fused pool,
    # per-tile loss partial sums) are exercised; production leaves it None.
    fwd = jax.jit(functools.partial(perceptual_loss_forward, max_tile_h=2))
    out = jax.block_until_ready(fwd(im1, im2, params))

    ref = jax.block_until_ready(reference_forward(im1, im2, params))

    assert out.shape == (2,), out.shape
    assert bool(jnp.all(jnp.isfinite(out)))
    np.testing.assert_allclose(np.asarray(out), np.asarray(ref),
                               rtol=1e-2, atol=1e-4)
    print("KERNEL_OK")
</pallas_src>

<mosaic_0001>
module attributes {stable_mosaic.version = 11 : i64} {
  func.func @k(%arg0: i32, %arg1: memref<8x128xf32, #tpu.memory_space<vmem>>, %arg2: memref<8x128xf32, #tpu.memory_space<vmem>>) attributes {dimension_semantics = [#tpu.dimension_semantics<arbitrary>], iteration_bounds = array<i64: 1>, scalar_prefetch = 0 : i64, scratch_operands = 0 : i64, tpu.core_type = #tpu.core_type<tc>, window_params = [{pipeline_mode = #tpu.pipeline_mode<synchronous>, transform_indices = @transform_0, window_bounds = array<i64: 8, 128>}, {pipeline_mode = #tpu.pipeline_mode<synchronous>, transform_indices = @transform_1, window_bounds = array<i64: 8, 128>}]} {
    %c0 = arith.constant 0 : index
    %c0_0 = arith.constant 0 : index
    %0 = vector.load %arg1[%c0, %c0_0] : memref<8x128xf32, #tpu.memory_space<vmem>>, vector<8x128xf32>
    %cst = arith.constant 1.000000e+00 : f32
    %1 = vector.broadcast %cst : f32 to vector<8x128xf32>
    %2 = arith.addf %0, %1 : vector<8x128xf32>
    %c0_1 = arith.constant 0 : index
    %c0_2 = arith.constant 0 : index
    %3 = vector.load %arg2[%c0_1, %c0_2] : memref<8x128xf32, #tpu.memory_space<vmem>>, vector<8x128xf32>
    tpu.vector_store %arg2[%c0_1, %c0_2], %2 {strides = array<i32>} : memref<8x128xf32, #tpu.memory_space<vmem>>, vector<8x128xf32>,
    return
  }
  func.func @transform_0(%arg0: i32) -> (i32, i32) {
    %c0_i32 = arith.constant 0 : i32
    %c0_i32_0 = arith.constant 0 : i32
    %c0_i32_1 = arith.constant 0 : i32
    return %c0_i32, %c0_i32_0 : i32, i32
  }
  func.func @transform_1(%arg0: i32) -> (i32, i32) {
    %c0_i32 = arith.constant 0 : i32
    %c0_i32_0 = arith.constant 0 : i32
    %c0_i32_1 = arith.constant 0 : i32
    return %c0_i32, %c0_i32_0 : i32, i32
  }
}

module attributes {stable_mosaic.version = 11 : i64} {
  func.func @k(%arg0: memref<8x8x128xbf16, #tpu.memory_space<vmem>>, %arg1: memref<8x8x128xbf16, #tpu.memory_space<vmem>>) attributes {dimension_semantics = [], scalar_prefetch = 0 : i64, scratch_operands = 0 : i64, tpu.core_type = #tpu.core_type<tc>} {
    %c0 = arith.constant 0 : index
    %c0_0 = arith.constant 0 : index
    %c0_1 = arith.constant 0 : index
    %0 = vector.load %arg0[%c0, %c0_0, %c0_1] : memref<8x8x128xbf16, #tpu.memory_space<vmem>>, vector<8x6x128xbf16>
    %1 = arith.extf %0 : vector<8x6x128xbf16> to vector<8x6x128xf32>
    %cst = arith.constant 0.000000e+00 : f32
    %2 = vector.broadcast %cst : f32 to vector<8x1x128xf32>
    %3 = tpu.concatenate %2, %1, %2 in 1 : vector<8x1x128xf32>, vector<8x6x128xf32>, vector<8x1x128xf32> -> vector<8x8x128xf32>
    %4 = arith.truncf %3 : vector<8x8x128xf32> to vector<8x8x128xbf16>
    %c0_2 = arith.constant 0 : index
    %c0_3 = arith.constant 0 : index
    %c0_4 = arith.constant 0 : index
    %5 = vector.load %arg1[%c0_2, %c0_3, %c0_4] : memref<8x8x128xbf16, #tpu.memory_space<vmem>>, vector<8x8x128xbf16>
    tpu.vector_store %arg1[%c0_2, %c0_3, %c0_4], %4 {strides = array<i32>} : memref<8x8x128xbf16, #tpu.memory_space<vmem>>, vector<8x8x128xbf16>,
    return
  }
}

module attributes {stable_mosaic.version = 11 : i64} {
  func.func @_conv3x3_kernel(%arg0: i32, %arg1: i32, %arg2: memref<1x16x16x27xbf16, #tpu.memory_space<vmem>>, %arg3: memref<1x27x64xbf16, #tpu.memory_space<vmem>>, %arg4: memref<1x64xf32, #tpu.memory_space<vmem>>, %arg5: memref<1x18x18x64xbf16, #tpu.memory_space<vmem>>) attributes {dimension_semantics = [#tpu.dimension_semantics<parallel>, #tpu.dimension_semantics<arbitrary>], iteration_bounds = array<i64: 4, 8>, scalar_prefetch = 0 : i64, scratch_operands = 0 : i64, tpu.core_type = #tpu.core_type<tc>, window_params = [{transform_indices = @transform_0, window_bounds = array<i64: 1, 16, 16, 27>}, {pipeline_mode = #tpu.pipeline_mode<synchronous>, transform_indices = @transform_1, window_bounds = array<i64: 1, 27, 64>}, {pipeline_mode = #tpu.pipeline_mode<synchronous>, transform_indices = @transform_2, window_bounds = array<i64: 1, 64>}, {transform_indices = @transform_3, window_bounds = array<i64: 1, 18, 18, 64>}]} {
    %c2_i32 = arith.constant 2 : i32
    %0 = arith.muli %arg1, %c2_i32 : i32
    %1 = tpu.assume_multiple %0, 2 : i32
    %c0 = arith.constant 0 : index
    %2 = arith.index_cast %1 : i32 to index
    %c0_0 = arith.constant 0 : index
    %c0_1 = arith.constant 0 : index
    %3 = vector.load %arg2[%c0, %2, %c0_0, %c0_1] : memref<1x16x16x27xbf16, #tpu.memory_space<vmem>>, vector<1x2x16x27xbf16>
    %4 = vector.shape_cast %3 : vector<1x2x16x27xbf16> to vector<2x16x27xbf16>
    %5 = vector.shape_cast %4 : vector<2x16x27xbf16> to vector<32x27xbf16>
    %c0_2 = arith.constant 0 : index
    %c0_3 = arith.constant 0 : index
    %c0_4 = arith.constant 0 : index
    %6 = vector.load %arg3[%c0_2, %c0_3, %c0_4] : memref<1x27x64xbf16, #tpu.memory_space<vmem>>, vector<1x27x64xbf16>
    %7 = vector.shape_cast %6 : vector<1x27x64xbf16> to vector<27x64xbf16>
    %cst = arith.constant dense<0.000000e+00> : vector<32x64xf32>
    %8 = tpu.matmul %5, %7, %cst {dimension_numbers = #tpu.dot_dimension_numbers<[1], [0], [0], [1], [0, 0, 1, 1], [], []>} : vector<32x27xbf16>, vector<27x64xbf16>, vector<32x64xf32> -> vector<32x64xf32>
    %c0_5 = arith.constant 0 : index
    %c0_6 = arith.constant 0 : index
    %9 = vector.load %arg4[%c0_5, %c0_6] : memref<1x64xf32, #tpu.memory_space<vmem>>, vector<1x64xf32>
    %10 = vector.broadcast %9 : vector<1x64xf32> to vector<32x64xf32>
    %11 = arith.addf %8, %10 : vector<32x64xf32>
    %cst_7 = arith.constant 0.000000e+00 : f32
    %12 = vector.broadcast %cst_7 : f32 to vector<32x64xf32>
    %13 = arith.maximumf %11, %12 : vector<32x64xf32>
    %14 = vector.shape_cast %13 : vector<32x64xf32> to vector<2x16x64xf32>
    %c0_i32 = arith.constant 0 : i32
    %15 = arith.cmpi eq, %arg1, %c0_i32 : i32
    %16 = arith.extui %15 : i1 to i32
    %c0_i32_8 = arith.constant 0 : i32
    %17 = arith.cmpi ne, %16, %c0_i32_8 : i32
    scf.if %17 {
      %cst_12 = arith.constant 0.000000e+00 : bf16
      %25 = vector.broadcast %cst_12 : bf16 to vector<1x18x18x64xbf16>
      %c0_13 = arith.constant 0 : index
      %c0_14 = arith.constant 0 : index
      %c0_15 = arith.constant 0 : index
      %c0_16 = arith.constant 0 : index
      %26 = vector.load %arg5[%c0_13, %c0_14, %c0_15, %c0_16] : memref<1x18x18x64xbf16, #tpu.memory_space<vmem>>, vector<1x18x18x64xbf16>
      tpu.vector_store %arg5[%c0_13, %c0_14, %c0_15, %c0_16], %25 {strides = array<i32>} : memref<1x18x18x64xbf16, #tpu.memory_space<vmem>>, vector<1x18x18x64xbf16>,
    } else {
    }
    %18 = arith.truncf %14 : vector<2x16x64xf32> to vector<2x16x64xbf16>
    %c2_i32_9 = arith.constant 2 : i32
    %19 = arith.muli %arg1, %c2_i32_9 : i32
    %c1_i32 = arith.constant 1 : i32
    %20 = arith.addi %19, %c1_i32 : i32
    %c0_10 = arith.constant 0 : index
    %21 = arith.index_cast %20 : i32 to index
    %c1 = arith.constant 1 : index
    %c0_11 = arith.constant 0 : index
    %22 = vector.load %arg5[%c0_10, %21, %c1, %c0_11] : memref<1x18x18x64xbf16, #tpu.memory_space<vmem>>, vector<1x2x16x64xbf16>
    %23 = vector.shape_cast %22 : vector<1x2x16x64xbf16> to vector<2x16x64xbf16>
    %24 = vector.shape_cast %18 : vector<2x16x64xbf16> to vector<1x2x16x64xbf16>
    tpu.vector_store %arg5[%c0_10, %21, %c1, %c0_11], %24 {strides = array<i32>} : memref<1x18x18x64xbf16, #tpu.memory_space<vmem>>, vector<1x2x16x64xbf16>,
    return
  }
  func.func @transform_0(%arg0: i32, %arg1: i32) -> (i32, i32, i32, i32) {
    %c0_i32 = arith.constant 0 : i32
    %c0_i32_0 = arith.constant 0 : i32
    %c0_i32_1 = arith.constant 0 : i32
    %c0_i32_2 = arith.constant 0 : i32
    return %arg0, %c0_i32, %c0_i32_0, %c0_i32_1 : i32, i32, i32, i32
  }
  func.func @transform_1(%arg0: i32, %arg1: i32) -> (i32, i32, i32) {
    %c0_i32 = arith.constant 0 : i32
    %c0_i32_0 = arith.constant 0 : i32
    %c0_i32_1 = arith.constant 0 : i32
    %c0_i32_2 = arith.constant 0 : i32
    return %c0_i32, %c0_i32_0, %c0_i32_1 : i32, i32, i32
  }
  func.func @transform_2(%arg0: i32, %arg1: i32) -> (i32, i32) {
    %c0_i32 = arith.constant 0 : i32
    %c0_i32_0 = arith.constant 0 : i32
    %c0_i32_1 = arith.constant 0 : i32
    return %c0_i32, %c0_i32_0 : i32, i32
  }
  func.func @transform_3(%arg0: i32, %arg1: i32) -> (i32, i32, i32, i32) {
    %c0_i32 = arith.constant 0 : i32
    %c0_i32_0 = arith.constant 0 : i32
    %c0_i32_1 = arith.constant 0 : i32
    %c0_i32_2 = arith.constant 0 : i32
    return %arg0, %c0_i32, %c0_i32_0, %c0_i32_1 : i32, i32, i32, i32
  }
}

module attributes {stable_mosaic.version = 11 : i64} {
  func.func @_conv3x3_kernel(%arg0: i32, %arg1: i32, %arg2: memref<1x18x18x64xbf16, #tpu.memory_space<vmem>>, %arg3: memref<3x192x64xbf16, #tpu.memory_space<vmem>>, %arg4: memref<1x64xf32, #tpu.memory_space<vmem>>, %arg5: memref<1x10x10x64xbf16, #tpu.memory_space<vmem>>) attributes {dimension_semantics = [#tpu.dimension_semantics<parallel>, #tpu.dimension_semantics<arbitrary>], iteration_bounds = array<i64: 4, 8>, scalar_prefetch = 0 : i64, scratch_operands = 0 : i64, tpu.core_type = #tpu.core_type<tc>, window_params = [{transform_indices = @transform_0, window_bounds = array<i64: 1, 18, 18, 64>}, {pipeline_mode = #tpu.pipeline_mode<synchronous>, transform_indices = @transform_1, window_bounds = array<i64: 3, 192, 64>}, {pipeline_mode = #tpu.pipeline_mode<synchronous>, transform_indices = @transform_2, window_bounds = array<i64: 1, 64>}, {transform_indices = @transform_3, window_bounds = array<i64: 1, 10, 10, 64>}]} {
    %c2_i32 = arith.constant 2 : i32
    %0 = arith.muli %arg1, %c2_i32 : i32
    %1 = tpu.assume_multiple %0, 2 : i32
    %c0_i32 = arith.constant 0 : i32
    %2 = arith.addi %1, %c0_i32 : i32
    %c0 = arith.constant 0 : index
    %3 = arith.index_cast %2 : i32 to index
    %c0_0 = arith.constant 0 : index
    %c0_1 = arith.constant 0 : index
    %4 = vector.load %arg2[%c0, %3, %c0_0, %c0_1] : memref<1x18x18x64xbf16, #tpu.memory_space<vmem>>, vector<1x2x16x64xbf16>
    %5 = vector.shape_cast %4 : vector<1x2x16x64xbf16> to vector<2x16x64xbf16>
    %6 = vector.shape_cast %5 : vector<2x16x64xbf16> to vector<32x64xbf16>
    %c0_2 = arith.constant 0 : index
    %c0_3 = arith.constant 0 : index
    %c0_4 = arith.constant 0 : index
    %7 = vector.load %arg3[%c0_2, %c0_3, %c0_4] : memref<3x192x64xbf16, #tpu.memory_space<vmem>>, vector<1x64x64xbf16>
    %8 = vector.shape_cast %7 : vector<1x64x64xbf16> to vector<64x64xbf16>
    %cst = arith.constant dense<0.000000e+00> : vector<32x64xf32>
    %9 = tpu.matmul %6, %8, %cst {dimension_numbers = #tpu.dot_dimension_numbers<[1], [0], [0], [1], [0, 0, 1, 1], [], []>} : vector<32x64xbf16>, vector<64x64xbf16>, vector<32x64xf32> -> vector<32x64xf32>
    %c1_i32 = arith.constant 1 : i32
    %10 = arith.addi %1, %c1_i32 : i32
    %c0_5 = arith.constant 0 : index
    %11 = arith.index_cast %10 : i32 to index
    %c0_6 = arith.constant 0 : index
    %c0_7 = arith.constant 0 : index
    %12 = vector.load %arg2[%c0_5, %11, %c0_6, %c0_7] : memref<1x18x18x64xbf16, #tpu.memory_space<vmem>>, vector<1x2x16x64xbf16>
    %13 = vector.shape_cast %12 : vector<1x2x16x64xbf16> to vector<2x16x64xbf16>
    %14 = vector.shape_cast %13 : vector<2x16x64xbf16> to vector<32x64xbf16>
    %c0_8 = arith.constant 0 : index
    %c64 = arith.constant 64 : index
    %c0_9 = arith.constant 0 : index
    %15 = vector.load %arg3[%c0_8, %c64, %c0_9] : memref<3x192x64xbf16, #tpu.memory_space<vmem>>, vector<1x64x64xbf16>
    %16 = vector.shape_cast %15 : vector<1x64x64xbf16> to vector<64x64xbf16>
    %cst_10 = arith.constant dense<0.000000e+00> : vector<32x64xf32>
    %17 = tpu.matmul %14, %16, %cst_10 {dimension_numbers = #tpu.dot_dimension_numbers<[1], [0], [0], [1], [0, 0, 1, 1], [], []>} : vector<32x64xbf16>, vector<64x64xbf16>, vector<32x64xf32> -> vector<32x64xf32>
    %18 = arith.addf %9, %17 : vector<32x64xf32>
    %c2_i32_11 = arith.constant 2 : i32
    %19 = arith.addi %1, %c2_i32_11 : i32
    %c0_12 = arith.constant 0 : index
    %20 = arith.index_cast %19 : i32 to index
    %c0_13 = arith.constant 0 : index
    %c0_14 = arith.constant 0 : index
    %21 = vector.load %arg2[%c0_12, %20, %c0_13, %c0_14] : memref<1x18x18x64xbf16, #tpu.memory_space<vmem>>, vector<1x2x16x64xbf16>
    %22 = vector.shape_cast %21 : vector<1x2x16x64xbf16> to vector<2x16x64xbf16>
    %23 = vector.shape_cast %22 : vector<2x16x64xbf16> to vector<32x64xbf16>
    %c0_15 = arith.constant 0 : index
    %c128 = arith.constant 128 : index
    %c0_16 = arith.constant 0 : index
    %24 = vector.load %arg3[%c0_15, %c128, %c0_16] : memref<3x192x64xbf16, #tpu.memory_space<vmem>>, vector<1x64x64xbf16>
    %25 = vector.shape_cast %24 : vector<1x64x64xbf16> to vector<64x64xbf16>
    %cst_17 = arith.constant dense<0.000000e+00> : vector<32x64xf32>
    %26 = tpu.matmul %23, %25, %cst_17 {dimension_numbers = #tpu.dot_dimension_numbers<[1], [0], [0], [1], [0, 0, 1, 1], [], []>} : vector<32x64xbf16>, vector<64x64xbf16>, vector<32x64xf32> -> vector<32x64xf32>
    %27 = arith.addf %18, %26 : vector<32x64xf32>
    %c0_i32_18 = arith.constant 0 : i32
    %28 = arith.addi %1, %c0_i32_18 : i32
    %c0_19 = arith.constant 0 : index
    %29 = arith.index_cast %28 : i32 to index
    %c1 = arith.constant 1 : index
    %c0_20 = arith.constant 0 : index
    %30 = vector.load %arg2[%c0_19, %29, %c1, %c0_20] : memref<1x18x18x64xbf16, #tpu.memory_space<vmem>>, vector<1x2x16x64xbf16>
    %31 = vector.shape_cast %30 : vector<1x2x16x64xbf16> to vector<2x16x64xbf16>
    %32 = vector.shape_cast %31 : vector<2x16x64xbf16> to vector<32x64xbf16>
    %c1_21 = arith.constant 1 : index
    %c0_22 = arith.constant 0 : index
    %c0_23 = arith.constant 0 : index
    %33 = vector.load %arg3[%c1_21, %c0_22, %c0_23] : memref<3x192x64xbf16, #tpu.memory_space<vmem>>, vector<1x64x64xbf16>
    %34 = vector.shape_cast %33 : vector<1x64x64xbf16> to vector<64x64xbf16>
    %cst_24 = arith.constant dense<0.000000e+00> : vector<32x64xf32>
    %35 = tpu.matmul %32, %34, %cst_24 {dimension_numbers = #tpu.dot_dimension_numbers<[1], [0], [0], [1], [0, 0, 1, 1], [], []>} : vector<32x64xbf16>, vector<64x64xbf16>, vector<32x64xf32> -> vector<32x64xf32>
    %36 = arith.addf %27, %35 : vector<32x64xf32>
    %c1_i32_25 = arith.constant 1 : i32
    %37 = arith.addi %1, %c1_i32_25 : i32
    %c0_26 = arith.constant 0 : index
    %38 = arith.index_cast %37 : i32 to index
    %c1_27 = arith.constant 1 : index
    %c0_28 = arith.constant 0 : index
    %39 = vector.load %arg2[%c0_26, %38, %c1_27, %c0_28] : memref<1x18x18x64xbf16, #tpu.memory_space<vmem>>, vector<1x2x16x64xbf16>
    %40 = vector.shape_cast %39 : vector<1x2x16x64xbf16> to vector<2x16x64xbf16>
    %41 = vector.shape_cast %40 : vector<2x16x64xbf16> to vector<32x64xbf16>
    %c1_29 = arith.constant 1 : index
    %c64_30 = arith.constant 64 : index
    %c0_31 = arith.constant 0 : index
    %42 = vector.load %arg3[%c1_29, %c64_30, %c0_31] : memref<3x192x64xbf16, #tpu.memory_space<vmem>>, vector<1x64x64xbf16>
    %43 = vector.shape_cast %42 : vector<1x64x64xbf16> to vector<64x64xbf16>
    %cst_32 = arith.constant dense<0.000000e+00> : vector<32x64xf32>
    %44 = tpu.matmul %41, %43, %cst_32 {dimension_numbers = #tpu.dot_dimension_numbers<[1], [0], [0], [1], [0, 0, 1, 1], [], []>} : vector<32x64xbf16>, vector<64x64xbf16>, vector<32x64xf32> -> vector<32x64xf32>
    %45 = arith.addf %36, %44 : vector<32x64xf32>
    %c2_i32_33 = arith.constant 2 : i32
    %46 = arith.addi %1, %c2_i32_33 : i32
    %c0_34 = arith.constant 0 : index
    %47 = arith.index_cast %46 : i32 to index
    %c1_35 = arith.constant 1 : index
    %c0_36 = arith.constant 0 : index
    %48 = vector.load %arg2[%c0_34, %47, %c1_35, %c0_36] : memref<1x18x18x64xbf16, #tpu.memory_space<vmem>>, vector<1x2x16x64xbf16>
    %49 = vector.shape_cast %48 : vector<1x2x16x64xbf16> to vector<2x16x64xbf16>
    %50 = vector.shape_cast %49 : vector<2x16x64xbf16> to vector<32x64xbf16>
    %c1_37 = arith.constant 1 : index
    %c128_38 = arith.constant 128 : index
    %c0_39 = arith.constant 0 : index
    %51 = vector.load %arg3[%c1_37, %c128_38, %c0_39] : memref<3x192x64xbf16, #tpu.memory_space<vmem>>, vector<1x64x64xbf16>
    %52 = vector.shape_cast %51 : vector<1x64x64xbf16> to vector<64x64xbf16>
    %cst_40 = arith.constant dense<0.000000e+00> : vector<32x64xf32>
    %53 = tpu.matmul %50, %52, %cst_40 {dimension_numbers = #tpu.dot_dimension_numbers<[1], [0], [0], [1], [0, 0, 1, 1], [], []>} : vector<32x64xbf16>, vector<64x64xbf16>, vector<32x64xf32> -> vector<32x64xf32>
    %54 = arith.addf %45, %53 : vector<32x64xf32>
    %c0_i32_41 = arith.constant 0 : i32
    %55 = arith.addi %1, %c0_i32_41 : i32
    %c0_42 = arith.constant 0 : index
    %56 = arith.index_cast %55 : i32 to index
    %c2 = arith.constant 2 : index
    %c0_43 = arith.constant 0 : index
    %57 = vector.load %arg2[%c0_42, %56, %c2, %c0_43] : memref<1x18x18x64xbf16, #tpu.memory_space<vmem>>, vector<1x2x16x64xbf16>
    %58 = vector.shape_cast %57 : vector<1x2x16x64xbf16> to vector<2x16x64xbf16>
    %59 = vector.shape_cast %58 : vector<2x16x64xbf16> to vector<32x64xbf16>
    %c2_44 = arith.constant 2 : index
    %c0_45 = arith.constant 0 : index
    %c0_46 = arith.constant 0 : index
    %60 = vector.load %arg3[%c2_44, %c0_45, %c0_46] : memref<3x192x64xbf16, #tpu.memory_space<vmem>>, vector<1x64x64xbf16>
    %61 = vector.shape_cast %60 : vector<1x64x64xbf16> to vector<64x64xbf16>
    %cst_47 = arith.constant dense<0.000000e+00> : vector<32x64xf32>
    %62 = tpu.matmul %59, %61, %cst_47 {dimension_numbers = #tpu.dot_dimension_numbers<[1], [0], [0], [1], [0, 0, 1, 1], [], []>} : vector<32x64xbf16>, vector<64x64xbf16>, vector<32x64xf32> -> vector<32x64xf32>
    %63 = arith.addf %54, %62 : vector<32x64xf32>
    %c1_i32_48 = arith.constant 1 : i32
    %64 = arith.addi %1, %c1_i32_48 : i32
    %c0_49 = arith.constant 0 : index
    %65 = arith.index_cast %64 : i32 to index
    %c2_50 = arith.constant 2 : index
    %c0_51 = arith.constant 0 : index
    %66 = vector.load %arg2[%c0_49, %65, %c2_50, %c0_51] : memref<1x18x18x64xbf16, #tpu.memory_space<vmem>>, vector<1x2x16x64xbf16>
    %67 = vector.shape_cast %66 : vector<1x2x16x64xbf16> to vector<2x16x64xbf16>
    %68 = vector.shape_cast %67 : vector<2x16x64xbf16> to vector<32x64xbf16>
    %c2_52 = arith.constant 2 : index
    %c64_53 = arith.constant 64 : index
    %c0_54 = arith.constant 0 : index
    %69 = vector.load %arg3[%c2_52, %c64_53, %c0_54] : memref<3x192x64xbf16, #tpu.memory_space<vmem>>, vector<1x64x64xbf16>
    %70 = vector.shape_cast %69 : vector<1x64x64xbf16> to vector<64x64xbf16>
    %cst_55 = arith.constant dense<0.000000e+00> : vector<32x64xf32>
    %71 = tpu.matmul %68, %70, %cst_55 {dimension_numbers = #tpu.dot_dimension_numbers<[1], [0], [0], [1], [0, 0, 1, 1], [], []>} : vector<32x64xbf16>, vector<64x64xbf16>, vector<32x64xf32> -> vector<32x64xf32>
    %72 = arith.addf %63, %71 : vector<32x64xf32>
    %c2_i32_56 = arith.constant 2 : i32
    %73 = arith.addi %1, %c2_i32_56 : i32
    %c0_57 = arith.constant 0 : index
    %74 = arith.index_cast %73 : i32 to index
    %c2_58 = arith.constant 2 : index
    %c0_59 = arith.constant 0 : index
    %75 = vector.load %arg2[%c0_57, %74, %c2_58, %c0_59] : memref<1x18x18x64xbf16, #tpu.memory_space<vmem>>, vector<1x2x16x64xbf16>
    %76 = vector.shape_cast %75 : vector<1x2x16x64xbf16> to vector<2x16x64xbf16>
    %77 = vector.shape_cast %76 : vector<2x16x64xbf16> to vector<32x64xbf16>
    %c2_60 = arith.constant 2 : index
    %c128_61 = arith.constant 128 : index
    %c0_62 = arith.constant 0 : index
    %78 = vector.load %arg3[%c2_60, %c128_61, %c0_62] : memref<3x192x64xbf16, #tpu.memory_space<vmem>>, vector<1x64x64xbf16>
    %79 = vector.shape_cast %78 : vector<1x64x64xbf16> to vector<64x64xbf16>
    %cst_63 = arith.constant dense<0.000000e+00> : vector<32x64xf32>
    %80 = tpu.matmul %77, %79, %cst_63 {dimension_numbers = #tpu.dot_dimension_numbers<[1], [0], [0], [1], [0, 0, 1, 1], [], []>} : vector<32x64xbf16>, vector<64x64xbf16>, vector<32x64xf32> -> vector<32x64xf32>
    %81 = arith.addf %72, %80 : vector<32x64xf32>
    %c0_64 = arith.constant 0 : index
    %c0_65 = arith.constant 0 : index
    %82 = vector.load %arg4[%c0_64, %c0_65] : memref<1x64xf32, #tpu.memory_space<vmem>>, vector<1x64xf32>
    %83 = vector.broadcast %82 : vector<1x64xf32> to vector<32x64xf32>
    %84 = arith.addf %81, %83 : vector<32x64xf32>
    %cst_66 = arith.constant 0.000000e+00 : f32
    %85 = vector.broadcast %cst_66 : f32 to vector<32x64xf32>
    %86 = arith.maximumf %84, %85 : vector<32x64xf32>
    %87 = vector.shape_cast %86 : vector<32x64xf32> to vector<2x16x64xf32>
    %88 = vector.shape_cast %87 : vector<2x16x64xf32> to vector<1x2x16x64xf32>
    %cst_67 = arith.constant dense<0xFF800000> : vector<1x16x64xf32>
    %89 = vector.multi_reduction <maximumf>, %88, %cst_67 [1] : vector<1x2x16x64xf32> to vector<1x16x64xf32>
    %90 = vector.shape_cast %89 : vector<1x16x64xf32> to vector<1x8x2x64xf32>
    %cst_68 = arith.constant dense<0xFF800000> : vector<1x8x64xf32>
    %91 = vector.multi_reduction <maximumf>, %90, %cst_68 [2] : vector<1x8x2x64xf32> to vector<1x8x64xf32>
    %c0_i32_69 = arith.constant 0 : i32
    %92 = arith.cmpi eq, %arg1, %c0_i32_69 : i32
    %93 = arith.extui %92 : i1 to i32
    %c0_i32_70 = arith.constant 0 : i32
    %94 = arith.cmpi ne, %93, %c0_i32_70 : i32
    scf.if %94 {
      %cst_76 = arith.constant 0.000000e+00 : bf16
      %102 = vector.broadcast %cst_76 : bf16 to vector<1x10x10x64xbf16>
      %c0_77 = arith.constant 0 : index
      %c0_78 = arith.constant 0 : index
      %c0_79 = arith.constant 0 : index
      %c0_80 = arith.constant 0 : index
      %103 = vector.load %arg5[%c0_77, %c0_78, %c0_79, %c0_80] : memref<1x10x10x64xbf16, #tpu.memory_space<vmem>>, vector<1x10x10x64xbf16>
      tpu.vector_store %arg5[%c0_77, %c0_78, %c0_79, %c0_80], %102 {strides = array<i32>} : memref<1x10x10x64xbf16, #tpu.memory_space<vmem>>, vector<1x10x10x64xbf16>,
    } else {
    }
    %95 = arith.truncf %91 : vector<1x8x64xf32> to vector<1x8x64xbf16>
    %c1_i32_71 = arith.constant 1 : i32
    %96 = arith.muli %arg1, %c1_i32_71 : i32
    %c1_i32_72 = arith.constant 1 : i32
    %97 = arith.addi %96, %c1_i32_72 : i32
    %c0_73 = arith.constant 0 : index
    %98 = arith.index_cast %97 : i32 to index
    %c1_74 = arith.constant 1 : index
    %c0_75 = arith.constant 0 : index
    %99 = vector.load %arg5[%c0_73, %98, %c1_74, %c0_75] : memref<1x10x10x64xbf16, #tpu.memory_space<vmem>>, vector<1x1x8x64xbf16>
    %100 = vector.shape_cast %99 : vector<1x1x8x64xbf16> to vector<1x8x64xbf16>
    %101 = vector.shape_cast %95 : vector<1x8x64xbf16> to vector<1x1x8x64xbf16>
    tpu.vector_store %arg5[%c0_73, %98, %c1_74, %c0_75], %101 {strides = array<i32>} : memref<1x10x10x64xbf16, #tpu.memory_space<vmem>>, vector<1x1x8x64xbf16>,
    return
  }
  func.func @transform_0(%arg0: i32, %arg1: i32) -> (i32, i32, i32, i32) {
    %c0_i32 = arith.constant 0 : i32
    %c0_i32_0 = arith.constant 0 : i32
    %c0_i32_1 = arith.constant 0 : i32
    %c0_i32_2 = arith.constant 0 : i32
    return %arg0, %c0_i32, %c0_i32_0, %c0_i32_1 : i32, i32, i32, i32
  }
  func.func @transform_1(%arg0: i32, %arg1: i32) -> (i32, i32, i32) {
    %c0_i32 = arith.constant 0 : i32
    %c0_i32_0 = arith.constant 0 : i32
    %c0_i32_1 = arith.constant 0 : i32
    %c0_i32_2 = arith.constant 0 : i32
    return %c0_i32, %c0_i32_0, %c0_i32_1 : i32, i32, i32
  }
  func.func @transform_2(%arg0: i32, %arg1: i32) -> (i32, i32) {
    %c0_i32 = arith.constant 0 : i32
    %c0_i32_0 = arith.constant 0 : i32
    %c0_i32_1 = arith.constant 0 : i32
    return %c0_i32, %c0_i32_0 : i32, i32
  }
  func.func @transform_3(%arg0: i32, %arg1: i32) -> (i32, i32, i32, i32) {
    %c0_i32 = arith.constant 0 : i32
    %c0_i32_0 = arith.constant 0 : i32
    %c0_i32_1 = arith.constant 0 : i32
    %c0_i32_2 = arith.constant 0 : i32
    return %arg0, %c0_i32, %c0_i32_0, %c0_i32_1 : i32, i32, i32, i32
  }
}

module attributes {stable_mosaic.version = 11 : i64} {
  func.func @_conv3x3_kernel(%arg0: i32, %arg1: i32, %arg2: memref<1x10x10x64xbf16, #tpu.memory_space<vmem>>, %arg3: memref<3x192x128xbf16, #tpu.memory_space<vmem>>, %arg4: memref<1x128xf32, #tpu.memory_space<vmem>>, %arg5: memref<1x10x10x128xbf16, #tpu.memory_space<vmem>>) attributes {dimension_semantics = [#tpu.dimension_semantics<parallel>, #tpu.dimension_semantics<arbitrary>], iteration_bounds = array<i64: 4, 4>, scalar_prefetch = 0 : i64, scratch_operands = 0 : i64, tpu.core_type = #tpu.core_type<tc>, window_params = [{transform_indices = @transform_0, window_bounds = array<i64: 1, 10, 10, 64>}, {pipeline_mode = #tpu.pipeline_mode<synchronous>, transform_indices = @transform_1, window_bounds = array<i64: 3, 192, 128>}, {pipeline_mode = #tpu.pipeline_mode<synchronous>, transform_indices = @transform_2, window_bounds = array<i64: 1, 128>}, {transform_indices = @transform_3, window_bounds = array<i64: 1, 10, 10, 128>}]} {
    %c2_i32 = arith.constant 2 : i32
    %0 = arith.muli %arg1, %c2_i32 : i32
    %1 = tpu.assume_multiple %0, 2 : i32
    %c0_i32 = arith.constant 0 : i32
    %2 = arith.addi %1, %c0_i32 : i32
    %c0 = arith.constant 0 : index
    %3 = arith.index_cast %2 : i32 to index
    %c0_0 = arith.constant 0 : index
    %c0_1 = arith.constant 0 : index
    %4 = vector.load %arg2[%c0, %3, %c0_0, %c0_1] : memref<1x10x10x64xbf16, #tpu.memory_space<vmem>>, vector<1x2x8x64xbf16>
    %5 = vector.shape_cast %4 : vector<1x2x8x64xbf16> to vector<2x8x64xbf16>
    %6 = vector.shape_cast %5 : vector<2x8x64xbf16> to vector<16x64xbf16>
    %c0_2 = arith.constant 0 : index
    %c0_3 = arith.constant 0 : index
    %c0_4 = arith.constant 0 : index
    %7 = vector.load %arg3[%c0_2, %c0_3, %c0_4] : memref<3x192x128xbf16, #tpu.memory_space<vmem>>, vector<1x64x128xbf16>
    %8 = vector.shape_cast %7 : vector<1x64x128xbf16> to vector<64x128xbf16>
    %cst = arith.constant dense<0.000000e+00> : vector<16x128xf32>
    %9 = tpu.matmul %6, %8, %cst {dimension_numbers = #tpu.dot_dimension_numbers<[1], [0], [0], [1], [0, 0, 1, 1], [], []>} : vector<16x64xbf16>, vector<64x128xbf16>, vector<16x128xf32> -> vector<16x128xf32>
    %c1_i32 = arith.constant 1 : i32
    %10 = arith.addi %1, %c1_i32 : i32
    %c0_5 = arith.constant 0 : index
    %11 = arith.index_cast %10 : i32 to index
    %c0_6 = arith.constant 0 : index
    %c0_7 = arith.constant 0 : index
    %12 = vector.load %arg2[%c0_5, %11, %c0_6, %c0_7] : memref<1x10x10x64xbf16, #tpu.memory_space<vmem>>, vector<1x2x8x64xbf16>
    %13 = vector.shape_cast %12 : vector<1x2x8x64xbf16> to vector<2x8x64xbf16>
    %14 = vector.shape_cast %13 : vector<2x8x64xbf16> to vector<16x64xbf16>
    %c0_8 = arith.constant 0 : index
    %c64 = arith.constant 64 : index
    %c0_9 = arith.constant 0 : index
    %15 = vector.load %arg3[%c0_8, %c64, %c0_9] : memref<3x192x128xbf16, #tpu.memory_space<vmem>>, vector<1x64x128xbf16>
    %16 = vector.shape_cast %15 : vector<1x64x128xbf16> to vector<64x128xbf16>
    %cst_10 = arith.constant dense<0.000000e+00> : vector<16x128xf32>
    %17 = tpu.matmul %14, %16, %cst_10 {dimension_numbers = #tpu.dot_dimension_numbers<[1], [0], [0], [1], [0, 0, 1, 1], [], []>} : vector<16x64xbf16>, vector<64x128xbf16>, vector<16x128xf32> -> vector<16x128xf32>
    %18 = arith.addf %9, %17 : vector<16x128xf32>
    %c2_i32_11 = arith.constant 2 : i32
    %19 = arith.addi %1, %c2_i32_11 : i32
    %c0_12 = arith.constant 0 : index
    %20 = arith.index_cast %19 : i32 to index
    %c0_13 = arith.constant 0 : index
    %c0_14 = arith.constant 0 : index
    %21 = vector.load %arg2[%c0_12, %20, %c0_13, %c0_14] : memref<1x10x10x64xbf16, #tpu.memory_space<vmem>>, vector<1x2x8x64xbf16>
    %22 = vector.shape_cast %21 : vector<1x2x8x64xbf16> to vector<2x8x64xbf16>
    %23 = vector.shape_cast %22 : vector<2x8x64xbf16> to vector<16x64xbf16>
    %c0_15 = arith.constant 0 : index
    %c128 = arith.constant 128 : index
    %c0_16 = arith.constant 0 : index
    %24 = vector.load %arg3[%c0_15, %c128, %c0_16] : memref<3x192x128xbf16, #tpu.memory_space<vmem>>, vector<1x64x128xbf16>
    %25 = vector.shape_cast %24 : vector<1x64x128xbf16> to vector<64x128xbf16>
    %cst_17 = arith.constant dense<0.000000e+00> : vector<16x128xf32>
    %26 = tpu.matmul %23, %25, %cst_17 {dimension_numbers = #tpu.dot_dimension_numbers<[1], [0], [0], [1], [0, 0, 1, 1], [], []>} : vector<16x64xbf16>, vector<64x128xbf16>, vector<16x128xf32> -> vector<16x128xf32>
    %27 = arith.addf %18, %26 : vector<16x128xf32>
    %c0_i32_18 = arith.constant 0 : i32
    %28 = arith.addi %1, %c0_i32_18 : i32
    %c0_19 = arith.constant 0 : index
    %29 = arith.index_cast %28 : i32 to index
    %c1 = arith.constant 1 : index
    %c0_20 = arith.constant 0 : index
    %30 = vector.load %arg2[%c0_19, %29, %c1, %c0_20] : memref<1x10x10x64xbf16, #tpu.memory_space<vmem>>, vector<1x2x8x64xbf16>
    %31 = vector.shape_cast %30 : vector<1x2x8x64xbf16> to vector<2x8x64xbf16>
    %32 = vector.shape_cast %31 : vector<2x8x64xbf16> to vector<16x64xbf16>
    %c1_21 = arith.constant 1 : index
    %c0_22 = arith.constant 0 : index
    %c0_23 = arith.constant 0 : index
    %33 = vector.load %arg3[%c1_21, %c0_22, %c0_23] : memref<3x192x128xbf16, #tpu.memory_space<vmem>>, vector<1x64x128xbf16>
    %34 = vector.shape_cast %33 : vector<1x64x128xbf16> to vector<64x128xbf16>
    %cst_24 = arith.constant dense<0.000000e+00> : vector<16x128xf32>
    %35 = tpu.matmul %32, %34, %cst_24 {dimension_numbers = #tpu.dot_dimension_numbers<[1], [0], [0], [1], [0, 0, 1, 1], [], []>} : vector<16x64xbf16>, vector<64x128xbf16>, vector<16x128xf32> -> vector<16x128xf32>
    %36 = arith.addf %27, %35 : vector<16x128xf32>
    %c1_i32_25 = arith.constant 1 : i32
    %37 = arith.addi %1, %c1_i32_25 : i32
    %c0_26 = arith.constant 0 : index
    %38 = arith.index_cast %37 : i32 to index
    %c1_27 = arith.constant 1 : index
    %c0_28 = arith.constant 0 : index
    %39 = vector.load %arg2[%c0_26, %38, %c1_27, %c0_28] : memref<1x10x10x64xbf16, #tpu.memory_space<vmem>>, vector<1x2x8x64xbf16>
    %40 = vector.shape_cast %39 : vector<1x2x8x64xbf16> to vector<2x8x64xbf16>
    %41 = vector.shape_cast %40 : vector<2x8x64xbf16> to vector<16x64xbf16>
    %c1_29 = arith.constant 1 : index
    %c64_30 = arith.constant 64 : index
    %c0_31 = arith.constant 0 : index
    %42 = vector.load %arg3[%c1_29, %c64_30, %c0_31] : memref<3x192x128xbf16, #tpu.memory_space<vmem>>, vector<1x64x128xbf16>
    %43 = vector.shape_cast %42 : vector<1x64x128xbf16> to vector<64x128xbf16>
    %cst_32 = arith.constant dense<0.000000e+00> : vector<16x128xf32>
    %44 = tpu.matmul %41, %43, %cst_32 {dimension_numbers = #tpu.dot_dimension_numbers<[1], [0], [0], [1], [0, 0, 1, 1], [], []>} : vector<16x64xbf16>, vector<64x128xbf16>, vector<16x128xf32> -> vector<16x128xf32>
    %45 = arith.addf %36, %44 : vector<16x128xf32>
    %c2_i32_33 = arith.constant 2 : i32
    %46 = arith.addi %1, %c2_i32_33 : i32
    %c0_34 = arith.constant 0 : index
    %47 = arith.index_cast %46 : i32 to index
    %c1_35 = arith.constant 1 : index
    %c0_36 = arith.constant 0 : index
    %48 = vector.load %arg2[%c0_34, %47, %c1_35, %c0_36] : memref<1x10x10x64xbf16, #tpu.memory_space<vmem>>, vector<1x2x8x64xbf16>
    %49 = vector.shape_cast %48 : vector<1x2x8x64xbf16> to vector<2x8x64xbf16>
    %50 = vector.shape_cast %49 : vector<2x8x64xbf16> to vector<16x64xbf16>
    %c1_37 = arith.constant 1 : index
    %c128_38 = arith.constant 128 : index
    %c0_39 = arith.constant 0 : index
    %51 = vector.load %arg3[%c1_37, %c128_38, %c0_39] : memref<3x192x128xbf16, #tpu.memory_space<vmem>>, vector<1x64x128xbf16>
    %52 = vector.shape_cast %51 : vector<1x64x128xbf16> to vector<64x128xbf16>
    %cst_40 = arith.constant dense<0.000000e+00> : vector<16x128xf32>
    %53 = tpu.matmul %50, %52, %cst_40 {dimension_numbers = #tpu.dot_dimension_numbers<[1], [0], [0], [1], [0, 0, 1, 1], [], []>} : vector<16x64xbf16>, vector<64x128xbf16>, vector<16x128xf32> -> vector<16x128xf32>
    %54 = arith.addf %45, %53 : vector<16x128xf32>
    %c0_i32_41 = arith.constant 0 : i32
    %55 = arith.addi %1, %c0_i32_41 : i32
    %c0_42 = arith.constant 0 : index
    %56 = arith.index_cast %55 : i32 to index
    %c2 = arith.constant 2 : index
    %c0_43 = arith.constant 0 : index
    %57 = vector.load %arg2[%c0_42, %56, %c2, %c0_43] : memref<1x10x10x64xbf16, #tpu.memory_space<vmem>>, vector<1x2x8x64xbf16>
    %58 = vector.shape_cast %57 : vector<1x2x8x64xbf16> to vector<2x8x64xbf16>
    %59 = vector.shape_cast %58 : vector<2x8x64xbf16> to vector<16x64xbf16>
    %c2_44 = arith.constant 2 : index
    %c0_45 = arith.constant 0 : index
    %c0_46 = arith.constant 0 : index
    %60 = vector.load %arg3[%c2_44, %c0_45, %c0_46] : memref<3x192x128xbf16, #tpu.memory_space<vmem>>, vector<1x64x128xbf16>
    %61 = vector.shape_cast %60 : vector<1x64x128xbf16> to vector<64x128xbf16>
    %cst_47 = arith.constant dense<0.000000e+00> : vector<16x128xf32>
    %62 = tpu.matmul %59, %61, %cst_47 {dimension_numbers = #tpu.dot_dimension_numbers<[1], [0], [0], [1], [0, 0, 1, 1], [], []>} : vector<16x64xbf16>, vector<64x128xbf16>, vector<16x128xf32> -> vector<16x128xf32>
    %63 = arith.addf %54, %62 : vector<16x128xf32>
    %c1_i32_48 = arith.constant 1 : i32
    %64 = arith.addi %1, %c1_i32_48 : i32
    %c0_49 = arith.constant 0 : index
    %65 = arith.index_cast %64 : i32 to index
    %c2_50 = arith.constant 2 : index
    %c0_51 = arith.constant 0 : index
    %66 = vector.load %arg2[%c0_49, %65, %c2_50, %c0_51] : memref<1x10x10x64xbf16, #tpu.memory_space<vmem>>, vector<1x2x8x64xbf16>
    %67 = vector.shape_cast %66 : vector<1x2x8x64xbf16> to vector<2x8x64xbf16>
    %68 = vector.shape_cast %67 : vector<2x8x64xbf16> to vector<16x64xbf16>
    %c2_52 = arith.constant 2 : index
    %c64_53 = arith.constant 64 : index
    %c0_54 = arith.constant 0 : index
    %69 = vector.load %arg3[%c2_52, %c64_53, %c0_54] : memref<3x192x128xbf16, #tpu.memory_space<vmem>>, vector<1x64x128xbf16>
    %70 = vector.shape_cast %69 : vector<1x64x128xbf16> to vector<64x128xbf16>
    %cst_55 = arith.constant dense<0.000000e+00> : vector<16x128xf32>
    %71 = tpu.matmul %68, %70, %cst_55 {dimension_numbers = #tpu.dot_dimension_numbers<[1], [0], [0], [1], [0, 0, 1, 1], [], []>} : vector<16x64xbf16>, vector<64x128xbf16>, vector<16x128xf32> -> vector<16x128xf32>
    %72 = arith.addf %63, %71 : vector<16x128xf32>
    %c2_i32_56 = arith.constant 2 : i32
    %73 = arith.addi %1, %c2_i32_56 : i32
    %c0_57 = arith.constant 0 : index
    %74 = arith.index_cast %73 : i32 to index
    %c2_58 = arith.constant 2 : index
    %c0_59 = arith.constant 0 : index
    %75 = vector.load %arg2[%c0_57, %74, %c2_58, %c0_59] : memref<1x10x10x64xbf16, #tpu.memory_space<vmem>>, vector<1x2x8x64xbf16>
    %76 = vector.shape_cast %75 : vector<1x2x8x64xbf16> to vector<2x8x64xbf16>
    %77 = vector.shape_cast %76 : vector<2x8x64xbf16> to vector<16x64xbf16>
    %c2_60 = arith.constant 2 : index
    %c128_61 = arith.constant 128 : index
    %c0_62 = arith.constant 0 : index
    %78 = vector.load %arg3[%c2_60, %c128_61, %c0_62] : memref<3x192x128xbf16, #tpu.memory_space<vmem>>, vector<1x64x128xbf16>
    %79 = vector.shape_cast %78 : vector<1x64x128xbf16> to vector<64x128xbf16>
    %cst_63 = arith.constant dense<0.000000e+00> : vector<16x128xf32>
    %80 = tpu.matmul %77, %79, %cst_63 {dimension_numbers = #tpu.dot_dimension_numbers<[1], [0], [0], [1], [0, 0, 1, 1], [], []>} : vector<16x64xbf16>, vector<64x128xbf16>, vector<16x128xf32> -> vector<16x128xf32>
    %81 = arith.addf %72, %80 : vector<16x128xf32>
    %c0_64 = arith.constant 0 : index
    %c0_65 = arith.constant 0 : index
    %82 = vector.load %arg4[%c0_64, %c0_65] : memref<1x128xf32, #tpu.memory_space<vmem>>, vector<1x128xf32>
    %83 = vector.broadcast %82 : vector<1x128xf32> to vector<16x128xf32>
    %84 = arith.addf %81, %83 : vector<16x128xf32>
    %cst_66 = arith.constant 0.000000e+00 : f32
    %85 = vector.broadcast %cst_66 : f32 to vector<16x128xf32>
    %86 = arith.maximumf %84, %85 : vector<16x128xf32>
    %87 = vector.shape_cast %86 : vector<16x128xf32> to vector<2x8x128xf32>
    %c0_i32_67 = arith.constant 0 : i32
    %88 = arith.cmpi eq, %arg1, %c0_i32_67 : i32
    %89 = arith.extui %88 : i1 to i32
    %c0_i32_68 = arith.constant 0 : i32
    %90 = arith.cmpi ne, %89, %c0_i32_68 : i32
    scf.if %90 {
      %cst_74 = arith.constant 0.000000e+00 : bf16
      %98 = vector.broadcast %cst_74 : bf16 to vector<1x10x10x128xbf16>
      %c0_75 = arith.constant 0 : index
      %c0_76 = arith.constant 0 : index
      %c0_77 = arith.constant 0 : index
      %c0_78 = arith.constant 0 : index
      %99 = vector.load %arg5[%c0_75, %c0_76, %c0_77, %c0_78] : memref<1x10x10x128xbf16, #tpu.memory_space<vmem>>, vector<1x10x10x128xbf16>
      tpu.vector_store %arg5[%c0_75, %c0_76, %c0_77, %c0_78], %98 {strides = array<i32>} : memref<1x10x10x128xbf16, #tpu.memory_space<vmem>>, vector<1x10x10x128xbf16>,
    } else {
    }
    %91 = arith.truncf %87 : vector<2x8x128xf32> to vector<2x8x128xbf16>
    %c2_i32_69 = arith.constant 2 : i32
    %92 = arith.muli %arg1, %c2_i32_69 : i32
    %c1_i32_70 = arith.constant 1 : i32
    %93 = arith.addi %92, %c1_i32_70 : i32
    %c0_71 = arith.constant 0 : index
    %94 = arith.index_cast %93 : i32 to index
    %c1_72 = arith.constant 1 : index
    %c0_73 = arith.constant 0 : index
    %95 = vector.load %arg5[%c0_71, %94, %c1_72, %c0_73] : memref<1x10x10x128xbf16, #tpu.memory_space<vmem>>, vector<1x2x8x128xbf16>
    %96 = vector.shape_cast %95 : vector<1x2x8x128xbf16> to vector<2x8x128xbf16>
    %97 = vector.shape_cast %91 : vector<2x8x128xbf16> to vector<1x2x8x128xbf16>
    tpu.vector_store %arg5[%c0_71, %94, %c1_72, %c0_73], %97 {strides = array<i32>} : memref<1x10x10x128xbf16, #tpu.memory_space<vmem>>, vector<1x2x8x128xbf16>,
    return
  }
  func.func @transform_0(%arg0: i32, %arg1: i32) -> (i32, i32, i32, i32) {
    %c0_i32 = arith.constant 0 : i32
    %c0_i32_0 = arith.constant 0 : i32
    %c0_i32_1 = arith.constant 0 : i32
    %c0_i32_2 = arith.constant 0 : i32
    return %arg0, %c0_i32, %c0_i32_0, %c0_i32_1 : i32, i32, i32, i32
  }
  func.func @transform_1(%arg0: i32, %arg1: i32) -> (i32, i32, i32) {
    %c0_i32 = arith.constant 0 : i32
    %c0_i32_0 = arith.constant 0 : i32
    %c0_i32_1 = arith.constant 0 : i32
    %c0_i32_2 = arith.constant 0 : i32
    return %c0_i32, %c0_i32_0, %c0_i32_1 : i32, i32, i32
  }
  func.func @transform_2(%arg0: i32, %arg1: i32) -> (i32, i32) {
    %c0_i32 = arith.constant 0 : i32
    %c0_i32_0 = arith.constant 0 : i32
    %c0_i32_1 = arith.constant 0 : i32
    return %c0_i32, %c0_i32_0 : i32, i32
  }
  func.func @transform_3(%arg0: i32, %arg1: i32) -> (i32, i32, i32, i32) {
    %c0_i32 = arith.constant 0 : i32
    %c0_i32_0 = arith.constant 0 : i32
    %c0_i32_1 = arith.constant 0 : i32
    %c0_i32_2 = arith.constant 0 : i32
    return %arg0, %c0_i32, %c0_i32_0, %c0_i32_1 : i32, i32, i32, i32
  }
}

module attributes {stable_mosaic.version = 11 : i64} {
  func.func @_conv3x3_kernel(%arg0: i32, %arg1: i32, %arg2: memref<1x10x10x128xbf16, #tpu.memory_space<vmem>>, %arg3: memref<3x384x128xbf16, #tpu.memory_space<vmem>>, %arg4: memref<1x128xf32, #tpu.memory_space<vmem>>, %arg5: memref<1x6x6x128xbf16, #tpu.memory_space<vmem>>) attributes {dimension_semantics = [#tpu.dimension_semantics<parallel>, #tpu.dimension_semantics<arbitrary>], iteration_bounds = array<i64: 4, 4>, scalar_prefetch = 0 : i64, scratch_operands = 0 : i64, tpu.core_type = #tpu.core_type<tc>, window_params = [{transform_indices = @transform_0, window_bounds = array<i64: 1, 10, 10, 128>}, {pipeline_mode = #tpu.pipeline_mode<synchronous>, transform_indices = @transform_1, window_bounds = array<i64: 3, 384, 128>}, {pipeline_mode = #tpu.pipeline_mode<synchronous>, transform_indices = @transform_2, window_bounds = array<i64: 1, 128>}, {transform_indices = @transform_3, window_bounds = array<i64: 1, 6, 6, 128>}]} {
    %c2_i32 = arith.constant 2 : i32
    %0 = arith.muli %arg1, %c2_i32 : i32
    %1 = tpu.assume_multiple %0, 2 : i32
    %c0_i32 = arith.constant 0 : i32
    %2 = arith.addi %1, %c0_i32 : i32
    %c0 = arith.constant 0 : index
    %3 = arith.index_cast %2 : i32 to index
    %c0_0 = arith.constant 0 : index
    %c0_1 = arith.constant 0 : index
    %4 = vector.load %arg2[%c0, %3, %c0_0, %c0_1] : memref<1x10x10x128xbf16, #tpu.memory_space<vmem>>, vector<1x2x8x128xbf16>
    %5 = vector.shape_cast %4 : vector<1x2x8x128xbf16> to vector<2x8x128xbf16>
    %c1_i32 = arith.constant 1 : i32
    %6 = arith.addi %1, %c1_i32 : i32
    %c0_2 = arith.constant 0 : index
    %7 = arith.index_cast %6 : i32 to index
    %c0_3 = arith.constant 0 : index
    %c0_4 = arith.constant 0 : index
    %8 = vector.load %arg2[%c0_2, %7, %c0_3, %c0_4] : memref<1x10x10x128xbf16, #tpu.memory_space<vmem>>, vector<1x2x8x128xbf16>
    %9 = vector.shape_cast %8 : vector<1x2x8x128xbf16> to vector<2x8x128xbf16>
    %c2_i32_5 = arith.constant 2 : i32
    %10 = arith.addi %1, %c2_i32_5 : i32
    %c0_6 = arith.constant 0 : index
    %11 = arith.index_cast %10 : i32 to index
    %c0_7 = arith.constant 0 : index
    %c0_8 = arith.constant 0 : index
    %12 = vector.load %arg2[%c0_6, %11, %c0_7, %c0_8] : memref<1x10x10x128xbf16, #tpu.memory_space<vmem>>, vector<1x2x8x128xbf16>
    %13 = vector.shape_cast %12 : vector<1x2x8x128xbf16> to vector<2x8x128xbf16>
    %14 = tpu.concatenate %5, %9, %13 in 2 : vector<2x8x128xbf16>, vector<2x8x128xbf16>, vector<2x8x128xbf16> -> vector<2x8x384xbf16>
    %15 = vector.shape_cast %14 : vector<2x8x384xbf16> to vector<16x384xbf16>
    %c0_9 = arith.constant 0 : index
    %c0_10 = arith.constant 0 : index
    %c0_11 = arith.constant 0 : index
    %16 = vector.load %arg3[%c0_9, %c0_10, %c0_11] : memref<3x384x128xbf16, #tpu.memory_space<vmem>>, vector<1x384x128xbf16>
    %17 = vector.shape_cast %16 : vector<1x384x128xbf16> to vector<384x128xbf16>
    %cst = arith.constant dense<0.000000e+00> : vector<16x128xf32>
    %18 = tpu.matmul %15, %17, %cst {dimension_numbers = #tpu.dot_dimension_numbers<[1], [0], [0], [1], [0, 0, 1, 1], [], []>} : vector<16x384xbf16>, vector<384x128xbf16>, vector<16x128xf32> -> vector<16x128xf32>
    %c0_i32_12 = arith.constant 0 : i32
    %19 = arith.addi %1, %c0_i32_12 : i32
    %c0_13 = arith.constant 0 : index
    %20 = arith.index_cast %19 : i32 to index
    %c1 = arith.constant 1 : index
    %c0_14 = arith.constant 0 : index
    %21 = vector.load %arg2[%c0_13, %20, %c1, %c0_14] : memref<1x10x10x128xbf16, #tpu.memory_space<vmem>>, vector<1x2x8x128xbf16>
    %22 = vector.shape_cast %21 : vector<1x2x8x128xbf16> to vector<2x8x128xbf16>
    %c1_i32_15 = arith.constant 1 : i32
    %23 = arith.addi %1, %c1_i32_15 : i32
    %c0_16 = arith.constant 0 : index
    %24 = arith.index_cast %23 : i32 to index
    %c1_17 = arith.constant 1 : index
    %c0_18 = arith.constant 0 : index
    %25 = vector.load %arg2[%c0_16, %24, %c1_17, %c0_18] : memref<1x10x10x128xbf16, #tpu.memory_space<vmem>>, vector<1x2x8x128xbf16>
    %26 = vector.shape_cast %25 : vector<1x2x8x128xbf16> to vector<2x8x128xbf16>
    %c2_i32_19 = arith.constant 2 : i32
    %27 = arith.addi %1, %c2_i32_19 : i32
    %c0_20 = arith.constant 0 : index
    %28 = arith.index_cast %27 : i32 to index
    %c1_21 = arith.constant 1 : index
    %c0_22 = arith.constant 0 : index
    %29 = vector.load %arg2[%c0_20, %28, %c1_21, %c0_22] : memref<1x10x10x128xbf16, #tpu.memory_space<vmem>>, vector<1x2x8x128xbf16>
    %30 = vector.shape_cast %29 : vector<1x2x8x128xbf16> to vector<2x8x128xbf16>
    %31 = tpu.concatenate %22, %26, %30 in 2 : vector<2x8x128xbf16>, vector<2x8x128xbf16>, vector<2x8x128xbf16> -> vector<2x8x384xbf16>
    %32 = vector.shape_cast %31 : vector<2x8x384xbf16> to vector<16x384xbf16>
    %c1_23 = arith.constant 1 : index
    %c0_24 = arith.constant 0 : index
    %c0_25 = arith.constant 0 : index
    %33 = vector.load %arg3[%c1_23, %c0_24, %c0_25] : memref<3x384x128xbf16, #tpu.memory_space<vmem>>, vector<1x384x128xbf16>
    %34 = vector.shape_cast %33 : vector<1x384x128xbf16> to vector<384x128xbf16>
    %cst_26 = arith.constant dense<0.000000e+00> : vector<16x128xf32>
    %35 = tpu.matmul %32, %34, %cst_26 {dimension_numbers = #tpu.dot_dimension_numbers<[1], [0], [0], [1], [0, 0, 1, 1], [], []>} : vector<16x384xbf16>, vector<384x128xbf16>, vector<16x128xf32> -> vector<16x128xf32>
    %36 = arith.addf %18, %35 : vector<16x128xf32>
    %c0_i32_27 = arith.constant 0 : i32
    %37 = arith.addi %1, %c0_i32_27 : i32
    %c0_28 = arith.constant 0 : index
    %38 = arith.index_cast %37 : i32 to index
    %c2 = arith.constant 2 : index
    %c0_29 = arith.constant 0 : index
    %39 = vector.load %arg2[%c0_28, %38, %c2, %c0_29] : memref<1x10x10x128xbf16, #tpu.memory_space<vmem>>, vector<1x2x8x128xbf16>
    %40 = vector.shape_cast %39 : vector<1x2x8x128xbf16> to vector<2x8x128xbf16>
    %c1_i32_30 = arith.constant 1 : i32
    %41 = arith.addi %1, %c1_i32_30 : i32
    %c0_31 = arith.constant 0 : index
    %42 = arith.index_cast %41 : i32 to index
    %c2_32 = arith.constant 2 : index
    %c0_33 = arith.constant 0 : index
    %43 = vector.load %arg2[%c0_31, %42, %c2_32, %c0_33] : memref<1x10x10x128xbf16, #tpu.memory_space<vmem>>, vector<1x2x8x128xbf16>
    %44 = vector.shape_cast %43 : vector<1x2x8x128xbf16> to vector<2x8x128xbf16>
    %c2_i32_34 = arith.constant 2 : i32
    %45 = arith.addi %1, %c2_i32_34 : i32
    %c0_35 = arith.constant 0 : index
    %46 = arith.index_cast %45 : i32 to index
    %c2_36 = arith.constant 2 : index
    %c0_37 = arith.constant 0 : index
    %47 = vector.load %arg2[%c0_35, %46, %c2_36, %c0_37] : memref<1x10x10x128xbf16, #tpu.memory_space<vmem>>, vector<1x2x8x128xbf16>
    %48 = vector.shape_cast %47 : vector<1x2x8x128xbf16> to vector<2x8x128xbf16>
    %49 = tpu.concatenate %40, %44, %48 in 2 : vector<2x8x128xbf16>, vector<2x8x128xbf16>, vector<2x8x128xbf16> -> vector<2x8x384xbf16>
    %50 = vector.shape_cast %49 : vector<2x8x384xbf16> to vector<16x384xbf16>
    %c2_38 = arith.constant 2 : index
    %c0_39 = arith.constant 0 : index
    %c0_40 = arith.constant 0 : index
    %51 = vector.load %arg3[%c2_38, %c0_39, %c0_40] : memref<3x384x128xbf16, #tpu.memory_space<vmem>>, vector<1x384x128xbf16>
    %52 = vector.shape_cast %51 : vector<1x384x128xbf16> to vector<384x128xbf16>
    %cst_41 = arith.constant dense<0.000000e+00> : vector<16x128xf32>
    %53 = tpu.matmul %50, %52, %cst_41 {dimension_numbers = #tpu.dot_dimension_numbers<[1], [0], [0], [1], [0, 0, 1, 1], [], []>} : vector<16x384xbf16>, vector<384x128xbf16>, vector<16x128xf32> -> vector<16x128xf32>
    %54 = arith.addf %36, %53 : vector<16x128xf32>
    %c0_42 = arith.constant 0 : index
    %c0_43 = arith.constant 0 : index
    %55 = vector.load %arg4[%c0_42, %c0_43] : memref<1x128xf32, #tpu.memory_space<vmem>>, vector<1x128xf32>
    %56 = vector.broadcast %55 : vector<1x128xf32> to vector<16x128xf32>
    %57 = arith.addf %54, %56 : vector<16x128xf32>
    %cst_44 = arith.constant 0.000000e+00 : f32
    %58 = vector.broadcast %cst_44 : f32 to vector<16x128xf32>
    %59 = arith.maximumf %57, %58 : vector<16x128xf32>
    %60 = vector.shape_cast %59 : vector<16x128xf32> to vector<2x8x128xf32>
    %61 = vector.shape_cast %60 : vector<2x8x128xf32> to vector<1x2x8x128xf32>
    %cst_45 = arith.constant dense<0xFF800000> : vector<1x8x128xf32>
    %62 = vector.multi_reduction <maximumf>, %61, %cst_45 [1] : vector<1x2x8x128xf32> to vector<1x8x128xf32>
    %63 = vector.shape_cast %62 : vector<1x8x128xf32> to vector<1x4x2x128xf32>
    %cst_46 = arith.constant dense<0xFF800000> : vector<1x4x128xf32>
    %64 = vector.multi_reduction <maximumf>, %63, %cst_46 [2] : vector<1x4x2x128xf32> to vector<1x4x128xf32>
    %c0_i32_47 = arith.constant 0 : i32
    %65 = arith.cmpi eq, %arg1, %c0_i32_47 : i32
    %66 = arith.extui %65 : i1 to i32
    %c0_i32_48 = arith.constant 0 : i32
    %67 = arith.cmpi ne, %66, %c0_i32_48 : i32
    scf.if %67 {
      %cst_54 = arith.constant 0.000000e+00 : bf16
      %75 = vector.broadcast %cst_54 : bf16 to vector<1x6x6x128xbf16>
      %c0_55 = arith.constant 0 : index
      %c0_56 = arith.constant 0 : index
      %c0_57 = arith.constant 0 : index
      %c0_58 = arith.constant 0 : index
      %76 = vector.load %arg5[%c0_55, %c0_56, %c0_57, %c0_58] : memref<1x6x6x128xbf16, #tpu.memory_space<vmem>>, vector<1x6x6x128xbf16>
      tpu.vector_store %arg5[%c0_55, %c0_56, %c0_57, %c0_58], %75 {strides = array<i32>} : memref<1x6x6x128xbf16, #tpu.memory_space<vmem>>, vector<1x6x6x128xbf16>,
    } else {
    }
    %68 = arith.truncf %64 : vector<1x4x128xf32> to vector<1x4x128xbf16>
    %c1_i32_49 = arith.constant 1 : i32
    %69 = arith.muli %arg1, %c1_i32_49 : i32
    %c1_i32_50 = arith.constant 1 : i32
    %70 = arith.addi %69, %c1_i32_50 : i32
    %c0_51 = arith.constant 0 : index
    %71 = arith.index_cast %70 : i32 to index
    %c1_52 = arith.constant 1 : index
    %c0_53 = arith.constant 0 : index
    %72 = vector.load %arg5[%c0_51, %71, %c1_52, %c0_53] : memref<1x6x6x128xbf16, #tpu.memory_space<vmem>>, vector<1x1x4x128xbf16>
    %73 = vector.shape_cast %72 : vector<1x1x4x128xbf16> to vector<1x4x128xbf16>
    %74 = vector.shape_cast %68 : vector<1x4x128xbf16> to vector<1x1x4x128xbf16>
    tpu.vector_store %arg5[%c0_51, %71, %c1_52, %c0_53], %74 {strides = array<i32>} : memref<1x6x6x128xbf16, #tpu.memory_space<vmem>>, vector<1x1x4x128xbf16>,
    return
  }
  func.func @transform_0(%arg0: i32, %arg1: i32) -> (i32, i32, i32, i32) {
    %c0_i32 = arith.constant 0 : i32
    %c0_i32_0 = arith.constant 0 : i32
    %c0_i32_1 = arith.constant 0 : i32
    %c0_i32_2 = arith.constant 0 : i32
    return %arg0, %c0_i32, %c0_i32_0, %c0_i32_1 : i32, i32, i32, i32
  }
  func.func @transform_1(%arg0: i32, %arg1: i32) -> (i32, i32, i32) {
    %c0_i32 = arith.constant 0 : i32
    %c0_i32_0 = arith.constant 0 : i32
    %c0_i32_1 = arith.constant 0 : i32
    %c0_i32_2 = arith.constant 0 : i32
    return %c0_i32, %c0_i32_0, %c0_i32_1 : i32, i32, i32
  }
  func.func @transform_2(%arg0: i32, %arg1: i32) -> (i32, i32) {
    %c0_i32 = arith.constant 0 : i32
    %c0_i32_0 = arith.constant 0 : i32
    %c0_i32_1 = arith.constant 0 : i32
    return %c0_i32, %c0_i32_0 : i32, i32
  }
  func.func @transform_3(%arg0: i32, %arg1: i32) -> (i32, i32, i32, i32) {
    %c0_i32 = arith.constant 0 : i32
    %c0_i32_0 = arith.constant 0 : i32
    %c0_i32_1 = arith.constant 0 : i32
    %c0_i32_2 = arith.constant 0 : i32
    return %arg0, %c0_i32, %c0_i32_0, %c0_i32_1 : i32, i32, i32, i32
  }
}

module attributes {stable_mosaic.version = 11 : i64} {
  func.func @_conv3x3_kernel(%arg0: i32, %arg1: i32, %arg2: memref<1x6x6x128xbf16, #tpu.memory_space<vmem>>, %arg3: memref<3x384x256xbf16, #tpu.memory_space<vmem>>, %arg4: memref<1x256xf32, #tpu.memory_space<vmem>>, %arg5: memref<1x6x6x256xbf16, #tpu.memory_space<vmem>>) attributes {dimension_semantics = [#tpu.dimension_semantics<parallel>, #tpu.dimension_semantics<arbitrary>], iteration_bounds = array<i64: 4, 2>, scalar_prefetch = 0 : i64, scratch_operands = 0 : i64, tpu.core_type = #tpu.core_type<tc>, window_params = [{transform_indices = @transform_0, window_bounds = array<i64: 1, 6, 6, 128>}, {pipeline_mode = #tpu.pipeline_mode<synchronous>, transform_indices = @transform_1, window_bounds = array<i64: 3, 384, 256>}, {pipeline_mode = #tpu.pipeline_mode<synchronous>, transform_indices = @transform_2, window_bounds = array<i64: 1, 256>}, {transform_indices = @transform_3, window_bounds = array<i64: 1, 6, 6, 256>}]} {
    %c2_i32 = arith.constant 2 : i32
    %0 = arith.muli %arg1, %c2_i32 : i32
    %1 = tpu.assume_multiple %0, 2 : i32
    %c0_i32 = arith.constant 0 : i32
    %2 = arith.addi %1, %c0_i32 : i32
    %c0 = arith.constant 0 : index
    %3 = arith.index_cast %2 : i32 to index
    %c0_0 = arith.constant 0 : index
    %c0_1 = arith.constant 0 : index
    %4 = vector.load %arg2[%c0, %3, %c0_0, %c0_1] : memref<1x6x6x128xbf16, #tpu.memory_space<vmem>>, vector<1x2x4x128xbf16>
    %5 = vector.shape_cast %4 : vector<1x2x4x128xbf16> to vector<2x4x128xbf16>
    %c1_i32 = arith.constant 1 : i32
    %6 = arith.addi %1, %c1_i32 : i32
    %c0_2 = arith.constant 0 : index
    %7 = arith.index_cast %6 : i32 to index
    %c0_3 = arith.constant 0 : index
    %c0_4 = arith.constant 0 : index
    %8 = vector.load %arg2[%c0_2, %7, %c0_3, %c0_4] : memref<1x6x6x128xbf16, #tpu.memory_space<vmem>>, vector<1x2x4x128xbf16>
    %9 = vector.shape_cast %8 : vector<1x2x4x128xbf16> to vector<2x4x128xbf16>
    %c2_i32_5 = arith.constant 2 : i32
    %10 = arith.addi %1, %c2_i32_5 : i32
    %c0_6 = arith.constant 0 : index
    %11 = arith.index_cast %10 : i32 to index
    %c0_7 = arith.constant 0 : index
    %c0_8 = arith.constant 0 : index
    %12 = vector.load %arg2[%c0_6, %11, %c0_7, %c0_8] : memref<1x6x6x128xbf16, #tpu.memory_space<vmem>>, vector<1x2x4x128xbf16>
    %13 = vector.shape_cast %12 : vector<1x2x4x128xbf16> to vector<2x4x128xbf16>
    %14 = tpu.concatenate %5, %9, %13 in 2 : vector<2x4x128xbf16>, vector<2x4x128xbf16>, vector<2x4x128xbf16> -> vector<2x4x384xbf16>
    %15 = vector.shape_cast %14 : vector<2x4x384xbf16> to vector<8x384xbf16>
    %c0_9 = arith.constant 0 : index
    %c0_10 = arith.constant 0 : index
    %c0_11 = arith.constant 0 : index
    %16 = vector.load %arg3[%c0_9, %c0_10, %c0_11] : memref<3x384x256xbf16, #tpu.memory_space<vmem>>, vector<1x384x256xbf16>
    %17 = vector.shape_cast %16 : vector<1x384x256xbf16> to vector<384x256xbf16>
    %cst = arith.constant dense<0.000000e+00> : vector<8x256xf32>
    %18 = tpu.matmul %15, %17, %cst {dimension_numbers = #tpu.dot_dimension_numbers<[1], [0], [0], [1], [0, 0, 1, 1], [], []>} : vector<8x384xbf16>, vector<384x256xbf16>, vector<8x256xf32> -> vector<8x256xf32>
    %c0_i32_12 = arith.constant 0 : i32
    %19 = arith.addi %1, %c0_i32_12 : i32
    %c0_13 = arith.constant 0 : index
    %20 = arith.index_cast %19 : i32 to index
    %c1 = arith.constant 1 : index
    %c0_14 = arith.constant 0 : index
    %21 = vector.load %arg2[%c0_13, %20, %c1, %c0_14] : memref<1x6x6x128xbf16, #tpu.memory_space<vmem>>, vector<1x2x4x128xbf16>
    %22 = vector.shape_cast %21 : vector<1x2x4x128xbf16> to vector<2x4x128xbf16>
    %c1_i32_15 = arith.constant 1 : i32
    %23 = arith.addi %1, %c1_i32_15 : i32
    %c0_16 = arith.constant 0 : index
    %24 = arith.index_cast %23 : i32 to index
    %c1_17 = arith.constant 1 : index
    %c0_18 = arith.constant 0 : index
    %25 = vector.load %arg2[%c0_16, %24, %c1_17, %c0_18] : memref<1x6x6x128xbf16, #tpu.memory_space<vmem>>, vector<1x2x4x128xbf16>
    %26 = vector.shape_cast %25 : vector<1x2x4x128xbf16> to vector<2x4x128xbf16>
    %c2_i32_19 = arith.constant 2 : i32
    %27 = arith.addi %1, %c2_i32_19 : i32
    %c0_20 = arith.constant 0 : index
    %28 = arith.index_cast %27 : i32 to index
    %c1_21 = arith.constant 1 : index
    %c0_22 = arith.constant 0 : index
    %29 = vector.load %arg2[%c0_20, %28, %c1_21, %c0_22] : memref<1x6x6x128xbf16, #tpu.memory_space<vmem>>, vector<1x2x4x128xbf16>
    %30 = vector.shape_cast %29 : vector<1x2x4x128xbf16> to vector<2x4x128xbf16>
    %31 = tpu.concatenate %22, %26, %30 in 2 : vector<2x4x128xbf16>, vector<2x4x128xbf16>, vector<2x4x128xbf16> -> vector<2x4x384xbf16>
    %32 = vector.shape_cast %31 : vector<2x4x384xbf16> to vector<8x384xbf16>
    %c1_23 = arith.constant 1 : index
    %c0_24 = arith.constant 0 : index
    %c0_25 = arith.constant 0 : index
    %33 = vector.load %arg3[%c1_23, %c0_24, %c0_25] : memref<3x384x256xbf16, #tpu.memory_space<vmem>>, vector<1x384x256xbf16>
    %34 = vector.shape_cast %33 : vector<1x384x256xbf16> to vector<384x256xbf16>
    %cst_26 = arith.constant dense<0.000000e+00> : vector<8x256xf32>
    %35 = tpu.matmul %32, %34, %cst_26 {dimension_numbers = #tpu.dot_dimension_numbers<[1], [0], [0], [1], [0, 0, 1, 1], [], []>} : vector<8x384xbf16>, vector<384x256xbf16>, vector<8x256xf32> -> vector<8x256xf32>
    %36 = arith.addf %18, %35 : vector<8x256xf32>
    %c0_i32_27 = arith.constant 0 : i32
    %37 = arith.addi %1, %c0_i32_27 : i32
    %c0_28 = arith.constant 0 : index
    %38 = arith.index_cast %37 : i32 to index
    %c2 = arith.constant 2 : index
    %c0_29 = arith.constant 0 : index
    %39 = vector.load %arg2[%c0_28, %38, %c2, %c0_29] : memref<1x6x6x128xbf16, #tpu.memory_space<vmem>>, vector<1x2x4x128xbf16>
    %40 = vector.shape_cast %39 : vector<1x2x4x128xbf16> to vector<2x4x128xbf16>
    %c1_i32_30 = arith.constant 1 : i32
    %41 = arith.addi %1, %c1_i32_30 : i32
    %c0_31 = arith.constant 0 : index
    %42 = arith.index_cast %41 : i32 to index
    %c2_32 = arith.constant 2 : index
    %c0_33 = arith.constant 0 : index
    %43 = vector.load %arg2[%c0_31, %42, %c2_32, %c0_33] : memref<1x6x6x128xbf16, #tpu.memory_space<vmem>>, vector<1x2x4x128xbf16>
    %44 = vector.shape_cast %43 : vector<1x2x4x128xbf16> to vector<2x4x128xbf16>
    %c2_i32_34 = arith.constant 2 : i32
    %45 = arith.addi %1, %c2_i32_34 : i32
    %c0_35 = arith.constant 0 : index
    %46 = arith.index_cast %45 : i32 to index
    %c2_36 = arith.constant 2 : index
    %c0_37 = arith.constant 0 : index
    %47 = vector.load %arg2[%c0_35, %46, %c2_36, %c0_37] : memref<1x6x6x128xbf16, #tpu.memory_space<vmem>>, vector<1x2x4x128xbf16>
    %48 = vector.shape_cast %47 : vector<1x2x4x128xbf16> to vector<2x4x128xbf16>
    %49 = tpu.concatenate %40, %44, %48 in 2 : vector<2x4x128xbf16>, vector<2x4x128xbf16>, vector<2x4x128xbf16> -> vector<2x4x384xbf16>
    %50 = vector.shape_cast %49 : vector<2x4x384xbf16> to vector<8x384xbf16>
    %c2_38 = arith.constant 2 : index
    %c0_39 = arith.constant 0 : index
    %c0_40 = arith.constant 0 : index
    %51 = vector.load %arg3[%c2_38, %c0_39, %c0_40] : memref<3x384x256xbf16, #tpu.memory_space<vmem>>, vector<1x384x256xbf16>
    %52 = vector.shape_cast %51 : vector<1x384x256xbf16> to vector<384x256xbf16>
    %cst_41 = arith.constant dense<0.000000e+00> : vector<8x256xf32>
    %53 = tpu.matmul %50, %52, %cst_41 {dimension_numbers = #tpu.dot_dimension_numbers<[1], [0], [0], [1], [0, 0, 1, 1], [], []>} : vector<8x384xbf16>, vector<384x256xbf16>, vector<8x256xf32> -> vector<8x256xf32>
    %54 = arith.addf %36, %53 : vector<8x256xf32>
    %c0_42 = arith.constant 0 : index
    %c0_43 = arith.constant 0 : index
    %55 = vector.load %arg4[%c0_42, %c0_43] : memref<1x256xf32, #tpu.memory_space<vmem>>, vector<1x256xf32>
    %56 = vector.broadcast %55 : vector<1x256xf32> to vector<8x256xf32>
    %57 = arith.addf %54, %56 : vector<8x256xf32>
    %cst_44 = arith.constant 0.000000e+00 : f32
    %58 = vector.broadcast %cst_44 : f32 to vector<8x256xf32>
    %59 = arith.maximumf %57, %58 : vector<8x256xf32>
    %60 = vector.shape_cast %59 : vector<8x256xf32> to vector<2x4x256xf32>
    %c0_i32_45 = arith.constant 0 : i32
    %61 = arith.cmpi eq, %arg1, %c0_i32_45 : i32
    %62 = arith.extui %61 : i1 to i32
    %c0_i32_46 = arith.constant 0 : i32
    %63 = arith.cmpi ne, %62, %c0_i32_46 : i32
    scf.if %63 {
      %cst_52 = arith.constant 0.000000e+00 : bf16
      %71 = vector.broadcast %cst_52 : bf16 to vector<1x6x6x256xbf16>
      %c0_53 = arith.constant 0 : index
      %c0_54 = arith.constant 0 : index
      %c0_55 = arith.constant 0 : index
      %c0_56 = arith.constant 0 : index
      %72 = vector.load %arg5[%c0_53, %c0_54, %c0_55, %c0_56] : memref<1x6x6x256xbf16, #tpu.memory_space<vmem>>, vector<1x6x6x256xbf16>
      tpu.vector_store %arg5[%c0_53, %c0_54, %c0_55, %c0_56], %71 {strides = array<i32>} : memref<1x6x6x256xbf16, #tpu.memory_space<vmem>>, vector<1x6x6x256xbf16>,
    } else {
    }
    %64 = arith.truncf %60 : vector<2x4x256xf32> to vector<2x4x256xbf16>
    %c2_i32_47 = arith.constant 2 : i32
    %65 = arith.muli %arg1, %c2_i32_47 : i32
    %c1_i32_48 = arith.constant 1 : i32
    %66 = arith.addi %65, %c1_i32_48 : i32
    %c0_49 = arith.constant 0 : index
    %67 = arith.index_cast %66 : i32 to index
    %c1_50 = arith.constant 1 : index
    %c0_51 = arith.constant 0 : index
    %68 = vector.load %arg5[%c0_49, %67, %c1_50, %c0_51] : memref<1x6x6x256xbf16, #tpu.memory_space<vmem>>, vector<1x2x4x256xbf16>
    %69 = vector.shape_cast %68 : vector<1x2x4x256xbf16> to vector<2x4x256xbf16>
    %70 = vector.shape_cast %64 : vector<2x4x256xbf16> to vector<1x2x4x256xbf16>
    tpu.vector_store %arg5[%c0_49, %67, %c1_50, %c0_51], %70 {strides = array<i32>} : memref<1x6x6x256xbf16, #tpu.memory_space<vmem>>, vector<1x2x4x256xbf16>,
    return
  }
  func.func @transform_0(%arg0: i32, %arg1: i32) -> (i32, i32, i32, i32) {
    %c0_i32 = arith.constant 0 : i32
    %c0_i32_0 = arith.constant 0 : i32
    %c0_i32_1 = arith.constant 0 : i32
    %c0_i32_2 = arith.constant 0 : i32
    return %arg0, %c0_i32, %c0_i32_0, %c0_i32_1 : i32, i32, i32, i32
  }
  func.func @transform_1(%arg0: i32, %arg1: i32) -> (i32, i32, i32) {
    %c0_i32 = arith.constant 0 : i32
    %c0_i32_0 = arith.constant 0 : i32
    %c0_i32_1 = arith.constant 0 : i32
    %c0_i32_2 = arith.constant 0 : i32
    return %c0_i32, %c0_i32_0, %c0_i32_1 : i32, i32, i32
  }
  func.func @transform_2(%arg0: i32, %arg1: i32) -> (i32, i32) {
    %c0_i32 = arith.constant 0 : i32
    %c0_i32_0 = arith.constant 0 : i32
    %c0_i32_1 = arith.constant 0 : i32
    return %c0_i32, %c0_i32_0 : i32, i32
  }
  func.func @transform_3(%arg0: i32, %arg1: i32) -> (i32, i32, i32, i32) {
    %c0_i32 = arith.constant 0 : i32
    %c0_i32_0 = arith.constant 0 : i32
    %c0_i32_1 = arith.constant 0 : i32
    %c0_i32_2 = arith.constant 0 : i32
    return %arg0, %c0_i32, %c0_i32_0, %c0_i32_1 : i32, i32, i32, i32
  }
}

module attributes {stable_mosaic.version = 11 : i64} {
  func.func @_conv3x3_kernel(%arg0: i32, %arg1: i32, %arg2: memref<1x6x6x256xbf16, #tpu.memory_space<vmem>>, %arg3: memref<3x768x256xbf16, #tpu.memory_space<vmem>>, %arg4: memref<1x256xf32, #tpu.memory_space<vmem>>, %arg5: memref<1x6x6x256xbf16, #tpu.memory_space<vmem>>) attributes {dimension_semantics = [#tpu.dimension_semantics<parallel>, #tpu.dimension_semantics<arbitrary>], iteration_bounds = array<i64: 4, 2>, scalar_prefetch = 0 : i64, scratch_operands = 0 : i64, tpu.core_type = #tpu.core_type<tc>, window_params = [{transform_indices = @transform_0, window_bounds = array<i64: 1, 6, 6, 256>}, {pipeline_mode = #tpu.pipeline_mode<synchronous>, transform_indices = @transform_1, window_bounds = array<i64: 3, 768, 256>}, {pipeline_mode = #tpu.pipeline_mode<synchronous>, transform_indices = @transform_2, window_bounds = array<i64: 1, 256>}, {transform_indices = @transform_3, window_bounds = array<i64: 1, 6, 6, 256>}]} {
    %c2_i32 = arith.constant 2 : i32
    %0 = arith.muli %arg1, %c2_i32 : i32
    %1 = tpu.assume_multiple %0, 2 : i32
    %c0_i32 = arith.constant 0 : i32
    %2 = arith.addi %1, %c0_i32 : i32
    %c0 = arith.constant 0 : index
    %3 = arith.index_cast %2 : i32 to index
    %c0_0 = arith.constant 0 : index
    %c0_1 = arith.constant 0 : index
    %4 = vector.load %arg2[%c0, %3, %c0_0, %c0_1] : memref<1x6x6x256xbf16, #tpu.memory_space<vmem>>, vector<1x2x4x256xbf16>
    %5 = vector.shape_cast %4 : vector<1x2x4x256xbf16> to vector<2x4x256xbf16>
    %c1_i32 = arith.constant 1 : i32
    %6 = arith.addi %1, %c1_i32 : i32
    %c0_2 = arith.constant 0 : index
    %7 = arith.index_cast %6 : i32 to index
    %c0_3 = arith.constant 0 : index
    %c0_4 = arith.constant 0 : index
    %8 = vector.load %arg2[%c0_2, %7, %c0_3, %c0_4] : memref<1x6x6x256xbf16, #tpu.memory_space<vmem>>, vector<1x2x4x256xbf16>
    %9 = vector.shape_cast %8 : vector<1x2x4x256xbf16> to vector<2x4x256xbf16>
    %c2_i32_5 = arith.constant 2 : i32
    %10 = arith.addi %1, %c2_i32_5 : i32
    %c0_6 = arith.constant 0 : index
    %11 = arith.index_cast %10 : i32 to index
    %c0_7 = arith.constant 0 : index
    %c0_8 = arith.constant 0 : index
    %12 = vector.load %arg2[%c0_6, %11, %c0_7, %c0_8] : memref<1x6x6x256xbf16, #tpu.memory_space<vmem>>, vector<1x2x4x256xbf16>
    %13 = vector.shape_cast %12 : vector<1x2x4x256xbf16> to vector<2x4x256xbf16>
    %14 = tpu.concatenate %5, %9, %13 in 2 : vector<2x4x256xbf16>, vector<2x4x256xbf16>, vector<2x4x256xbf16> -> vector<2x4x768xbf16>
    %15 = vector.shape_cast %14 : vector<2x4x768xbf16> to vector<8x768xbf16>
    %c0_9 = arith.constant 0 : index
    %c0_10 = arith.constant 0 : index
    %c0_11 = arith.constant 0 : index
    %16 = vector.load %arg3[%c0_9, %c0_10, %c0_11] : memref<3x768x256xbf16, #tpu.memory_space<vmem>>, vector<1x768x256xbf16>
    %17 = vector.shape_cast %16 : vector<1x768x256xbf16> to vector<768x256xbf16>
    %cst = arith.constant dense<0.000000e+00> : vector<8x256xf32>
    %18 = tpu.matmul %15, %17, %cst {dimension_numbers = #tpu.dot_dimension_numbers<[1], [0], [0], [1], [0, 0, 1, 1], [], []>} : vector<8x768xbf16>, vector<768x256xbf16>, vector<8x256xf32> -> vector<8x256xf32>
    %c0_i32_12 = arith.constant 0 : i32
    %19 = arith.addi %1, %c0_i32_12 : i32
    %c0_13 = arith.constant 0 : index
    %20 = arith.index_cast %19 : i32 to index
    %c1 = arith.constant 1 : index
    %c0_14 = arith.constant 0 : index
    %21 = vector.load %arg2[%c0_13, %20, %c1, %c0_14] : memref<1x6x6x256xbf16, #tpu.memory_space<vmem>>, vector<1x2x4x256xbf16>
    %22 = vector.shape_cast %21 : vector<1x2x4x256xbf16> to vector<2x4x256xbf16>
    %c1_i32_15 = arith.constant 1 : i32
    %23 = arith.addi %1, %c1_i32_15 : i32
    %c0_16 = arith.constant 0 : index
    %24 = arith.index_cast %23 : i32 to index
    %c1_17 = arith.constant 1 : index
    %c0_18 = arith.constant 0 : index
    %25 = vector.load %arg2[%c0_16, %24, %c1_17, %c0_18] : memref<1x6x6x256xbf16, #tpu.memory_space<vmem>>, vector<1x2x4x256xbf16>
    %26 = vector.shape_cast %25 : vector<1x2x4x256xbf16> to vector<2x4x256xbf16>
    %c2_i32_19 = arith.constant 2 : i32
    %27 = arith.addi %1, %c2_i32_19 : i32
    %c0_20 = arith.constant 0 : index
    %28 = arith.index_cast %27 : i32 to index
    %c1_21 = arith.constant 1 : index
    %c0_22 = arith.constant 0 : index
    %29 = vector.load %arg2[%c0_20, %28, %c1_21, %c0_22] : memref<1x6x6x256xbf16, #tpu.memory_space<vmem>>, vector<1x2x4x256xbf16>
    %30 = vector.shape_cast %29 : vector<1x2x4x256xbf16> to vector<2x4x256xbf16>
    %31 = tpu.concatenate %22, %26, %30 in 2 : vector<2x4x256xbf16>, vector<2x4x256xbf16>, vector<2x4x256xbf16> -> vector<2x4x768xbf16>
    %32 = vector.shape_cast %31 : vector<2x4x768xbf16> to vector<8x768xbf16>
    %c1_23 = arith.constant 1 : index
    %c0_24 = arith.constant 0 : index
    %c0_25 = arith.constant 0 : index
    %33 = vector.load %arg3[%c1_23, %c0_24, %c0_25] : memref<3x768x256xbf16, #tpu.memory_space<vmem>>, vector<1x768x256xbf16>
    %34 = vector.shape_cast %33 : vector<1x768x256xbf16> to vector<768x256xbf16>
    %cst_26 = arith.constant dense<0.000000e+00> : vector<8x256xf32>
    %35 = tpu.matmul %32, %34, %cst_26 {dimension_numbers = #tpu.dot_dimension_numbers<[1], [0], [0], [1], [0, 0, 1, 1], [], []>} : vector<8x768xbf16>, vector<768x256xbf16>, vector<8x256xf32> -> vector<8x256xf32>
    %36 = arith.addf %18, %35 : vector<8x256xf32>
    %c0_i32_27 = arith.constant 0 : i32
    %37 = arith.addi %1, %c0_i32_27 : i32
    %c0_28 = arith.constant 0 : index
    %38 = arith.index_cast %37 : i32 to index
    %c2 = arith.constant 2 : index
    %c0_29 = arith.constant 0 : index
    %39 = vector.load %arg2[%c0_28, %38, %c2, %c0_29] : memref<1x6x6x256xbf16, #tpu.memory_space<vmem>>, vector<1x2x4x256xbf16>
    %40 = vector.shape_cast %39 : vector<1x2x4x256xbf16> to vector<2x4x256xbf16>
    %c1_i32_30 = arith.constant 1 : i32
    %41 = arith.addi %1, %c1_i32_30 : i32
    %c0_31 = arith.constant 0 : index
    %42 = arith.index_cast %41 : i32 to index
    %c2_32 = arith.constant 2 : index
    %c0_33 = arith.constant 0 : index
    %43 = vector.load %arg2[%c0_31, %42, %c2_32, %c0_33] : memref<1x6x6x256xbf16, #tpu.memory_space<vmem>>, vector<1x2x4x256xbf16>
    %44 = vector.shape_cast %43 : vector<1x2x4x256xbf16> to vector<2x4x256xbf16>
    %c2_i32_34 = arith.constant 2 : i32
    %45 = arith.addi %1, %c2_i32_34 : i32
    %c0_35 = arith.constant 0 : index
    %46 = arith.index_cast %45 : i32 to index
    %c2_36 = arith.constant 2 : index
    %c0_37 = arith.constant 0 : index
    %47 = vector.load %arg2[%c0_35, %46, %c2_36, %c0_37] : memref<1x6x6x256xbf16, #tpu.memory_space<vmem>>, vector<1x2x4x256xbf16>
    %48 = vector.shape_cast %47 : vector<1x2x4x256xbf16> to vector<2x4x256xbf16>
    %49 = tpu.concatenate %40, %44, %48 in 2 : vector<2x4x256xbf16>, vector<2x4x256xbf16>, vector<2x4x256xbf16> -> vector<2x4x768xbf16>
    %50 = vector.shape_cast %49 : vector<2x4x768xbf16> to vector<8x768xbf16>
    %c2_38 = arith.constant 2 : index
    %c0_39 = arith.constant 0 : index
    %c0_40 = arith.constant 0 : index
    %51 = vector.load %arg3[%c2_38, %c0_39, %c0_40] : memref<3x768x256xbf16, #tpu.memory_space<vmem>>, vector<1x768x256xbf16>
    %52 = vector.shape_cast %51 : vector<1x768x256xbf16> to vector<768x256xbf16>
    %cst_41 = arith.constant dense<0.000000e+00> : vector<8x256xf32>
    %53 = tpu.matmul %50, %52, %cst_41 {dimension_numbers = #tpu.dot_dimension_numbers<[1], [0], [0], [1], [0, 0, 1, 1], [], []>} : vector<8x768xbf16>, vector<768x256xbf16>, vector<8x256xf32> -> vector<8x256xf32>
    %54 = arith.addf %36, %53 : vector<8x256xf32>
    %c0_42 = arith.constant 0 : index
    %c0_43 = arith.constant 0 : index
    %55 = vector.load %arg4[%c0_42, %c0_43] : memref<1x256xf32, #tpu.memory_space<vmem>>, vector<1x256xf32>
    %56 = vector.broadcast %55 : vector<1x256xf32> to vector<8x256xf32>
    %57 = arith.addf %54, %56 : vector<8x256xf32>
    %cst_44 = arith.constant 0.000000e+00 : f32
    %58 = vector.broadcast %cst_44 : f32 to vector<8x256xf32>
    %59 = arith.maximumf %57, %58 : vector<8x256xf32>
    %60 = vector.shape_cast %59 : vector<8x256xf32> to vector<2x4x256xf32>
    %c0_i32_45 = arith.constant 0 : i32
    %61 = arith.cmpi eq, %arg1, %c0_i32_45 : i32
    %62 = arith.extui %61 : i1 to i32
    %c0_i32_46 = arith.constant 0 : i32
    %63 = arith.cmpi ne, %62, %c0_i32_46 : i32
    scf.if %63 {
      %cst_52 = arith.constant 0.000000e+00 : bf16
      %71 = vector.broadcast %cst_52 : bf16 to vector<1x6x6x256xbf16>
      %c0_53 = arith.constant 0 : index
      %c0_54 = arith.constant 0 : index
      %c0_55 = arith.constant 0 : index
      %c0_56 = arith.constant 0 : index
      %72 = vector.load %arg5[%c0_53, %c0_54, %c0_55, %c0_56] : memref<1x6x6x256xbf16, #tpu.memory_space<vmem>>, vector<1x6x6x256xbf16>
      tpu.vector_store %arg5[%c0_53, %c0_54, %c0_55, %c0_56], %71 {strides = array<i32>} : memref<1x6x6x256xbf16, #tpu.memory_space<vmem>>, vector<1x6x6x256xbf16>,
    } else {
    }
    %64 = arith.truncf %60 : vector<2x4x256xf32> to vector<2x4x256xbf16>
    %c2_i32_47 = arith.constant 2 : i32
    %65 = arith.muli %arg1, %c2_i32_47 : i32
    %c1_i32_48 = arith.constant 1 : i32
    %66 = arith.addi %65, %c1_i32_48 : i32
    %c0_49 = arith.constant 0 : index
    %67 = arith.index_cast %66 : i32 to index
    %c1_50 = arith.constant 1 : index
    %c0_51 = arith.constant 0 : index
    %68 = vector.load %arg5[%c0_49, %67, %c1_50, %c0_51] : memref<1x6x6x256xbf16, #tpu.memory_space<vmem>>, vector<1x2x4x256xbf16>
    %69 = vector.shape_cast %68 : vector<1x2x4x256xbf16> to vector<2x4x256xbf16>
    %70 = vector.shape_cast %64 : vector<2x4x256xbf16> to vector<1x2x4x256xbf16>
    tpu.vector_store %arg5[%c0_49, %67, %c1_50, %c0_51], %70 {strides = array<i32>} : memref<1x6x6x256xbf16, #tpu.memory_space<vmem>>, vector<1x2x4x256xbf16>,
    return
  }
  func.func @transform_0(%arg0: i32, %arg1: i32) -> (i32, i32, i32, i32) {
    %c0_i32 = arith.constant 0 : i32
    %c0_i32_0 = arith.constant 0 : i32
    %c0_i32_1 = arith.constant 0 : i32
    %c0_i32_2 = arith.constant 0 : i32
    return %arg0, %c0_i32, %c0_i32_0, %c0_i32_1 : i32, i32, i32, i32
  }
  func.func @transform_1(%arg0: i32, %arg1: i32) -> (i32, i32, i32) {
    %c0_i32 = arith.constant 0 : i32
    %c0_i32_0 = arith.constant 0 : i32
    %c0_i32_1 = arith.constant 0 : i32
    %c0_i32_2 = arith.constant 0 : i32
    return %c0_i32, %c0_i32_0, %c0_i32_1 : i32, i32, i32
  }
  func.func @transform_2(%arg0: i32, %arg1: i32) -> (i32, i32) {
    %c0_i32 = arith.constant 0 : i32
    %c0_i32_0 = arith.constant 0 : i32
    %c0_i32_1 = arith.constant 0 : i32
    return %c0_i32, %c0_i32_0 : i32, i32
  }
  func.func @transform_3(%arg0: i32, %arg1: i32) -> (i32, i32, i32, i32) {
    %c0_i32 = arith.constant 0 : i32
    %c0_i32_0 = arith.constant 0 : i32
    %c0_i32_1 = arith.constant 0 : i32
    %c0_i32_2 = arith.constant 0 : i32
    return %arg0, %c0_i32, %c0_i32_0, %c0_i32_1 : i32, i32, i32, i32
  }
}

module attributes {stable_mosaic.version = 11 : i64} {
  func.func @_conv3x3_kernel(%arg0: i32, %arg1: i32, %arg2: memref<1x6x6x256xbf16, #tpu.memory_space<vmem>>, %arg3: memref<3x768x256xbf16, #tpu.memory_space<vmem>>, %arg4: memref<1x256xf32, #tpu.memory_space<vmem>>, %arg5: memref<1x2x4x256xbf16, #tpu.memory_space<vmem>>) attributes {dimension_semantics = [#tpu.dimension_semantics<parallel>, #tpu.dimension_semantics<parallel>], iteration_bounds = array<i64: 4, 2>, scalar_prefetch = 0 : i64, scratch_operands = 0 : i64, tpu.core_type = #tpu.core_type<tc>, window_params = [{transform_indices = @transform_0, window_bounds = array<i64: 1, 6, 6, 256>}, {pipeline_mode = #tpu.pipeline_mode<synchronous>, transform_indices = @transform_1, window_bounds = array<i64: 3, 768, 256>}, {pipeline_mode = #tpu.pipeline_mode<synchronous>, transform_indices = @transform_2, window_bounds = array<i64: 1, 256>}, {transform_indices = @transform_3, window_bounds = array<i64: 1, 2, 4, 256>}]} {
    %c2_i32 = arith.constant 2 : i32
    %0 = arith.muli %arg1, %c2_i32 : i32
    %1 = tpu.assume_multiple %0, 2 : i32
    %c0_i32 = arith.constant 0 : i32
    %2 = arith.addi %1, %c0_i32 : i32
    %c0 = arith.constant 0 : index
    %3 = arith.index_cast %2 : i32 to index
    %c0_0 = arith.constant 0 : index
    %c0_1 = arith.constant 0 : index
    %4 = vector.load %arg2[%c0, %3, %c0_0, %c0_1] : memref<1x6x6x256xbf16, #tpu.memory_space<vmem>>, vector<1x2x4x256xbf16>
    %5 = vector.shape_cast %4 : vector<1x2x4x256xbf16> to vector<2x4x256xbf16>
    %c1_i32 = arith.constant 1 : i32
    %6 = arith.addi %1, %c1_i32 : i32
    %c0_2 = arith.constant 0 : index
    %7 = arith.index_cast %6 : i32 to index
    %c0_3 = arith.constant 0 : index
    %c0_4 = arith.constant 0 : index
    %8 = vector.load %arg2[%c0_2, %7, %c0_3, %c0_4] : memref<1x6x6x256xbf16, #tpu.memory_space<vmem>>, vector<1x2x4x256xbf16>
    %9 = vector.shape_cast %8 : vector<1x2x4x256xbf16> to vector<2x4x256xbf16>
    %c2_i32_5 = arith.constant 2 : i32
    %10 = arith.addi %1, %c2_i32_5 : i32
    %c0_6 = arith.constant 0 : index
    %11 = arith.index_cast %10 : i32 to index
    %c0_7 = arith.constant 0 : index
    %c0_8 = arith.constant 0 : index
    %12 = vector.load %arg2[%c0_6, %11, %c0_7, %c0_8] : memref<1x6x6x256xbf16, #tpu.memory_space<vmem>>, vector<1x2x4x256xbf16>
    %13 = vector.shape_cast %12 : vector<1x2x4x256xbf16> to vector<2x4x256xbf16>
    %14 = tpu.concatenate %5, %9, %13 in 2 : vector<2x4x256xbf16>, vector<2x4x256xbf16>, vector<2x4x256xbf16> -> vector<2x4x768xbf16>
    %15 = vector.shape_cast %14 : vector<2x4x768xbf16> to vector<8x768xbf16>
    %c0_9 = arith.constant 0 : index
    %c0_10 = arith.constant 0 : index
    %c0_11 = arith.constant 0 : index
    %16 = vector.load %arg3[%c0_9, %c0_10, %c0_11] : memref<3x768x256xbf16, #tpu.memory_space<vmem>>, vector<1x768x256xbf16>
    %17 = vector.shape_cast %16 : vector<1x768x256xbf16> to vector<768x256xbf16>
    %cst = arith.constant dense<0.000000e+00> : vector<8x256xf32>
    %18 = tpu.matmul %15, %17, %cst {dimension_numbers = #tpu.dot_dimension_numbers<[1], [0], [0], [1], [0, 0, 1, 1], [], []>} : vector<8x768xbf16>, vector<768x256xbf16>, vector<8x256xf32> -> vector<8x256xf32>
    %c0_i32_12 = arith.constant 0 : i32
    %19 = arith.addi %1, %c0_i32_12 : i32
    %c0_13 = arith.constant 0 : index
    %20 = arith.index_cast %19 : i32 to index
    %c1 = arith.constant 1 : index
    %c0_14 = arith.constant 0 : index
    %21 = vector.load %arg2[%c0_13, %20, %c1, %c0_14] : memref<1x6x6x256xbf16, #tpu.memory_space<vmem>>, vector<1x2x4x256xbf16>
    %22 = vector.shape_cast %21 : vector<1x2x4x256xbf16> to vector<2x4x256xbf16>
    %c1_i32_15 = arith.constant 1 : i32
    %23 = arith.addi %1, %c1_i32_15 : i32
    %c0_16 = arith.constant 0 : index
    %24 = arith.index_cast %23 : i32 to index
    %c1_17 = arith.constant 1 : index
    %c0_18 = arith.constant 0 : index
    %25 = vector.load %arg2[%c0_16, %24, %c1_17, %c0_18] : memref<1x6x6x256xbf16, #tpu.memory_space<vmem>>, vector<1x2x4x256xbf16>
    %26 = vector.shape_cast %25 : vector<1x2x4x256xbf16> to vector<2x4x256xbf16>
    %c2_i32_19 = arith.constant 2 : i32
    %27 = arith.addi %1, %c2_i32_19 : i32
    %c0_20 = arith.constant 0 : index
    %28 = arith.index_cast %27 : i32 to index
    %c1_21 = arith.constant 1 : index
    %c0_22 = arith.constant 0 : index
    %29 = vector.load %arg2[%c0_20, %28, %c1_21, %c0_22] : memref<1x6x6x256xbf16, #tpu.memory_space<vmem>>, vector<1x2x4x256xbf16>
    %30 = vector.shape_cast %29 : vector<1x2x4x256xbf16> to vector<2x4x256xbf16>
    %31 = tpu.concatenate %22, %26, %30 in 2 : vector<2x4x256xbf16>, vector<2x4x256xbf16>, vector<2x4x256xbf16> -> vector<2x4x768xbf16>
    %32 = vector.shape_cast %31 : vector<2x4x768xbf16> to vector<8x768xbf16>
    %c1_23 = arith.constant 1 : index
    %c0_24 = arith.constant 0 : index
    %c0_25 = arith.constant 0 : index
    %33 = vector.load %arg3[%c1_23, %c0_24, %c0_25] : memref<3x768x256xbf16, #tpu.memory_space<vmem>>, vector<1x768x256xbf16>
    %34 = vector.shape_cast %33 : vector<1x768x256xbf16> to vector<768x256xbf16>
    %cst_26 = arith.constant dense<0.000000e+00> : vector<8x256xf32>
    %35 = tpu.matmul %32, %34, %cst_26 {dimension_numbers = #tpu.dot_dimension_numbers<[1], [0], [0], [1], [0, 0, 1, 1], [], []>} : vector<8x768xbf16>, vector<768x256xbf16>, vector<8x256xf32> -> vector<8x256xf32>
    %36 = arith.addf %18, %35 : vector<8x256xf32>
    %c0_i32_27 = arith.constant 0 : i32
    %37 = arith.addi %1, %c0_i32_27 : i32
    %c0_28 = arith.constant 0 : index
    %38 = arith.index_cast %37 : i32 to index
    %c2 = arith.constant 2 : index
    %c0_29 = arith.constant 0 : index
    %39 = vector.load %arg2[%c0_28, %38, %c2, %c0_29] : memref<1x6x6x256xbf16, #tpu.memory_space<vmem>>, vector<1x2x4x256xbf16>
    %40 = vector.shape_cast %39 : vector<1x2x4x256xbf16> to vector<2x4x256xbf16>
    %c1_i32_30 = arith.constant 1 : i32
    %41 = arith.addi %1, %c1_i32_30 : i32
    %c0_31 = arith.constant 0 : index
    %42 = arith.index_cast %41 : i32 to index
    %c2_32 = arith.constant 2 : index
    %c0_33 = arith.constant 0 : index
    %43 = vector.load %arg2[%c0_31, %42, %c2_32, %c0_33] : memref<1x6x6x256xbf16, #tpu.memory_space<vmem>>, vector<1x2x4x256xbf16>
    %44 = vector.shape_cast %43 : vector<1x2x4x256xbf16> to vector<2x4x256xbf16>
    %c2_i32_34 = arith.constant 2 : i32
    %45 = arith.addi %1, %c2_i32_34 : i32
    %c0_35 = arith.constant 0 : index
    %46 = arith.index_cast %45 : i32 to index
    %c2_36 = arith.constant 2 : index
    %c0_37 = arith.constant 0 : index
    %47 = vector.load %arg2[%c0_35, %46, %c2_36, %c0_37] : memref<1x6x6x256xbf16, #tpu.memory_space<vmem>>, vector<1x2x4x256xbf16>
    %48 = vector.shape_cast %47 : vector<1x2x4x256xbf16> to vector<2x4x256xbf16>
    %49 = tpu.concatenate %40, %44, %48 in 2 : vector<2x4x256xbf16>, vector<2x4x256xbf16>, vector<2x4x256xbf16> -> vector<2x4x768xbf16>
    %50 = vector.shape_cast %49 : vector<2x4x768xbf16> to vector<8x768xbf16>
    %c2_38 = arith.constant 2 : index
    %c0_39 = arith.constant 0 : index
    %c0_40 = arith.constant 0 : index
    %51 = vector.load %arg3[%c2_38, %c0_39, %c0_40] : memref<3x768x256xbf16, #tpu.memory_space<vmem>>, vector<1x768x256xbf16>
    %52 = vector.shape_cast %51 : vector<1x768x256xbf16> to vector<768x256xbf16>
    %cst_41 = arith.constant dense<0.000000e+00> : vector<8x256xf32>
    %53 = tpu.matmul %50, %52, %cst_41 {dimension_numbers = #tpu.dot_dimension_numbers<[1], [0], [0], [1], [0, 0, 1, 1], [], []>} : vector<8x768xbf16>, vector<768x256xbf16>, vector<8x256xf32> -> vector<8x256xf32>
    %54 = arith.addf %36, %53 : vector<8x256xf32>
    %c0_42 = arith.constant 0 : index
    %c0_43 = arith.constant 0 : index
    %55 = vector.load %arg4[%c0_42, %c0_43] : memref<1x256xf32, #tpu.memory_space<vmem>>, vector<1x256xf32>
    %56 = vector.broadcast %55 : vector<1x256xf32> to vector<8x256xf32>
    %57 = arith.addf %54, %56 : vector<8x256xf32>
    %cst_44 = arith.constant 0.000000e+00 : f32
    %58 = vector.broadcast %cst_44 : f32 to vector<8x256xf32>
    %59 = arith.maximumf %57, %58 : vector<8x256xf32>
    %60 = vector.shape_cast %59 : vector<8x256xf32> to vector<2x4x256xf32>
    %61 = arith.truncf %60 : vector<2x4x256xf32> to vector<2x4x256xbf16>
    %c0_45 = arith.constant 0 : index
    %c0_46 = arith.constant 0 : index
    %c0_47 = arith.constant 0 : index
    %c0_48 = arith.constant 0 : index
    %62 = vector.load %arg5[%c0_45, %c0_46, %c0_47, %c0_48] : memref<1x2x4x256xbf16, #tpu.memory_space<vmem>>, vector<1x2x4x256xbf16>
    %63 = vector.shape_cast %62 : vector<1x2x4x256xbf16> to vector<2x4x256xbf16>
    %64 = vector.shape_cast %61 : vector<2x4x256xbf16> to vector<1x2x4x256xbf16>
    tpu.vector_store %arg5[%c0_45, %c0_46, %c0_47, %c0_48], %64 {strides = array<i32>} : memref<1x2x4x256xbf16, #tpu.memory_space<vmem>>, vector<1x2x4x256xbf16>,
    return
  }
  func.func @transform_0(%arg0: i32, %arg1: i32) -> (i32, i32, i32, i32) {
    %c0_i32 = arith.constant 0 : i32
    %c0_i32_0 = arith.constant 0 : i32
    %c0_i32_1 = arith.constant 0 : i32
    %c0_i32_2 = arith.constant 0 : i32
    return %arg0, %c0_i32, %c0_i32_0, %c0_i32_1 : i32, i32, i32, i32
  }
  func.func @transform_1(%arg0: i32, %arg1: i32) -> (i32, i32, i32) {
    %c0_i32 = arith.constant 0 : i32
    %c0_i32_0 = arith.constant 0 : i32
    %c0_i32_1 = arith.constant 0 : i32
    %c0_i32_2 = arith.constant 0 : i32
    return %c0_i32, %c0_i32_0, %c0_i32_1 : i32, i32, i32
  }
  func.func @transform_2(%arg0: i32, %arg1: i32) -> (i32, i32) {
    %c0_i32 = arith.constant 0 : i32
    %c0_i32_0 = arith.constant 0 : i32
    %c0_i32_1 = arith.constant 0 : i32
    return %c0_i32, %c0_i32_0 : i32, i32
  }
  func.func @transform_3(%arg0: i32, %arg1: i32) -> (i32, i32, i32, i32) {
    %c0_i32 = arith.constant 0 : i32
    %c0_i32_0 = arith.constant 0 : i32
    %c0_i32_1 = arith.constant 0 : i32
    return %arg0, %arg1, %c0_i32, %c0_i32_0 : i32, i32, i32, i32
  }
}

module attributes {stable_mosaic.version = 11 : i64} {
  func.func @_level_loss_kernel(%arg0: i32, %arg1: i32, %arg2: memref<1x2x4x256xbf16, #tpu.memory_space<vmem>>, %arg3: memref<1x2x4x256xbf16, #tpu.memory_space<vmem>>, %arg4: memref<1x2x128xf32, #tpu.memory_space<vmem>>) attributes {dimension_semantics = [#tpu.dimension_semantics<parallel>, #tpu.dimension_semantics<arbitrary>], iteration_bounds = array<i64: 2, 2>, scalar_prefetch = 0 : i64, scratch_operands = 0 : i64, tpu.core_type = #tpu.core_type<tc>, window_params = [{transform_indices = @transform_0, window_bounds = array<i64: 1, 2, 4, 256>}, {transform_indices = @transform_1, window_bounds = array<i64: 1, 2, 4, 256>}, {transform_indices = @transform_2, window_bounds = array<i64: 1, 2, 128>}]} {
    %c0 = arith.constant 0 : index
    %c0_0 = arith.constant 0 : index
    %c0_1 = arith.constant 0 : index
    %c0_2 = arith.constant 0 : index
    %0 = vector.load %arg2[%c0, %c0_0, %c0_1, %c0_2] : memref<1x2x4x256xbf16, #tpu.memory_space<vmem>>, vector<1x2x4x256xbf16>
    %1 = vector.shape_cast %0 : vector<1x2x4x256xbf16> to vector<2x4x256xbf16>
    %2 = arith.extf %1 : vector<2x4x256xbf16> to vector<2x4x256xf32>
    %c0_3 = arith.constant 0 : index
    %c0_4 = arith.constant 0 : index
    %c0_5 = arith.constant 0 : index
    %c0_6 = arith.constant 0 : index
    %3 = vector.load %arg3[%c0_3, %c0_4, %c0_5, %c0_6] : memref<1x2x4x256xbf16, #tpu.memory_space<vmem>>, vector<1x2x4x256xbf16>
    %4 = vector.shape_cast %3 : vector<1x2x4x256xbf16> to vector<2x4x256xbf16>
    %5 = arith.extf %4 : vector<2x4x256xbf16> to vector<2x4x256xf32>
    %6 = arith.mulf %2, %2 : vector<2x4x256xf32>
    %cst = arith.constant dense<0.000000e+00> : vector<2x4xf32>
    %7 = vector.multi_reduction <add>, %6, %cst [2] : vector<2x4x256xf32> to vector<2x4xf32>
    %8 = vector.shape_cast %7 : vector<2x4xf32> to vector<2x4x1xf32>
    %9 = arith.mulf %5, %5 : vector<2x4x256xf32>
    %cst_7 = arith.constant dense<0.000000e+00> : vector<2x4xf32>
    %10 = vector.multi_reduction <add>, %9, %cst_7 [2] : vector<2x4x256xf32> to vector<2x4xf32>
    %11 = vector.shape_cast %10 : vector<2x4xf32> to vector<2x4x1xf32>
    %cst_8 = arith.constant 9.99999968E-21 : f32
    %12 = vector.broadcast %cst_8 : f32 to vector<2x4x1xf32>
    %13 = arith.addf %8, %12 : vector<2x4x1xf32>
    %14 = math.rsqrt %13 : vector<2x4x1xf32>
    %15 = vector.broadcast %14 : vector<2x4x1xf32> to vector<2x4x256xf32>
    %16 = arith.mulf %2, %15 : vector<2x4x256xf32>
    %cst_9 = arith.constant 9.99999968E-21 : f32
    %17 = vector.broadcast %cst_9 : f32 to vector<2x4x1xf32>
    %18 = arith.addf %11, %17 : vector<2x4x1xf32>
    %19 = math.rsqrt %18 : vector<2x4x1xf32>
    %20 = vector.broadcast %19 : vector<2x4x1xf32> to vector<2x4x256xf32>
    %21 = arith.mulf %5, %20 : vector<2x4x256xf32>
    %22 = arith.subf %16, %21 : vector<2x4x256xf32>
    %23 = arith.mulf %22, %22 : vector<2x4x256xf32>
    %cst_10 = arith.constant dense<0.000000e+00> : vector<4x256xf32>
    %24 = vector.multi_reduction <add>, %23, %cst_10 [0] : vector<2x4x256xf32> to vector<4x256xf32>
    %cst_11 = arith.constant dense<0.000000e+00> : vector<256xf32>
    %25 = vector.multi_reduction <add>, %24, %cst_11 [0] : vector<4x256xf32> to vector<256xf32>
    %26 = vector.shape_cast %25 : vector<256xf32> to vector<1x256xf32>
    %cst_12 = arith.constant dense<0.000000e+00> : vector<1xf32>
    %27 = vector.multi_reduction <add>, %26, %cst_12 [1] : vector<1x256xf32> to vector<1xf32>
    %28 = vector.shape_cast %27 : vector<1xf32> to vector<1x1xf32>
    %29 = vector.shape_cast %28 : vector<1x1xf32> to vector<1x1xf32>
    %30 = vector.broadcast %29 : vector<1x1xf32> to vector<1x128xf32>
    %c0_13 = arith.constant 0 : index
    %31 = arith.index_cast %arg1 : i32 to index
    %c0_14 = arith.constant 0 : index
    %32 = vector.load %arg4[%c0_13, %31, %c0_14] : memref<1x2x128xf32, #tpu.memory_space<vmem>>, vector<1x1x128xf32>
    %33 = vector.shape_cast %32 : vector<1x1x128xf32> to vector<1x128xf32>
    %34 = vector.shape_cast %30 : vector<1x128xf32> to vector<1x1x128xf32>
    tpu.vector_store %arg4[%c0_13, %31, %c0_14], %34 {strides = array<i32>} : memref<1x2x128xf32, #tpu.memory_space<vmem>>, vector<1x1x128xf32>,
    return
  }
  func.func @transform_0(%arg0: i32, %arg1: i32) -> (i32, i32, i32, i32) {
    %c0_i32 = arith.constant 0 : i32
    %c0_i32_0 = arith.constant 0 : i32
    %c0_i32_1 = arith.constant 0 : i32
    return %arg0, %arg1, %c0_i32, %c0_i32_0 : i32, i32, i32, i32
  }
  func.func @transform_1(%arg0: i32, %arg1: i32) -> (i32, i32, i32, i32) {
    %c0_i32 = arith.constant 0 : i32
    %c0_i32_0 = arith.constant 0 : i32
    %c0_i32_1 = arith.constant 0 : i32
    return %arg0, %arg1, %c0_i32, %c0_i32_0 : i32, i32, i32, i32
  }
  func.func @transform_2(%arg0: i32, %arg1: i32) -> (i32, i32, i32) {
    %c0_i32 = arith.constant 0 : i32
    %c0_i32_0 = arith.constant 0 : i32
    %c0_i32_1 = arith.constant 0 : i32
    return %arg0, %c0_i32, %c0_i32_0 : i32, i32, i32
  }
}

</mosaic_0001>

<bundles_post_ra>
// kernel: tpu_custom_call.1
= control target key start
LH: loop header
LB: loop body
LE: loop exit
PB: predicated region body
PF: predicated region fallthrough
CT: control target
= control target key end

     0   :  { %6 = vsyncpa [#allocation3], 0  ;;  %s103_s0 = inlined_call_operand.hbm [shape: f32[8,128], index: 0, kind: input, shape index: {}]   ;;  %s104_s1 = inlined_call_operand.hbm [shape: f32[8,128], index: 1, kind: output, shape index: {}]  }
   0x1   :  { %7 = vsyncpa [#allocation4], 0  ;;  %s85_s6 = smov [#allocation2]  }
   0x2   :  { %s14_s7 = sshll.u32 %s85_s6, 4  ;;  %s15_s7 = int_to_ptr.vmem [resolvable:$true] %s14_s7 }
   0x3   :  { %s49_s8 = scalar_lea.vmem %s15_s7, 128  ;;  %p54_p1 = scmp.lt.s32.totalorder %s15_s7, %s15_s7 }
   0x4   :  { %p50_p0 = scmp.ne.s32.totalorder %s15_s7, %s49_s8  ;;  %p55_p2 = scmp.lt.s32.totalorder %s49_s8, %s49_s8 }
   0x6   :  { %p56_p3 = por %p55_p2, %p54_p1 }
   0x8   :  { %p57_p4 = pnand %p56_p3, %p50_p0 }
   0xa   :  { %60 = shalt.err (!%p57_p4)
}
   0xb   :  { %17 = dma.hbm_to_vmem [thread:$0]  %s103_s0, 128, %s15_s7, [#allocation3]  }
   0xc   :  { %81 = dma.done.wait [#allocation3], 128  }
   0xd   :  { %82 = vsyncadd [#allocation3], 4294967168  ;;  %s86_s11 = smov [#allocation5]   ;;  %v21_v0 = vld [vmem:[#allocation2] sm:$0xff] }
   0xe   :  { %s30_s12 = sshll.u32 %s86_s11, 4  ;;  %v22_v1 = vadd.f32 1.0, %v21_v0  ;;  %s31_s12 = int_to_ptr.vmem [resolvable:$true] %s30_s12 }
   0xf   :  { %s61_s13 = scalar_lea.vmem %s31_s12, 128  ;;  %p66_p6 = scmp.lt.s32.totalorder %s31_s12, %s31_s12 }
  0x10   :  { %23 = vst [vmem:[#allocation5] sm:$0xff] %v22_v1  ;;  %p62_p5 = scmp.ne.s32.totalorder %s31_s12, %s61_s13  ;;  %p67_p7 = scmp.lt.s32.totalorder %s61_s13, %s61_s13 }
  0x12   :  { %p68_p8 = por %p67_p7, %p66_p6 }
  0x14   :  { %p69_p9 = pnand %p68_p8, %p62_p5 }
  0x16   :  { %72 = shalt.err (!%p69_p9)
}
  0x17   :  { %33 = dma.vmem_to_hbm [thread:$0]  %s31_s12, 128, %s104_s1, [#allocation4]  }
  0x18   :  { %83 = dma.done.wait [#allocation4], 128  }
  0x19   :  { %84 = vsyncadd [#allocation4], 4294967168 }
  0x1a   :  { %37 = vsyncpa [#allocation3], 1 }
  0x1b   :  { %38 = vsyncpa [#allocation4], 1 }

// kernel: tpu_custom_call.1
= control target key start
LH: loop header
LB: loop body
LE: loop exit
PB: predicated region body
PF: predicated region fallthrough
CT: control target
= control target key end

     0   :  { %6 = vsyncpa [#allocation3], 0  ;;  %s227_s0 = inlined_call_operand.hbm [shape: bf16[8,8,128], index: 0, kind: input, shape index: {}]   ;;  %s228_s1 = inlined_call_operand.hbm [shape: bf16[8,8,128], index: 1, kind: output, shape index: {}]  }
   0x1   :  { %7 = vsyncpa [#allocation4], 0  ;;  %s185_s6 = smov [#allocation2]  }
   0x2   :  { %s13_s7 = sshll.u32 %s185_s6, 4  ;;  %s14_s7 = int_to_ptr.vmem [resolvable:$true] %s13_s7 }
   0x3   :  { %s149_s8 = scalar_lea.vmem %s14_s7, 512  ;;  %p154_p1 = scmp.lt.s32.totalorder %s14_s7, %s14_s7 }
   0x4   :  { %p150_p0 = scmp.ne.s32.totalorder %s14_s7, %s149_s8  ;;  %p155_p2 = scmp.lt.s32.totalorder %s149_s8, %s149_s8 }
   0x6   :  { %p156_p3 = por %p155_p2, %p154_p1 }
   0x8   :  { %p157_p4 = pnand %p156_p3, %p150_p0 }
   0xa   :  { %160 = shalt.err (!%p157_p4)
}
   0xb   :  { %s186_s9 = smov 64   ;;  %s187_s10 = smov 4  }
   0xc   :  { %19 = dma.hbm_to_vmem [thread:$0]  %s227_s0, 512, %s14_s7, [#allocation3], %s186_s9, %s186_s9, %s187_s10  }
   0xd   :  { %181 = dma.done.wait [#allocation3], 512  }
   0xe   :  { %182 = vsyncadd [#allocation3], 4294966784  ;;  %vm63_vm0 = vcmask 1040384   ;;  %v23_v0 = vld [vmem:[#allocation2] sm:$0x7]  ;;  %vm72_vm1 = vcmask 1046528  }
   0xf   :  { %v24_v1 = vld [vmem:[#allocation2 + $0x4] sm:$0x7]  ;;  %v25_v2 = vld [vmem:[#allocation2 + $0x8] sm:$0x7]  ;;  %v31_v3 = vunpack.c.l.bf16 %v23_v0  ;;  %v26_v5 = vld [vmem:[#allocation2 + $0xc] sm:$0x7] }
  0x10   :  { %v32_v4 = vunpack.c.l.bf16 %v24_v1  ;;  %v33_v6 = vunpack.c.l.bf16 %v25_v2  ;;  %v27_v7 = vld [vmem:[#allocation2 + $0x10] sm:$0x7]  ;;  %v28_v8 = vld [vmem:[#allocation2 + $0x14] sm:$0x7]  ;;  %v34_v9 = vunpack.c.l.bf16 %v26_v5  ;;  %v29_v12 = vld [vmem:[#allocation2 + $0x18] sm:$0x7] }
  0x11   :  { %v35_v10 = vunpack.c.l.bf16 %v27_v7  ;;  %v36_v11 = vunpack.c.l.bf16 %v28_v8  ;;  %v30_v13 = vld [vmem:[#allocation2 + $0x1c] sm:$0x7]  ;;  %v47_v14 = vrot.slane %v31_v3, 7  ;;  %v37_v17 = vunpack.c.l.bf16 %v29_v12  ;;  %s188_s0 = smov [#allocation5]  }
  0x12   :  { %v48_v15 = vrot.slane %v32_v4, 7  ;;  %v49_v16 = vrot.slane %v33_v6, 7  ;;  %v50_v18 = vrot.slane %v34_v9, 7  ;;  %v38_v21 = vunpack.c.l.bf16 %v30_v13  ;;  %s102_s13 = sshll.u32 %s188_s0, 4  ;;  %s103_s13 = int_to_ptr.vmem [resolvable:$true] %s102_s13 }
  0x13   :  { %v51_v19 = vrot.slane %v35_v10, 7  ;;  %v52_v20 = vrot.slane %v36_v11, 7  ;;  %v64_v22 = vsel %vm63_vm0, 0.0, %v47_v14  ;;  %v53_v25 = vrot.slane %v37_v17, 7  ;;  %s161_s14 = scalar_lea.vmem %s103_s13, 512  ;;  %p166_p6 = scmp.lt.s32.totalorder %s103_s13, %s103_s13 }
  0x14   :  { %v65_v23 = vsel %vm63_vm0, 0.0, %v48_v15  ;;  %v66_v24 = vsel %vm63_vm0, 0.0, %v49_v16  ;;  %v73_v26 = vsel %vm72_vm1, %v64_v22, 0.0  ;;  %v67_v28 = vsel %vm63_vm0, 0.0, %v50_v18  ;;  %p162_p5 = scmp.ne.s32.totalorder %s103_s13, %s161_s14  ;;  %p167_p7 = scmp.lt.s32.totalorder %s161_s14, %s161_s14 }
  0x15   :  { %v74_v27 = vsel %vm72_vm1, %v65_v23, 0.0  ;;  %v75_v29 = vsel %vm72_vm1, %v66_v24, 0.0  ;;  %v76_v31 = vsel %vm72_vm1, %v67_v28, 0.0  ;;  %v68_v32 = vsel %vm63_vm0, 0.0, %v51_v19 }
  0x16   :  { %v117_v30 = vpack.c.bf16 %v74_v27, %v73_v26  ;;  %v69_v33 = vsel %vm63_vm0, 0.0, %v52_v20  ;;  %v122_v34 = vpack.c.bf16 %v76_v31, %v75_v29  ;;  %v77_v35 = vsel %vm72_vm1, %v68_v32, 0.0  ;;  %p168_p8 = por %p167_p7, %p166_p6 }
  0x17   :  { %v78_v36 = vsel %vm72_vm1, %v69_v33, 0.0  ;;  %v54_v37 = vrot.slane %v38_v21, 7  ;;  %v70_v39 = vsel %vm63_vm0, 0.0, %v53_v25 }
  0x18   :  { %118 = vst [vmem:[#allocation5] sm:$0xff] %v117_v30   ;;  %v127_v38 = vpack.c.bf16 %v78_v36, %v77_v35  ;;  %134 = vst [vmem:[#allocation5 + $0x8] sm:$0xff] %v122_v34   ;;  %v79_v41 = vsel %vm72_vm1, %v70_v39, 0.0  ;;  %p169_p9 = pnand %p168_p8, %p162_p5 }
  0x19   :  { %v71_v40 = vsel %vm63_vm0, 0.0, %v54_v37 }
  0x1a   :  { %135 = vst [vmem:[#allocation5 + $0x10] sm:$0xff] %v127_v38   ;;  %v80_v42 = vsel %vm72_vm1, %v71_v40, 0.0 }
  0x1b   :  { %v132_v43 = vpack.c.bf16 %v80_v42, %v79_v41 }
  0x1d   :  { %136 = vst [vmem:[#allocation5 + $0x18] sm:$0xff] %v132_v43  }
  0x1e   :  { %172 = shalt.err (!%p169_p9)
}
  0x1f   :  { %108 = dma.vmem_to_hbm [thread:$0]  %s103_s13, 512, %s228_s1, [#allocation4], %s186_s9, %s186_s9, %s187_s10  }
  0x20   :  { %183 = dma.done.wait [#allocation4], 512  }
  0x21   :  { %184 = vsyncadd [#allocation4], 4294966784 }
  0x22   :  { %112 = vsyncpa [#allocation3], 1 }
  0x23   :  { %113 = vsyncpa [#allocation4], 1 }

// kernel: perceptual_loss_forward.8
= control target key start
LH: loop header
LB: loop body
LE: loop exit
PB: predicated region body
PF: predicated region fallthrough
CT: control target
= control target key end

     0   :  { %s667_s12 = smov 0   ;;  %s669_s13 = smov 0   ;;  %s909_s0 = inlined_call_operand.vmem [shape: bf16[4,16,16,27], index: 0, kind: input, shape index: {}]   ;;  %s910_s1 = inlined_call_operand.vmem [shape: bf16[1,27,64], index: 1, kind: input, shape index: {}]   ;;  %s911_s2 = inlined_call_operand.vmem [shape: f32[1,64], index: 2, kind: input, shape index: {}]   ;;  %s912_s3 = inlined_call_operand.vmem [shape: bf16[4,18,18,64], index: 3, kind: output, shape index: {}]  }
   0x1   :  { %s671_s14 = smov 0   ;;  %s673_s15 = smov 0  }
   0x2   :  { %s675_s16 = smov 0  }
   0x3 LB: > { %s22_s17 = sadd.s32 1, %s635_s14  ;;  %s25_s18 = sadd.s32 1, %s639_s15  ;;  %s643_s16 = sphi %s675_s16, %s13_s16   ;;  %s639_s15 = sphi %s673_s15, %s922_s15   ;;  %s635_s14 = sphi %s671_s14, %s921_s14   ;;  %s631_s13 = sphi %s669_s13, %s920_s13   ;;  %s627_s12 = sphi %s667_s12, %s919_s12  }
   0x4   : > { %p23_p0 = scmp.ge.s32.totalorder %s22_s17, 8  ;;  %p506_p1 = scmp.ge.s32.totalorder %s643_s16, 1 }
   0x5   : > { %p149_p2 = scmp.lt.s32.totalorder %s643_s16, 33 }
   0x6   : > { %s924_s17 = smov (%p23_p0, %s22_s17), 0  ;;  %s926_s18 = smov (!%p23_p0, %s25_s18), %s639_s15 }
   0x7   : > { %p150_p3 = pnand %p506_p1, %p149_p2  ;;  %p27_p4 = scmp.ge.s32.totalorder %s926_s18, 4 }
   0x8   : > { %p173_p5 = scmp.lt.s32.totalorder (!%p150_p3), %s631_s13, 3  ;;  %s541_s23 = sshll.u32 (!%p150_p3), %s627_s12, 4 }
   0x9   : > { %s928_s18 = smov (%p27_p4, %s926_s18), 0  ;;  %153 = sbr.rel (%p150_p3) target bundleno = 270 (0x10e), region = 32 }
   0xa   : > { %p520_p6 = scmp.ne.s32.totalorder (!%p150_p3), %s627_s12, 0 }
   0xe   : > { %v601_v0 = vld [vmem:[%s910_s1 + $0x8] sm:$0x3f]   ;;  %vm231_vm0 = vcmask 1044480   ;;  %vm232_vm1 = vcmask 1045504   ;;  %v645_v1 = vmov 65535   ;;  %v602_v5 = vld [vmem:[%s910_s1] sm:$0xff]  }
   0xf   : > { %v233_v2 = vsel %vm231_vm0, 4294967295, %v645_v1  ;;  %s930_s13 = smov (!%p173_p5, %s631_s13), 3  ;;  %vm224_vm2 = vcmask 220160   ;;  %v513_v8 = vld [vmem:[%s911_s2] ss:$0 sm:$0xff] }
  0x10   : > { %v234_v3 = vsel %vm232_vm1, %v233_v2, 0  ;;  %s539_s24 = sshll.u32 %s930_s13, 7  ;;  %s558_s25 = smul.u32 216, %s930_s13 }
  0x11   : > { %v236_v4 = vand.u32 %v601_v0, %v234_v3  ;;  %s177_s28 = scalar_lea.vmem %s909_s0, %s539_s24 }
  0x12   : > { %s712_s4 = scalar_lea.vmem %s912_s3, %s558_s25  ;;  %s187_s5 = scalar_lea.vmem %s177_s28, %s541_s23 }
  0x13   : > { %550 = vmatprep.subr.bf16.mxu0 %v236_v4  ;;  %v603_v6 = vld [vmem:[%s187_s5] sm:$0xff]   ;;  %v604_v7 = vld [vmem:[%s187_s5 + $0x8] sm:$0xff]  }
  0x14   : > { %551 = vmatpush3.bf16.msra.mxu0 %v236_v4  ;;  %554 = vmatprep.mubr.msk.bf16.mxu0 %vm224_vm2, %v603_v6 }
  0x15   : > { %552 = vmatprep.subr.bf16.mxu0 %v602_v5 }
  0x18   : > { %553 = vmatpush3.bf16.msra.mxu0 %v602_v5 }
  0x1b   : > { %555 = vmatmul.mubr.msk.bf16.vlgmr.msra.gmra.mxu0 %vm224_vm2, %v604_v7 }
  0xdb   : > { %v556_v9 = vpop.f32.mrf.mxu0 }
  0xdc   : > { %v717_v10 = vadd.f32 %v556_v9, %v513_v8 }
  0xdd   : > { %v272_v11 = vpop.f32.mrf.mxu0 }
  0xde   : > { %v289_v12 = vmax.f32 %v717_v10, 0.0  ;;  %v720_v13 = vadd.f32 %v513_v8, %v272_v11 }
  0xdf   : > { %v557_v14 = vpop.f32.mrf.mxu0 }
  0xe0   : > { %v287_v15 = vmax.f32 %v720_v13, 0.0  ;;  %v723_v16 = vadd.f32 %v557_v14, %v513_v8  ;;  %294 = sbr.rel (%p520_p6) target bundleno = 257 (0x101), region = 36 }
  0xe1   : > { %v275_v17 = vpop.f32.mrf.mxu0 }
  0xe2   : > { %v290_v18 = vmax.f32 %v723_v16, 0.0  ;;  %v726_v19 = vadd.f32 %v513_v8, %v275_v17 }
  0xe4   : > { %v288_v20 = vmax.f32 %v726_v19, 0.0 }
  0xe5   : > { %vm295_vm3 = vcmask 519168   ;;  %vm298_vm4 = vcmask 516096   ;;  %v646_v21 = vmov 0  }
  0xe6   : > { %296 = vst.msk [vmem:[%s712_s4] sm:$0xf] %vm295_vm3, %v646_v21  ;;  %297 = vst.msk [vmem:[%s712_s4 + $0x4] sm:$0xf] %vm295_vm3, %v646_v21 }
  0xe7   : > { %300 = vst.msk [vmem:[%s712_s4 + $0xc] sm:$0xf] %vm295_vm3, %v646_v21  ;;  %301 = vst.msk [vmem:[%s712_s4 + $0x10] sm:$0xf] %vm295_vm3, %v646_v21 }
  0xe8   : > { %303 = vst.msk [vmem:[%s712_s4 + $0x18] sm:$0xf] %vm295_vm3, %v646_v21  ;;  %304 = vst.msk [vmem:[%s712_s4 + $0x1c] sm:$0xf] %vm295_vm3, %v646_v21 }
  0xe9   : > { %306 = vst.msk [vmem:[%s712_s4 + $0x24] sm:$0xf] %vm295_vm3, %v646_v21  ;;  %307 = vst.msk [vmem:[%s712_s4 + $0x28] sm:$0xf] %vm295_vm3, %v646_v21 }
  0xea   : > { %309 = vst.msk [vmem:[%s712_s4 + $0x30] sm:$0xf] %vm295_vm3, %v646_v21  ;;  %310 = vst.msk [vmem:[%s712_s4 + $0x34] sm:$0xf] %vm295_vm3, %v646_v21 }
  0xeb   : > { %312 = vst.msk [vmem:[%s712_s4 + $0x3c] sm:$0xf] %vm295_vm3, %v646_v21  ;;  %313 = vst.msk [vmem:[%s712_s4 + $0x40] sm:$0xf] %vm295_vm3, %v646_v21 }
  0xec   : > { %315 = vst.msk [vmem:[%s712_s4 + $0x48] sm:$0xf] %vm295_vm3, %v646_v21  ;;  %316 = vst.msk [vmem:[%s712_s4 + $0x4c] sm:$0xf] %vm295_vm3, %v646_v21 }
  0xed   : > { %318 = vst.msk [vmem:[%s712_s4 + $0x54] sm:$0xf] %vm295_vm3, %v646_v21  ;;  %319 = vst.msk [vmem:[%s712_s4 + $0x58] sm:$0xf] %vm295_vm3, %v646_v21 }
  0xee   : > { %321 = vst.msk [vmem:[%s712_s4 + $0x60] sm:$0xf] %vm295_vm3, %v646_v21  ;;  %322 = vst.msk [vmem:[%s712_s4 + $0x64] sm:$0xf] %vm295_vm3, %v646_v21 }
  0xef   : > { %324 = vst.msk [vmem:[%s712_s4 + $0x6c] sm:$0xf] %vm295_vm3, %v646_v21  ;;  %325 = vst.msk [vmem:[%s712_s4 + $0x70] sm:$0xf] %vm295_vm3, %v646_v21 }
  0xf0   : > { %327 = vst.msk [vmem:[%s712_s4 + $0x78] sm:$0xf] %vm295_vm3, %v646_v21  ;;  %328 = vst.msk [vmem:[%s712_s4 + $0x7c] sm:$0xf] %vm295_vm3, %v646_v21 }
  0xf1   : > { %330 = vst.msk [vmem:[%s712_s4 + $0x84] sm:$0xf] %vm295_vm3, %v646_v21  ;;  %331 = vst.msk [vmem:[%s712_s4 + $0x88] sm:$0xf] %vm295_vm3, %v646_v21 }
  0xf2   : > { %333 = vst.msk [vmem:[%s712_s4 + $0x90] sm:$0xf] %vm295_vm3, %v646_v21  ;;  %334 = vst.msk [vmem:[%s712_s4 + $0x94] sm:$0xf] %vm295_vm3, %v646_v21 }
  0xf3   : > { %336 = vst.msk [vmem:[%s712_s4 + $0x9c] sm:$0xf] %vm295_vm3, %v646_v21  ;;  %337 = vst.msk [vmem:[%s712_s4 + $0xa0] sm:$0xf] %vm295_vm3, %v646_v21 }
  0xf4   : > { %339 = vst.msk [vmem:[%s712_s4 + $0xa8] sm:$0xf] %vm295_vm3, %v646_v21  ;;  %340 = vst.msk [vmem:[%s712_s4 + $0xac] sm:$0xf] %vm295_vm3, %v646_v21 }
  0xf5   : > { %342 = vst.msk [vmem:[%s712_s4 + $0xb4] sm:$0xf] %vm295_vm3, %v646_v21  ;;  %343 = vst.msk [vmem:[%s712_s4 + $0xb8] sm:$0xf] %vm295_vm3, %v646_v21 }
  0xf6   : > { %345 = vst.msk [vmem:[%s712_s4 + $0xc0] sm:$0xf] %vm295_vm3, %v646_v21  ;;  %346 = vst.msk [vmem:[%s712_s4 + $0xc4] sm:$0xf] %vm295_vm3, %v646_v21 }
  0xf7   : > { %348 = vst.msk [vmem:[%s712_s4 + $0xcc] sm:$0xf] %vm295_vm3, %v646_v21  ;;  %349 = vst.msk [vmem:[%s712_s4 + $0xd0] sm:$0xf] %vm295_vm3, %v646_v21 }
  0xf8   : > { %299 = vst.msk [vmem:[%s712_s4 + $0x8] sm:$0x1] %vm298_vm4, %v646_v21  ;;  %302 = vst.msk [vmem:[%s712_s4 + $0x14] sm:$0x1] %vm298_vm4, %v646_v21 }
  0xf9   : > { %305 = vst.msk [vmem:[%s712_s4 + $0x20] sm:$0x1] %vm298_vm4, %v646_v21  ;;  %308 = vst.msk [vmem:[%s712_s4 + $0x2c] sm:$0x1] %vm298_vm4, %v646_v21 }
  0xfa   : > { %311 = vst.msk [vmem:[%s712_s4 + $0x38] sm:$0x1] %vm298_vm4, %v646_v21  ;;  %314 = vst.msk [vmem:[%s712_s4 + $0x44] sm:$0x1] %vm298_vm4, %v646_v21 }
  0xfb   : > { %317 = vst.msk [vmem:[%s712_s4 + $0x50] sm:$0x1] %vm298_vm4, %v646_v21  ;;  %320 = vst.msk [vmem:[%s712_s4 + $0x5c] sm:$0x1] %vm298_vm4, %v646_v21 }
  0xfc   : > { %323 = vst.msk [vmem:[%s712_s4 + $0x68] sm:$0x1] %vm298_vm4, %v646_v21  ;;  %326 = vst.msk [vmem:[%s712_s4 + $0x74] sm:$0x1] %vm298_vm4, %v646_v21 }
  0xfd   : > { %329 = vst.msk [vmem:[%s712_s4 + $0x80] sm:$0x1] %vm298_vm4, %v646_v21  ;;  %332 = vst.msk [vmem:[%s712_s4 + $0x8c] sm:$0x1] %vm298_vm4, %v646_v21 }
  0xfe   : > { %335 = vst.msk [vmem:[%s712_s4 + $0x98] sm:$0x1] %vm298_vm4, %v646_v21  ;;  %338 = vst.msk [vmem:[%s712_s4 + $0xa4] sm:$0x1] %vm298_vm4, %v646_v21 }
  0xff   : > { %341 = vst.msk [vmem:[%s712_s4 + $0xb0] sm:$0x1] %vm298_vm4, %v646_v21  ;;  %344 = vst.msk [vmem:[%s712_s4 + $0xbc] sm:$0x1] %vm298_vm4, %v646_v21 }
 0x100   : > { %347 = vst.msk [vmem:[%s712_s4 + $0xc8] sm:$0x1] %vm298_vm4, %v646_v21  ;;  %350 = vst.msk [vmem:[%s712_s4 + $0xd4] sm:$0x1] %vm298_vm4, %v646_v21 }
 0x101 PF: > { %v542_v22 = vpack.c.bf16 %v287_v15, %v287_v15  ;;  %s526_s8 = smul.u32 24, %s627_s12  ;;  %vm410_vm5 = vcmask 519168   ;;  %vm411_vm6 = vsmask.f32 7938  ;;  %v543_v23 = vpack.c.bf16 %v288_v20, %v288_v20 }
 0x102   : > { %vm364_vm7 = vsmask.f32 256  ;;  %vm365_vm8 = vsmask.f32 4368  ;;  %vm418_vm9 = vcmask 516096   ;;  %v544_v24 = vpack.c.bf16 %v289_v12, %v289_v12  ;;  %vm852_vm10 = vmand %vm410_vm5, %vm411_vm6 }
 0x103   : > { %v368_v25 = vshrl.u32 %v542_v22, 16  ;;  %v371_v26 = vshll.u32 %v542_v22, 16  ;;  %s849_s9 = scalar_lea.vmem %s712_s4, %s526_s8  ;;  %v376_v27 = vshrl.u32 %v543_v23, 16  ;;  %v379_v28 = vshll.u32 %v543_v23, 16  ;;  %vm861_vm11 = vmor %vm364_vm7, %vm365_vm8 }
 0x104   : > { %v385_v30 = vshrl.u32 %v544_v24, 16  ;;  %v388_v31 = vshll.u32 %v544_v24, 16  ;;  %v545_v32 = vpack.c.bf16 %v290_v18, %v290_v18  ;;  %vm867_vm12 = vmand %vm418_vm9, %vm364_vm7 }
 0x105   : > { %v370_v33 = vrot.slane %v368_v25, 7  ;;  %v378_v36 = vrot.slane %v376_v27, 7 }
 0x106   : > { %v387_v39 = vrot.slane %v385_v30, 7  ;;  %v393_v40 = vshrl.u32 %v545_v32, 16  ;;  %v396_v41 = vshll.u32 %v545_v32, 16 }
 0x107   : > { %v527_v34 = vld [vmem:[%s849_s9 + $0xc] sm:$0xf]  ;;  %v530_v38 = vld [vmem:[%s849_s9 + $0x14] sm:$0x1]  ;;  %v373_v42 = vor.u32 %v371_v26, %v370_v33  ;;  %v374_v43 = vrot.slane %v370_v33, 4  ;;  %v381_v44 = vor.u32 %v379_v28, %v378_v36  ;;  %v383_v45 = vrot.slane %v378_v36, 4 }
 0x108   : > { %v532_v46 = vld [vmem:[%s849_s9 + $0x18] sm:$0xf]  ;;  %v390_v47 = vor.u32 %v388_v31, %v387_v39  ;;  %v391_v48 = vrot.slane %v387_v39, 4  ;;  %v395_v49 = vrot.slane %v393_v40, 7  ;;  %v535_v53 = vld [vmem:[%s849_s9 + $0x20] sm:$0x1] }
 0x109   : > { %v414_v50 = vsel %vm852_vm10, %v373_v42, %v527_v34  ;;  %v382_v51 = vsel %vm861_vm11, %v374_v43, %v381_v44  ;;  %v421_v52 = vsel %vm867_vm12, %v383_v45, %v530_v38 }
 0x10a   : > { %528 = vst [vmem:[%s849_s9 + $0xc] sm:$0xf] %v414_v50  ;;  %529 = vst.msk [vmem:[%s849_s9 + $0x10] sm:$0xf] %vm410_vm5, %v382_v51  ;;  %v424_v54 = vsel %vm852_vm10, %v390_v47, %v532_v46  ;;  %v398_v55 = vor.u32 %v396_v41, %v395_v49  ;;  %v400_v56 = vrot.slane %v395_v49, 4 }
 0x10b   : > { %531 = vst [vmem:[%s849_s9 + $0x14] sm:$0x1] %v421_v52  ;;  %533 = vst [vmem:[%s849_s9 + $0x18] sm:$0xf] %v424_v54 }
 0x10c   : > { %v399_v57 = vsel %vm861_vm11, %v391_v48, %v398_v55  ;;  %v428_v58 = vsel %vm867_vm12, %v400_v56, %v535_v53 }
 0x10d   : > { %534 = vst.msk [vmem:[%s849_s9 + $0x1c] sm:$0xf] %vm410_vm5, %v399_v57  ;;  %536 = vst [vmem:[%s849_s9 + $0x20] sm:$0x1] %v428_v58 }
 0x10e PF: > { %s13_s16 = sadd.s32 1, %s643_s16   ;;  %s919_s12 = smov %s635_s14 }
 0x10f   : > { %p10_p7 = scmp.ge.s32.totalorder %s13_s16, 34   ;;  %s920_s13 = smov %s639_s15 }
 0x110   : > { %s921_s14 = smov %s924_s17  ;;  %s922_s15 = smov %s928_s18 }
 0x111   :  { %12 = sbr.rel (!%p10_p7) target bundleno = 3 (0x3), region = 68 }

// kernel: perceptual_loss_forward.10
= control target key start
LH: loop header
LB: loop body
LE: loop exit
PB: predicated region body
PF: predicated region fallthrough
CT: control target
= control target key end

     0   :  { %s1705_s12 = smov 0   ;;  %s1707_s13 = smov 0   ;;  %s2054_s0 = inlined_call_operand.vmem [shape: bf16[4,10,10,64], index: 0, kind: input, shape index: {}]   ;;  %s2055_s1 = inlined_call_operand.vmem [shape: bf16[3,192,128], index: 1, kind: input, shape index: {}]   ;;  %s2056_s2 = inlined_call_operand.vmem [shape: f32[1,128], index: 2, kind: input, shape index: {}]   ;;  %s2057_s3 = inlined_call_operand.vmem [shape: bf16[4,10,10,128], index: 3, kind: output, shape index: {}]  }
   0x1   :  { %s1709_s14 = smov 0   ;;  %s1711_s15 = smov 0  }
   0x2   :  { %s1713_s16 = smov 0  }
   0x3 LB: > { %s22_s17 = sadd.s32 1, %s1672_s14  ;;  %s25_s18 = sadd.s32 1, %s1676_s15  ;;  %s1680_s16 = sphi %s1713_s16, %s13_s16   ;;  %s1676_s15 = sphi %s1711_s15, %s2067_s15   ;;  %s1672_s14 = sphi %s1709_s14, %s2066_s14   ;;  %s1668_s13 = sphi %s1707_s13, %s2065_s13   ;;  %s1664_s12 = sphi %s1705_s12, %s2064_s12  }
   0x4   : > { %p23_p0 = scmp.ge.s32.totalorder %s22_s17, 4  ;;  %p1249_p1 = scmp.ge.s32.totalorder %s1680_s16, 1 }
   0x5   : > { %p149_p2 = scmp.lt.s32.totalorder %s1680_s16, 17 }
   0x6   : > { %s2069_s17 = smov (%p23_p0, %s22_s17), 0  ;;  %s2071_s18 = smov (!%p23_p0, %s25_s18), %s1676_s15 }
   0x7   : > { %p150_p3 = pnand %p1249_p1, %p149_p2  ;;  %p27_p4 = scmp.ge.s32.totalorder %s2071_s18, 4 }
   0x8   : > { %p173_p5 = scmp.lt.s32.totalorder (!%p150_p3), %s1668_s13, 3  ;;  %s1400_s27 = sshll.u32 (!%p150_p3), %s1664_s12, 4 }
   0x9   : > { %s2073_s18 = smov (%p27_p4, %s2071_s18), 0  ;;  %153 = sbr.rel (%p150_p3) target bundleno = 319 (0x13f), region = 32 }
   0xa   : > { %p1384_p6 = scmp.ne.s32.totalorder (!%p150_p3), %s1664_s12, 0 }
   0xe   : > { %v1603_v0 = vld [vmem:[%s2055_s1 + $0x38] sm:$0xff]   ;;  %v1682_v1 = vmov 0.0   ;;  %v1605_v3 = vld [vmem:[%s2055_s1 + $0x30] sm:$0xff]   ;;  %vm1683_vm0 = vmmov 0   ;;  %s2075_s13 = smov (!%p173_p5, %s1668_s13), 3  ;;  %v1607_v5 = vld [vmem:[%s2055_s1 + $0x28] sm:$0xff]  }
   0xf   : > { %1451 = vmatprep.subr.bf16.mxu0 %v1682_v1  ;;  %1463 = vmatprep.subr.bf16.mxu1 %v1682_v1  ;;  %v1604_v2 = vld [vmem:[%s2055_s1 + $0x18] sm:$0xff]   ;;  %v1606_v4 = vld [vmem:[%s2055_s1 + $0x10] sm:$0xff]   ;;  %s1559_s30 = smul.u32 80, %s2075_s13  ;;  %v1608_v6 = vld [vmem:[%s2055_s1 + $0x8] sm:$0xff]   ;;  %vm241_vm1 = vcmask 523264   ;;  %vm797_vm5 = vcmask 1042432  }
  0x10   : > { %1452 = vmatpush3.bf16.msra.mxu0 %v1603_v0  ;;  %1459 = vmatprep.mubr.msk.bf16.mxu0 %vm1683_vm0, %v1682_v1  ;;  %v1609_v7 = vld [vmem:[%s2055_s1 + $0x20] sm:$0xff]   ;;  %v1613_v9 = vld [vmem:[%s2055_s1 + $0x58] sm:$0xff]   ;;  %v1615_v13 = vld [vmem:[%s2055_s1 + $0x50] sm:$0xff]   ;;  %vm452_vm2 = vsmask.f32 3328  ;;  %vm798_vm6 = vcmask 1046532  }
  0x11   : > { %1464 = vmatpush3.bf16.msra.mxu1 %v1604_v2  ;;  %1453 = vmatprep.subr.bf16.mxu0 %v1682_v1  ;;  %s177_s8 = scalar_lea.vmem %s2054_s0, %s1559_s30  ;;  %s1776_s11 = scalar_lea.vmem %s2057_s3, %s1559_s30  ;;  %v1610_v8 = vld [vmem:[%s2055_s1] sm:$0xff]   ;;  %v1614_v12 = vld [vmem:[%s2055_s1 + $0x78] sm:$0xff]   ;;  %v1616_v14 = vld [vmem:[%s2055_s1 + $0x70] sm:$0xff]   ;;  %vm453_vm3 = vsmask.f32 7440 }
  0x12   : > { %1465 = vmatprep.subr.bf16.mxu1 %v1682_v1  ;;  %1471 = vmatprep.mubr.msk.bf16.mxu1 %vm1683_vm0, %v1682_v1  ;;  %s1780_s13 = scalar_lea.vmem %s177_s8, %s1400_s27  ;;  %v1617_v18 = vld [vmem:[%s2055_s1 + $0x48] sm:$0xff]   ;;  %v1619_v30 = vld [vmem:[%s2055_s1 + $0x40] sm:$0xff]   ;;  %vm1842_vm4 = vmor %vm452_vm2, %vm453_vm3 }
  0x13   : > { %v1611_v10 = vld [vmem:[%s1780_s13 + $0x8] ss:$8 sps:$4 sm:$0xff]   ;;  %v448_v15 = vld [vmem:[%s1780_s13] sm:$0xf]  ;;  %v1814_v16 = vld [vmem:[%s1780_s13 + $0x4] sm:$0x1] }
  0x14   : > { %1454 = vmatpush3.bf16.msra.mxu0 %v1605_v3  ;;  %v1612_v11 = vld [vmem:[%s1780_s13] ss:$8 sps:$4 sm:$0xff]   ;;  %v1826_v20 = vld [vmem:[%s1780_s13 + $0xc] sm:$0x1]  ;;  %v456_v21 = vshrl.u32 %v448_v15, 16  ;;  %v459_v22 = vshll.u32 %v448_v15, 16  ;;  %vm1952_vm7 = vmor %vm797_vm5, %vm798_vm6 }
  0x15   : > { %1466 = vmatpush3.bf16.msra.mxu1 %v1606_v4  ;;  %1455 = vmatprep.subr.bf16.mxu0 %v1682_v1  ;;  %v450_v17 = vld [vmem:[%s1780_s13 + $0x8] sm:$0xf]  ;;  %v465_v23 = vshll.u32 %v1814_v16, 16  ;;  %v479_v26 = vshll.u32 %v1826_v20, 16  ;;  %v1620_v32 = vld [vmem:[%s2055_s1 + $0x60] sm:$0xff]   ;;  %v1622_v40 = vld [vmem:[%s2055_s1 + $0x98] sm:$0xff]  }
  0x16   : > { %1467 = vmatprep.subr.bf16.mxu1 %v1682_v1  ;;  %v1618_v19 = vld [vmem:[%s2055_s1 + $0x68] sm:$0xff]   ;;  %v470_v24 = vshrl.u32 %v450_v17, 16  ;;  %v473_v25 = vshll.u32 %v450_v17, 16  ;;  %v458_v27 = vrot.slane %v456_v21, 4  ;;  %v461_v28 = vrot.slane %v459_v22, 5  ;;  %v1623_v43 = vld [vmem:[%s2055_s1 + $0xb8] sm:$0xff]  }
  0x17   : > { %v467_v34 = vrot.slane %v465_v23, 5  ;;  %v1621_v35 = vld [vmem:[%s1780_s13 + $0x10] ss:$8 sps:$4 sm:$0xff]   ;;  %v481_v38 = vrot.slane %v479_v26, 5  ;;  %v1295_v44 = vld [vmem:[%s1780_s13 + $0x8] sm:$0xf] }
  0x18   : > { %1456 = vmatpush3.bf16.msra.mxu0 %v1607_v5  ;;  %v472_v29 = vrot.slane %v470_v24, 4  ;;  %v475_v31 = vrot.slane %v473_v25, 5  ;;  %v462_v33 = vor.u32 %v461_v28, %v458_v27  ;;  %v1860_v46 = vld [vmem:[%s1780_s13 + $0xc] sm:$0x1]  ;;  %v1297_v47 = vld [vmem:[%s1780_s13 + $0x10] sm:$0xf] }
  0x19   : > { %1468 = vmatpush3.bf16.msra.mxu1 %v1608_v6  ;;  %1457 = vmatprep.subr.bf16.mxu0 %v1682_v1  ;;  %v1864_v48 = vld [vmem:[%s1780_s13 + $0x14] sm:$0x1]  ;;  %v570_v50 = vshrl.u32 %v1295_v44, 16  ;;  %v573_v51 = vshll.u32 %v1295_v44, 16  ;;  %v579_v52 = vshll.u32 %v1860_v46, 16  ;;  %v584_v54 = vshrl.u32 %v1297_v47, 16 }
  0x1a   : > { %1469 = vmatprep.subr.bf16.mxu1 %v1682_v1  ;;  %v476_v37 = vor.u32 %v475_v31, %v472_v29  ;;  %v463_v39 = vrot.slane %v462_v33, 4  ;;  %v1624_v53 = vld [vmem:[%s2055_s1 + $0x90] sm:$0xff]   ;;  %v587_v55 = vshll.u32 %v1297_v47, 16  ;;  %v593_v59 = vshll.u32 %v1864_v48, 16  ;;  %v1315_v4 = vld [vmem:[%s1780_s13 + $0x18] sm:$0xf] }
  0x1b   : > { %v1625_v56 = vld [vmem:[%s2055_s1 + $0xb0] sm:$0xff]   ;;  %v572_v57 = vrot.slane %v570_v50, 4  ;;  %v575_v58 = vrot.slane %v573_v51, 5  ;;  %v581_v61 = vrot.slane %v579_v52, 5  ;;  %v586_v62 = vrot.slane %v584_v54, 4  ;;  %v1628_v27 = vld [vmem:[%s2055_s1 + $0x80] sm:$0xff]  }
  0x1c   : > { %1458 = vmatpush3.bf16.msra.mxu0 %v1609_v7  ;;  %v477_v41 = vrot.slane %v476_v37, 4  ;;  %v468_v42 = vsel %vm1842_vm4, %v463_v39, %v467_v34  ;;  %v1313_v60 = vld [vmem:[%s1780_s13 + $0x10] sm:$0xf]  ;;  %v589_v63 = vrot.slane %v587_v55, 5  ;;  %v1880_v0 = vld [vmem:[%s1780_s13 + $0x14] sm:$0x1] }
  0x1d   : > { %1470 = vmatpush3.bf16.msra.mxu1 %v1610_v8  ;;  %1475 = vmatprep.subr.bf16.mxu0 %v1682_v1  ;;  %v683_v2 = vshrl.u32 %v1313_v60, 16  ;;  %v576_v3 = vor.u32 %v575_v58, %v572_v57  ;;  %v1887_v5 = vld [vmem:[%s1780_s13 + $0x1c] sm:$0x1]  ;;  %v686_v6 = vshll.u32 %v1313_v60, 16  ;;  %v692_v7 = vshll.u32 %v1880_v0, 16  ;;  %v1626_v8 = vld [vmem:[%s2055_s1 + $0x88] sm:$0xff]  }
  0x1e   : > { %1487 = vmatprep.subr.bf16.mxu1 %v1682_v1  ;;  %v482_v45 = vsel %vm1842_vm4, %v477_v41, %v481_v38  ;;  %v706_v17 = vshll.u32 %v1887_v5, 16  ;;  %v1629_v31 = vld [vmem:[%s2055_s1 + $0xa0] sm:$0xff]   ;;  %v1630_v37 = vld [vmem:[%s2055_s1 + $0xd8] sm:$0xff]   ;;  %v1632_v36 = vld [vmem:[%s2055_s1 + $0xd0] sm:$0xff]   ;;  %v806_v51 = vrot.slane %v1826_v20, 5  ;;  %v898_v55 = vrot.slane %v1860_v46, 5 }
  0x1f   : > { %1460 = vmatmul.mubr.msk.bf16.vlgmr.msra.gmra.mxu0 %vm241_vm1, %v1611_v10  ;;  %v1289_v49 = vcombine.low %v468_v42, %v482_v45  ;;  %v685_v10 = vrot.slane %v683_v2, 4  ;;  %v688_v15 = vrot.slane %v686_v6, 5  ;;  %v694_v24 = vrot.slane %v692_v7, 5  ;;  %v1631_v39 = vld [vmem:[%s2055_s1 + $0xf8] sm:$0xff]   ;;  %v791_v41 = vld [vmem:[%s1780_s13] sm:$0xe] }
  0x20   : > { %1472 = vmatmul.mubr.msk.bf16.vlgmr.msra.gmra.mxu1 %vm241_vm1, %v1612_v11  ;;  %1476 = vmatpush3.bf16.msra.mxu0 %v1613_v9  ;;  %v590_v9 = vor.u32 %v589_v63, %v586_v62  ;;  %v697_v11 = vshrl.u32 %v1315_v4, 16  ;;  %v708_v25 = vrot.slane %v706_v17, 5  ;;  %v792_v42 = vld [vmem:[%s1780_s13 + $0x8] sm:$0xe]  ;;  %v1348_v44 = vld [vmem:[%s1780_s13 + $0x10] sm:$0xe] }
  0x21   : > { %1488 = vmatpush3.bf16.msra.mxu1 %v1614_v12  ;;  %1477 = vmatprep.subr.bf16.mxu0 %v1682_v1  ;;  %v700_v12 = vshll.u32 %v1315_v4, 16  ;;  %v689_v23 = vor.u32 %v688_v15, %v685_v10  ;;  %v1634_v45 = vld [vmem:[%s2055_s1 + $0xc8] sm:$0xff]   ;;  %v1331_v47 = vrot.slane %v791_v41, 9  ;;  %v1332_v50 = vrot.slane %v792_v42, 9  ;;  %v1636_v20 = vld [vmem:[%s2055_s1 + $0xc0] sm:$0xff]   ;;  %v1639_v63 = vld [vmem:[%s2055_s1 + $0x110] sm:$0xff]  }
  0x22   : > { %1489 = vmatprep.subr.bf16.mxu1 %v1682_v1  ;;  %1483 = vmatprep.mubr.msk.bf16.mxu0 %vm1683_vm0, %v1682_v1  ;;  %v699_v21 = vrot.slane %v697_v11, 4  ;;  %v1635_v52 = vld [vmem:[%s2055_s1 + $0xe8] sm:$0xff]   ;;  %v1637_v46 = vld [vmem:[%s2055_s1 + $0xe0] sm:$0xff]   ;;  %v1365_v2 = vld [vmem:[%s1780_s13 + $0x10] sm:$0xe]  ;;  %v993_v7 = vrot.slane %v1880_v0, 5 }
  0x23   : > { %1495 = vmatprep.mubr.msk.bf16.mxu1 %vm1683_vm0, %v1682_v1  ;;  %v702_v22 = vrot.slane %v700_v12, 5  ;;  %v807_v58 = vsel %vm1952_vm7, %v1332_v50, %v806_v51  ;;  %v1640_v4 = vld [vmem:[%s2055_s1 + $0x108] sm:$0xff]   ;;  %v1367_v6 = vrot.slane %v1365_v2, 9  ;;  %v1641_v10 = vld [vmem:[%s2055_s1 + $0x100] sm:$0xff]  }
  0x24   : > { %1478 = vmatpush3.bf16.msra.mxu0 %v1615_v13  ;;  %v577_v13 = vrot.slane %v576_v3, 4  ;;  %v1366_v3 = vld [vmem:[%s1780_s13 + $0x18] sm:$0xe] }
  0x25   : > { %1490 = vmatpush3.bf16.msra.mxu1 %v1616_v14  ;;  %1479 = vmatprep.subr.bf16.mxu0 %v1682_v1  ;;  %v595_v14 = vrot.slane %v593_v59, 5  ;;  %v703_v26 = vor.u32 %v702_v22, %v699_v21  ;;  %v994_v11 = vsel %vm1952_vm7, %v1367_v6, %v993_v7 }
  0x26   : > { %1491 = vmatprep.subr.bf16.mxu1 %v1682_v1  ;;  %v582_v28 = vsel %vm1842_vm4, %v577_v13, %v581_v61  ;;  %v1638_v61 = vld [vmem:[%s2055_s1 + $0x118] sm:$0xff]  }
  0x28   : > { %1480 = vmatpush3.bf16.msra.mxu0 %v1617_v18  ;;  %v1627_v18 = vld [vmem:[%s2055_s1 + $0xa8] sm:$0xff]  }
  0x29   : > { %1492 = vmatpush3.bf16.msra.mxu1 %v1618_v19  ;;  %1481 = vmatprep.subr.bf16.mxu0 %v1682_v1  ;;  %v591_v19 = vrot.slane %v590_v9, 4  ;;  %v997_v9 = vrot.slane %v1887_v5, 5 }
  0x2a   : > { %1493 = vmatprep.subr.bf16.mxu1 %v1682_v1 }
  0x2b   : > { %v596_v29 = vsel %vm1842_vm4, %v591_v19, %v595_v14 }
  0x2c   : > { %1482 = vmatpush3.bf16.msra.mxu0 %v1619_v30  ;;  %v690_v30 = vrot.slane %v689_v23, 4  ;;  %v1307_v34 = vcombine.low %v582_v28, %v596_v29 }
  0x2d   : > { %1494 = vmatpush3.bf16.msra.mxu1 %v1620_v32  ;;  %1499 = vmatprep.subr.bf16.mxu0 %v1682_v1  ;;  %v704_v32 = vrot.slane %v703_v26, 4 }
  0x2e   : > { %1511 = vmatprep.subr.bf16.mxu1 %v1682_v1  ;;  %v695_v33 = vsel %vm1842_vm4, %v690_v30, %v694_v24 }
  0x2f   : > { %1484 = vmatmul.mubr.msk.bf16.vlgmr.msra.gmra.mxu0 %vm241_vm1, %v1621_v35  ;;  %v709_v35 = vsel %vm1842_vm4, %v704_v32, %v708_v25 }
  0x30   : > { %1500 = vmatpush3.bf16.msra.mxu0 %v1622_v40  ;;  %1496 = vmatmul.mubr.msk.bf16.vlgmr.msra.gmra.mxu1 %vm241_vm1, %v1289_v49  ;;  %v1325_v38 = vcombine.low %v695_v33, %v709_v35  ;;  %v1633_v40 = vld [vmem:[%s2055_s1 + $0xf0] sm:$0xff]   ;;  %v802_v49 = vrot.slane %v1814_v16, 5  ;;  %v902_v16 = vrot.slane %v1864_v48, 5 }
  0x31   : > { %1512 = vmatpush3.bf16.msra.mxu1 %v1623_v43  ;;  %1501 = vmatprep.subr.bf16.mxu0 %v1682_v1  ;;  %v1347_v43 = vld [vmem:[%s1780_s13 + $0x8] sm:$0xe] }
  0x32   : > { %1513 = vmatprep.subr.bf16.mxu1 %v1682_v1  ;;  %1507 = vmatprep.mubr.msk.bf16.mxu0 %vm1683_vm0, %v1682_v1  ;;  %v1349_v54 = vrot.slane %v1347_v43, 9  ;;  %v803_v57 = vsel %vm1952_vm7, %v1331_v47, %v802_v49 }
  0x33   : > { %1519 = vmatprep.mubr.msk.bf16.mxu1 %vm1683_vm0, %v1682_v1  ;;  %v1341_v60 = vcombine.low %v803_v57, %v807_v58 }
  0x34   : > { %1502 = vmatpush3.bf16.msra.mxu0 %v1624_v53  ;;  %v899_v48 = vsel %vm1952_vm7, %v1349_v54, %v898_v55 }
  0x35   : > { %1514 = vmatpush3.bf16.msra.mxu1 %v1625_v56  ;;  %1503 = vmatprep.subr.bf16.mxu0 %v1682_v1  ;;  %v1350_v56 = vrot.slane %v1348_v44, 9 }
  0x36   : > { %1515 = vmatprep.subr.bf16.mxu1 %v1682_v1 }
  0x37   : > { %v903_v59 = vsel %vm1952_vm7, %v1350_v56, %v902_v16 }
  0x38   : > { %1504 = vmatpush3.bf16.msra.mxu0 %v1626_v8  ;;  %v1359_v62 = vcombine.low %v899_v48, %v903_v59  ;;  %v1368_v8 = vrot.slane %v1366_v3, 9 }
  0x39   : > { %1516 = vmatpush3.bf16.msra.mxu1 %v1627_v18  ;;  %1505 = vmatprep.subr.bf16.mxu0 %v1682_v1 }
  0x3a   : > { %1517 = vmatprep.subr.bf16.mxu1 %v1682_v1  ;;  %v998_v12 = vsel %vm1952_vm7, %v1368_v8, %v997_v9 }
  0x3b   : > { %v1377_v13 = vcombine.low %v994_v11, %v998_v12 }
  0x3c   : > { %1506 = vmatpush3.bf16.msra.mxu0 %v1628_v27 }
  0x3d   : > { %1518 = vmatpush3.bf16.msra.mxu1 %v1629_v31  ;;  %1523 = vmatprep.subr.bf16.mxu0 %v1682_v1 }
  0x3e   : > { %1535 = vmatprep.subr.bf16.mxu1 %v1682_v1 }
  0x3f   : > { %1508 = vmatmul.mubr.msk.bf16.vlgmr.msra.gmra.mxu0 %vm241_vm1, %v1307_v34 }
  0x40   : > { %1524 = vmatpush3.bf16.msra.mxu0 %v1630_v37  ;;  %1520 = vmatmul.mubr.msk.bf16.vlgmr.msra.gmra.mxu1 %vm241_vm1, %v1325_v38 }
  0x41   : > { %1536 = vmatpush3.bf16.msra.mxu1 %v1631_v39  ;;  %1525 = vmatprep.subr.bf16.mxu0 %v1682_v1 }
  0x42   : > { %1537 = vmatprep.subr.bf16.mxu1 %v1682_v1  ;;  %1531 = vmatprep.mubr.msk.bf16.mxu0 %vm1683_vm0, %v1682_v1 }
  0x43   : > { %1543 = vmatprep.mubr.msk.bf16.mxu1 %vm1683_vm0, %v1682_v1 }
  0x44   : > { %1526 = vmatpush3.bf16.msra.mxu0 %v1632_v36 }
  0x45   : > { %1538 = vmatpush3.bf16.msra.mxu1 %v1633_v40  ;;  %1527 = vmatprep.subr.bf16.mxu0 %v1682_v1 }
  0x46   : > { %1539 = vmatprep.subr.bf16.mxu1 %v1682_v1 }
  0x48   : > { %1528 = vmatpush3.bf16.msra.mxu0 %v1634_v45 }
  0x49   : > { %1540 = vmatpush3.bf16.msra.mxu1 %v1635_v52  ;;  %1529 = vmatprep.subr.bf16.mxu0 %v1682_v1 }
  0x4a   : > { %1541 = vmatprep.subr.bf16.mxu1 %v1682_v1 }
  0x4c   : > { %1530 = vmatpush3.bf16.msra.mxu0 %v1636_v20 }
  0x4d   : > { %1542 = vmatpush3.bf16.msra.mxu1 %v1637_v46  ;;  %1547 = vmatprep.subr.bf16.mxu0 %v1682_v1  ;;  %v1383_v46 = vld [vmem:[%s2056_s2] ss:$0 sm:$0xff] }
  0x4f   : > { %1532 = vmatmul.mubr.msk.bf16.vlgmr.msra.gmra.mxu0 %vm241_vm1, %v1341_v60 }
  0x50   : > { %1548 = vmatpush3.bf16.msra.mxu0 %v1638_v61  ;;  %1544 = vmatmul.mubr.msk.bf16.vlgmr.msra.gmra.mxu1 %vm241_vm1, %v1359_v62 }
  0x51   : > { %1549 = vmatprep.subr.bf16.mxu0 %v1682_v1  ;;  %1555 = vmatprep.mubr.msk.bf16.mxu0 %vm1683_vm0, %v1682_v1 }
  0x54   : > { %1550 = vmatpush3.bf16.msra.mxu0 %v1639_v63 }
  0x55   : > { %1551 = vmatprep.subr.bf16.mxu0 %v1682_v1 }
  0x58   : > { %1552 = vmatpush3.bf16.msra.mxu0 %v1640_v4 }
  0x59   : > { %1553 = vmatprep.subr.bf16.mxu0 %v1682_v1 }
  0x5c   : > { %1554 = vmatpush3.bf16.msra.mxu0 %v1641_v10 }
  0x5f   : > { %1556 = vmatmul.mubr.msk.bf16.vlgmr.msra.gmra.mxu0 %vm241_vm1, %v1377_v13 }
  0xdf   : > { %v279_v0 = vpop.f32.mrf.mxu0 }
  0xe0   : > { %v352_v5 = vpop.f32.mrf.mxu1 }
  0xe1   : > { %v1461_v14 = vpop.f32.mrf.mxu0  ;;  %v353_v38 = vadd.f32 %v352_v5, %v279_v0 }
  0xe2   : > { %v1473_v15 = vpop.f32.mrf.mxu1 }
  0xe3   : > { %v282_v17 = vpop.f32.mrf.mxu0 }
  0xe4   : > { %v355_v18 = vpop.f32.mrf.mxu1 }
  0xe5   : > { %v1462_v19 = vpop.f32.mrf.mxu0  ;;  %v356_v40 = vadd.f32 %v355_v18, %v282_v17 }
  0xe6   : > { %v1474_v21 = vpop.f32.mrf.mxu1 }
  0xef   : > { %v439_v22 = vpop.f32.mrf.mxu0 }
  0xf0   : > { %v556_v23 = vpop.f32.mrf.mxu1  ;;  %v446_v39 = vadd.f32 %v439_v22, %v353_v38 }
  0xf1   : > { %v1485_v24 = vpop.f32.mrf.mxu0 }
  0xf2   : > { %v1497_v25 = vpop.f32.mrf.mxu1  ;;  %v563_v43 = vadd.f32 %v556_v23, %v446_v39 }
  0xf3   : > { %v442_v26 = vpop.f32.mrf.mxu0 }
  0xf4   : > { %v559_v27 = vpop.f32.mrf.mxu1  ;;  %v447_v44 = vadd.f32 %v442_v26, %v356_v40 }
  0xf5   : > { %v1486_v28 = vpop.f32.mrf.mxu0 }
  0xf6   : > { %v1498_v1 = vpop.f32.mrf.mxu1  ;;  %v564_v52 = vadd.f32 %v559_v27, %v447_v44 }
  0xff   : > { %v669_v29 = vpop.f32.mrf.mxu0 }
 0x100   : > { %v782_v30 = vpop.f32.mrf.mxu1  ;;  %v676_v49 = vadd.f32 %v669_v29, %v563_v43 }
 0x101   : > { %v1509_v31 = vpop.f32.mrf.mxu0 }
 0x102   : > { %v1521_v32 = vpop.f32.mrf.mxu1  ;;  %v789_v54 = vadd.f32 %v782_v30, %v676_v49 }
 0x103   : > { %v672_v33 = vpop.f32.mrf.mxu0 }
 0x104   : > { %v785_v34 = vpop.f32.mrf.mxu1  ;;  %v677_v55 = vadd.f32 %v672_v33, %v564_v52 }
 0x105   : > { %v1510_v35 = vpop.f32.mrf.mxu0 }
 0x106   : > { %v1522_v37 = vpop.f32.mrf.mxu1  ;;  %v790_v16 = vadd.f32 %v785_v34, %v677_v55 }
 0x10f   : > { %v881_v36 = vpop.f32.mrf.mxu0 }
 0x110   : > { %v976_v41 = vpop.f32.mrf.mxu1  ;;  %v888_v56 = vadd.f32 %v881_v36, %v789_v54 }
 0x111   : > { %v1533_v42 = vpop.f32.mrf.mxu0 }
 0x112   : > { %v1545_v45 = vpop.f32.mrf.mxu1  ;;  %v983_v20 = vadd.f32 %v976_v41, %v888_v56 }
 0x113   : > { %v884_v47 = vpop.f32.mrf.mxu0 }
 0x114   : > { %v979_v50 = vpop.f32.mrf.mxu1  ;;  %v889_v57 = vadd.f32 %v884_v47, %v790_v16 }
 0x115   : > { %v1534_v51 = vpop.f32.mrf.mxu0 }
 0x116   : > { %v1546_v53 = vpop.f32.mrf.mxu1  ;;  %v984_v60 = vadd.f32 %v979_v50, %v889_v57 }
 0x11f   : > { %v1071_v58 = vpop.f32.mrf.mxu0 }
 0x120   : > { %v1078_v48 = vadd.f32 %v1071_v58, %v983_v20 }
 0x121   : > { %v1557_v59 = vpop.f32.mrf.mxu0 }
 0x122   : > { %v1087_v61 = vadd.f32 %v1383_v46, %v1078_v48 }
 0x123   : > { %v1074_v62 = vpop.f32.mrf.mxu0 }
 0x124   : > { %v1089_v63 = vmax.f32 %v1087_v61, 0.0  ;;  %v1079_v2 = vadd.f32 %v1074_v62, %v984_v60  ;;  %1094 = sbr.rel (%p1384_p6) target bundleno = 308 (0x134), region = 36 }
 0x125   : > { %v1558_v3 = vpop.f32.mrf.mxu0 }
 0x126   : > { %v1088_v4 = vadd.f32 %v1383_v46, %v1079_v2 }
 0x128   : > { %v1090_v6 = vmax.f32 %v1088_v4, 0.0 }
 0x129   : > { %v1684_v7 = vmov 0  }
 0x12a   : > { %1095 = vst [vmem:[%s1776_s11] sm:$0xf] %v1684_v7  ;;  %1096 = vst [vmem:[%s1776_s11 + $0x4] sm:$0x1] %v1684_v7 }
 0x12b   : > { %1097 = vst [vmem:[%s1776_s11 + $0x8] sm:$0xf] %v1684_v7  ;;  %1098 = vst [vmem:[%s1776_s11 + $0xc] sm:$0x1] %v1684_v7 }
 0x12c   : > { %1099 = vst [vmem:[%s1776_s11 + $0x10] sm:$0xf] %v1684_v7  ;;  %1100 = vst [vmem:[%s1776_s11 + $0x14] sm:$0x1] %v1684_v7 }
 0x12d   : > { %1101 = vst [vmem:[%s1776_s11 + $0x18] sm:$0xf] %v1684_v7  ;;  %1102 = vst [vmem:[%s1776_s11 + $0x1c] sm:$0x1] %v1684_v7 }
 0x12e   : > { %1103 = vst [vmem:[%s1776_s11 + $0x20] sm:$0xf] %v1684_v7  ;;  %1104 = vst [vmem:[%s1776_s11 + $0x24] sm:$0x1] %v1684_v7 }
 0x12f   : > { %1105 = vst [vmem:[%s1776_s11 + $0x28] sm:$0xf] %v1684_v7  ;;  %1106 = vst [vmem:[%s1776_s11 + $0x2c] sm:$0x1] %v1684_v7 }
 0x130   : > { %1107 = vst [vmem:[%s1776_s11 + $0x30] sm:$0xf] %v1684_v7  ;;  %1108 = vst [vmem:[%s1776_s11 + $0x34] sm:$0x1] %v1684_v7 }
 0x131   : > { %1109 = vst [vmem:[%s1776_s11 + $0x38] sm:$0xf] %v1684_v7  ;;  %1110 = vst [vmem:[%s1776_s11 + $0x3c] sm:$0x1] %v1684_v7 }
 0x132   : > { %1111 = vst [vmem:[%s1776_s11 + $0x40] sm:$0xf] %v1684_v7  ;;  %1112 = vst [vmem:[%s1776_s11 + $0x44] sm:$0x1] %v1684_v7 }
 0x133   : > { %1113 = vst [vmem:[%s1776_s11 + $0x48] sm:$0xf] %v1684_v7  ;;  %1114 = vst [vmem:[%s1776_s11 + $0x4c] sm:$0x1] %v1684_v7 }
 0x134 PF: > { %v1403_v8 = vpack.c.bf16 %v1089_v63, %v1089_v63  ;;  %vm1147_vm8 = vcmask 1043456   ;;  %vm1148_vm9 = vsmask.f32 7938  ;;  %v1404_v9 = vpack.c.bf16 %v1090_v6, %v1090_v6  ;;  %s1208_s26 = scalar_lea.vmem %s1776_s11, %s1400_s27 }
 0x135   : > { %vm1153_vm10 = vcmask 1040384   ;;  %vm1154_vm11 = vsmask.f32 256  ;;  %vm2031_vm12 = vmand %vm1147_vm8, %vm1148_vm9 }
 0x136   : > { %v1125_v10 = vshrl.u32 %v1403_v8, 16  ;;  %v1128_v11 = vshll.u32 %v1403_v8, 16  ;;  %v1133_v12 = vshrl.u32 %v1404_v9, 16  ;;  %v1136_v13 = vshll.u32 %v1404_v9, 16  ;;  %vm1155_vm13 = vmand %vm1153_vm10, %vm1154_vm11 }
 0x138   : > { %v1127_v0 = vrot.slane %v1125_v10, 7  ;;  %v1135_v17 = vrot.slane %v1133_v12, 7 }
 0x13a   : > { %v1389_v14 = vld [vmem:[%s1208_s26 + $0x8] sm:$0xf]  ;;  %v1391_v15 = vld [vmem:[%s1208_s26 + $0xc] sm:$0x1]  ;;  %v1130_v18 = vor.u32 %v1128_v11, %v1127_v0  ;;  %v1131_v19 = vrot.slane %v1127_v0, 4  ;;  %v1138_v23 = vor.u32 %v1136_v13, %v1135_v17  ;;  %v1139_v24 = vrot.slane %v1135_v17, 4 }
 0x13b   : > { %v1393_v21 = vld [vmem:[%s1208_s26 + $0x10] sm:$0xf]  ;;  %v1395_v22 = vld [vmem:[%s1208_s26 + $0x14] sm:$0x1] }
 0x13c   : > { %v1151_v25 = vsel %vm2031_vm12, %v1130_v18, %v1389_v14  ;;  %v1157_v26 = vsel %vm1155_vm13, %v1131_v19, %v1391_v15  ;;  %v1160_v27 = vsel %vm2031_vm12, %v1138_v23, %v1393_v21  ;;  %v1163_v28 = vsel %vm1155_vm13, %v1139_v24, %v1395_v22 }
 0x13d   : > { %1390 = vst [vmem:[%s1208_s26 + $0x8] sm:$0xf] %v1151_v25  ;;  %1392 = vst [vmem:[%s1208_s26 + $0xc] sm:$0x1] %v1157_v26 }
 0x13e   : > { %1394 = vst [vmem:[%s1208_s26 + $0x10] sm:$0xf] %v1160_v27  ;;  %1396 = vst [vmem:[%s1208_s26 + $0x14] sm:$0x1] %v1163_v28 }
 0x13f PF: > { %s13_s16 = sadd.s32 1, %s1680_s16   ;;  %s2064_s12 = smov %s1672_s14 }
 0x140   : > { %p10_p7 = scmp.ge.s32.totalorder %s13_s16, 18   ;;  %s2065_s13 = smov %s1676_s15 }
 0x141   : > { %s2066_s14 = smov %s2069_s17  ;;  %s2067_s15 = smov %s2073_s18 }
 0x142   :  { %12 = sbr.rel (!%p10_p7) target bundleno = 3 (0x3), region = 72 }

// kernel: perceptual_loss_forward.9
= control target key start
LH: loop header
LB: loop body
LE: loop exit
PB: predicated region body
PF: predicated region fallthrough
CT: control target
= control target key end

     0   :  { %s2123_s12 = smov 0   ;;  %s2125_s13 = smov 0   ;;  %s2511_s0 = inlined_call_operand.vmem [shape: bf16[4,18,18,64], index: 0, kind: input, shape index: {}]   ;;  %s2512_s1 = inlined_call_operand.vmem [shape: bf16[3,192,64], index: 1, kind: input, shape index: {}]   ;;  %s2513_s2 = inlined_call_operand.vmem [shape: f32[1,64], index: 2, kind: input, shape index: {}]   ;;  %s2514_s3 = inlined_call_operand.vmem [shape: bf16[4,10,10,64], index: 3, kind: output, shape index: {}]  }
   0x1   :  { %s2127_s14 = smov 0   ;;  %s2129_s15 = smov 0  }
   0x2   :  { %s2131_s16 = smov 0  }
   0x3 LB: > { %s22_s17 = sadd.s32 1, %s2091_s14  ;;  %s25_s18 = sadd.s32 1, %s2095_s15  ;;  %s2099_s16 = sphi %s2131_s16, %s13_s16   ;;  %s2095_s15 = sphi %s2129_s15, %s2522_s15   ;;  %s2091_s14 = sphi %s2127_s14, %s2521_s14   ;;  %s2087_s13 = sphi %s2125_s13, %s2520_s13   ;;  %s2083_s12 = sphi %s2123_s12, %s2519_s12  }
   0x4   : > { %p23_p0 = scmp.ge.s32.totalorder %s22_s17, 8  ;;  %p1625_p1 = scmp.ge.s32.totalorder %s2099_s16, 1 }
   0x5   : > { %p149_p2 = scmp.lt.s32.totalorder %s2099_s16, 33 }
   0x6   : > { %s2524_s17 = smov (%p23_p0, %s22_s17), 0  ;;  %s2526_s18 = smov (!%p23_p0, %s25_s18), %s2095_s15 }
   0x7   : > { %p150_p3 = pnand %p1625_p1, %p149_p2  ;;  %p27_p4 = scmp.ge.s32.totalorder %s2526_s18, 4 }
   0x8   : > { %p173_p5 = scmp.lt.s32.totalorder (!%p150_p3), %s2087_s13, 3  ;;  %s1803_s27 = smul.u32 (!%p150_p3), 24, %s2083_s12 }
   0x9   : > { %s2528_s18 = smov (%p27_p4, %s2526_s18), 0  ;;  %153 = sbr.rel (%p150_p3) target bundleno = 347 (0x15b), region = 32 }
   0xa   : > { %p1786_p6 = scmp.ne.s32.totalorder (!%p150_p3), %s2083_s12, 0 }
   0xe   : > { %v2019_v0 = vld [vmem:[%s2512_s1 + $0x38] sm:$0xff]   ;;  %v2021_v2 = vld [vmem:[%s2512_s1 + $0x30] sm:$0xff]   ;;  %s2530_s13 = smov (!%p173_p5, %s2087_s13), 3  ;;  %v2023_v4 = vld [vmem:[%s2512_s1 + $0x28] sm:$0xff]   ;;  %vm250_vm0 = vcmask 523264   ;;  %vm969_vm4 = vcmask 1042432  }
   0xf   : > { %v2020_v1 = vld [vmem:[%s2512_s1 + $0x18] sm:$0xff]   ;;  %1867 = vmatprep.subr.bf16.mxu0 %v2019_v0  ;;  %v2022_v3 = vld [vmem:[%s2512_s1 + $0x10] sm:$0xff]   ;;  %s1975_s30 = smul.u32 216, %s2530_s13  ;;  %v2024_v5 = vld [vmem:[%s2512_s1 + $0x8] sm:$0xff]   ;;  %vm510_vm1 = vsmask.f32 3328 }
  0x10   : > { %1879 = vmatprep.subr.bf16.mxu1 %v2020_v1  ;;  %1868 = vmatpush3.bf16.msra.mxu0 %v2019_v0  ;;  %s1976_s6 = smul.u32 80, %s2530_s13  ;;  %v2025_v6 = vld [vmem:[%s2512_s1 + $0x20] sm:$0xff]   ;;  %v2031_v10 = vld [vmem:[%s2512_s1 + $0x58] sm:$0xff]   ;;  %v2033_v14 = vld [vmem:[%s2512_s1 + $0x50] sm:$0xff]   ;;  %vm511_vm2 = vsmask.f32 7440 }
  0x11   : > { %1880 = vmatpush3.bf16.msra.mxu1 %v2020_v1  ;;  %1869 = vmatprep.subr.bf16.mxu0 %v2021_v2  ;;  %s177_s11 = scalar_lea.vmem %s2511_s0, %s1975_s30  ;;  %v2026_v7 = vld [vmem:[%s2512_s1] sm:$0xff]   ;;  %v2032_v11 = vld [vmem:[%s2512_s1 + $0x78] sm:$0xff]   ;;  %v2034_v15 = vld [vmem:[%s2512_s1 + $0x70] sm:$0xff]   ;;  %vm970_vm5 = vcmask 1046532   ;;  %vm1387_vm7 = vcmask 517120  }
  0x12   : > { %1881 = vmatprep.subr.bf16.mxu1 %v2022_v3  ;;  %s2186_s23 = scalar_lea.vmem %s2514_s3, %s1976_s6  ;;  %s2188_s24 = scalar_lea.vmem %s177_s11, %s1803_s27  ;;  %v2035_v16 = vld [vmem:[%s2512_s1 + $0x48] sm:$0xff]   ;;  %v2037_v19 = vld [vmem:[%s2512_s1 + $0x40] sm:$0xff]   ;;  %v2041_v30 = vld [vmem:[%s2512_s1 + $0x98] sm:$0xff]  }
  0x13   : > { %v2027_v8 = vld [vmem:[%s2188_s24 + $0xc] sm:$0xff]   ;;  %v2028_v9 = vld [vmem:[%s2188_s24] sm:$0xff]   ;;  %v2029_v12 = vld [vmem:[%s2188_s24 + $0x18] sm:$0xff]  }
  0x14   : > { %1870 = vmatpush3.bf16.msra.mxu0 %v2021_v2  ;;  %1875 = vmatprep.mubr.msk.bf16.mxu0 %vm250_vm0, %v2027_v8  ;;  %v2030_v13 = vld [vmem:[%s2188_s24 + $0xc] sm:$0xff]   ;;  %v2039_v17 = vld [vmem:[%s2188_s24 + $0x18] sm:$0xff]   ;;  %v504_v20 = vld [vmem:[%s2188_s24] sm:$0xf] }
  0x15   : > { %1882 = vmatpush3.bf16.msra.mxu1 %v2022_v3  ;;  %1871 = vmatprep.subr.bf16.mxu0 %v2023_v4  ;;  %v2036_v18 = vld [vmem:[%s2512_s1 + $0x68] sm:$0xff]   ;;  %v2223_v21 = vld [vmem:[%s2188_s24 + $0x4] sm:$0xf]  ;;  %v514_v23 = vshrl.u32 %v504_v20, 16  ;;  %v517_v24 = vshll.u32 %v504_v20, 16  ;;  %v2042_v44 = vld [vmem:[%s2512_s1 + $0xb8] sm:$0xff]  }
  0x16   : > { %1883 = vmatprep.subr.bf16.mxu1 %v2024_v5  ;;  %1887 = vmatprep.mubr.msk.bf16.mxu1 %vm250_vm0, %v2028_v9  ;;  %v2226_v22 = vld [vmem:[%s2188_s24 + $0x8] sm:$0x1]  ;;  %v2038_v25 = vld [vmem:[%s2512_s1 + $0x60] sm:$0xff]   ;;  %v523_v26 = vshll.u32 %v2223_v21, 16  ;;  %v527_v27 = vshrl.u32 %v2223_v21, 16  ;;  %vm2252_vm3 = vmor %vm510_vm1, %vm511_vm2  ;;  %v974_v0 = vrot.slane %v2223_v21, 5 }
  0x17   : > { %v533_v28 = vshll.u32 %v2226_v22, 16  ;;  %v507_v29 = vld [vmem:[%s2188_s24 + $0xc] sm:$0xf]  ;;  %v516_v31 = vrot.slane %v514_v23, 4  ;;  %v519_v32 = vrot.slane %v517_v24, 5  ;;  %v2040_v39 = vld [vmem:[%s2188_s24 + $0x24] sm:$0xff]   ;;  %vm2359_vm6 = vmor %vm969_vm4, %vm970_vm5 }
  0x18   : > { %1872 = vmatpush3.bf16.msra.mxu0 %v2023_v4  ;;  %v2239_v33 = vld [vmem:[%s2188_s24 + $0x10] sm:$0xf]  ;;  %v2242_v34 = vld [vmem:[%s2188_s24 + $0x14] sm:$0x1]  ;;  %v525_v35 = vrot.slane %v523_v26, 5  ;;  %v529_v36 = vrot.slane %v527_v27, 4 }
  0x19   : > { %1884 = vmatpush3.bf16.msra.mxu1 %v2024_v5  ;;  %1873 = vmatprep.subr.bf16.mxu0 %v2025_v6  ;;  %v535_v37 = vrot.slane %v533_v28, 5  ;;  %v538_v38 = vshrl.u32 %v507_v29, 16  ;;  %v520_v40 = vor.u32 %v519_v32, %v516_v31  ;;  %v541_v41 = vshll.u32 %v507_v29, 16  ;;  %v2043_v55 = vld [vmem:[%s2512_s1 + $0x90] sm:$0xff]   ;;  %v2045_v63 = vld [vmem:[%s2512_s1 + $0x88] sm:$0xff]  }
  0x1a   : > { %1885 = vmatprep.subr.bf16.mxu1 %v2026_v7  ;;  %v547_v42 = vshll.u32 %v2239_v33, 16  ;;  %v551_v43 = vshrl.u32 %v2239_v33, 16  ;;  %v530_v46 = vor.u32 %v529_v36, %v525_v35  ;;  %v557_v48 = vshll.u32 %v2242_v34, 16  ;;  %v1683_v1 = vld [vmem:[%s2188_s24 + $0xc] sm:$0xf]  ;;  %v2044_v9 = vld [vmem:[%s2512_s1 + $0xb0] sm:$0xff]  }
  0x1b   : > { %v540_v47 = vrot.slane %v538_v38, 4  ;;  %v521_v49 = vrot.slane %v520_v40, 4  ;;  %v543_v50 = vrot.slane %v541_v41, 5  ;;  %v2276_v4 = vld [vmem:[%s2188_s24 + $0x10] sm:$0xf] }
  0x1c   : > { %1874 = vmatpush3.bf16.msra.mxu0 %v2025_v6  ;;  %v549_v51 = vrot.slane %v547_v42, 5  ;;  %v553_v52 = vrot.slane %v551_v43, 4  ;;  %v531_v53 = vrot.slane %v530_v46, 4  ;;  %v559_v54 = vrot.slane %v557_v48, 5  ;;  %v2279_v5 = vld [vmem:[%s2188_s24 + $0x14] sm:$0x1] }
  0x1d   : > { %1886 = vmatpush3.bf16.msra.mxu1 %v2026_v7  ;;  %1891 = vmatprep.subr.bf16.mxu0 %v2031_v10  ;;  %v526_v56 = vsel %vm2252_vm3, %v521_v49, %v525_v35  ;;  %v544_v57 = vor.u32 %v543_v50, %v540_v47  ;;  %v666_v6 = vshrl.u32 %v1683_v1, 16  ;;  %v669_v7 = vshll.u32 %v1683_v1, 16  ;;  %v1705_v35 = vld [vmem:[%s2188_s24 + $0x18] sm:$0xf]  ;;  %v2306_v36 = vld [vmem:[%s2188_s24 + $0x1c] sm:$0xf] }
  0x1e   : > { %1903 = vmatprep.subr.bf16.mxu1 %v2032_v11  ;;  %v554_v58 = vor.u32 %v553_v52, %v549_v51  ;;  %v536_v59 = vsel %vm2252_vm3, %v531_v53, %v535_v37  ;;  %v2309_v43 = vld [vmem:[%s2188_s24 + $0x20] sm:$0x1]  ;;  %v820_v46 = vshll.u32 %v1705_v35, 16  ;;  %v1708_v52 = vld [vmem:[%s2188_s24 + $0x24] sm:$0xf]  ;;  %v2052_v21 = vld [vmem:[%s2512_s1 + $0xf0] sm:$0xff]  }
  0x1f   : > { %1876 = vmatmul.mubr.msk.bf16.vlgmr.msra.gmra.mxu0 %vm250_vm0, %v2029_v12  ;;  %v1675_v60 = vcombine.low %v526_v56, %v536_v59  ;;  %v545_v61 = vrot.slane %v544_v57, 4  ;;  %v685_v12 = vshll.u32 %v2279_v5, 16  ;;  %v2048_v47 = vld [vmem:[%s2512_s1 + $0xa0] sm:$0xff]   ;;  %v2319_v53 = vld [vmem:[%s2188_s24 + $0x28] sm:$0xf] }
  0x20   : > { %1888 = vmatmul.mubr.msk.bf16.vlgmr.msra.gmra.mxu1 %vm250_vm0, %v2030_v13  ;;  %1892 = vmatpush3.bf16.msra.mxu0 %v2031_v10  ;;  %v555_v62 = vrot.slane %v554_v58, 4  ;;  %v675_v10 = vshll.u32 %v2276_v4, 16  ;;  %v1686_v13 = vld [vmem:[%s2188_s24 + $0x18] sm:$0xf]  ;;  %v822_v57 = vrot.slane %v820_v46, 5  ;;  %v830_v58 = vshrl.u32 %v2306_v36, 16 }
  0x21   : > { %1904 = vmatpush3.bf16.msra.mxu1 %v2032_v11  ;;  %1893 = vmatprep.subr.bf16.mxu0 %v2033_v14  ;;  %v550_v2 = vsel %vm2252_vm3, %v545_v61, %v549_v51  ;;  %v679_v11 = vshrl.u32 %v2276_v4, 16  ;;  %v687_v23 = vrot.slane %v685_v12, 5  ;;  %v690_v24 = vshrl.u32 %v1686_v13, 16 }
  0x22   : > { %1905 = vmatprep.subr.bf16.mxu1 %v2034_v15  ;;  %1899 = vmatprep.mubr.msk.bf16.mxu0 %vm250_vm0, %v2039_v17  ;;  %v560_v3 = vsel %vm2252_vm3, %v555_v62, %v559_v54  ;;  %v2292_v17 = vld [vmem:[%s2188_s24 + $0x20] sm:$0x1]  ;;  %v693_v27 = vshll.u32 %v1686_v13, 16  ;;  %v826_v51 = vshll.u32 %v2306_v36, 16  ;;  %v850_v12 = vshll.u32 %v2319_v53, 16 }
  0x23   : > { %1911 = vmatprep.mubr.msk.bf16.mxu1 %vm250_vm0, %v1675_v60  ;;  %v1676_v8 = vcombine.low %v550_v2, %v560_v3  ;;  %v681_v20 = vrot.slane %v679_v11, 4  ;;  %v692_v31 = vrot.slane %v690_v24, 4  ;;  %v709_v32 = vshll.u32 %v2292_v17, 16 }
  0x24   : > { %1894 = vmatpush3.bf16.msra.mxu0 %v2033_v14  ;;  %v668_v14 = vrot.slane %v666_v6, 4  ;;  %v695_v38 = vrot.slane %v693_v27, 5  ;;  %v828_v62 = vrot.slane %v826_v51, 5  ;;  %v832_v2 = vrot.slane %v830_v58, 4 }
  0x25   : > { %1906 = vmatpush3.bf16.msra.mxu1 %v2034_v15  ;;  %1895 = vmatprep.subr.bf16.mxu0 %v2035_v16  ;;  %v671_v15 = vrot.slane %v669_v7, 5  ;;  %v711_v42 = vrot.slane %v709_v32, 5  ;;  %v836_v3 = vshll.u32 %v2309_v43, 16  ;;  %v841_v6 = vshrl.u32 %v1708_v52, 16  ;;  %v2334_v7 = vld [vmem:[%s2512_s1 + $0xf8] sm:$0xff]   ;;  %v2053_v32 = vld [vmem:[%s2512_s1 + $0xc8] sm:$0xff]  }
  0x26   : > { %1907 = vmatprep.subr.bf16.mxu1 %v2036_v18  ;;  %v696_v49 = vor.u32 %v695_v38, %v692_v31  ;;  %v844_v11 = vshll.u32 %v1708_v52, 16  ;;  %v854_v24 = vshrl.u32 %v2319_v53, 16  ;;  %v977_v46 = vrot.slane %v2226_v22, 5 }
  0x27   : > { %v672_v26 = vor.u32 %v671_v15, %v668_v14  ;;  %v833_v15 = vor.u32 %v832_v2, %v828_v62  ;;  %v984_v51 = vrot.slane %v2242_v34, 5  ;;  %v1094_v52 = vrot.slane %v2276_v4, 5 }
  0x28   : > { %1896 = vmatpush3.bf16.msra.mxu0 %v2035_v16  ;;  %v2289_v16 = vld [vmem:[%s2188_s24 + $0x1c] sm:$0xf]  ;;  %v697_v60 = vrot.slane %v696_v49, 4  ;;  %v1213_v2 = vrot.slane %v2306_v36, 5 }
  0x29   : > { %1908 = vmatpush3.bf16.msra.mxu1 %v2036_v18  ;;  %1897 = vmatprep.subr.bf16.mxu0 %v2037_v19  ;;  %v2046_v18 = vld [vmem:[%s2512_s1 + $0xa8] sm:$0xff]   ;;  %v699_v28 = vshll.u32 %v2289_v16, 16  ;;  %v703_v29 = vshrl.u32 %v2289_v16, 16  ;;  %v673_v37 = vrot.slane %v672_v26, 4  ;;  %v834_v26 = vrot.slane %v833_v15, 4 }
  0x2a   : > { %1909 = vmatprep.subr.bf16.mxu1 %v2038_v25  ;;  %v1096_v58 = vrot.slane %v1094_v52, 4  ;;  %v1104_v15 = vrot.slane %v2292_v17, 5 }
  0x2b   : > { %v705_v40 = vrot.slane %v703_v29, 4  ;;  %v856_v29 = vrot.slane %v854_v24, 4  ;;  %v1766_v24 = vld [vmem:[%s2188_s24 + $0x24] sm:$0xe] }
  0x2c   : > { %1898 = vmatpush3.bf16.msra.mxu0 %v2037_v19  ;;  %v677_v19 = vrot.slane %v675_v10, 5 }
  0x2d   : > { %1910 = vmatpush3.bf16.msra.mxu1 %v2038_v25  ;;  %1915 = vmatprep.subr.bf16.mxu0 %v2041_v30  ;;  %v2047_v25 = vld [vmem:[%s2512_s1 + $0x80] sm:$0xff]  }
  0x2e   : > { %1927 = vmatprep.subr.bf16.mxu1 %v2042_v44  ;;  %v678_v48 = vsel %vm2252_vm3, %v673_v37, %v677_v19 }
  0x2f   : > { %1900 = vmatmul.mubr.msk.bf16.vlgmr.msra.gmra.mxu0 %vm250_vm0, %v2040_v39  ;;  %v701_v39 = vrot.slane %v699_v28, 5 }
  0x30   : > { %1916 = vmatpush3.bf16.msra.mxu0 %v2041_v30  ;;  %1912 = vmatmul.mubr.msk.bf16.vlgmr.msra.gmra.mxu1 %vm250_vm0, %v1676_v8  ;;  %v682_v30 = vor.u32 %v681_v20, %v677_v19  ;;  %v2051_v8 = vld [vmem:[%s2512_s1 + $0xd0] sm:$0xff]   ;;  %v838_v19 = vrot.slane %v836_v3, 5  ;;  %v843_v20 = vrot.slane %v841_v6, 4  ;;  %v1216_v3 = vrot.slane %v2309_v43, 5 }
  0x31   : > { %1917 = vmatprep.subr.bf16.mxu0 %v2043_v55  ;;  %1928 = vmatpush3.bf16.msra.mxu1 %v2042_v44  ;;  %v817_v44 = vshrl.u32 %v1705_v35, 16  ;;  %v706_v50 = vor.u32 %v705_v40, %v701_v39 }
  0x32   : > { %1929 = vmatprep.subr.bf16.mxu1 %v2044_v9  ;;  %v683_v41 = vrot.slane %v682_v30, 4  ;;  %v839_v30 = vsel %vm2252_vm3, %v834_v26, %v838_v19  ;;  %v1768_v26 = vrot.slane %v1766_v24, 9 }
  0x33   : > { %v819_v56 = vrot.slane %v817_v44, 4  ;;  %v707_v61 = vrot.slane %v706_v50, 4 }
  0x34   : > { %1918 = vmatpush3.bf16.msra.mxu0 %v2043_v55  ;;  %v688_v54 = vsel %vm2252_vm3, %v683_v41, %v687_v23  ;;  %v2049_v55 = vld [vmem:[%s2512_s1 + $0xd8] sm:$0xff]   ;;  %v846_v23 = vrot.slane %v844_v11, 5  ;;  %v976_v41 = vrot.slane %v974_v0, 4 }
  0x35   : > { %1919 = vmatprep.subr.bf16.mxu0 %v2045_v63  ;;  %1930 = vmatpush3.bf16.msra.mxu1 %v2044_v9  ;;  %v1697_v59 = vcombine.low %v678_v48, %v688_v54  ;;  %v823_v1 = vor.u32 %v822_v57, %v819_v56  ;;  %v702_v9 = vsel %vm2252_vm3, %v697_v60, %v701_v39  ;;  %v961_v39 = vld [vmem:[%s2188_s24] sm:$0xe]  ;;  %v981_v48 = vrot.slane %v2239_v33, 5  ;;  %v1745_v56 = vld [vmem:[%s2188_s24 + $0xc] sm:$0xe] }
  0x36   : > { %1931 = vmatprep.subr.bf16.mxu1 %v2046_v18  ;;  %v712_v10 = vsel %vm2252_vm3, %v707_v61, %v711_v42  ;;  %v847_v28 = vor.u32 %v846_v23, %v843_v20  ;;  %v962_v42 = vld [vmem:[%s2188_s24 + $0xc] sm:$0xe]  ;;  %v1727_v44 = vrot.slane %v961_v39, 9  ;;  %v2055_v54 = vld [vmem:[%s2512_s1 + $0xc0] sm:$0xff]   ;;  %v978_v33 = vsel %vm2359_vm6, %v976_v41, %v977_v46  ;;  %v2057_v61 = vld [vmem:[%s2512_s1 + $0x118] sm:$0xff]  }
  0x37   : > { %1923 = vmatprep.mubr.msk.bf16.mxu0 %vm250_vm0, %v1697_v59  ;;  %v1698_v13 = vcombine.low %v702_v9, %v712_v10  ;;  %v824_v14 = vrot.slane %v823_v1, 4  ;;  %v1747_v57 = vrot.slane %v1745_v56, 9  ;;  %v1097_v60 = vrot.slane %v2279_v5, 5  ;;  %v1765_v1 = vld [vmem:[%s2188_s24 + $0x18] sm:$0xe]  ;;  %v2054_v10 = vld [vmem:[%s2512_s1 + $0xe8] sm:$0xff]  }
  0x38   : > { %1920 = vmatpush3.bf16.msra.mxu0 %v2045_v63  ;;  %v2328_v63 = vld [vmem:[%s2188_s24 + $0x2c] sm:$0x1]  ;;  %v848_v37 = vrot.slane %v847_v28, 4  ;;  %v975_v22 = vsel %vm2359_vm6, %v1727_v44, %v974_v0  ;;  %v1767_v9 = vrot.slane %v1765_v1, 9  ;;  %v2056_v20 = vld [vmem:[%s2512_s1 + $0xe0] sm:$0xff]   ;;  %v1220_v23 = vrot.slane %v2319_v53, 5 }
  0x39   : > { %1921 = vmatprep.subr.bf16.mxu0 %v2047_v25  ;;  %1932 = vmatpush3.bf16.msra.mxu1 %v2046_v18  ;;  %v852_v18 = vrot.slane %v850_v12, 5  ;;  %v860_v27 = vshll.u32 %v2328_v63, 16  ;;  %v1737_v4 = vcombine.low %v975_v22, %v978_v33  ;;  %v1098_v5 = vsel %vm2359_vm6, %v1096_v58, %v1097_v60  ;;  %v1746_v12 = vld [vmem:[%s2188_s24 + $0x18] sm:$0xe] }
  0x3a   : > { %1933 = vmatprep.subr.bf16.mxu1 %v2048_v47  ;;  %v1214_v36 = vsel %vm2359_vm6, %v1767_v9, %v1213_v2  ;;  %v1223_v28 = vrot.slane %v2328_v63, 5 }
  0x3b   : > { %v862_v31 = vrot.slane %v860_v27, 5  ;;  %v857_v38 = vor.u32 %v856_v29, %v852_v18  ;;  %v853_v49 = vsel %vm2252_vm3, %v848_v37, %v852_v18  ;;  %v2059_v18 = vld [vmem:[%s2512_s1 + $0x108] sm:$0xff]   ;;  %v1222_v27 = vrot.slane %v1220_v23, 4  ;;  %v2060_v29 = vld [vmem:[%s2512_s1 + $0x100] sm:$0xff]  }
  0x3c   : > { %1922 = vmatpush3.bf16.msra.mxu0 %v2047_v25  ;;  %v829_v25 = vsel %vm2252_vm3, %v824_v14, %v828_v62  ;;  %v1095_v62 = vsel %vm2359_vm6, %v1747_v57, %v1094_v52 }
  0x3d   : > { %1939 = vmatprep.subr.bf16.mxu0 %v2049_v55  ;;  %1934 = vmatpush3.bf16.msra.mxu1 %v2048_v47  ;;  %v1719_v35 = vcombine.low %v829_v25, %v839_v30  ;;  %v1728_v47 = vrot.slane %v962_v42, 9  ;;  %v858_v50 = vrot.slane %v857_v38, 4  ;;  %v1757_v6 = vcombine.low %v1095_v62, %v1098_v5 }
  0x3e   : > { %1951 = vmatprep.subr.bf16.mxu1 %v2334_v7  ;;  %v1221_v30 = vsel %vm2359_vm6, %v1768_v26, %v1220_v23  ;;  %v1785_v26 = vld [vmem:[%s2513_s2] ss:$0 sm:$0xff] }
  0x3f   : > { %1924 = vmatmul.mubr.msk.bf16.vlgmr.msra.gmra.mxu0 %vm250_vm0, %v1698_v13  ;;  %1935 = vmatprep.mubr.msk.bf16.mxu1 %vm250_vm0, %v1719_v35  ;;  %v863_v34 = vsel %vm2252_vm3, %v858_v50, %v862_v31  ;;  %v982_v0 = vsel %vm2359_vm6, %v1728_v47, %v981_v48  ;;  %v1215_v13 = vrot.slane %v1213_v2, 4  ;;  %v1224_v31 = vsel %vm2359_vm6, %v1222_v27, %v1223_v28 }
  0x40   : > { %1940 = vmatpush3.bf16.msra.mxu0 %v2049_v55  ;;  %v983_v55 = vrot.slane %v981_v48, 4  ;;  %v1720_v59 = vcombine.low %v853_v49, %v863_v34  ;;  %1947 = vmatprep.mubr.msk.bf16.mxu0 %vm250_vm0, %v1737_v4  ;;  %v2101_v27 = vmov 1983009808  }
  0x41   : > { %1941 = vmatprep.subr.bf16.mxu0 %v2051_v8  ;;  %v1217_v43 = vsel %vm2359_vm6, %v1215_v13, %v1216_v3  ;;  %v1347_v28 = vunpack.c.l.s4 %v2101_v27 }
  0x42   : > { %v985_v45 = vsel %vm2359_vm6, %v983_v55, %v984_v51  ;;  %1936 = vmatmul.mubr.msk.bf16.vlgmr.msra.gmra.mxu1 %vm250_vm0, %v1720_v59  ;;  %v1777_v19 = vcombine.low %v1214_v36, %v1217_v43 }
  0x43   : > { %1952 = vmatpush3.bf16.msra.mxu1 %v2334_v7  ;;  %v1738_v11 = vcombine.low %v982_v0, %v985_v45  ;;  %1959 = vmatprep.mubr.msk.bf16.mxu1 %vm250_vm0, %v1757_v6  ;;  %v1748_v7 = vrot.slane %v1746_v12, 9 }
  0x44   : > { %1942 = vmatpush3.bf16.msra.mxu0 %v2051_v8  ;;  %v1101_v8 = vrot.slane %v2289_v16, 5  ;;  %1953 = vmatprep.subr.bf16.mxu1 %v2052_v21  ;;  %v2058_v16 = vld [vmem:[%s2512_s1 + $0x110] sm:$0xff]  }
  0x45   : > { %1943 = vmatprep.subr.bf16.mxu0 %v2053_v32 }
  0x46   : > { %v1103_v14 = vrot.slane %v1101_v8, 4  ;;  %v1102_v17 = vsel %vm2359_vm6, %v1748_v7, %v1101_v8 }
  0x47   : > { %1954 = vmatpush3.bf16.msra.mxu1 %v2052_v21 }
  0x48   : > { %1944 = vmatpush3.bf16.msra.mxu0 %v2053_v32  ;;  %1955 = vmatprep.subr.bf16.mxu1 %v2054_v10  ;;  %v1105_v25 = vsel %vm2359_vm6, %v1103_v14, %v1104_v15  ;;  %v1778_v32 = vcombine.low %v1221_v30, %v1224_v31 }
  0x49   : > { %1945 = vmatprep.subr.bf16.mxu0 %v2055_v54  ;;  %v1758_v53 = vcombine.low %v1102_v17, %v1105_v25 }
  0x4b   : > { %1956 = vmatpush3.bf16.msra.mxu1 %v2054_v10 }
  0x4c   : > { %1946 = vmatpush3.bf16.msra.mxu0 %v2055_v54  ;;  %1957 = vmatprep.subr.bf16.mxu1 %v2056_v20 }
  0x4d   : > { %1963 = vmatprep.subr.bf16.mxu0 %v2057_v61 }
  0x4f   : > { %1948 = vmatmul.mubr.msk.bf16.vlgmr.msra.gmra.mxu0 %vm250_vm0, %v1738_v11  ;;  %1958 = vmatpush3.bf16.msra.mxu1 %v2056_v20 }
  0x50   : > { %1964 = vmatpush3.bf16.msra.mxu0 %v2057_v61  ;;  %1971 = vmatprep.mubr.msk.bf16.mxu0 %vm250_vm0, %v1777_v19 }
  0x51   : > { %1965 = vmatprep.subr.bf16.mxu0 %v2058_v16 }
  0x52   : > { %1960 = vmatmul.mubr.msk.bf16.vlgmr.msra.gmra.mxu1 %vm250_vm0, %v1758_v53  ;;  %v1349_v53 = vlaneseq }
  0x54   : > { %1966 = vmatpush3.bf16.msra.mxu0 %v2058_v16 }
  0x55   : > { %1967 = vmatprep.subr.bf16.mxu0 %v2059_v18 }
  0x58   : > { %1968 = vmatpush3.bf16.msra.mxu0 %v2059_v18 }
  0x59   : > { %1969 = vmatprep.subr.bf16.mxu0 %v2060_v29 }
  0x5c   : > { %1970 = vmatpush3.bf16.msra.mxu0 %v2060_v29 }
  0x5f   : > { %1972 = vmatmul.mubr.msk.bf16.vlgmr.msra.gmra.mxu0 %vm250_vm0, %v1778_v32 }
  0xdf   : > { %v1877_v63 = vpop.f32.mrf.mxu0 }
  0xe0   : > { %v1889_v37 = vpop.f32.mrf.mxu1 }
  0xe1   : > { %v291_v35 = vpop.f32.mrf.mxu0  ;;  %v389_v56 = vadd.f32 %v1889_v37, %v1877_v63 }
  0xe2   : > { %v380_v39 = vpop.f32.mrf.mxu1 }
  0xe3   : > { %v1878_v38 = vpop.f32.mrf.mxu0  ;;  %v381_v34 = vadd.f32 %v380_v39, %v291_v35  ;;  %v1348_v39 = vunpack.c.0.s8 %v1347_v28 }
  0xe4   : > { %v1890_v44 = vpop.f32.mrf.mxu1 }
  0xe5   : > { %v294_v41 = vpop.f32.mrf.mxu0  ;;  %v392_v59 = vadd.f32 %v1890_v44, %v1878_v38 }
  0xe6   : > { %v383_v47 = vpop.f32.mrf.mxu1 }
  0xe7   : > { %v384_v0 = vadd.f32 %v383_v47, %v294_v41  ;;  %v1350_v41 = vshrl.u32 %v1349_v53, 7 }
  0xef   : > { %v1901_v42 = vpop.f32.mrf.mxu0 }
  0xf0   : > { %v1913_v48 = vpop.f32.mrf.mxu1  ;;  %v502_v4 = vadd.f32 %v1901_v42, %v389_v56 }
  0xf1   : > { %v485_v46 = vpop.f32.mrf.mxu0 }
  0xf2   : > { %v640_v49 = vpop.f32.mrf.mxu1  ;;  %v500_v21 = vadd.f32 %v485_v46, %v381_v34  ;;  %v657_v45 = vadd.f32 %v1913_v48, %v502_v4 }
  0xf3   : > { %v1902_v40 = vpop.f32.mrf.mxu0 }
  0xf4   : > { %v1914_v52 = vpop.f32.mrf.mxu1  ;;  %v503_v61 = vadd.f32 %v1902_v40, %v392_v59  ;;  %v655_v5 = vadd.f32 %v640_v49, %v500_v21 }
  0xf5   : > { %v488_v50 = vpop.f32.mrf.mxu0 }
  0xf6   : > { %v643_v22 = vpop.f32.mrf.mxu1  ;;  %v501_v1 = vadd.f32 %v488_v50, %v384_v0  ;;  %v658_v6 = vadd.f32 %v1914_v52, %v503_v61  ;;  %v1351_v52 = vsub.s32 %v1348_v39, %v1350_v41 }
  0xf8   : > { %v656_v10 = vadd.f32 %v643_v22, %v501_v1 }
  0xff   : > { %v1925_v51 = vpop.f32.mrf.mxu0 }
 0x100   : > { %v808_v2 = vadd.f32 %v1925_v51, %v657_v45 }
 0x101   : > { %v791_v54 = vpop.f32.mrf.mxu0 }
 0x102   : > { %v1937_v33 = vpop.f32.mrf.mxu1  ;;  %v806_v8 = vadd.f32 %v791_v54, %v655_v5 }
 0x103   : > { %v1926_v55 = vpop.f32.mrf.mxu0  ;;  %v959_v11 = vadd.f32 %v1937_v33, %v808_v2 }
 0x104   : > { %v942_v57 = vpop.f32.mrf.mxu1  ;;  %v809_v12 = vadd.f32 %v1926_v55, %v658_v6 }
 0x105   : > { %v794_v58 = vpop.f32.mrf.mxu0  ;;  %v957_v16 = vadd.f32 %v942_v57, %v806_v8 }
 0x106   : > { %v1938_v62 = vpop.f32.mrf.mxu1  ;;  %v807_v43 = vadd.f32 %v794_v58, %v656_v10 }
 0x107   : > { %v960_v15 = vadd.f32 %v1938_v62, %v809_v12 }
 0x108   : > { %v945_v9 = vpop.f32.mrf.mxu1 }
 0x109   : > { %v958_v18 = vadd.f32 %v945_v9, %v807_v43 }
 0x10f   : > { %v1949_v60 = vpop.f32.mrf.mxu0 }
 0x110   : > { %v1082_v7 = vadd.f32 %v1949_v60, %v959_v11 }
 0x111   : > { %v1065_v3 = vpop.f32.mrf.mxu0 }
 0x112   : > { %v1961_v13 = vpop.f32.mrf.mxu1  ;;  %v1080_v19 = vadd.f32 %v1065_v3, %v957_v16 }
 0x113   : > { %v1950_v36 = vpop.f32.mrf.mxu0  ;;  %v1201_v24 = vadd.f32 %v1961_v13, %v1082_v7 }
 0x114   : > { %v1184_v14 = vpop.f32.mrf.mxu1  ;;  %v1083_v17 = vadd.f32 %v1950_v36, %v960_v15 }
 0x115   : > { %v1068_v20 = vpop.f32.mrf.mxu0  ;;  %v1199_v29 = vadd.f32 %v1184_v14, %v1080_v19 }
 0x116   : > { %v1962_v23 = vpop.f32.mrf.mxu1  ;;  %v1081_v30 = vadd.f32 %v1068_v20, %v958_v18 }
 0x117   : > { %v1202_v35 = vadd.f32 %v1962_v23, %v1083_v17 }
 0x118   : > { %v1187_v32 = vpop.f32.mrf.mxu1 }
 0x119   : > { %v1200_v44 = vadd.f32 %v1187_v32, %v1081_v30 }
 0x11f   : > { %v1973_v25 = vpop.f32.mrf.mxu0 }
 0x120   : > { %v1320_v31 = vadd.f32 %v1973_v25, %v1201_v24 }
 0x121   : > { %v1303_v63 = vpop.f32.mrf.mxu0 }
 0x122   : > { %v1331_v37 = vadd.f32 %v1785_v26, %v1320_v31  ;;  %v1318_v38 = vadd.f32 %v1303_v63, %v1199_v29 }
 0x123   : > { %v1974_v42 = vpop.f32.mrf.mxu0 }
 0x124   : > { %v1335_v46 = vmax.f32 %v1331_v37, 0.0  ;;  %v1329_v47 = vadd.f32 %v1785_v26, %v1318_v38  ;;  %v1321_v48 = vadd.f32 %v1974_v42, %v1202_v35 }
 0x125   : > { %v1306_v40 = vpop.f32.mrf.mxu0 }
 0x126   : > { %v1333_v49 = vmax.f32 %v1329_v47, 0.0  ;;  %v1332_v50 = vadd.f32 %v1785_v26, %v1321_v48  ;;  %v1319_v51 = vadd.f32 %v1306_v40, %v1200_v44  ;;  %v1338_v54 = vsel %vm250_vm0, %v1335_v46, -inf }
 0x128   : > { %v1337_v22 = vsel %vm250_vm0, %v1333_v49, -inf  ;;  %v1336_v33 = vmax.f32 %v1332_v50, 0.0  ;;  %v1330_v55 = vadd.f32 %v1785_v26, %v1319_v51 }
 0x129   : > { %v1339_v56 = vmax.f32 %v1337_v22, %v1338_v54 }
 0x12a   : > { %v1334_v34 = vmax.f32 %v1330_v55, 0.0  ;;  %v1341_v58 = vsel %vm250_vm0, %v1336_v33, -inf }
 0x12b   : > { %v1345_v4 = vcombine.high %v1339_v56, %v1339_v56  ;;  %v1352_v57 = vrot.slane %v1339_v56, %v1351_v52 }
 0x12c   : > { %v1340_v59 = vsel %vm250_vm0, %v1334_v34, -inf }
 0x12d   : > { %v1359_v21 = vrot.slane %v1345_v4, %v1351_v52  ;;  %v1360_v60 = vcombine.high %v1352_v57, %v1352_v57  ;;  %v1388_v0 = vsel %vm1387_vm7, %v1352_v57, -inf  ;;  %v1342_v45 = vmax.f32 %v1340_v59, %v1341_v58 }
 0x12e   : > { %v1389_v61 = vrot.slane %v1388_v0, 4 }
 0x12f   : > { %v1361_v62 = vcombine.high %v1359_v21, %v1359_v21  ;;  %v1395_v5 = vsel %vm1387_vm7, %v1360_v60, -inf  ;;  %v1402_v1 = vsel %vm1387_vm7, %v1359_v21, -inf  ;;  %v1362_v2 = vcombine.high %v1342_v45, %v1342_v45 }
 0x130   : > { %v1390_v3 = vmax.f32 %v1388_v0, %v1389_v61  ;;  %v1396_v6 = vrot.slane %v1395_v5, 4  ;;  %v1403_v8 = vrot.slane %v1402_v1, 4  ;;  %v1369_v9 = vrot.slane %v1342_v45, %v1351_v52 }
 0x131   : > { %v1409_v10 = vsel %vm1387_vm7, %v1361_v62, -inf  ;;  %v1376_v11 = vrot.slane %v1362_v2, %v1351_v52 }
 0x132   : > { %v1391_v12 = vrot.slane %v1390_v3, 2  ;;  %v1397_v13 = vmax.f32 %v1395_v5, %v1396_v6  ;;  %v1404_v36 = vmax.f32 %v1402_v1, %v1403_v8  ;;  %v1410_v16 = vrot.slane %v1409_v10, 4 }
 0x133   : > { %v1377_v43 = vcombine.high %v1369_v9, %v1369_v9  ;;  %v1378_v7 = vcombine.high %v1376_v11, %v1376_v11  ;;  %v1416_v14 = vsel %vm1387_vm7, %v1369_v9, -inf  ;;  %v1430_v15 = vsel %vm1387_vm7, %v1376_v11, -inf }
 0x134   : > { %v1392_v19 = vmax.f32 %v1390_v3, %v1391_v12  ;;  %v1398_v20 = vrot.slane %v1397_v13, 2  ;;  %v1405_v23 = vrot.slane %v1404_v36, 2  ;;  %v1411_v18 = vmax.f32 %v1409_v10, %v1410_v16 }
 0x135   : > { %v1417_v24 = vrot.slane %v1416_v14, 4  ;;  %v1423_v17 = vsel %vm1387_vm7, %v1377_v43, -inf  ;;  %v1431_v25 = vrot.slane %v1430_v15, 4  ;;  %v1437_v26 = vsel %vm1387_vm7, %v1378_v7, -inf }
 0x136   : > { %v1393_v27 = vrot.slane %v1392_v19, 1  ;;  %v1399_v28 = vmax.f32 %v1397_v13, %v1398_v20  ;;  %v1406_v53 = vmax.f32 %v1404_v36, %v1405_v23  ;;  %v1412_v29 = vrot.slane %v1411_v18, 2 }
 0x137   : > { %v1418_v30 = vmax.f32 %v1416_v14, %v1417_v24  ;;  %v1424_v31 = vrot.slane %v1423_v17, 4  ;;  %v1432_v32 = vmax.f32 %v1430_v15, %v1431_v25  ;;  %v1438_v63 = vrot.slane %v1437_v26, 4 }
 0x138   : > { %v1394_v35 = vmax.f32 %v1392_v19, %v1393_v27  ;;  %v1400_v37 = vrot.slane %v1399_v28, 1  ;;  %v1407_v38 = vrot.slane %v1406_v53, 1  ;;  %v1413_v39 = vmax.f32 %v1411_v18, %v1412_v29 }
 0x139   : > { %v1419_v41 = vrot.slane %v1418_v30, 2  ;;  %v1425_v42 = vmax.f32 %v1423_v17, %v1424_v31  ;;  %v1433_v44 = vrot.slane %v1432_v32, 2  ;;  %v1439_v46 = vmax.f32 %v1437_v26, %v1438_v63 }
 0x13a   : > { %v1401_v47 = vmax.f32 %v1399_v28, %v1400_v37  ;;  %v1408_v48 = vmax.f32 %v1406_v53, %v1407_v38  ;;  %v1414_v40 = vrot.slane %v1413_v39, 1 }
 0x13b   : > { %v1420_v49 = vmax.f32 %v1418_v30, %v1419_v41  ;;  %v1426_v50 = vrot.slane %v1425_v42, 2  ;;  %v1434_v51 = vmax.f32 %v1432_v32, %v1433_v44  ;;  %v1440_v52 = vrot.slane %v1439_v46, 2 }
 0x13c   : > { %v1415_v54 = vmax.f32 %v1413_v39, %v1414_v40 }
 0x13d   : > { %v1421_v22 = vrot.slane %v1420_v49, 1  ;;  %v1427_v33 = vmax.f32 %v1425_v42, %v1426_v50  ;;  %v1435_v55 = vrot.slane %v1434_v51, 1  ;;  %v1441_v56 = vmax.f32 %v1439_v46, %v1440_v52  ;;  %1447 = sbr.rel (%p1786_p6) target bundleno = 333 (0x14d), region = 36 }
 0x13f   : > { %v1422_v34 = vmax.f32 %v1420_v49, %v1421_v22  ;;  %v1428_v4 = vrot.slane %v1427_v33, 1  ;;  %v1436_v57 = vmax.f32 %v1434_v51, %v1435_v55  ;;  %v1442_v58 = vrot.slane %v1441_v56, 1 }
 0x141   : > { %v1429_v59 = vmax.f32 %v1427_v33, %v1428_v4  ;;  %v2459_v21 = vmax.f32 %v1441_v56, %v1442_v58 }
 0x142   : > { %vm1448_vm8 = vcmask 519168   ;;  %vm1450_vm9 = vcmask 516096   ;;  %v2102_v60 = vmov 0  }
 0x143   : > { %1449 = vst.msk [vmem:[%s2186_s23] sm:$0xf] %vm1448_vm8, %v2102_v60  ;;  %1452 = vst.msk [vmem:[%s2186_s23 + $0x8] sm:$0xf] %vm1448_vm8, %v2102_v60 }
 0x144   : > { %1454 = vst.msk [vmem:[%s2186_s23 + $0x10] sm:$0xf] %vm1448_vm8, %v2102_v60  ;;  %1456 = vst.msk [vmem:[%s2186_s23 + $0x18] sm:$0xf] %vm1448_vm8, %v2102_v60 }
 0x145   : > { %1458 = vst.msk [vmem:[%s2186_s23 + $0x20] sm:$0xf] %vm1448_vm8, %v2102_v60  ;;  %1460 = vst.msk [vmem:[%s2186_s23 + $0x28] sm:$0xf] %vm1448_vm8, %v2102_v60 }
 0x146   : > { %1462 = vst.msk [vmem:[%s2186_s23 + $0x30] sm:$0xf] %vm1448_vm8, %v2102_v60  ;;  %1464 = vst.msk [vmem:[%s2186_s23 + $0x38] sm:$0xf] %vm1448_vm8, %v2102_v60 }
 0x147   : > { %1466 = vst.msk [vmem:[%s2186_s23 + $0x40] sm:$0xf] %vm1448_vm8, %v2102_v60  ;;  %1468 = vst.msk [vmem:[%s2186_s23 + $0x48] sm:$0xf] %vm1448_vm8, %v2102_v60 }
 0x148   : > { %1451 = vst.msk [vmem:[%s2186_s23 + $0x4] sm:$0x1] %vm1450_vm9, %v2102_v60  ;;  %1453 = vst.msk [vmem:[%s2186_s23 + $0xc] sm:$0x1] %vm1450_vm9, %v2102_v60 }
 0x149   : > { %1455 = vst.msk [vmem:[%s2186_s23 + $0x14] sm:$0x1] %vm1450_vm9, %v2102_v60  ;;  %1457 = vst.msk [vmem:[%s2186_s23 + $0x1c] sm:$0x1] %vm1450_vm9, %v2102_v60 }
 0x14a   : > { %1459 = vst.msk [vmem:[%s2186_s23 + $0x24] sm:$0x1] %vm1450_vm9, %v2102_v60  ;;  %1461 = vst.msk [vmem:[%s2186_s23 + $0x2c] sm:$0x1] %vm1450_vm9, %v2102_v60 }
 0x14b   : > { %1463 = vst.msk [vmem:[%s2186_s23 + $0x34] sm:$0x1] %vm1450_vm9, %v2102_v60  ;;  %1465 = vst.msk [vmem:[%s2186_s23 + $0x3c] sm:$0x1] %vm1450_vm9, %v2102_v60 }
 0x14c   : > { %1467 = vst.msk [vmem:[%s2186_s23 + $0x44] sm:$0x1] %vm1450_vm9, %v2102_v60  ;;  %1469 = vst.msk [vmem:[%s2186_s23 + $0x4c] sm:$0x1] %vm1450_vm9, %v2102_v60 }
 0x14d PF: > { %v1804_v0 = vpack.c.bf16 %v1394_v35, %v1394_v35  ;;  %v1805_v45 = vpack.c.bf16 %v1401_v47, %v1401_v47  ;;  %v1806_v61 = vpack.c.bf16 %v1408_v48, %v1408_v48  ;;  %v1807_v62 = vpack.c.bf16 %v1415_v54, %v1415_v54  ;;  %s1796_s13 = sshll.u32 %s2083_s12, 3 }
 0x14e   : > { %v1808_v5 = vpack.c.bf16 %v1422_v34, %v1422_v34  ;;  %v1809_v1 = vpack.c.bf16 %v1429_v59, %v1429_v59  ;;  %v1810_v2 = vpack.c.bf16 %v1436_v57, %v1436_v57  ;;  %vm1511_vm10 = vcmask 1042434   ;;  %s1584_s25 = scalar_lea.vmem %s2186_s23, %s1796_s13 }
 0x14f   : > { %v1503_v3 = vunpack.c.l.b16 %v1804_v0  ;;  %v1504_v6 = vunpack.c.l.b16 %v1805_v45  ;;  %v1505_v8 = vunpack.c.l.b16 %v1806_v61  ;;  %v1506_v9 = vunpack.c.l.b16 %v1807_v62 }
 0x150   : > { %v1507_v10 = vunpack.c.l.b16 %v1808_v5  ;;  %v1508_v11 = vunpack.c.l.b16 %v1809_v1  ;;  %v1509_v12 = vunpack.c.l.b16 %v1810_v2  ;;  %vm1513_vm11 = vcmask 1043459  }
 0x151   : > { %v1512_v13 = vsel %vm1511_vm10, %v1504_v6, %v1503_v3  ;;  %vm1515_vm12 = vcmask 1044484   ;;  %vm1517_vm13 = vcmask 1045509   ;;  %vm1519_vm14 = vcmask 1046534  }
 0x152   : > { %v1514_v36 = vsel %vm1513_vm11, %v1505_v8, %v1512_v13  ;;  %vm1521_vm15 = vcmask 1047559   ;;  %vm1530_vm0 = vcmask 519168   ;;  %vm1531_vm1 = vsmask.f32 7938 }
 0x153   : > { %v1799_v16 = vld [vmem:[%s1584_s25 + $0xc] sm:$0x1]  ;;  %v1516_v43 = vsel %vm1515_vm12, %v1506_v9, %v1514_v36  ;;  %v1812_v7 = vpack.c.bf16 %v2459_v21, %v2459_v21  ;;  %vm1536_vm2 = vcmask 516096   ;;  %vm1537_vm3 = vsmask.f32 256  ;;  %vm1532_vm5 = vmand %vm1530_vm0, %vm1531_vm1 }
 0x154   : > { %v1518_v14 = vsel %vm1517_vm13, %v1507_v10, %v1516_v43  ;;  %vm1538_vm4 = vmand %vm1536_vm2, %vm1537_vm3  ;;  %v1797_v23 = vld [vmem:[%s1584_s25 + $0x8] sm:$0xf] }
 0x155   : > { %v1520_v15 = vsel %vm1519_vm14, %v1508_v11, %v1518_v14  ;;  %v1540_v19 = vsel %vm1538_vm4, %v1812_v7, %v1799_v16 }
 0x156   : > { %v1522_v20 = vsel %vm1521_vm15, %v1509_v12, %v1520_v15  ;;  %1800 = vst [vmem:[%s1584_s25 + $0xc] sm:$0x1] %v1540_v19 }
 0x157   : > { %v1523_v18 = vpack.c.b16 %v1522_v20, %v1522_v20 }
 0x159   : > { %v1534_v24 = vsel %vm1532_vm5, %v1523_v18, %v1797_v23 }
 0x15a   : > { %1798 = vst [vmem:[%s1584_s25 + $0x8] sm:$0xf] %v1534_v24 }
 0x15b PF: > { %s13_s16 = sadd.s32 1, %s2099_s16   ;;  %s2519_s12 = smov %s2091_s14 }
 0x15c   : > { %p10_p7 = scmp.ge.s32.totalorder %s13_s16, 34   ;;  %s2520_s13 = smov %s2095_s15 }
 0x15d   : > { %s2521_s14 = smov %s2524_s17  ;;  %s2522_s15 = smov %s2528_s18 }
 0x15e   :  { %12 = sbr.rel (!%p10_p7) target bundleno = 3 (0x3), region = 72 }

// kernel: perceptual_loss_forward.11
= control target key start
LH: loop header
LB: loop body
LE: loop exit
PB: predicated region body
PF: predicated region fallthrough
CT: control target
= control target key end

     0   :  { %s1972_s12 = smov 0   ;;  %s1974_s13 = smov 0   ;;  %s2377_s0 = inlined_call_operand.vmem [shape: bf16[4,10,10,128], index: 0, kind: input, shape index: {}]   ;;  %s2378_s1 = inlined_call_operand.vmem [shape: bf16[3,384,128], index: 1, kind: input, shape index: {}]   ;;  %s2379_s2 = inlined_call_operand.vmem [shape: f32[1,128], index: 2, kind: input, shape index: {}]   ;;  %s2380_s3 = inlined_call_operand.vmem [shape: bf16[4,6,6,128], index: 3, kind: output, shape index: {}]  }
   0x1   :  { %s1976_s14 = smov 0   ;;  %s1978_s15 = smov 0  }
   0x2   :  { %s1980_s16 = smov 0  }
   0x3 LB: > { %s22_s17 = sadd.s32 1, %s1938_s14  ;;  %s25_s18 = sadd.s32 1, %s1942_s15  ;;  %s1946_s16 = sphi %s1980_s16, %s13_s16   ;;  %s1942_s15 = sphi %s1978_s15, %s2388_s15   ;;  %s1938_s14 = sphi %s1976_s14, %s2387_s14   ;;  %s1934_s13 = sphi %s1974_s13, %s2386_s13   ;;  %s1930_s12 = sphi %s1972_s12, %s2385_s12  }
   0x4   : > { %p23_p0 = scmp.ge.s32.totalorder %s22_s17, 4  ;;  %p1388_p1 = scmp.ge.s32.totalorder %s1946_s16, 1 }
   0x5   : > { %p149_p2 = scmp.lt.s32.totalorder %s1946_s16, 17 }
   0x6   : > { %s2390_s17 = smov (%p23_p0, %s22_s17), 0  ;;  %s2392_s18 = smov (!%p23_p0, %s25_s18), %s1942_s15 }
   0x7   : > { %p150_p3 = pnand %p1388_p1, %p149_p2  ;;  %p27_p4 = scmp.ge.s32.totalorder %s2392_s18, 4 }
   0x8   : > { %p173_p5 = scmp.lt.s32.totalorder (!%p150_p3), %s1934_s13, 3  ;;  %s1615_s20 = sshll.u32 (!%p150_p3), %s1930_s12, 4 }
   0x9   : > { %s2394_s18 = smov (%p27_p4, %s2392_s18), 0  ;;  %153 = sbr.rel (%p150_p3) target bundleno = 356 (0x164), region = 32 }
   0xa   : > { %p1604_p6 = scmp.ne.s32.totalorder (!%p150_p3), %s1930_s12, 0 }
   0xe   : > { %v1821_v0 = vld [vmem:[%s2378_s1 + $0x138] sm:$0xff]   ;;  %v1948_v1 = vmov 0.0   ;;  %vm1949_vm0 = vmmov 0   ;;  %v1824_v4 = vld [vmem:[%s2378_s1 + $0x130] sm:$0xff]   ;;  %s2396_s13 = smov (!%p173_p5, %s1934_s13), 3  ;;  %v1827_v7 = vld [vmem:[%s2378_s1 + $0x128] sm:$0xff]  }
   0xf   : > { %1715 = vmatprep.subr.bf16.mxu1 %v1948_v1  ;;  %v1822_v2 = vld [vmem:[%s2378_s1 + $0x178] sm:$0xff]   ;;  %1622 = vmatprep.subr.bf16.mxu0 %v1821_v0  ;;  %v1825_v5 = vld [vmem:[%s2378_s1 + $0x170] sm:$0xff]   ;;  %v1828_v8 = vld [vmem:[%s2378_s1 + $0x168] sm:$0xff]   ;;  %s1776_s8 = smul.u32 24, %s2396_s13  ;;  %vm288_vm1 = vsmask.f32 3328 }
  0x10   : > { %v1823_v3 = vld [vmem:[%s2378_s1 + $0xf8] sm:$0xff]   ;;  %1731 = vmatprep.mubr.msk.bf16.mxu1 %vm1949_vm0, %v1948_v1  ;;  %1716 = vmatpush3.bf16.msra.mxu1 %v1822_v2  ;;  %v1826_v6 = vld [vmem:[%s2378_s1 + $0xf0] sm:$0xff]   ;;  %v1829_v9 = vld [vmem:[%s2378_s1 + $0xe8] sm:$0xff]   ;;  %s1775_s29 = smul.u32 80, %s2396_s13  ;;  %vm289_vm2 = vsmask.f32 7440 }
  0x11   : > { %1623 = vmatpush3.bf16.msra.mxu0 %v1823_v3  ;;  %1717 = vmatprep.subr.bf16.mxu1 %v1948_v1  ;;  %v1830_v10 = vld [vmem:[%s2378_s1 + $0x120] sm:$0xff]   ;;  %s2046_s22 = scalar_lea.vmem %s2380_s3, %s1776_s8  ;;  %v1833_v13 = vld [vmem:[%s2378_s1 + $0x118] sm:$0xff]   ;;  %v1836_v16 = vld [vmem:[%s2378_s1 + $0x110] sm:$0xff]   ;;  %vm888_vm4 = vcmask 1042432   ;;  %vm889_vm5 = vcmask 1046532   ;;  %vm1230_vm7 = vcmask 1041408  }
  0x12   : > { %1624 = vmatprep.subr.bf16.mxu0 %v1824_v4  ;;  %v1831_v11 = vld [vmem:[%s2378_s1 + $0x160] sm:$0xff]   ;;  %v1834_v14 = vld [vmem:[%s2378_s1 + $0x158] sm:$0xff]   ;;  %v1837_v17 = vld [vmem:[%s2378_s1 + $0x150] sm:$0xff]   ;;  %s177_s19 = scalar_lea.vmem %s2377_s0, %s1775_s29 }
  0x13   : > { %v1832_v12 = vld [vmem:[%s2378_s1 + $0xe0] sm:$0xff]   ;;  %v1835_v15 = vld [vmem:[%s2378_s1 + $0xd8] sm:$0xff]   ;;  %v1838_v18 = vld [vmem:[%s2378_s1 + $0xd0] sm:$0xff]   ;;  %s2085_s28 = scalar_lea.vmem %s177_s19, %s1615_s20 }
  0x14   : > { %1718 = vmatpush3.bf16.msra.mxu1 %v1825_v5  ;;  %v1839_v19 = vld [vmem:[%s2378_s1 + $0x108] sm:$0xff]   ;;  %v1842_v22 = vld [vmem:[%s2378_s1 + $0x100] sm:$0xff]   ;;  %v2107_v27 = vld [vmem:[%s2085_s28 + $0x10] sm:$0xf] }
  0x15   : > { %1625 = vmatpush3.bf16.msra.mxu0 %v1826_v6  ;;  %1719 = vmatprep.subr.bf16.mxu1 %v1948_v1  ;;  %v1840_v20 = vld [vmem:[%s2378_s1 + $0x148] sm:$0xff]   ;;  %v2095_v23 = vld [vmem:[%s2085_s28] sm:$0xf]  ;;  %v2126_v39 = vld [vmem:[%s2085_s28 + $0x10] sm:$0xf] }
  0x16   : > { %1626 = vmatprep.subr.bf16.mxu0 %v1827_v7  ;;  %v1841_v21 = vld [vmem:[%s2378_s1 + $0xc8] sm:$0xff]   ;;  %v1843_v26 = vld [vmem:[%s2378_s1 + $0x140] sm:$0xff]   ;;  %v1853_v40 = vld [vmem:[%s2378_s1 + $0x78] sm:$0xff]   ;;  %v1407_v45 = vcombine.low %v2126_v39, %v2126_v39 }
  0x17   : > { %v2098_v24 = vld [vmem:[%s2085_s28 + $0x8] sm:$0xf]  ;;  %v2114_v30 = vld [vmem:[%s2085_s28 + $0x4] ss:$8 sps:$4 sm:$0x11]   ;;  %vm2144_vm3 = vmor %vm288_vm1, %vm289_vm2 }
  0x18   : > { %1720 = vmatpush3.bf16.msra.mxu1 %v1828_v8  ;;  %v2101_v25 = vld [vmem:[%s2085_s28 + $0x8] sm:$0xf]  ;;  %v1410_v29 = vcombine.low %v2098_v24, %v2107_v27  ;;  %v2117_v31 = vld [vmem:[%s2085_s28 + $0xc] ss:$8 sps:$4 sm:$0x11]   ;;  %v1844_v32 = vld [vmem:[%s2378_s1 + $0xc0] sm:$0xff]  }
  0x19   : > { %1627 = vmatpush3.bf16.msra.mxu0 %v1829_v9  ;;  %1721 = vmatprep.subr.bf16.mxu1 %v1948_v1  ;;  %v1406_v28 = vcombine.low %v2095_v23, %v2101_v25  ;;  %v301_v36 = vshll.u32 %v2114_v30, 16  ;;  %v329_v38 = vshll.u32 %v2117_v31, 16  ;;  %v2132_v44 = vld [vmem:[%s2085_s28 + $0x18] sm:$0xf]  ;;  %v306_v52 = vshrl.u32 %v1407_v45, 16  ;;  %v1886_v53 = vld [vmem:[%s2378_s1 + $0x1e8] sm:$0xff]   ;;  %vm2294_vm6 = vmor %vm888_vm4, %vm889_vm5 }
  0x1a   : > { %1628 = vmatprep.subr.bf16.mxu0 %v1830_v10  ;;  %v320_v35 = vshrl.u32 %v1410_v29, 16  ;;  %v323_v37 = vshll.u32 %v1410_v29, 16  ;;  %v1411_v49 = vcombine.low %v2132_v44, %v2132_v44  ;;  %v2139_v51 = vld [vmem:[%s2085_s28 + $0x14] ss:$0 sps:$4 sm:$0x11]   ;;  %v309_v56 = vshll.u32 %v1407_v45, 16 }
  0x1b   : > { %v292_v33 = vshrl.u32 %v1406_v28, 16  ;;  %v295_v34 = vshll.u32 %v1406_v28, 16  ;;  %v303_v46 = vrot.slane %v301_v36, 5  ;;  %v331_v48 = vrot.slane %v329_v38, 5  ;;  %v1855_v6 = vld [vmem:[%s2378_s1 + $0x38] sm:$0xff]   ;;  %v1860_v28 = vld [vmem:[%s2378_s1 + $0xa8] sm:$0xff]  }
  0x1c   : > { %1722 = vmatpush3.bf16.msra.mxu1 %v1831_v11  ;;  %v322_v43 = vrot.slane %v320_v35, 4  ;;  %v325_v47 = vrot.slane %v323_v37, 5  ;;  %v2149_v55 = vld [vmem:[%s2085_s28 + $0x1c] ss:$0 sps:$4 sm:$0x11]   ;;  %v334_v57 = vshrl.u32 %v1411_v49, 16 }
  0x1d   : > { %1629 = vmatpush3.bf16.msra.mxu0 %v1832_v12  ;;  %1723 = vmatprep.subr.bf16.mxu1 %v1948_v1  ;;  %v294_v41 = vrot.slane %v292_v33, 4  ;;  %v297_v42 = vrot.slane %v295_v34, 5  ;;  %v337_v58 = vshll.u32 %v1411_v49, 16  ;;  %v308_v60 = vrot.slane %v306_v52, 4  ;;  %v1864_v29 = vld [vmem:[%s2378_s1 + $0x20] sm:$0xff]   ;;  %v1867_v34 = vld [vmem:[%s2378_s1 + $0x18] sm:$0xff]  }
  0x1e   : > { %1630 = vmatprep.subr.bf16.mxu0 %v1833_v13  ;;  %v326_v54 = vor.u32 %v325_v47, %v322_v43  ;;  %v315_v61 = vshll.u32 %v2139_v51, 16  ;;  %v311_v63 = vrot.slane %v309_v56, 5  ;;  %v336_v0 = vrot.slane %v334_v57, 4  ;;  %v1856_v13 = vld [vmem:[%s2378_s1 + $0x70] sm:$0xff]   ;;  %v1863_v33 = vld [vmem:[%s2378_s1 + $0xa0] sm:$0xff]   ;;  %v1866_v36 = vld [vmem:[%s2378_s1 + $0x98] sm:$0xff]  }
  0x1f   : > { %v298_v50 = vor.u32 %v297_v42, %v294_v41  ;;  %v339_v2 = vrot.slane %v337_v58, 5  ;;  %v343_v5 = vshll.u32 %v2149_v55, 16  ;;  %v1868_v35 = vld [vmem:[%s2378_s1 + $0x50] sm:$0xff]   ;;  %v1871_v38 = vld [vmem:[%s2378_s1 + $0x48] sm:$0xff]   ;;  %v1874_v42 = vld [vmem:[%s2378_s1 + $0x40] sm:$0xff]   ;;  %v1491_v52 = vcombine.low %v2126_v39, %v2132_v44 }
  0x20   : > { %1724 = vmatpush3.bf16.msra.mxu1 %v1834_v14  ;;  %v327_v62 = vrot.slane %v326_v54, 4  ;;  %v317_v4 = vrot.slane %v315_v61, 5  ;;  %v312_v8 = vor.u32 %v311_v63, %v308_v60  ;;  %v1490_v14 = vcombine.low %v2101_v25, %v2107_v27  ;;  %v1857_v25 = vld [vmem:[%s2378_s1 + $0xb0] sm:$0xff]   ;;  %v1862_v27 = vld [vmem:[%s2378_s1 + $0x60] sm:$0xff]   ;;  %v1873_v41 = vld [vmem:[%s2378_s1 + $0x8] sm:$0xff]  }
  0x21   : > { %1631 = vmatpush3.bf16.msra.mxu0 %v1835_v15  ;;  %1725 = vmatprep.subr.bf16.mxu1 %v1948_v1  ;;  %v299_v59 = vrot.slane %v298_v50, 4  ;;  %v340_v9 = vor.u32 %v339_v2, %v336_v0  ;;  %v345_v12 = vrot.slane %v343_v5, 5  ;;  %v1870_v37 = vld [vmem:[%s2378_s1 + $0x10] sm:$0xff]   ;;  %v1872_v43 = vld [vmem:[%s2378_s1 + $0x88] sm:$0xff]   ;;  %v1876_v45 = vld [vmem:[%s2378_s1] sm:$0xff]   ;;  %v893_v56 = vrot.slane %v2114_v30, 5 }
  0x22   : > { %1632 = vmatprep.subr.bf16.mxu0 %v1836_v16  ;;  %v332_v7 = vsel %vm2144_vm3, %v327_v62, %v331_v48  ;;  %v313_v15 = vrot.slane %v312_v8, 4  ;;  %v1875_v47 = vld [vmem:[%s2378_s1 + $0x80] sm:$0xff]   ;;  %v1489_v48 = vcombine.low %v2095_v23, %v2098_v24  ;;  %v1882_v49 = vld [vmem:[%s2378_s1 + $0x1b8] sm:$0xff]   ;;  %v1883_v50 = vld [vmem:[%s2378_s1 + $0x1f0] sm:$0xff]   ;;  %v901_v58 = vrot.slane %v2117_v31, 5 }
  0x23   : > { %v304_v3 = vsel %vm2144_vm3, %v299_v59, %v303_v46  ;;  %v341_v16 = vrot.slane %v340_v9, 4  ;;  %v1880_v46 = vld [vmem:[%s2378_s1 + $0x1f8] sm:$0xff]   ;;  %v1885_v24 = vld [vmem:[%s2378_s1 + $0x1b0] sm:$0xff]   ;;  %v1888_v44 = vld [vmem:[%s2378_s1 + $0x1a8] sm:$0xff]   ;;  %v897_v60 = vrot.slane %v2139_v51, 5  ;;  %v905_v61 = vrot.slane %v2149_v55, 5 }
  0x24   : > { %1726 = vmatpush3.bf16.msra.mxu1 %v1837_v17  ;;  %v1462_v10 = vcombine.low %v304_v3, %v332_v7  ;;  %v1463_v11 = vcombine.high %v304_v3, %v332_v7  ;;  %v318_v17 = vsel %vm2144_vm3, %v313_v15, %v317_v4  ;;  %v1881_v23 = vld [vmem:[%s2378_s1 + $0x238] sm:$0xff]   ;;  %v1884_v39 = vld [vmem:[%s2378_s1 + $0x230] sm:$0xff]   ;;  %v1889_v54 = vld [vmem:[%s2378_s1 + $0x1e0] sm:$0xff]   ;;  %v1213_v63 = vlaneseq }
  0x25   : > { %1633 = vmatpush3.bf16.msra.mxu0 %v1838_v18  ;;  %1727 = vmatprep.subr.bf16.mxu1 %v1948_v1  ;;  %v346_v18 = vsel %vm2144_vm3, %v341_v16, %v345_v12  ;;  %v1887_v57 = vld [vmem:[%s2378_s1 + $0x228] sm:$0xff]   ;;  %v1891_v59 = vld [vmem:[%s2378_s1 + $0x1a0] sm:$0xff]   ;;  %v1892_v30 = vld [vmem:[%s2378_s1 + $0x1d8] sm:$0xff]  }
  0x26   : > { %1634 = vmatprep.subr.bf16.mxu0 %v1839_v19  ;;  %584 = vmatprep.mubr.bf16.mxu0 %v1463_v11  ;;  %v1854_v19 = vld [vmem:[%s2378_s1 + $0xb8] sm:$0xff]   ;;  %v1904_v62 = vld [vmem:[%s2085_s28] ss:$8 sps:$4 sm:$0xee]   ;;  %v1895_v5 = vld [vmem:[%s2378_s1 + $0x1d0] sm:$0xff]  }
  0x27   : > { %v1905_v31 = vld [vmem:[%s2085_s28 + $0x8] ss:$8 sps:$4 sm:$0xee]   ;;  %v1890_v51 = vld [vmem:[%s2378_s1 + $0x220] sm:$0xff]   ;;  %v1894_v55 = vld [vmem:[%s2378_s1 + $0x198] sm:$0xff]   ;;  %v1524_v2 = vrot.slane %v1904_v62, 9 }
  0x28   : > { %1728 = vmatpush3.bf16.msra.mxu1 %v1840_v20  ;;  %v1464_v20 = vcombine.low %v318_v17, %v346_v18  ;;  %v1906_v0 = vld [vmem:[%s2085_s28 + $0x10] ss:$0 sps:$4 sm:$0xee]   ;;  %v1526_v3 = vrot.slane %v1905_v31, 9  ;;  %v1898_v15 = vld [vmem:[%s2378_s1 + $0x1c8] sm:$0xff]  }
  0x29   : > { %1635 = vmatpush3.bf16.msra.mxu0 %v1841_v21  ;;  %1729 = vmatprep.subr.bf16.mxu1 %v1948_v1  ;;  %v1858_v21 = vld [vmem:[%s2378_s1 + $0x30] sm:$0xff]   ;;  %v1907_v4 = vld [vmem:[%s2085_s28 + $0x18] ss:$0 sps:$4 sm:$0xee]   ;;  %v894_v7 = vsel %vm2294_vm6, %v1524_v2, %v893_v56  ;;  %v1900_v18 = vld [vmem:[%s2378_s1 + $0x188] sm:$0xff]  }
  0x2a   : > { %1636 = vmatprep.subr.bf16.mxu0 %v1842_v22  ;;  %v1859_v22 = vld [vmem:[%s2378_s1 + $0x68] sm:$0xff]   ;;  %v902_v8 = vsel %vm2294_vm6, %v1526_v3, %v901_v58  ;;  %v1527_v9 = vrot.slane %v1907_v4, 9  ;;  %v1896_v17 = vld [vmem:[%s2378_s1 + $0x210] sm:$0xff]   ;;  %v1950_v62 = vmov 1983009808  }
  0x2b   : > { %v1577_v11 = vcombine.high %v894_v7, %v902_v8  ;;  %v1211_v31 = vunpack.c.l.s4 %v1950_v62 }
  0x2c   : > { %1730 = vmatpush3.bf16.msra.mxu1 %v1843_v26  ;;  %v1861_v26 = vld [vmem:[%s2378_s1 + $0x28] sm:$0xff]  }
  0x2d   : > { %1637 = vmatpush3.bf16.msra.mxu0 %v1844_v32  ;;  %1735 = vmatprep.subr.bf16.mxu1 %v1948_v1  ;;  %v1865_v32 = vld [vmem:[%s2378_s1 + $0x58] sm:$0xff]  }
  0x2e   : > { %1653 = vmatprep.subr.bf16.mxu0 %v1853_v40  ;;  %v1869_v40 = vld [vmem:[%s2378_s1 + $0x90] sm:$0xff]  }
  0x2f   : > { %1732 = vmatmul.mubr.bf16.vlgmr.msra.gmra.mxu1 %v1464_v20  ;;  %v1899_v20 = vld [vmem:[%s2378_s1 + $0x208] sm:$0xff]  }
  0x30   : > { %585 = vmatmul.mubr.bf16.vlgmr.msra.gmra.mxu0 %v1462_v10  ;;  %1736 = vmatpush3.bf16.msra.mxu1 %v1854_v19  ;;  %v1893_v10 = vld [vmem:[%s2378_s1 + $0x218] sm:$0xff]   ;;  %v1901_v19 = vld [vmem:[%s2378_s1 + $0x1c0] sm:$0xff]  }
  0x31   : > { %1654 = vmatpush3.bf16.msra.mxu0 %v1855_v6  ;;  %816 = vmatprep.mubr.bf16.mxu0 %v1490_v14  ;;  %v1525_v6 = vrot.slane %v1906_v0, 9  ;;  %v906_v14 = vsel %vm2294_vm6, %v1527_v9, %v905_v61 }
  0x32   : > { %1655 = vmatprep.subr.bf16.mxu0 %v1856_v13  ;;  %1751 = vmatprep.mubr.msk.bf16.mxu1 %vm1949_vm0, %v1948_v1  ;;  %v1897_v13 = vld [vmem:[%s2378_s1 + $0x190] sm:$0xff]  }
  0x33   : > { %1737 = vmatprep.subr.bf16.mxu1 %v1948_v1  ;;  %v898_v12 = vsel %vm2294_vm6, %v1525_v6, %v897_v60  ;;  %v1214_v6 = vshrl.u32 %v1213_v63, 7 }
  0x34   : > { %1738 = vmatpush3.bf16.msra.mxu1 %v1857_v25  ;;  %v1578_v16 = vcombine.low %v898_v12, %v906_v14  ;;  %v1576_v25 = vcombine.low %v894_v7, %v902_v8 }
  0x35   : > { %1656 = vmatpush3.bf16.msra.mxu0 %v1858_v21  ;;  %1739 = vmatprep.subr.bf16.mxu1 %v1948_v1  ;;  %v1903_v21 = vld [vmem:[%s2378_s1 + $0x180] sm:$0xff]  }
  0x36   : > { %1657 = vmatprep.subr.bf16.mxu0 %v1859_v22  ;;  %v1902_v22 = vld [vmem:[%s2378_s1 + $0x200] sm:$0xff]  }
  0x38   : > { %1740 = vmatpush3.bf16.msra.mxu1 %v1860_v28 }
  0x39   : > { %1658 = vmatpush3.bf16.msra.mxu0 %v1861_v26  ;;  %1741 = vmatprep.subr.bf16.mxu1 %v1948_v1 }
  0x3a   : > { %1659 = vmatprep.subr.bf16.mxu0 %v1862_v27 }
  0x3c   : > { %1742 = vmatpush3.bf16.msra.mxu1 %v1863_v33 }
  0x3d   : > { %1660 = vmatpush3.bf16.msra.mxu0 %v1864_v29  ;;  %1743 = vmatprep.subr.bf16.mxu1 %v1948_v1 }
  0x3e   : > { %1661 = vmatprep.subr.bf16.mxu0 %v1865_v32 }
  0x40   : > { %1744 = vmatpush3.bf16.msra.mxu1 %v1866_v36 }
  0x41   : > { %1662 = vmatpush3.bf16.msra.mxu0 %v1867_v34  ;;  %1745 = vmatprep.subr.bf16.mxu1 %v1948_v1 }
  0x42   : > { %1663 = vmatprep.subr.bf16.mxu0 %v1868_v35 }
  0x44   : > { %1746 = vmatpush3.bf16.msra.mxu1 %v1869_v40 }
  0x45   : > { %1664 = vmatpush3.bf16.msra.mxu0 %v1870_v37  ;;  %1747 = vmatprep.subr.bf16.mxu1 %v1948_v1 }
  0x46   : > { %1665 = vmatprep.subr.bf16.mxu0 %v1871_v38 }
  0x48   : > { %1748 = vmatpush3.bf16.msra.mxu1 %v1872_v43 }
  0x49   : > { %1666 = vmatpush3.bf16.msra.mxu0 %v1873_v41  ;;  %1749 = vmatprep.subr.bf16.mxu1 %v1948_v1 }
  0x4a   : > { %1667 = vmatprep.subr.bf16.mxu0 %v1874_v42 }
  0x4c   : > { %1750 = vmatpush3.bf16.msra.mxu1 %v1875_v47 }
  0x4d   : > { %1668 = vmatpush3.bf16.msra.mxu0 %v1876_v45  ;;  %1755 = vmatprep.subr.bf16.mxu1 %v1948_v1 }
  0x4e   : > { %1684 = vmatprep.subr.bf16.mxu0 %v1880_v46 }
  0x4f   : > { %1752 = vmatmul.mubr.bf16.vlgmr.msra.gmra.mxu1 %v1491_v52 }
  0x50   : > { %817 = vmatmul.mubr.bf16.vlgmr.msra.gmra.mxu0 %v1489_v48  ;;  %1756 = vmatpush3.bf16.msra.mxu1 %v1881_v23 }
  0x51   : > { %1685 = vmatpush3.bf16.msra.mxu0 %v1882_v49  ;;  %1771 = vmatprep.mubr.msk.bf16.mxu1 %vm1949_vm0, %v1948_v1 }
  0x52   : > { %1686 = vmatprep.subr.bf16.mxu0 %v1883_v50  ;;  %1757 = vmatprep.subr.bf16.mxu1 %v1948_v1 }
  0x53   : > { %1144 = vmatprep.mubr.bf16.mxu0 %v1577_v11 }
  0x54   : > { %1758 = vmatpush3.bf16.msra.mxu1 %v1884_v39 }
  0x55   : > { %1687 = vmatpush3.bf16.msra.mxu0 %v1885_v24  ;;  %1759 = vmatprep.subr.bf16.mxu1 %v1948_v1 }
  0x56   : > { %1688 = vmatprep.subr.bf16.mxu0 %v1886_v53 }
  0x58   : > { %1760 = vmatpush3.bf16.msra.mxu1 %v1887_v57 }
  0x59   : > { %1689 = vmatpush3.bf16.msra.mxu0 %v1888_v44  ;;  %1761 = vmatprep.subr.bf16.mxu1 %v1948_v1 }
  0x5a   : > { %1690 = vmatprep.subr.bf16.mxu0 %v1889_v54 }
  0x5c   : > { %1762 = vmatpush3.bf16.msra.mxu1 %v1890_v51  ;;  %v1603_v51 = vld [vmem:[%s2379_s2] ss:$0 sm:$0xff] }
  0x5d   : > { %1691 = vmatpush3.bf16.msra.mxu0 %v1891_v59  ;;  %1763 = vmatprep.subr.bf16.mxu1 %v1948_v1 }
  0x5e   : > { %1692 = vmatprep.subr.bf16.mxu0 %v1892_v30 }
  0x60   : > { %1764 = vmatpush3.bf16.msra.mxu1 %v1893_v10 }
  0x61   : > { %1693 = vmatpush3.bf16.msra.mxu0 %v1894_v55  ;;  %1765 = vmatprep.subr.bf16.mxu1 %v1948_v1 }
  0x62   : > { %1694 = vmatprep.subr.bf16.mxu0 %v1895_v5  ;;  %v1212_v5 = vunpack.c.0.s8 %v1211_v31 }
  0x64   : > { %1766 = vmatpush3.bf16.msra.mxu1 %v1896_v17  ;;  %v1215_v10 = vsub.s32 %v1212_v5, %v1214_v6 }
  0x65   : > { %1695 = vmatpush3.bf16.msra.mxu0 %v1897_v13  ;;  %1767 = vmatprep.subr.bf16.mxu1 %v1948_v1 }
  0x66   : > { %1696 = vmatprep.subr.bf16.mxu0 %v1898_v15 }
  0x68   : > { %1768 = vmatpush3.bf16.msra.mxu1 %v1899_v20 }
  0x69   : > { %1697 = vmatpush3.bf16.msra.mxu0 %v1900_v18  ;;  %1769 = vmatprep.subr.bf16.mxu1 %v1948_v1 }
  0x6a   : > { %1698 = vmatprep.subr.bf16.mxu0 %v1901_v19 }
  0x6c   : > { %1770 = vmatpush3.bf16.msra.mxu1 %v1902_v22 }
  0x6d   : > { %1699 = vmatpush3.bf16.msra.mxu0 %v1903_v21 }
  0x6f   : > { %1772 = vmatmul.mubr.bf16.vlgmr.msra.gmra.mxu1 %v1578_v16 }
  0x70   : > { %1145 = vmatmul.mubr.bf16.vlgmr.msra.gmra.mxu0 %v1576_v25 }
  0xef   : > { %v627_v26 = vpop.f32.mrf.mxu1 }
  0xf0   : > { %v1638_v33 = vpop.f32.mrf.mxu0 }
  0xf1   : > { %v1733_v27 = vpop.f32.mrf.mxu1 }
  0xf2   : > { %v1639_v36 = vpop.f32.mrf.mxu0 }
  0xf3   : > { %v630_v28 = vpop.f32.mrf.mxu1  ;;  %v1640_v1 = vadd.f32 %v1639_v36, %v1638_v33 }
  0xf4   : > { %v1641_v38 = vpop.f32.mrf.mxu0 }
  0xf5   : > { %v1734_v29 = vpop.f32.mrf.mxu1  ;;  %v628_v47 = vadd.f32 %v1640_v1, %v627_v26 }
  0xf6   : > { %v1642_v40 = vpop.f32.mrf.mxu0 }
  0xf7   : > { %v1643_v48 = vadd.f32 %v1642_v40, %v1641_v38 }
  0xf9   : > { %v631_v24 = vadd.f32 %v1643_v48, %v630_v28 }
 0x10f   : > { %v859_v32 = vpop.f32.mrf.mxu1 }
 0x110   : > { %v1669_v41 = vpop.f32.mrf.mxu0 }
 0x111   : > { %v1753_v34 = vpop.f32.mrf.mxu1 }
 0x112   : > { %v1670_v42 = vpop.f32.mrf.mxu0 }
 0x113   : > { %v862_v35 = vpop.f32.mrf.mxu1  ;;  %v1671_v45 = vadd.f32 %v1670_v42, %v1669_v41 }
 0x114   : > { %v1672_v43 = vpop.f32.mrf.mxu0 }
 0x115   : > { %v1754_v37 = vpop.f32.mrf.mxu1  ;;  %v819_v50 = vadd.f32 %v1671_v45, %v628_v47 }
 0x116   : > { %v1673_v46 = vpop.f32.mrf.mxu0 }
 0x117   : > { %v1674_v52 = vadd.f32 %v1673_v46, %v1672_v43  ;;  %v860_v54 = vadd.f32 %v859_v32, %v819_v50 }
 0x119   : > { %v822_v56 = vadd.f32 %v1674_v52, %v631_v24 }
 0x11b   : > { %v863_v0 = vadd.f32 %v862_v35, %v822_v56 }
 0x12f   : > { %v1187_v53 = vpop.f32.mrf.mxu1 }
 0x130   : > { %v1700_v49 = vpop.f32.mrf.mxu0 }
 0x131   : > { %v1773_v57 = vpop.f32.mrf.mxu1 }
 0x132   : > { %v1701_v23 = vpop.f32.mrf.mxu0 }
 0x133   : > { %v1702_v39 = vadd.f32 %v1701_v23, %v1700_v49  ;;  %v1190_v30 = vpop.f32.mrf.mxu1 }
 0x134   : > { %v1703_v44 = vpop.f32.mrf.mxu0 }
 0x135   : > { %v1188_v58 = vadd.f32 %v1702_v39, %v1187_v53  ;;  %v1774_v55 = vpop.f32.mrf.mxu1 }
 0x136   : > { %v1704_v59 = vpop.f32.mrf.mxu0 }
 0x137   : > { %v1194_v60 = vadd.f32 %v1188_v58, %v860_v54  ;;  %v1705_v61 = vadd.f32 %v1704_v59, %v1703_v44 }
 0x139   : > { %v1191_v2 = vadd.f32 %v1705_v61, %v1190_v30  ;;  %v1203_v3 = vadd.f32 %v1603_v51, %v1194_v60 }
 0x13b   : > { %v1195_v4 = vadd.f32 %v1191_v2, %v863_v0  ;;  %v1205_v8 = vmax.f32 %v1203_v3, 0.0 }
 0x13d   : > { %v1204_v7 = vadd.f32 %v1603_v51, %v1195_v4 }
 0x13f   : > { %v1206_v9 = vmax.f32 %v1204_v7, 0.0 }
 0x141   : > { %v1207_v11 = vmax.f32 %v1205_v8, %v1206_v9 }
 0x143   : > { %v1209_v12 = vcombine.high %v1207_v11, %v1207_v11  ;;  %v1216_v13 = vrot.slane %v1207_v11, %v1215_v10 }
 0x145   : > { %v1223_v14 = vrot.slane %v1209_v12, %v1215_v10  ;;  %v1224_v15 = vcombine.high %v1216_v13, %v1216_v13  ;;  %v1231_v16 = vsel %vm1230_vm7, %v1216_v13, -inf }
 0x146   : > { %v1232_v17 = vrot.slane %v1231_v16, 4 }
 0x147   : > { %v1225_v18 = vcombine.high %v1223_v14, %v1223_v14  ;;  %v1238_v19 = vsel %vm1230_vm7, %v1224_v15, -inf  ;;  %v1245_v20 = vsel %vm1230_vm7, %v1223_v14, -inf }
 0x148   : > { %v1233_v21 = vmax.f32 %v1231_v16, %v1232_v17  ;;  %v1239_v22 = vrot.slane %v1238_v19, 4  ;;  %v1246_v25 = vrot.slane %v1245_v20, 4 }
 0x149   : > { %v1252_v26 = vsel %vm1230_vm7, %v1225_v18, -inf }
 0x14a   : > { %v1234_v27 = vrot.slane %v1233_v21, 2  ;;  %v1240_v28 = vmax.f32 %v1238_v19, %v1239_v22  ;;  %v1247_v29 = vmax.f32 %v1245_v20, %v1246_v25  ;;  %v1253_v32 = vrot.slane %v1252_v26, 4 }
 0x14c   : > { %v1235_v33 = vmax.f32 %v1233_v21, %v1234_v27  ;;  %v1241_v34 = vrot.slane %v1240_v28, 2  ;;  %v1248_v35 = vrot.slane %v1247_v29, 2  ;;  %v1254_v36 = vmax.f32 %v1252_v26, %v1253_v32 }
 0x14e   : > { %v1236_v37 = vrot.slane %v1235_v33, 1  ;;  %v1242_v38 = vmax.f32 %v1240_v28, %v1241_v34  ;;  %v1249_v40 = vmax.f32 %v1247_v29, %v1248_v35  ;;  %v1255_v41 = vrot.slane %v1254_v36, 2 }
 0x150   : > { %v1237_v42 = vmax.f32 %v1235_v33, %v1236_v37  ;;  %v1243_v43 = vrot.slane %v1242_v38, 1  ;;  %v1250_v1 = vrot.slane %v1249_v40, 1  ;;  %v1256_v45 = vmax.f32 %v1254_v36, %v1255_v41  ;;  %1262 = sbr.rel (%p1604_p6) target bundleno = 345 (0x159), region = 36 }
 0x152   : > { %v1244_v46 = vmax.f32 %v1242_v38, %v1243_v43  ;;  %v1251_v47 = vmax.f32 %v1249_v40, %v1250_v1  ;;  %v1257_v48 = vrot.slane %v1256_v45, 1 }
 0x154   : > { %v1258_v49 = vmax.f32 %v1256_v45, %v1257_v48 }
 0x155   : > { %v1951_v50 = vmov 0  }
 0x156   : > { %1263 = vst [vmem:[%s2046_s22] sm:$0x7] %v1951_v50  ;;  %1264 = vst [vmem:[%s2046_s22 + $0x4] sm:$0x7] %v1951_v50 }
 0x157   : > { %1265 = vst [vmem:[%s2046_s22 + $0x8] sm:$0x7] %v1951_v50  ;;  %1266 = vst [vmem:[%s2046_s22 + $0xc] sm:$0x7] %v1951_v50 }
 0x158   : > { %1267 = vst [vmem:[%s2046_s22 + $0x10] sm:$0x7] %v1951_v50  ;;  %1268 = vst [vmem:[%s2046_s22 + $0x14] sm:$0x7] %v1951_v50 }
 0x159 PF: > { %v1618_v52 = vpack.c.bf16 %v1237_v42, %v1237_v42  ;;  %v1619_v23 = vpack.c.bf16 %v1244_v46, %v1244_v46  ;;  %v1620_v24 = vpack.c.bf16 %v1251_v47, %v1251_v47  ;;  %v1621_v53 = vpack.c.bf16 %v1258_v49, %v1258_v49  ;;  %s1609_s11 = sshll.u32 %s1930_s12, 2 }
 0x15a   : > { %vm1290_vm8 = vcmask 1042434   ;;  %vm1292_vm9 = vcmask 1043459   ;;  %vm1294_vm10 = vcmask 1044484   ;;  %s1347_s19 = scalar_lea.vmem %s2046_s22, %s1609_s11  ;;  %vm1300_vm11 = vsmask.f32 2306 }
 0x15b   : > { %v1286_v39 = vunpack.c.l.b16 %v1618_v52  ;;  %v1287_v44 = vunpack.c.l.b16 %v1619_v23  ;;  %v1288_v54 = vunpack.c.l.b16 %v1620_v24  ;;  %v1289_v56 = vunpack.c.l.b16 %v1621_v53  ;;  %vm1301_vm12 = vmand %vm888_vm4, %vm1300_vm11 }
 0x15d   : > { %v1291_v57 = vsel %vm1290_vm8, %v1287_v44, %v1286_v39 }
 0x15e   : > { %v1293_v58 = vsel %vm1292_vm9, %v1288_v54, %v1291_v57 }
 0x15f   : > { %v1295_v59 = vsel %vm1294_vm10, %v1289_v56, %v1293_v58  ;;  %v1610_v60 = vld [vmem:[%s1347_s19 + $0x4] sm:$0x7] }
 0x160   : > { %v1296_v30 = vpack.c.b16 %v1295_v59, %v1295_v59 }
 0x162   : > { %v1303_v61 = vsel %vm1301_vm12, %v1296_v30, %v1610_v60 }
 0x163   : > { %1611 = vst [vmem:[%s1347_s19 + $0x4] sm:$0x7] %v1303_v61 }
 0x164 PF: > { %s13_s16 = sadd.s32 1, %s1946_s16   ;;  %s2385_s12 = smov %s1938_s14 }
 0x165   : > { %p10_p7 = scmp.ge.s32.totalorder %s13_s16, 18   ;;  %s2386_s13 = smov %s1942_s15 }
 0x166   : > { %s2387_s14 = smov %s2390_s17  ;;  %s2388_s15 = smov %s2394_s18 }
 0x167   :  { %12 = sbr.rel (!%p10_p7) target bundleno = 3 (0x3), region = 72 }

// kernel: perceptual_loss_forward.12
= control target key start
LH: loop header
LB: loop body
LE: loop exit
PB: predicated region body
PF: predicated region fallthrough
CT: control target
= control target key end

     0   :  { %s2346_s12 = smov 0   ;;  %s2348_s13 = smov 0   ;;  %s2906_s0 = inlined_call_operand.vmem [shape: bf16[4,6,6,128], index: 0, kind: input, shape index: {}]   ;;  %s2907_s1 = inlined_call_operand.vmem [shape: bf16[3,384,256], index: 1, kind: input, shape index: {}]   ;;  %s2908_s2 = inlined_call_operand.vmem [shape: f32[1,256], index: 2, kind: input, shape index: {}]   ;;  %s2909_s3 = inlined_call_operand.vmem [shape: bf16[4,6,6,256], index: 3, kind: output, shape index: {}]  }
   0x1   :  { %s2350_s14 = smov 0   ;;  %s2352_s15 = smov 0  }
   0x2   :  { %s2354_s16 = smov 0  }
   0x3 LB: > { %s22_s17 = sadd.s32 1, %s2313_s14  ;;  %s25_s18 = sadd.s32 1, %s2317_s15  ;;  %s2321_s16 = sphi %s2354_s16, %s13_s16   ;;  %s2317_s15 = sphi %s2352_s15, %s2917_s15   ;;  %s2313_s14 = sphi %s2350_s14, %s2916_s14   ;;  %s2309_s13 = sphi %s2348_s13, %s2915_s13   ;;  %s2305_s12 = sphi %s2346_s12, %s2914_s12  }
   0x4   : > { %p23_p0 = scmp.ge.s32.totalorder %s22_s17, 2  ;;  %p1720_p1 = scmp.ge.s32.totalorder %s2321_s16, 1 }
   0x5   : > { %p149_p2 = scmp.lt.s32.totalorder %s2321_s16, 9 }
   0x6   : > { %s2919_s17 = smov (%p23_p0, %s22_s17), 0  ;;  %s2921_s18 = smov (!%p23_p0, %s25_s18), %s2317_s15 }
   0x7   : > { %p150_p3 = pnand %p1720_p1, %p149_p2  ;;  %p27_p4 = scmp.ge.s32.totalorder %s2921_s18, 4 }
   0x8   : > { %p173_p5 = scmp.lt.s32.totalorder (!%p150_p3), %s2309_s13, 3  ;;  %s2004_s4 = sshll.u32 (!%p150_p3), %s2305_s12, 3 }
   0x9   : > { %s2923_s18 = smov (%p27_p4, %s2921_s18), 0  ;;  %153 = sbr.rel (%p150_p3) target bundleno = 396 (0x18c), region = 32 }
   0xa   : > { %p1991_p6 = scmp.ne.s32.totalorder (!%p150_p3), %s2305_s12, 0 }
   0xe   : > { %v2055_v0 = vld [vmem:[%s2907_s1 + $0x1f4] ss:$8 sps:$4 sm:$0xff]   ;;  %v2323_v2 = vmov 0   ;;  %v2059_v3 = vld [vmem:[%s2907_s1 + $0x1f0] ss:$8 sps:$4 sm:$0xff]   ;;  %s2925_s13 = smov (!%p173_p5, %s2309_s13), 3  ;;  %v209_v24 = vlaneseq }
   0xf   : > { %v2057_v1 = vld [vmem:[%s2907_s1 + $0x2f4] ss:$8 sps:$4 sm:$0xff]   ;;  %748 = vmatprep.mubr.bf16.mxu1 %v2323_v2  ;;  %675 = vmatprep.subr.bf16.mxu0 %v2055_v0  ;;  %v2060_v4 = vld [vmem:[%s2907_s1 + $0x2f0] ss:$8 sps:$4 sm:$0xff]   ;;  %v2061_v5 = vld [vmem:[%s2907_s1 + $0x1e4] ss:$8 sps:$4 sm:$0xff]  }
  0x10   : > { %716 = vmatprep.subr.bf16.mxu1 %v2057_v1  ;;  %676 = vmatpush1.bf16.msra.mxu0 %v2059_v3  ;;  %v2063_v6 = vld [vmem:[%s2907_s1 + $0x2e4] ss:$8 sps:$4 sm:$0xff]   ;;  %v2065_v7 = vld [vmem:[%s2907_s1 + $0x1e0] ss:$8 sps:$4 sm:$0xff]   ;;  %s2011_s8 = smul.u32 48, %s2925_s13  ;;  %v2467_v30 = vshrl.u32 %v209_v24, 7 }
  0x11   : > { %717 = vmatpush1.bf16.msra.mxu1 %v2060_v4  ;;  %677 = vmatprep.subr.bf16.mxu0 %v2061_v5  ;;  %v2066_v8 = vld [vmem:[%s2907_s1 + $0x2e0] ss:$8 sps:$4 sm:$0xff]   ;;  %v2067_v9 = vld [vmem:[%s2907_s1 + $0x1d4] ss:$8 sps:$4 sm:$0xff]   ;;  %v2071_v11 = vld [vmem:[%s2907_s1 + $0x1d0] ss:$8 sps:$4 sm:$0xff]  }
  0x12   : > { %718 = vmatprep.subr.bf16.mxu1 %v2063_v6  ;;  %v2069_v10 = vld [vmem:[%s2907_s1 + $0x2d4] ss:$8 sps:$4 sm:$0xff]   ;;  %v2072_v12 = vld [vmem:[%s2907_s1 + $0x2d0] ss:$8 sps:$4 sm:$0xff]   ;;  %s2421_s26 = scalar_lea.vmem %s2909_s3, %s2011_s8  ;;  %v2073_v13 = vld [vmem:[%s2907_s1 + $0x1c4] ss:$8 sps:$4 sm:$0xff]  }
  0x13   : > { %v2075_v14 = vld [vmem:[%s2907_s1 + $0x2c4] ss:$8 sps:$4 sm:$0xff]   ;;  %v2077_v15 = vld [vmem:[%s2907_s1 + $0x1c0] ss:$8 sps:$4 sm:$0xff]   ;;  %v2079_v17 = vld [vmem:[%s2907_s1 + $0x1b4] ss:$8 sps:$4 sm:$0xff]  }
  0x14   : > { %678 = vmatpush1.bf16.msra.mxu0 %v2065_v7  ;;  %v2078_v16 = vld [vmem:[%s2907_s1 + $0x2c0] ss:$8 sps:$4 sm:$0xff]   ;;  %v2081_v18 = vld [vmem:[%s2907_s1 + $0x2b4] ss:$8 sps:$4 sm:$0xff]   ;;  %v2083_v19 = vld [vmem:[%s2907_s1 + $0x1b0] ss:$8 sps:$4 sm:$0xff]  }
  0x15   : > { %719 = vmatpush1.bf16.msra.mxu1 %v2066_v8  ;;  %679 = vmatprep.subr.bf16.mxu0 %v2067_v9  ;;  %v2084_v20 = vld [vmem:[%s2907_s1 + $0x2b0] ss:$8 sps:$4 sm:$0xff]   ;;  %v2085_v21 = vld [vmem:[%s2907_s1 + $0x1a4] ss:$8 sps:$4 sm:$0xff]   ;;  %s2010_s25 = smul.u32 24, %s2925_s13  ;;  %vm1145_vm7 = vcmask 1040384  }
  0x16   : > { %720 = vmatprep.subr.bf16.mxu1 %v2069_v10  ;;  %v2324_v22 = vmov 1983009808   ;;  %v2087_v25 = vld [vmem:[%s2907_s1 + $0x2a4] ss:$8 sps:$4 sm:$0xff]   ;;  %v2089_v26 = vld [vmem:[%s2907_s1 + $0x1a0] ss:$8 sps:$4 sm:$0xff]  }
  0x17   : > { %v207_v23 = vunpack.c.l.s4 %v2324_v22  ;;  %v2090_v27 = vld [vmem:[%s2907_s1 + $0x2a0] ss:$8 sps:$4 sm:$0xff]   ;;  %v2091_v28 = vld [vmem:[%s2907_s1 + $0x194] ss:$8 sps:$4 sm:$0xff]   ;;  %s177_s10 = scalar_lea.vmem %s2906_s0, %s2010_s25  ;;  %vm331_vm0 = vsmask.f32 1280 }
  0x18   : > { %680 = vmatpush1.bf16.msra.mxu0 %v2071_v11  ;;  %v2093_v31 = vld [vmem:[%s2907_s1 + $0x294] ss:$8 sps:$4 sm:$0xff]   ;;  %v2095_v32 = vld [vmem:[%s2907_s1 + $0x190] ss:$8 sps:$4 sm:$0xff]   ;;  %s2478_s24 = scalar_lea.vmem %s177_s10, %s2004_s4  ;;  %vm332_vm1 = vsmask.f32 3336 }
  0x19   : > { %721 = vmatpush1.bf16.msra.mxu1 %v2072_v12  ;;  %681 = vmatprep.subr.bf16.mxu0 %v2073_v13  ;;  %v208_v29 = vunpack.c.0.s8 %v207_v23  ;;  %v2096_v33 = vld [vmem:[%s2907_s1 + $0x290] ss:$8 sps:$4 sm:$0xff]   ;;  %v2097_v35 = vld [vmem:[%s2907_s1 + $0x184] ss:$8 sps:$4 sm:$0xff]   ;;  %v2101_v37 = vld [vmem:[%s2907_s1 + $0x180] ss:$8 sps:$4 sm:$0xff]  }
  0x1a   : > { %722 = vmatprep.subr.bf16.mxu1 %v2075_v14  ;;  %v2099_v36 = vld [vmem:[%s2907_s1 + $0x284] ss:$8 sps:$4 sm:$0xff]   ;;  %v1739_v38 = vld.sshfl [vmem:[%s2478_s24 + $0x8] sm:$0x13 pattern:$0x76325410]  ;;  %vm333_vm2 = vmor %vm331_vm0, %vm332_vm1 }
  0x1b   : > { %v2481_v34 = vsub.s32 %v208_v29, %v2467_v30  ;;  %v2277_v39 = vld.sshfl [vmem:[%s2478_s24] sm:$0x5f pattern:$0x76325410]  ;;  %v2103_v43 = vld [vmem:[%s2907_s1 + $0x274] ss:$8 sps:$4 sm:$0xff]  }
  0x1c   : > { %682 = vmatpush1.bf16.msra.mxu0 %v2077_v15  ;;  %v2102_v40 = vld [vmem:[%s2907_s1 + $0x280] ss:$8 sps:$4 sm:$0xff]   ;;  %v1740_v42 = vld.sshfl [vmem:[%s2478_s24 + $0xc] sm:$0x13 pattern:$0x76325410]  ;;  %v312_v45 = vcombine.low %v2277_v39, %v1739_v38  ;;  %v313_v46 = vcombine.high %v2277_v39, %v1739_v38 }
  0x1d   : > { %723 = vmatpush1.bf16.msra.mxu1 %v2078_v16  ;;  %683 = vmatprep.subr.bf16.mxu0 %v2079_v17  ;;  %v2278_v41 = vld.sshfl [vmem:[%s2478_s24 + $0x4] sm:$0x5f pattern:$0x76325410]  ;;  %v2107_v44 = vld [vmem:[%s2907_s1 + $0x74] ss:$8 sps:$4 sm:$0xff]  }
  0x1e   : > { %724 = vmatprep.subr.bf16.mxu1 %v2081_v18  ;;  %vm334_vm3 = vsmask.f32 5392  ;;  %v329_v47 = vcombine.low %v2278_v41, %v1740_v42  ;;  %v330_v48 = vcombine.high %v2278_v41, %v1740_v42  ;;  %vm336_vm4 = vsmask.f32 7448  ;;  %v2108_v49 = vld [vmem:[%s2907_s1 + $0x270] ss:$8 sps:$4 sm:$0xff]  }
  0x1f   : > { %v339_v50 = vshrl.u32 %v312_v45, 16  ;;  %v342_v51 = vshll.u32 %v312_v45, 16  ;;  %v348_v52 = vshll.u32 %v313_v46, 16  ;;  %vm335_vm5 = vmor %vm333_vm2, %vm334_vm3  ;;  %v2111_v56 = vld [vmem:[%s2907_s1 + $0x264] ss:$8 sps:$4 sm:$0xff]   ;;  %vm1146_vm8 = vcmask 1042434  }
  0x20   : > { %684 = vmatpush1.bf16.msra.mxu0 %v2083_v19  ;;  %v353_v53 = vshrl.u32 %v329_v47, 16  ;;  %v356_v54 = vshll.u32 %v329_v47, 16  ;;  %v362_v55 = vshll.u32 %v330_v48, 16  ;;  %vm337_vm6 = vmor %vm335_vm5, %vm336_vm4  ;;  %v2116_v63 = vld [vmem:[%s2907_s1 + $0x260] ss:$8 sps:$4 sm:$0xff]   ;;  %vm1148_vm10 = vcmask 1044484  }
  0x21   : > { %725 = vmatpush1.bf16.msra.mxu1 %v2084_v20  ;;  %685 = vmatprep.subr.bf16.mxu0 %v2085_v21  ;;  %v341_v57 = vrot.slane %v339_v50, 6  ;;  %v344_v58 = vrot.slane %v342_v51, 7  ;;  %v350_v62 = vrot.slane %v348_v52, 7  ;;  %v2117_v3 = vld [vmem:[%s2907_s1 + $0x254] ss:$8 sps:$4 sm:$0xff]   ;;  %vm2707_vm9 = vmor %vm1145_vm7, %vm1146_vm8  ;;  %vm1150_vm12 = vcmask 1046534  }
  0x22   : > { %726 = vmatprep.subr.bf16.mxu1 %v2087_v25  ;;  %v355_v59 = vrot.slane %v353_v53, 6  ;;  %v358_v60 = vrot.slane %v356_v54, 7  ;;  %v364_v1 = vrot.slane %v362_v55, 7  ;;  %v2122_v7 = vld [vmem:[%s2907_s1 + $0x250] ss:$8 sps:$4 sm:$0xff]   ;;  %vm1149_vm11 = vmor %vm2707_vm9, %vm1148_vm10 }
  0x23   : > { %v345_v61 = vor.u32 %v344_v58, %v341_v57  ;;  %v2123_v9 = vld [vmem:[%s2907_s1 + $0x244] ss:$8 sps:$4 sm:$0xff]   ;;  %v2105_v12 = vld [vmem:[%s2907_s1 + $0x70] ss:$8 sps:$4 sm:$0xff]   ;;  %v2128_v15 = vld [vmem:[%s2907_s1 + $0x240] ss:$8 sps:$4 sm:$0xff]  }
  0x24   : > { %686 = vmatpush1.bf16.msra.mxu0 %v2089_v26  ;;  %v359_v0 = vor.u32 %v358_v60, %v355_v59  ;;  %v2115_v14 = vld [vmem:[%s2907_s1 + $0x64] ss:$8 sps:$4 sm:$0xff]   ;;  %v2129_v17 = vld [vmem:[%s2907_s1 + $0x234] ss:$8 sps:$4 sm:$0xff]   ;;  %v2113_v19 = vld [vmem:[%s2907_s1 + $0x60] ss:$8 sps:$4 sm:$0xff]  }
  0x25   : > { %727 = vmatpush1.bf16.msra.mxu1 %v2090_v27  ;;  %687 = vmatprep.subr.bf16.mxu0 %v2091_v28  ;;  %v346_v4 = vrot.slane %v345_v61, 2  ;;  %v2121_v20 = vld [vmem:[%s2907_s1 + $0x54] ss:$8 sps:$4 sm:$0xff]   ;;  %v2134_v21 = vld [vmem:[%s2907_s1 + $0x230] ss:$8 sps:$4 sm:$0xff]   ;;  %vm1151_vm13 = vmor %vm1149_vm11, %vm1150_vm12 }
  0x26   : > { %728 = vmatprep.subr.bf16.mxu1 %v2093_v31  ;;  %v360_v5 = vrot.slane %v359_v0, 2  ;;  %v2135_v22 = vld [vmem:[%s2907_s1 + $0x224] ss:$8 sps:$4 sm:$0xff]   ;;  %v2119_v23 = vld [vmem:[%s2907_s1 + $0x50] ss:$8 sps:$4 sm:$0xff]  }
  0x27   : > { %v351_v6 = vsel %vm337_vm6, %v346_v4, %v350_v62  ;;  %v2127_v24 = vld [vmem:[%s2907_s1 + $0x44] ss:$8 sps:$4 sm:$0xff]   ;;  %v2140_v25 = vld [vmem:[%s2907_s1 + $0x220] ss:$8 sps:$4 sm:$0xff]   ;;  %v2141_v26 = vld [vmem:[%s2907_s1 + $0x214] ss:$8 sps:$4 sm:$0xff]  }
  0x28   : > { %688 = vmatpush1.bf16.msra.mxu0 %v2095_v32  ;;  %v365_v8 = vsel %vm337_vm6, %v360_v5, %v364_v1  ;;  %v2125_v27 = vld [vmem:[%s2907_s1 + $0x40] ss:$8 sps:$4 sm:$0xff]   ;;  %v2133_v28 = vld [vmem:[%s2907_s1 + $0x34] ss:$8 sps:$4 sm:$0xff]   ;;  %v2146_v29 = vld [vmem:[%s2907_s1 + $0x210] ss:$8 sps:$4 sm:$0xff]  }
  0x29   : > { %729 = vmatpush1.bf16.msra.mxu1 %v2096_v33  ;;  %689 = vmatprep.subr.bf16.mxu0 %v2097_v35  ;;  %v416_v10 = vcombine.high %v351_v6, %v365_v8  ;;  %v415_v11 = vcombine.low %v351_v6, %v365_v8  ;;  %v2147_v31 = vld [vmem:[%s2907_s1 + $0x204] ss:$8 sps:$4 sm:$0xff]   ;;  %v2131_v32 = vld [vmem:[%s2907_s1 + $0x30] ss:$8 sps:$4 sm:$0xff]   ;;  %v2152_v35 = vld [vmem:[%s2907_s1 + $0x200] ss:$8 sps:$4 sm:$0xff]  }
  0x2a   : > { %730 = vmatprep.subr.bf16.mxu1 %v2099_v36  ;;  %v2139_v33 = vld [vmem:[%s2907_s1 + $0x24] ss:$8 sps:$4 sm:$0xff]   ;;  %v2158_v36 = vld [vmem:[%s2907_s1 + $0x174] ss:$8 sps:$4 sm:$0xff]   ;;  %v2156_v39 = vld [vmem:[%s2907_s1 + $0x170] ss:$8 sps:$4 sm:$0xff]  }
  0x2b   : > { %v430_v13 = vrot.slane %v416_v10, %v2481_v34  ;;  %v423_v16 = vrot.slane %v415_v11, %v2481_v34  ;;  %v2145_v38 = vld [vmem:[%s2907_s1 + $0x14] ss:$8 sps:$4 sm:$0xff]   ;;  %v2143_v41 = vld [vmem:[%s2907_s1 + $0x10] ss:$8 sps:$4 sm:$0xff]   ;;  %v2151_v42 = vld [vmem:[%s2907_s1 + $0x4] ss:$8 sps:$4 sm:$0xff]  }
  0x2c   : > { %690 = vmatpush1.bf16.msra.mxu0 %v2101_v37  ;;  %v2137_v37 = vld [vmem:[%s2907_s1 + $0x20] ss:$8 sps:$4 sm:$0xff]   ;;  %v2155_v48 = vld [vmem:[%s2907_s1 + $0xf4] ss:$8 sps:$4 sm:$0xff]   ;;  %v2176_v50 = vld [vmem:[%s2907_s1 + $0x144] ss:$8 sps:$4 sm:$0xff]  }
  0x2d   : > { %731 = vmatpush1.bf16.msra.mxu1 %v2102_v40  ;;  %691 = vmatprep.subr.bf16.mxu0 %v2103_v43  ;;  %v431_v18 = vcombine.high %v423_v16, %v423_v16  ;;  %v2164_v40 = vld [vmem:[%s2907_s1 + $0x164] ss:$8 sps:$4 sm:$0xff]   ;;  %v2162_v43 = vld [vmem:[%s2907_s1 + $0x160] ss:$8 sps:$4 sm:$0xff]   ;;  %v2153_v52 = vld [vmem:[%s2907_s1 + $0xf0] ss:$8 sps:$4 sm:$0xff]  }
  0x2e   : > { %1017 = vmatprep.subr.bf16.mxu1 %v2107_v44  ;;  %v2170_v44 = vld [vmem:[%s2907_s1 + $0x154] ss:$8 sps:$4 sm:$0xff]   ;;  %v2279_v45 = vld.sshfl [vmem:[%s2478_s24] sm:$0xf pattern:$0x76325410] }
  0x2f   : > { %707 = vmatprep.mubr.bf16.mxu0 %v431_v18  ;;  %v2280_v46 = vld.sshfl [vmem:[%s2478_s24 + $0x4] sm:$0xf pattern:$0x76325410]  ;;  %v2167_v59 = vld [vmem:[%s2907_s1 + $0xd4] ss:$8 sps:$4 sm:$0xff]  }
  0x30   : > { %692 = vmatpush2.bf16.msra.mxu0 %v2108_v49  ;;  %749 = vmatmul.mubr.bf16.vlgmr.msra.gmra.mxu1 %v430_v13  ;;  %v2149_v47 = vld [vmem:[%s2907_s1] ss:$8 sps:$4 sm:$0xff]   ;;  %v2168_v49 = vld [vmem:[%s2907_s1 + $0x150] ss:$8 sps:$4 sm:$0xff]   ;;  %v1837_v51 = vcombine.low %v2279_v45, %v2280_v46  ;;  %v2161_v53 = vld [vmem:[%s2907_s1 + $0xe4] ss:$8 sps:$4 sm:$0xff]  }
  0x31   : > { %693 = vmatprep.subr.bf16.mxu0 %v2111_v56  ;;  %1018 = vmatpush1.bf16.msra.mxu1 %v2105_v12  ;;  %v2174_v54 = vld [vmem:[%s2907_s1 + $0x140] ss:$8 sps:$4 sm:$0xff]   ;;  %v2182_v56 = vld [vmem:[%s2907_s1 + $0x134] ss:$8 sps:$4 sm:$0xff]   ;;  %v2180_v60 = vld [vmem:[%s2907_s1 + $0x130] ss:$8 sps:$4 sm:$0xff]  }
  0x32   : > { %1019 = vmatprep.subr.bf16.mxu1 %v2115_v14  ;;  %v2637_v55 = vrot.slane %v1837_v51, %v2481_v34  ;;  %v2159_v58 = vld [vmem:[%s2907_s1 + $0xe0] ss:$8 sps:$4 sm:$0xff]   ;;  %v2188_v61 = vld [vmem:[%s2907_s1 + $0x124] ss:$8 sps:$4 sm:$0xff]   ;;  %v2165_v62 = vld [vmem:[%s2907_s1 + $0xd0] ss:$8 sps:$4 sm:$0xff]  }
  0x33   : > { %v2186_v0 = vld [vmem:[%s2907_s1 + $0x120] ss:$8 sps:$4 sm:$0xff]   ;;  %v2179_v4 = vld [vmem:[%s2907_s1 + $0xb4] ss:$8 sps:$4 sm:$0xff]   ;;  %v2192_v5 = vld [vmem:[%s2907_s1 + $0x110] ss:$8 sps:$4 sm:$0xff]  }
  0x34   : > { %694 = vmatpush2.bf16.msra.mxu0 %v2116_v63  ;;  %v773_v57 = vcombine.high %v2637_v55, %v2637_v55  ;;  %v2173_v63 = vld [vmem:[%s2907_s1 + $0xc4] ss:$8 sps:$4 sm:$0xff]   ;;  %v2171_v1 = vld [vmem:[%s2907_s1 + $0xc0] ss:$8 sps:$4 sm:$0xff]   ;;  %v2205_v13 = vld [vmem:[%s2907_s1 + $0x374] ss:$8 sps:$4 sm:$0xff]  }
  0x35   : > { %695 = vmatprep.subr.bf16.mxu0 %v2117_v3  ;;  %1020 = vmatpush1.bf16.msra.mxu1 %v2113_v19  ;;  %v2194_v3 = vld [vmem:[%s2907_s1 + $0x114] ss:$8 sps:$4 sm:$0xff]   ;;  %v1733_v6 = vld.sshfl [vmem:[%s2478_s24 + $0x8] sm:$0x3 pattern:$0x76325410] }
  0x36   : > { %1021 = vmatprep.subr.bf16.mxu1 %v2121_v20  ;;  %1049 = vmatprep.mubr.bf16.mxu1 %v773_v57  ;;  %v2200_v8 = vld [vmem:[%s2907_s1 + $0x104] ss:$8 sps:$4 sm:$0xff]   ;;  %v2198_v12 = vld [vmem:[%s2907_s1 + $0x100] ss:$8 sps:$4 sm:$0xff]   ;;  %v2189_v20 = vld [vmem:[%s2907_s1 + $0x90] ss:$8 sps:$4 sm:$0xff]  }
  0x37   : > { %v2185_v10 = vld [vmem:[%s2907_s1 + $0xa4] ss:$8 sps:$4 sm:$0xff]   ;;  %v2183_v14 = vld [vmem:[%s2907_s1 + $0xa0] ss:$8 sps:$4 sm:$0xff]  }
  0x38   : > { %696 = vmatpush2.bf16.msra.mxu0 %v2122_v7  ;;  %v1734_v7 = vld.sshfl [vmem:[%s2478_s24 + $0xc] sm:$0x3 pattern:$0x76325410]  ;;  %v2263_v19 = vld [vmem:[%s2907_s1 + $0x3a0] ss:$8 sps:$4 sm:$0xff]  }
  0x39   : > { %697 = vmatprep.subr.bf16.mxu0 %v2123_v9  ;;  %1022 = vmatpush1.bf16.msra.mxu1 %v2119_v23  ;;  %v2177_v9 = vld [vmem:[%s2907_s1 + $0xb0] ss:$8 sps:$4 sm:$0xff]   ;;  %v1838_v11 = vcombine.low %v1733_v6, %v1734_v7  ;;  %v2208_v18 = vld [vmem:[%s2907_s1 + $0x364] ss:$8 sps:$4 sm:$0xff]   ;;  %v2211_v23 = vld [vmem:[%s2907_s1 + $0x354] ss:$8 sps:$4 sm:$0xff]  }
  0x3a   : > { %1023 = vmatprep.subr.bf16.mxu1 %v2127_v24  ;;  %v2195_v24 = vld [vmem:[%s2907_s1 + $0x80] ss:$8 sps:$4 sm:$0xff]   ;;  %v2241_v6 = vld [vmem:[%s2907_s1 + $0x3e4] ss:$8 sps:$4 sm:$0xff]   ;;  %v2260_v7 = vld [vmem:[%s2907_s1 + $0x410] ss:$8 sps:$4 sm:$0xff]  }
  0x3c   : > { %698 = vmatpush2.bf16.msra.mxu0 %v2128_v15  ;;  %v2191_v15 = vld [vmem:[%s2907_s1 + $0x94] ss:$8 sps:$4 sm:$0xff]  }
  0x3d   : > { %699 = vmatprep.subr.bf16.mxu0 %v2129_v17  ;;  %1024 = vmatpush1.bf16.msra.mxu1 %v2125_v27  ;;  %v2203_v17 = vld [vmem:[%s2907_s1 + $0x370] ss:$8 sps:$4 sm:$0xff]   ;;  %v2226_v27 = vld [vmem:[%s2907_s1 + $0x474] ss:$8 sps:$4 sm:$0xff]  }
  0x3e   : > { %1025 = vmatprep.subr.bf16.mxu1 %v2133_v28  ;;  %v2281_v28 = vld.sshfl [vmem:[%s2478_s24] sm:$0x5a pattern:$0x76325410] }
  0x40   : > { %700 = vmatpush2.bf16.msra.mxu0 %v2134_v21  ;;  %v2197_v21 = vld [vmem:[%s2907_s1 + $0x84] ss:$8 sps:$4 sm:$0xff]  }
  0x41   : > { %701 = vmatprep.subr.bf16.mxu0 %v2135_v22  ;;  %1026 = vmatpush1.bf16.msra.mxu1 %v2131_v32  ;;  %v2206_v22 = vld [vmem:[%s2907_s1 + $0x360] ss:$8 sps:$4 sm:$0xff]   ;;  %v1892_v32 = vld.sshfl [vmem:[%s2478_s24 + $0xc] sm:$0x12 pattern:$0x76325410] }
  0x42   : > { %1027 = vmatprep.subr.bf16.mxu1 %v2139_v33  ;;  %v2224_v33 = vld [vmem:[%s2907_s1 + $0x470] ss:$8 sps:$4 sm:$0xff]  }
  0x44   : > { %702 = vmatpush2.bf16.msra.mxu0 %v2140_v25  ;;  %v2209_v25 = vld [vmem:[%s2907_s1 + $0x350] ss:$8 sps:$4 sm:$0xff]  }
  0x45   : > { %703 = vmatprep.subr.bf16.mxu0 %v2141_v26  ;;  %1028 = vmatpush1.bf16.msra.mxu1 %v2137_v37  ;;  %v2214_v26 = vld [vmem:[%s2907_s1 + $0x344] ss:$8 sps:$4 sm:$0xff]  }
  0x46   : > { %1029 = vmatprep.subr.bf16.mxu1 %v2145_v38 }
  0x48   : > { %704 = vmatpush2.bf16.msra.mxu0 %v2146_v29  ;;  %v1891_v29 = vld.sshfl [vmem:[%s2478_s24 + $0x8] sm:$0x12 pattern:$0x76325410] }
  0x49   : > { %705 = vmatprep.subr.bf16.mxu0 %v2147_v31  ;;  %1030 = vmatpush1.bf16.msra.mxu1 %v2143_v41  ;;  %v2282_v31 = vld.sshfl [vmem:[%s2478_s24 + $0x4] sm:$0x5a pattern:$0x76325410]  ;;  %v1126_v37 = vcombine.low %v2281_v28, %v1891_v29  ;;  %v1127_v38 = vcombine.high %v2281_v28, %v1891_v29 }
  0x4a   : > { %1031 = vmatprep.subr.bf16.mxu1 %v2151_v42  ;;  %v1144_v41 = vcombine.high %v2282_v31, %v1892_v32 }
  0x4b   : > { %v1893_v42 = vrot.slane %v1126_v37, 9 }
  0x4c   : > { %706 = vmatpush2.bf16.msra.mxu0 %v2152_v35  ;;  %v2212_v35 = vld [vmem:[%s2907_s1 + $0x340] ss:$8 sps:$4 sm:$0xff]   ;;  %v1158_v46 = vrot.slane %v1144_v41, 7 }
  0x4d   : > { %1058 = vmatprep.subr.bf16.mxu0 %v2158_v36  ;;  %1032 = vmatpush1.bf16.msra.mxu1 %v2149_v47  ;;  %v2232_v36 = vld [vmem:[%s2907_s1 + $0x464] ss:$8 sps:$4 sm:$0xff]   ;;  %v2215_v47 = vld [vmem:[%s2907_s1 + $0x330] ss:$8 sps:$4 sm:$0xff]  }
  0x4e   : > { %1033 = vmatprep.subr.bf16.mxu1 %v2155_v48  ;;  %v2238_v48 = vld [vmem:[%s2907_s1 + $0x454] ss:$8 sps:$4 sm:$0xff]  }
  0x4f   : > { %708 = vmatmul.mubr.bf16.vlgmr.msra.gmra.mxu0 %v423_v16  ;;  %v772_v16 = vrot.slane %v1838_v11, %v2481_v34 }
  0x50   : > { %1059 = vmatpush1.bf16.msra.mxu0 %v2156_v39  ;;  %1090 = vmatprep.mubr.bf16.mxu0 %v2323_v2  ;;  %v2217_v39 = vld [vmem:[%s2907_s1 + $0x334] ss:$8 sps:$4 sm:$0xff]  }
  0x51   : > { %1060 = vmatprep.subr.bf16.mxu0 %v2164_v40  ;;  %1034 = vmatpush2.bf16.msra.mxu1 %v2153_v52  ;;  %v1143_v40 = vcombine.low %v2282_v31, %v1892_v32  ;;  %v2236_v52 = vld [vmem:[%s2907_s1 + $0x450] ss:$8 sps:$4 sm:$0xff]  }
  0x52   : > { %1035 = vmatprep.subr.bf16.mxu1 %v2161_v53  ;;  %v2218_v53 = vld [vmem:[%s2907_s1 + $0x320] ss:$8 sps:$4 sm:$0xff]  }
  0x53   : > { %v1894_v45 = vrot.slane %v1143_v40, 9 }
  0x54   : > { %1061 = vmatpush1.bf16.msra.mxu0 %v2162_v43  ;;  %v1154_v43 = vrot.slane %v1127_v38, 7 }
  0x55   : > { %1062 = vmatprep.subr.bf16.mxu0 %v2170_v44  ;;  %1036 = vmatpush2.bf16.msra.mxu1 %v2159_v58  ;;  %v2230_v44 = vld [vmem:[%s2907_s1 + $0x460] ss:$8 sps:$4 sm:$0xff]   ;;  %v1159_v51 = vsel %vm1151_vm13, %v1894_v45, %v1158_v46 }
  0x56   : > { %1037 = vmatprep.subr.bf16.mxu1 %v2167_v59  ;;  %v2242_v58 = vld [vmem:[%s2907_s1 + $0x440] ss:$8 sps:$4 sm:$0xff]   ;;  %v2221_v59 = vld [vmem:[%s2907_s1 + $0x310] ss:$8 sps:$4 sm:$0xff]  }
  0x58   : > { %1063 = vmatpush1.bf16.msra.mxu0 %v2168_v49  ;;  %v2220_v49 = vld [vmem:[%s2907_s1 + $0x324] ss:$8 sps:$4 sm:$0xff]  }
  0x59   : > { %1064 = vmatprep.subr.bf16.mxu0 %v2176_v50  ;;  %1038 = vmatpush2.bf16.msra.mxu1 %v2165_v62  ;;  %v1155_v50 = vsel %vm1151_vm13, %v1893_v42, %v1154_v43  ;;  %v2248_v62 = vld [vmem:[%s2907_s1 + $0x430] ss:$8 sps:$4 sm:$0xff]  }
  0x5a   : > { %1039 = vmatprep.subr.bf16.mxu1 %v2173_v63  ;;  %v2227_v63 = vld [vmem:[%s2907_s1 + $0x300] ss:$8 sps:$4 sm:$0xff]   ;;  %v1210_v11 = vcombine.high %v1155_v50, %v1159_v51 }
  0x5c   : > { %1065 = vmatpush1.bf16.msra.mxu0 %v2174_v54  ;;  %v2244_v54 = vld [vmem:[%s2907_s1 + $0x444] ss:$8 sps:$4 sm:$0xff]  }
  0x5d   : > { %1066 = vmatprep.subr.bf16.mxu0 %v2182_v56  ;;  %1040 = vmatpush2.bf16.msra.mxu1 %v2171_v1  ;;  %v2223_v56 = vld [vmem:[%s2907_s1 + $0x314] ss:$8 sps:$4 sm:$0xff]  }
  0x5e   : > { %1041 = vmatprep.subr.bf16.mxu1 %v2179_v4  ;;  %v2235_v1 = vld [vmem:[%s2907_s1 + $0x3f4] ss:$8 sps:$4 sm:$0xff]   ;;  %v2233_v4 = vld [vmem:[%s2907_s1 + $0x3f0] ss:$8 sps:$4 sm:$0xff]  }
  0x60   : > { %1067 = vmatpush1.bf16.msra.mxu0 %v2180_v60  ;;  %v2250_v60 = vld [vmem:[%s2907_s1 + $0x434] ss:$8 sps:$4 sm:$0xff]  }
  0x61   : > { %1068 = vmatprep.subr.bf16.mxu0 %v2188_v61  ;;  %1042 = vmatpush2.bf16.msra.mxu1 %v2177_v9  ;;  %v2229_v61 = vld [vmem:[%s2907_s1 + $0x304] ss:$8 sps:$4 sm:$0xff]  }
  0x62   : > { %1043 = vmatprep.subr.bf16.mxu1 %v2185_v10  ;;  %v2268_v9 = vld [vmem:[%s2907_s1 + $0x404] ss:$8 sps:$4 sm:$0xff]   ;;  %v2247_v10 = vld [vmem:[%s2907_s1 + $0x3d4] ss:$8 sps:$4 sm:$0xff]  }
  0x64   : > { %1069 = vmatpush1.bf16.msra.mxu0 %v2186_v0  ;;  %v2256_v0 = vld [vmem:[%s2907_s1 + $0x424] ss:$8 sps:$4 sm:$0xff]  }
  0x65   : > { %1070 = vmatprep.subr.bf16.mxu0 %v2194_v3  ;;  %1044 = vmatpush2.bf16.msra.mxu1 %v2183_v14  ;;  %v2254_v3 = vld [vmem:[%s2907_s1 + $0x420] ss:$8 sps:$4 sm:$0xff]   ;;  %v2253_v14 = vld [vmem:[%s2907_s1 + $0x3c4] ss:$8 sps:$4 sm:$0xff]  }
  0x66   : > { %1045 = vmatprep.subr.bf16.mxu1 %v2191_v15  ;;  %v1224_v15 = vrot.slane %v1210_v11, %v2481_v34 }
  0x68   : > { %1071 = vmatpush1.bf16.msra.mxu0 %v2192_v5  ;;  %v2262_v5 = vld [vmem:[%s2907_s1 + $0x414] ss:$8 sps:$4 sm:$0xff]  }
  0x69   : > { %1072 = vmatprep.subr.bf16.mxu0 %v2200_v8  ;;  %1046 = vmatpush2.bf16.msra.mxu1 %v2189_v20  ;;  %v2239_v8 = vld [vmem:[%s2907_s1 + $0x3e0] ss:$8 sps:$4 sm:$0xff]   ;;  %v2271_v20 = vld [vmem:[%s2907_s1 + $0x394] ss:$8 sps:$4 sm:$0xff]  }
  0x6a   : > { %1047 = vmatprep.subr.bf16.mxu1 %v2197_v21  ;;  %v2269_v21 = vld [vmem:[%s2907_s1 + $0x390] ss:$8 sps:$4 sm:$0xff]  }
  0x6c   : > { %1073 = vmatpush1.bf16.msra.mxu0 %v2198_v12  ;;  %v2266_v12 = vld [vmem:[%s2907_s1 + $0x400] ss:$8 sps:$4 sm:$0xff]  }
  0x6d   : > { %1469 = vmatprep.subr.bf16.mxu0 %v2205_v13  ;;  %1048 = vmatpush2.bf16.msra.mxu1 %v2195_v24  ;;  %v2245_v13 = vld [vmem:[%s2907_s1 + $0x3d0] ss:$8 sps:$4 sm:$0xff]  }
  0x6e   : > { %1510 = vmatprep.subr.bf16.mxu1 %v2226_v27 }
  0x6f   : > { %1091 = vmatmul.mubr.bf16.vlgmr.msra.gmra.mxu0 %v772_v16  ;;  %v2251_v16 = vld [vmem:[%s2907_s1 + $0x3c0] ss:$8 sps:$4 sm:$0xff]  }
  0x70   : > { %1470 = vmatpush1.bf16.msra.mxu0 %v2203_v17  ;;  %1050 = vmatmul.mubr.bf16.vlgmr.msra.gmra.mxu1 %v2637_v55  ;;  %v2259_v17 = vld [vmem:[%s2907_s1 + $0x3b4] ss:$8 sps:$4 sm:$0xff]  }
  0x71   : > { %1471 = vmatprep.subr.bf16.mxu0 %v2208_v18  ;;  %1511 = vmatpush1.bf16.msra.mxu1 %v2224_v33  ;;  %v2257_v18 = vld [vmem:[%s2907_s1 + $0x3b0] ss:$8 sps:$4 sm:$0xff]  }
  0x72   : > { %1542 = vmatprep.mubr.bf16.mxu1 %v2323_v2  ;;  %1512 = vmatprep.subr.bf16.mxu1 %v2232_v36  ;;  %v1209_v2 = vcombine.low %v1155_v50, %v1159_v51 }
  0x74   : > { %1472 = vmatpush1.bf16.msra.mxu0 %v2206_v22  ;;  %v2778_v55 = vrot.slane %v1209_v2, %v2481_v34  ;;  %v2265_v34 = vld [vmem:[%s2907_s1 + $0x3a4] ss:$8 sps:$4 sm:$0xff]   ;;  %v1557_v2 = vsub.s32 0, %v2467_v30 }
  0x75   : > { %1473 = vmatprep.subr.bf16.mxu0 %v2211_v23  ;;  %1513 = vmatpush1.bf16.msra.mxu1 %v2230_v44  ;;  %v2276_v22 = vld [vmem:[%s2907_s1 + $0x384] ss:$8 sps:$4 sm:$0xff]   ;;  %v2274_v23 = vld [vmem:[%s2907_s1 + $0x380] ss:$8 sps:$4 sm:$0xff]  }
  0x76   : > { %1514 = vmatprep.subr.bf16.mxu1 %v2238_v48  ;;  %v1225_v57 = vcombine.high %v2778_v55, %v2778_v55 }
  0x78   : > { %1474 = vmatpush1.bf16.msra.mxu0 %v2209_v25  ;;  %1501 = vmatprep.mubr.bf16.mxu0 %v1225_v57 }
  0x79   : > { %1475 = vmatprep.subr.bf16.mxu0 %v2214_v26  ;;  %1515 = vmatpush1.bf16.msra.mxu1 %v2236_v52  ;;  %v1553_v52 = vld [vmem:[%s2908_s2] sm:$0x3] }
  0x7a   : > { %1516 = vmatprep.subr.bf16.mxu1 %v2244_v54 }
  0x7c   : > { %1476 = vmatpush1.bf16.msra.mxu0 %v2212_v35 }
  0x7d   : > { %1477 = vmatprep.subr.bf16.mxu0 %v2217_v39  ;;  %1517 = vmatpush1.bf16.msra.mxu1 %v2242_v58 }
  0x7e   : > { %1518 = vmatprep.subr.bf16.mxu1 %v2250_v60 }
  0x80   : > { %1478 = vmatpush1.bf16.msra.mxu0 %v2215_v47 }
  0x81   : > { %1479 = vmatprep.subr.bf16.mxu0 %v2220_v49  ;;  %1519 = vmatpush1.bf16.msra.mxu1 %v2248_v62 }
  0x82   : > { %1520 = vmatprep.subr.bf16.mxu1 %v2256_v0 }
  0x84   : > { %1480 = vmatpush1.bf16.msra.mxu0 %v2218_v53  ;;  %v1561_v53 = vsub.s32 1, %v2467_v30 }
  0x85   : > { %1481 = vmatprep.subr.bf16.mxu0 %v2223_v56  ;;  %1521 = vmatpush1.bf16.msra.mxu1 %v2254_v3  ;;  %v1558_v56 = vrot.slane %v1553_v52, %v1557_v2 }
  0x86   : > { %1522 = vmatprep.subr.bf16.mxu1 %v2262_v5  ;;  %v1562_v60 = vrot.slane %v1553_v52, %v1561_v53 }
  0x88   : > { %1482 = vmatpush1.bf16.msra.mxu0 %v2221_v59 }
  0x89   : > { %1483 = vmatprep.subr.bf16.mxu0 %v2229_v61  ;;  %1523 = vmatpush1.bf16.msra.mxu1 %v2260_v7 }
  0x8a   : > { %1524 = vmatprep.subr.bf16.mxu1 %v2268_v9 }
  0x8c   : > { %1484 = vmatpush1.bf16.msra.mxu0 %v2227_v63 }
  0x8d   : > { %1485 = vmatprep.subr.bf16.mxu0 %v2235_v1  ;;  %1525 = vmatpush1.bf16.msra.mxu1 %v2266_v12 }
  0x90   : > { %1486 = vmatpush2.bf16.msra.mxu0 %v2233_v4  ;;  %1543 = vmatmul.mubr.bf16.vlgmr.msra.gmra.mxu1 %v1224_v15 }
  0x91   : > { %1487 = vmatprep.subr.bf16.mxu0 %v2241_v6 }
  0x94   : > { %1488 = vmatpush2.bf16.msra.mxu0 %v2239_v8 }
  0x95   : > { %1489 = vmatprep.subr.bf16.mxu0 %v2247_v10 }
  0x98   : > { %1490 = vmatpush2.bf16.msra.mxu0 %v2245_v13 }
  0x99   : > { %1491 = vmatprep.subr.bf16.mxu0 %v2253_v14 }
  0x9c   : > { %1492 = vmatpush2.bf16.msra.mxu0 %v2251_v16 }
  0x9d   : > { %1493 = vmatprep.subr.bf16.mxu0 %v2259_v17 }
  0xa0   : > { %1494 = vmatpush2.bf16.msra.mxu0 %v2257_v18 }
  0xa1   : > { %1495 = vmatprep.subr.bf16.mxu0 %v2265_v34 }
  0xa4   : > { %1496 = vmatpush2.bf16.msra.mxu0 %v2263_v19 }
  0xa5   : > { %1497 = vmatprep.subr.bf16.mxu0 %v2271_v20 }
  0xa8   : > { %1498 = vmatpush2.bf16.msra.mxu0 %v2269_v21 }
  0xa9   : > { %1499 = vmatprep.subr.bf16.mxu0 %v2276_v22 }
  0xac   : > { %1500 = vmatpush2.bf16.msra.mxu0 %v2274_v23 }
  0xaf   : > { %1502 = vmatmul.mubr.bf16.vlgmr.msra.gmra.mxu0 %v2778_v55 }
  0xf0   : > { %v750_v24 = vpop.f32.mrf.mxu1 }
  0xf2   : > { %v752_v25 = vpop.f32.mrf.mxu1 }
  0xf4   : > { %v754_v26 = vpop.f32.mrf.mxu1 }
  0xf6   : > { %v755_v27 = vpop.f32.mrf.mxu1 }
 0x10f   : > { %v709_v28 = vpop.f32.mrf.mxu0 }
 0x110   : > { %v751_v29 = vadd.f32 %v750_v24, %v709_v28 }
 0x111   : > { %v711_v31 = vpop.f32.mrf.mxu0 }
 0x112   : > { %v753_v32 = vadd.f32 %v752_v25, %v711_v31 }
 0x113   : > { %v713_v33 = vpop.f32.mrf.mxu0 }
 0x115   : > { %v714_v35 = vpop.f32.mrf.mxu0 }
 0x12f   : > { %v1092_v36 = vpop.f32.mrf.mxu0 }
 0x130   : > { %v1051_v40 = vpop.f32.mrf.mxu1 }
 0x131   : > { %v1094_v37 = vpop.f32.mrf.mxu0  ;;  %v1052_v41 = vadd.f32 %v1051_v40, %v751_v29 }
 0x132   : > { %v1053_v42 = vpop.f32.mrf.mxu1 }
 0x133   : > { %v1096_v38 = vpop.f32.mrf.mxu0  ;;  %v1093_v43 = vadd.f32 %v1092_v36, %v1052_v41  ;;  %v1054_v44 = vadd.f32 %v1053_v42, %v753_v32 }
 0x134   : > { %v1055_v45 = vpop.f32.mrf.mxu1 }
 0x135   : > { %v1097_v39 = vpop.f32.mrf.mxu0  ;;  %v1095_v46 = vadd.f32 %v1094_v37, %v1054_v44 }
 0x136   : > { %v1056_v47 = vpop.f32.mrf.mxu1 }
 0x150   : > { %v1544_v48 = vpop.f32.mrf.mxu1 }
 0x152   : > { %v1546_v49 = vpop.f32.mrf.mxu1 }
 0x154   : > { %v1548_v50 = vpop.f32.mrf.mxu1 }
 0x156   : > { %v1549_v51 = vpop.f32.mrf.mxu1 }
 0x16f   : > { %v1503_v54 = vpop.f32.mrf.mxu0 }
 0x170   : > { %v1545_v55 = vadd.f32 %v1544_v48, %v1503_v54 }
 0x171   : > { %v1505_v57 = vpop.f32.mrf.mxu0 }
 0x172   : > { %v1551_v58 = vadd.f32 %v1545_v55, %v1093_v43  ;;  %v1547_v59 = vadd.f32 %v1546_v49, %v1505_v57 }
 0x173   : > { %v1507_v61 = vpop.f32.mrf.mxu0 }
 0x174   : > { %v1565_v62 = vadd.f32 %v1558_v56, %v1551_v58  ;;  %v1552_v63 = vadd.f32 %v1547_v59, %v1095_v46 }
 0x175   : > { %v1508_v0 = vpop.f32.mrf.mxu0 }
 0x176   : > { %v1566_v1 = vadd.f32 %v1562_v60, %v1552_v63  ;;  %v1567_v3 = vmax.f32 %v1565_v62, 0.0  ;;  %1578 = sbr.rel (%p1991_p6) target bundleno = 383 (0x17f), region = 36 }
 0x178   : > { %v1568_v4 = vmax.f32 %v1566_v1, 0.0 }
 0x17a   : > { %v1571_v5 = vcombine.low %v1567_v3, %v1568_v4  ;;  %v1572_v6 = vcombine.high %v1567_v3, %v1568_v4 }
 0x17b   : > { %v2325_v30 = vmov 0  }
 0x17c   : > { %1579 = vst [vmem:[%s2421_s26] sm:$0x77] %v2325_v30  ;;  %1580 = vst [vmem:[%s2421_s26 + $0x8] sm:$0x77] %v2325_v30 }
 0x17d   : > { %1581 = vst [vmem:[%s2421_s26 + $0x10] sm:$0x77] %v2325_v30  ;;  %1582 = vst [vmem:[%s2421_s26 + $0x18] sm:$0x77] %v2325_v30 }
 0x17e   : > { %1583 = vst [vmem:[%s2421_s26 + $0x20] sm:$0x77] %v2325_v30  ;;  %1584 = vst [vmem:[%s2421_s26 + $0x28] sm:$0x77] %v2325_v30 }
 0x17f PF: > { %v1992_v7 = vcombine.low %v1568_v4, %v1568_v4  ;;  %vm1623_vm14 = vcmask 1042432   ;;  %vm1624_vm15 = vsmask.f32 2306  ;;  %s2009_s28 = sshll.u32 %s2305_s12, 4  ;;  %vm1626_vm0 = vcmask 1046532  }
 0x180   : > { %vm1627_vm1 = vsmask.f32 6418  ;;  %v1993_v8 = vcombine.high %v1568_v4, %v1568_v4  ;;  %vm2884_vm2 = vmand %vm1623_vm14, %vm1624_vm15  ;;  %s1679_s29 = scalar_lea.vmem %s2421_s26, %s2009_s28 }
 0x181   : > { %v2007_v9 = vpack.c.bf16 %v1992_v7, %v1571_v5  ;;  %vm1628_vm3 = vmand %vm1626_vm0, %vm1627_vm1 }
 0x182   : > { %v2008_v11 = vpack.c.bf16 %v1993_v8, %v1572_v6  ;;  %vm1629_vm4 = vmor %vm1628_vm3, %vm2884_vm2 }
 0x183   : > { %v1605_v12 = vshrl.u32 %v2007_v9, 16  ;;  %v1608_v13 = vshll.u32 %v2007_v9, 16 }
 0x184   : > { %v1612_v14 = vshrl.u32 %v2008_v11, 16  ;;  %v1615_v15 = vshll.u32 %v2008_v11, 16 }
 0x185   : > { %v1607_v16 = vrot.slane %v1605_v12, 7  ;;  %v1998_v17 = vld [vmem:[%s1679_s29 + $0x8] sm:$0x77]  ;;  %v2000_v19 = vld [vmem:[%s1679_s29 + $0x10] sm:$0x77] }
 0x186   : > { %v1614_v18 = vrot.slane %v1612_v14, 7 }
 0x187   : > { %v1610_v34 = vor.u32 %v1608_v13, %v1607_v16 }
 0x188   : > { %v1617_v20 = vor.u32 %v1615_v15, %v1614_v18 }
 0x189   : > { %v1631_v21 = vsel %vm1629_vm4, %v1610_v34, %v1998_v17 }
 0x18a   : > { %1999 = vst [vmem:[%s1679_s29 + $0x8] sm:$0x77] %v1631_v21  ;;  %v1634_v22 = vsel %vm1629_vm4, %v1617_v20, %v2000_v19 }
 0x18b   : > { %2001 = vst [vmem:[%s1679_s29 + $0x10] sm:$0x77] %v1634_v22 }
 0x18c PF: > { %s13_s16 = sadd.s32 1, %s2321_s16   ;;  %s2914_s12 = smov %s2313_s14 }
 0x18d   : > { %p10_p7 = scmp.ge.s32.totalorder %s13_s16, 10   ;;  %s2915_s13 = smov %s2317_s15 }
 0x18e   : > { %s2916_s14 = smov %s2919_s17  ;;  %s2917_s15 = smov %s2923_s18 }
 0x18f   :  { %12 = sbr.rel (!%p10_p7) target bundleno = 3 (0x3), region = 72 }

// kernel: perceptual_loss_forward.15
= control target key start
LH: loop header
LB: loop body
LE: loop exit
PB: predicated region body
PF: predicated region fallthrough
CT: control target
= control target key end

     0   :  { %s564_s9 = smov 0   ;;  %s566_s10 = smov 0   ;;  %s640_s0 = inlined_call_operand.vmem [shape: bf16[2,4,4,256], index: 0, kind: input, shape index: {}]   ;;  %s641_s1 = inlined_call_operand.vmem [shape: bf16[2,4,4,256], index: 1, kind: input, shape index: {}]   ;;  %s642_s2 = inlined_call_operand.vmem [shape: f32[2,2,128], index: 2, kind: output, shape index: {}]  }
   0x1   :  { %s568_s11 = smov 0   ;;  %s570_s12 = smov 0  }
   0x2   :  { %s572_s13 = smov 0  }
   0x3 LB: > { %s21_s14 = sadd.s32 1, %s538_s11  ;;  %s24_s15 = sadd.s32 1, %s542_s12  ;;  %s546_s13 = sphi %s572_s13, %s12_s13   ;;  %s542_s12 = sphi %s570_s12, %s646_s12   ;;  %s538_s11 = sphi %s568_s11, %s645_s11   ;;  %s534_s10 = sphi %s566_s10, %s644_s10   ;;  %s530_s9 = sphi %s564_s9, %s643_s9  }
   0x4   : > { %p22_p0 = scmp.ge.s32.totalorder %s21_s14, 2  ;;  %p439_p1 = scmp.ge.s32.totalorder %s546_s13, 1 }
   0x5   : > { %p150_p2 = scmp.lt.s32.totalorder %s546_s13, 5 }
   0x6   : > { %s648_s14 = smov (%p22_p0, %s21_s14), 0  ;;  %s650_s15 = smov (!%p22_p0, %s24_s15), %s542_s12 }
   0x7   : > { %p151_p3 = pnand %p439_p1, %p150_p2  ;;  %p26_p4 = scmp.ge.s32.totalorder %s650_s15, 2 }
   0x8   : > { %s440_s16 = sshll.u32 (!%p151_p3), %s530_s9, 1  ;;  %p187_p5 = scmp.lt.s32.totalorder (!%p151_p3), %s534_s10, 1 }
   0x9   : > { %s652_s15 = smov (%p26_p4, %s650_s15), 0  ;;  %154 = sbr.rel (%p151_p3) target bundleno = 355 (0x163), region = 28 }
   0xa   : > { %p189_p6 = scmp.lt.s32.totalorder (!%p151_p3), %s440_s16, 3 }
   0xe   : > { %s654_s10 = smov (!%p187_p5, %s534_s10), 1  ;;  %s656_s16 = smov (!%p189_p6, %s440_s16), 3  ;;  %vm228_vm0 = vcmask 1043456   ;;  %v548_v32 = vmov 839922192   ;;  %v266_v34 = vlaneseq }
   0xf   : > { %s442_s17 = sshll.u32 %s654_s10, 3  ;;  %s441_s18 = sshll.u32 %s656_s16, 1  ;;  %v264_v33 = vunpack.c.l.s4 %v548_v32 }
  0x10   : > { %s193_s19 = sadd.s32 %s442_s17, %s441_s18  ;;  %v267_v38 = vshrl.u32 %v266_v34, 7  ;;  %s448_s27 = sshll.u32 %s654_s10, 1 }
  0x11   : > { %s443_s20 = sshll.u32 %s193_s19, 1  ;;  %v265_v37 = vunpack.c.0.s8 %v264_v33  ;;  %s211_s30 = scalar_lea.vmem %s642_s2, %s448_s27 }
  0x12   : > { %s206_s23 = scalar_lea.vmem %s641_s1, %s443_s20  ;;  %s195_s26 = scalar_lea.vmem %s640_s0, %s443_s20 }
  0x13   : > { %v456_v0 = vld [vmem:[%s206_s23] sm:$0xff]   ;;  %v268_v39 = vsub.s32 %v265_v37, %v267_v38  ;;  %s338_s3 = scalar_lea.vmem %s211_s30, %s530_s9 }
  0x14   : > { %v452_v1 = vld [vmem:[%s195_s26] sm:$0xff]   ;;  %v457_v2 = vunpack.c.l.bf16 %v456_v0  ;;  %v458_v4 = vunpack.c.h.bf16 %v456_v0 }
  0x15   : > { %v453_v3 = vunpack.c.l.bf16 %v452_v1  ;;  %v454_v5 = vunpack.c.h.bf16 %v452_v1 }
  0x16   : > { %v239_v6 = vmul.f32 %v457_v2, %v457_v2  ;;  %v240_v8 = vmul.f32 %v458_v4, %v458_v4 }
  0x17   : > { %v220_v7 = vmul.f32 %v453_v3, %v453_v3  ;;  %v221_v9 = vmul.f32 %v454_v5, %v454_v5 }
  0x18   : > { %v243_v10 = vcombine.high %v239_v6, %v239_v6  ;;  %v247_v11 = vsel %vm228_vm0, %v239_v6, 0.0  ;;  %v244_v14 = vcombine.high %v240_v8, %v240_v8  ;;  %v252_v18 = vsel %vm228_vm0, %v240_v8, 0.0 }
  0x19   : > { %v224_v12 = vcombine.high %v220_v7, %v220_v7  ;;  %v229_v13 = vsel %vm228_vm0, %v220_v7, 0.0  ;;  %v225_v15 = vcombine.high %v221_v9, %v221_v9  ;;  %v234_v19 = vsel %vm228_vm0, %v221_v9, 0.0 }
  0x1a   : > { %v248_v16 = vsel %vm228_vm0, %v243_v10, 0.0  ;;  %v253_v22 = vsel %vm228_vm0, %v244_v14, 0.0 }
  0x1b   : > { %v230_v17 = vsel %vm228_vm0, %v224_v12, 0.0  ;;  %v249_v20 = vadd.f32 %v248_v16, %v247_v11  ;;  %v235_v23 = vsel %vm228_vm0, %v225_v15, 0.0  ;;  %v254_v24 = vadd.f32 %v253_v22, %v252_v18 }
  0x1c   : > { %v231_v21 = vadd.f32 %v230_v17, %v229_v13  ;;  %v236_v25 = vadd.f32 %v235_v23, %v234_v19 }
  0x1d   : > { %250 = vadd.xlane.f32.xlu1 %v249_v20 }
  0x1e   : > { %232 = vadd.xlane.f32.xlu0 %v231_v21 }
  0x21   : > { %255 = vadd.xlane.f32.xlu1 %v254_v24 }
  0x22   : > { %237 = vadd.xlane.f32.xlu0 %v236_v25 }
  0xa6   : > { %v251_v26 = vpop.xlane.xlu1 %250 }
  0xa7   : > { %v233_v27 = vpop.xlane.xlu0 %232  ;;  %v281_v28 = vadd.f32 1e-20, %v251_v26 }
  0xa8   : > { %v257_v29 = vadd.f32 1e-20, %v233_v27 }
  0xa9   : > { %500 = vrsqrt.f32 %v281_v28 }
  0xaa   : > { %502 = vrsqrt.f32 %v257_v29  ;;  %v256_v30 = vpop.xlane.xlu1 %255 }
  0xab   : > { %v238_v31 = vpop.xlane.xlu0 %237  ;;  %v282_v35 = vadd.f32 1e-20, %v256_v30 }
  0xac   : > { %v258_v36 = vadd.f32 1e-20, %v238_v31 }
  0xad   : > { %504 = vrsqrt.f32 %v282_v35 }
  0xae   : > { %506 = vrsqrt.f32 %v258_v36 }
  0xb6   : > { %v501_v40 = vpop.eup %500 }
  0xb7   : > { %v503_v41 = vpop.eup %502  ;;  %v293_v42 = vrot.slane %v501_v40, %v268_v39 }
  0xb8   : > { %v269_v43 = vrot.slane %v503_v41, %v268_v39 }
  0xb9   : > { %v303_v44 = vmul.f32 %v457_v2, %v293_v42 }
  0xba   : > { %v505_v45 = vpop.eup %504  ;;  %v279_v46 = vmul.f32 %v453_v3, %v269_v43 }
  0xbb   : > { %v507_v47 = vpop.eup %506  ;;  %v300_v48 = vrot.slane %v505_v45, %v268_v39 }
  0xbc   : > { %v276_v49 = vrot.slane %v507_v47, %v268_v39  ;;  %v305_v50 = vsub.f32 %v279_v46, %v303_v44 }
  0xbd   : > { %v304_v51 = vmul.f32 %v458_v4, %v300_v48 }
  0xbe   : > { %v280_v52 = vmul.f32 %v454_v5, %v276_v49  ;;  %v307_v53 = vmul.f32 %v305_v50, %v305_v50 }
  0xc0   : > { %v306_v54 = vsub.f32 %v280_v52, %v304_v51  ;;  %v311_v56 = vcombine.high %v307_v53, %v307_v53  ;;  %v315_v58 = vsel %vm228_vm0, %v307_v53, 0.0 }
  0xc2   : > { %v308_v55 = vmul.f32 %v306_v54, %v306_v54  ;;  %v318_v61 = vsel %vm228_vm0, %v311_v56, 0.0 }
  0xc4   : > { %v312_v57 = vcombine.high %v308_v55, %v308_v55  ;;  %v316_v59 = vsel %vm228_vm0, %v308_v55, 0.0 }
  0xc5   : > { %v317_v60 = vadd.f32 %v316_v59, %v315_v58 }
  0xc6   : > { %v319_v62 = vsel %vm228_vm0, %v312_v57, 0.0 }
  0xc7   : > { %v320_v63 = vadd.f32 %v319_v62, %v318_v61  ;;  %v321_v0 = vsel %vm228_vm0, %v317_v60, 0.0 }
  0xc8   : > { %v322_v1 = vrot.slane %v321_v0, 4 }
  0xc9   : > { %v328_v2 = vsel %vm228_vm0, %v320_v63, 0.0 }
  0xca   : > { %v323_v3 = vadd.f32 %v322_v1, %v321_v0  ;;  %v329_v4 = vrot.slane %v328_v2, 4 }
  0xcc   : > { %v324_v5 = vrot.slane %v323_v3, 2  ;;  %v330_v6 = vadd.f32 %v329_v4, %v328_v2 }
  0xce   : > { %v325_v7 = vadd.f32 %v324_v5, %v323_v3  ;;  %v331_v8 = vrot.slane %v330_v6, 2 }
  0xd0   : > { %v326_v9 = vrot.slane %v325_v7, 1  ;;  %v332_v10 = vadd.f32 %v331_v8, %v330_v6 }
  0xd2   : > { %v333_v11 = vrot.slane %v332_v10, 1  ;;  %v327_v12 = vadd.f32 %v326_v9, %v325_v7 }
  0xd4   : > { %v334_v13 = vadd.f32 %v333_v11, %v332_v10 }
  0xd6   : > { %v335_v14 = vadd.f32 %v334_v13, %v327_v12 }
  0xd8   : > { %336 = vadd.xlane.f32.xlu0 %v335_v14 }
 0x161   : > { %v337_v15 = vpop.xlane.xlu0 %336 }
 0x162   : > { %339 = vst [vmem:[%s338_s3] sm:$0x1] %v337_v15 }
 0x163 PF: > { %s12_s13 = sadd.s32 1, %s546_s13   ;;  %s643_s9 = smov %s538_s11 }
 0x164   : > { %p9_p7 = scmp.ge.s32.totalorder %s12_s13, 6   ;;  %s644_s10 = smov %s542_s12 }
 0x165   : > { %s645_s11 = smov %s648_s14  ;;  %s646_s12 = smov %s652_s15 }
 0x166   :  { %11 = sbr.rel (!%p9_p7) target bundleno = 3 (0x3), region = 62 }

// kernel: perceptual_loss_forward.14
= control target key start
LH: loop header
LB: loop body
LE: loop exit
PB: predicated region body
PF: predicated region fallthrough
CT: control target
= control target key end

     0   :  { %s4030_s12 = smov 0   ;;  %s4032_s13 = smov 0   ;;  %s5079_s0 = inlined_call_operand.vmem [shape: bf16[4,6,6,256], index: 0, kind: input, shape index: {}]   ;;  %s5080_s1 = inlined_call_operand.vmem [shape: bf16[3,768,256], index: 1, kind: input, shape index: {}]   ;;  %s5081_s2 = inlined_call_operand.vmem [shape: f32[1,256], index: 2, kind: input, shape index: {}]   ;;  %s5082_s3 = inlined_call_operand.vmem [shape: bf16[4,4,4,256], index: 3, kind: output, shape index: {}]  }
   0x1   :  { %s4034_s14 = smov 0   ;;  %s4036_s15 = smov 0  }
   0x2   :  { %s4038_s16 = smov 0  }
   0x3 LB: > { %s22_s17 = sadd.s32 1, %s3999_s14  ;;  %s25_s18 = sadd.s32 1, %s4003_s15  ;;  %s4007_s16 = sphi %s4038_s16, %s13_s16   ;;  %s4003_s15 = sphi %s4036_s15, %s5092_s15   ;;  %s3999_s14 = sphi %s4034_s14, %s5091_s14   ;;  %s3995_s13 = sphi %s4032_s13, %s5090_s13   ;;  %s3991_s12 = sphi %s4030_s12, %s5089_s12  }
   0x4   : > { %p23_p0 = scmp.ge.s32.totalorder %s22_s17, 2  ;;  %p2918_p1 = scmp.ge.s32.totalorder %s4007_s16, 1 }
   0x5   : > { %p151_p2 = scmp.lt.s32.totalorder %s4007_s16, 9 }
   0x6   : > { %s5094_s17 = smov (%p23_p0, %s22_s17), 0  ;;  %s5096_s18 = smov (!%p23_p0, %s25_s18), %s4003_s15 }
   0x7   : > { %p152_p3 = pnand %p2918_p1, %p151_p2  ;;  %p27_p4 = scmp.ge.s32.totalorder %s5096_s18, 4 }
   0x8   : > { %p180_p5 = scmp.lt.s32.totalorder (!%p152_p3), %s3995_s13, 3  ;;  %s3474_s27 = sshll.u32 (!%p152_p3), %s3991_s12, 4 }
   0x9   : > { %s5098_s18 = smov (%p27_p4, %s5096_s18), 0  ;;  %155 = sbr.rel (%p152_p3) target bundleno = 544 (0x220), region = 32 }
   0xa   : > { %s2920_s21 = sshll.u32 (!%p152_p3), %s3991_s12, 1 }
   0xb   : > { %p188_p6 = scmp.lt.s32.totalorder (!%p152_p3), %s2920_s21, 3 }
   0xe   : > { %v3537_v0 = vld [vmem:[%s5080_s1 + $0x374] ss:$8 sps:$4 sm:$0xff]   ;;  %v3541_v2 = vld [vmem:[%s5080_s1 + $0x370] ss:$8 sps:$4 sm:$0xff]   ;;  %v3543_v4 = vld [vmem:[%s5080_s1 + $0x364] ss:$8 sps:$4 sm:$0xff]   ;;  %v645_v55 = vlaneseq }
   0xf   : > { %v3539_v1 = vld [vmem:[%s5080_s1 + $0x474] ss:$8 sps:$4 sm:$0xff]   ;;  %1153 = vmatprep.subr.bf16.mxu0 %v3537_v0  ;;  %v3542_v3 = vld [vmem:[%s5080_s1 + $0x470] ss:$8 sps:$4 sm:$0xff]   ;;  %v3545_v5 = vld [vmem:[%s5080_s1 + $0x464] ss:$8 sps:$4 sm:$0xff]  }
  0x10   : > { %1194 = vmatprep.subr.bf16.mxu1 %v3539_v1  ;;  %1154 = vmatpush1.bf16.msra.mxu0 %v3541_v2  ;;  %v3547_v6 = vld [vmem:[%s5080_s1 + $0x360] ss:$8 sps:$4 sm:$0xff]   ;;  %v3549_v8 = vld [vmem:[%s5080_s1 + $0x354] ss:$8 sps:$4 sm:$0xff]   ;;  %v3553_v10 = vld [vmem:[%s5080_s1 + $0x350] ss:$8 sps:$4 sm:$0xff]  }
  0x11   : > { %1195 = vmatpush1.bf16.msra.mxu1 %v3542_v3  ;;  %1155 = vmatprep.subr.bf16.mxu0 %v3543_v4  ;;  %v3548_v7 = vld [vmem:[%s5080_s1 + $0x460] ss:$8 sps:$4 sm:$0xff]   ;;  %v3551_v9 = vld [vmem:[%s5080_s1 + $0x454] ss:$8 sps:$4 sm:$0xff]   ;;  %v3554_v11 = vld [vmem:[%s5080_s1 + $0x450] ss:$8 sps:$4 sm:$0xff]  }
  0x12   : > { %1196 = vmatprep.subr.bf16.mxu1 %v3545_v5  ;;  %v3555_v12 = vld [vmem:[%s5080_s1 + $0x344] ss:$8 sps:$4 sm:$0xff]   ;;  %v3559_v14 = vld [vmem:[%s5080_s1 + $0x340] ss:$8 sps:$4 sm:$0xff]   ;;  %v3561_v16 = vld [vmem:[%s5080_s1 + $0x334] ss:$8 sps:$4 sm:$0xff]  }
  0x13   : > { %v3557_v13 = vld [vmem:[%s5080_s1 + $0x444] ss:$8 sps:$4 sm:$0xff]   ;;  %v3560_v15 = vld [vmem:[%s5080_s1 + $0x440] ss:$8 sps:$4 sm:$0xff]   ;;  %v3563_v17 = vld [vmem:[%s5080_s1 + $0x434] ss:$8 sps:$4 sm:$0xff]  }
  0x14   : > { %1156 = vmatpush1.bf16.msra.mxu0 %v3547_v6  ;;  %v3565_v18 = vld [vmem:[%s5080_s1 + $0x330] ss:$8 sps:$4 sm:$0xff]   ;;  %v3567_v20 = vld [vmem:[%s5080_s1 + $0x324] ss:$8 sps:$4 sm:$0xff]   ;;  %v3571_v22 = vld [vmem:[%s5080_s1 + $0x320] ss:$8 sps:$4 sm:$0xff]  }
  0x15   : > { %1197 = vmatpush1.bf16.msra.mxu1 %v3548_v7  ;;  %1157 = vmatprep.subr.bf16.mxu0 %v3549_v8  ;;  %v3566_v19 = vld [vmem:[%s5080_s1 + $0x430] ss:$8 sps:$4 sm:$0xff]   ;;  %v3569_v21 = vld [vmem:[%s5080_s1 + $0x424] ss:$8 sps:$4 sm:$0xff]   ;;  %v3572_v23 = vld [vmem:[%s5080_s1 + $0x420] ss:$8 sps:$4 sm:$0xff]  }
  0x16   : > { %1198 = vmatprep.subr.bf16.mxu1 %v3551_v9  ;;  %v3573_v24 = vld [vmem:[%s5080_s1 + $0x314] ss:$8 sps:$4 sm:$0xff]   ;;  %v3577_v26 = vld [vmem:[%s5080_s1 + $0x310] ss:$8 sps:$4 sm:$0xff]   ;;  %v3579_v28 = vld [vmem:[%s5080_s1 + $0x304] ss:$8 sps:$4 sm:$0xff]  }
  0x17   : > { %v3575_v25 = vld [vmem:[%s5080_s1 + $0x414] ss:$8 sps:$4 sm:$0xff]   ;;  %v3578_v27 = vld [vmem:[%s5080_s1 + $0x410] ss:$8 sps:$4 sm:$0xff]   ;;  %v3581_v29 = vld [vmem:[%s5080_s1 + $0x404] ss:$8 sps:$4 sm:$0xff]  }
  0x18   : > { %1158 = vmatpush1.bf16.msra.mxu0 %v3553_v10  ;;  %v3583_v30 = vld [vmem:[%s5080_s1 + $0x300] ss:$8 sps:$4 sm:$0xff]   ;;  %v3585_v32 = vld [vmem:[%s5080_s1 + $0x3f4] ss:$8 sps:$4 sm:$0xff]   ;;  %s5100_s13 = smov (!%p180_p5, %s3995_s13), 3  ;;  %vm2002_vm7 = vcmask 1040384  }
  0x19   : > { %1199 = vmatpush1.bf16.msra.mxu1 %v3554_v11  ;;  %1159 = vmatprep.subr.bf16.mxu0 %v3555_v12  ;;  %v3584_v31 = vld [vmem:[%s5080_s1 + $0x400] ss:$8 sps:$4 sm:$0xff]   ;;  %v3587_v33 = vld [vmem:[%s5080_s1 + $0x4f4] ss:$8 sps:$4 sm:$0xff]   ;;  %v3589_v34 = vld [vmem:[%s5080_s1 + $0x3f0] ss:$8 sps:$4 sm:$0xff]  }
  0x1a   : > { %1200 = vmatprep.subr.bf16.mxu1 %v3557_v13  ;;  %v3590_v35 = vld [vmem:[%s5080_s1 + $0x4f0] ss:$8 sps:$4 sm:$0xff]   ;;  %v3591_v36 = vld [vmem:[%s5080_s1 + $0x3e4] ss:$8 sps:$4 sm:$0xff]   ;;  %s3495_s8 = smul.u32 48, %s5100_s13  ;;  %v4253_v11 = vshrl.u32 %v645_v55, 7 }
  0x1b   : > { %v3593_v37 = vld [vmem:[%s5080_s1 + $0x4e4] ss:$8 sps:$4 sm:$0xff]   ;;  %v3595_v38 = vld [vmem:[%s5080_s1 + $0x3e0] ss:$8 sps:$4 sm:$0xff]   ;;  %v3597_v40 = vld [vmem:[%s5080_s1 + $0x3d4] ss:$8 sps:$4 sm:$0xff]  }
  0x1c   : > { %1160 = vmatpush1.bf16.msra.mxu0 %v3559_v14  ;;  %v3596_v39 = vld [vmem:[%s5080_s1 + $0x4e0] ss:$8 sps:$4 sm:$0xff]   ;;  %v3599_v41 = vld [vmem:[%s5080_s1 + $0x4d4] ss:$8 sps:$4 sm:$0xff]   ;;  %s184_s26 = scalar_lea.vmem %s5079_s0, %s3495_s8  ;;  %v3601_v42 = vld [vmem:[%s5080_s1 + $0x3d0] ss:$8 sps:$4 sm:$0xff]  }
  0x1d   : > { %1201 = vmatpush1.bf16.msra.mxu1 %v3560_v15  ;;  %1161 = vmatprep.subr.bf16.mxu0 %v3561_v16  ;;  %v3602_v43 = vld [vmem:[%s5080_s1 + $0x4d0] ss:$8 sps:$4 sm:$0xff]   ;;  %v3603_v44 = vld [vmem:[%s5080_s1 + $0x3c4] ss:$8 sps:$4 sm:$0xff]   ;;  %s4208_s7 = scalar_lea.vmem %s184_s26, %s3474_s27  ;;  %vm480_vm0 = vsmask.f32 1280 }
  0x1e   : > { %1202 = vmatprep.subr.bf16.mxu1 %v3563_v17  ;;  %v3605_v45 = vld [vmem:[%s5080_s1 + $0x4c4] ss:$8 sps:$4 sm:$0xff]   ;;  %vm481_vm1 = vsmask.f32 3336  ;;  %v3607_v46 = vld [vmem:[%s5080_s1 + $0x3c0] ss:$8 sps:$4 sm:$0xff]  }
  0x1f   : > { %v3608_v47 = vld [vmem:[%s5080_s1 + $0x4c0] ss:$8 sps:$4 sm:$0xff]   ;;  %v3609_v48 = vld [vmem:[%s5080_s1 + $0x3b4] ss:$8 sps:$4 sm:$0xff]   ;;  %v3613_v56 = vld [vmem:[%s5080_s1 + $0x3b0] ss:$8 sps:$4 sm:$0xff]  }
  0x20   : > { %1162 = vmatpush1.bf16.msra.mxu0 %v3565_v18  ;;  %v3483_v49 = vld.sshfl [vmem:[%s4208_s7] sm:$0x5f pattern:$0x76325410]  ;;  %v3611_v51 = vld [vmem:[%s5080_s1 + $0x4b4] ss:$8 sps:$4 sm:$0xff]   ;;  %vm4237_vm2 = vmor %vm480_vm0, %vm481_vm1 }
  0x21   : > { %1203 = vmatpush1.bf16.msra.mxu1 %v3566_v19  ;;  %1163 = vmatprep.subr.bf16.mxu0 %v3567_v20  ;;  %v3486_v50 = vld.sshfl [vmem:[%s4208_s7 + $0x8] sm:$0x5f pattern:$0x76325410]  ;;  %vm483_vm3 = vsmask.f32 5392 }
  0x22   : > { %1204 = vmatprep.subr.bf16.mxu1 %v3569_v21  ;;  %v4228_v52 = vld.sshfl [vmem:[%s4208_s7 + $0x10] sm:$0x5f pattern:$0x76325410]  ;;  %v442_v53 = vcombine.low %v3483_v49, %v3486_v50  ;;  %v443_v54 = vcombine.high %v3483_v49, %v3486_v50  ;;  %vm485_vm4 = vsmask.f32 7448  ;;  %vm484_vm5 = vmor %vm4237_vm2, %vm483_vm3 }
  0x23   : > { %v469_v57 = vcombine.low %v3486_v50, %v4228_v52  ;;  %v470_v58 = vcombine.high %v3486_v50, %v4228_v52  ;;  %v3614_v60 = vld [vmem:[%s5080_s1 + $0x4b0] ss:$8 sps:$4 sm:$0xff]   ;;  %v4009_v0 = vmov 1983009808   ;;  %v3615_v2 = vld [vmem:[%s5080_s1 + $0x3a4] ss:$8 sps:$4 sm:$0xff]   ;;  %vm4265_vm6 = vmor %vm484_vm5, %vm485_vm4 }
  0x24   : > { %1164 = vmatpush1.bf16.msra.mxu0 %v3571_v22  ;;  %v488_v61 = vshrl.u32 %v442_v53, 16  ;;  %v491_v62 = vshll.u32 %v442_v53, 16  ;;  %v497_v63 = vshll.u32 %v443_v54, 16  ;;  %v643_v1 = vunpack.c.l.s4 %v4009_v0  ;;  %v3617_v6 = vld [vmem:[%s5080_s1 + $0x4a4] ss:$8 sps:$4 sm:$0xff]   ;;  %s5102_s21 = smov (!%p188_p6, %s2920_s21), 3 }
  0x25   : > { %1205 = vmatpush1.bf16.msra.mxu1 %v3572_v23  ;;  %1165 = vmatprep.subr.bf16.mxu0 %v3573_v24  ;;  %v516_v3 = vshrl.u32 %v469_v57, 16  ;;  %v519_v4 = vshll.u32 %v469_v57, 16  ;;  %v525_v5 = vshll.u32 %v470_v58, 16  ;;  %v3619_v12 = vld [vmem:[%s5080_s1 + $0x3a0] ss:$8 sps:$4 sm:$0xff]   ;;  %v502_v55 = vshrl.u32 %v4228_v52, 16 }
  0x26   : > { %1206 = vmatprep.subr.bf16.mxu1 %v3575_v25  ;;  %v490_v7 = vrot.slane %v488_v61, 6  ;;  %v493_v8 = vrot.slane %v491_v62, 7  ;;  %v3620_v13 = vld [vmem:[%s5080_s1 + $0x4a0] ss:$8 sps:$4 sm:$0xff]   ;;  %v499_v15 = vrot.slane %v497_v63, 7  ;;  %v644_v16 = vunpack.c.0.s8 %v643_v1  ;;  %s2921_s24 = sshll.u32 %s5102_s21, 1 }
  0x27   : > { %v518_v9 = vrot.slane %v516_v3, 6  ;;  %v521_v10 = vrot.slane %v519_v4, 7  ;;  %v3621_v17 = vld [vmem:[%s5080_s1 + $0x394] ss:$8 sps:$4 sm:$0xff]   ;;  %v527_v20 = vrot.slane %v525_v5, 7  ;;  %v505_v58 = vshll.u32 %v4228_v52, 16 }
  0x28   : > { %1166 = vmatpush1.bf16.msra.mxu0 %v3577_v26  ;;  %v494_v14 = vor.u32 %v493_v8, %v490_v7  ;;  %v3623_v21 = vld [vmem:[%s5080_s1 + $0x494] ss:$8 sps:$4 sm:$0xff]   ;;  %v3625_v24 = vld [vmem:[%s5080_s1 + $0x390] ss:$8 sps:$4 sm:$0xff]   ;;  %v4278_v26 = vsub.s32 %v644_v16, %v4253_v11  ;;  %v3656_v53 = vld [vmem:[%s5080_s1 + $0x44] ss:$8 sps:$4 sm:$0xff]   ;;  %v452_v61 = vcombine.high %v4228_v52, %v4228_v52 }
  0x29   : > { %1207 = vmatpush1.bf16.msra.mxu1 %v3578_v27  ;;  %1167 = vmatprep.subr.bf16.mxu0 %v3579_v28  ;;  %v522_v19 = vor.u32 %v521_v10, %v518_v9  ;;  %v3626_v27 = vld [vmem:[%s5080_s1 + $0x490] ss:$8 sps:$4 sm:$0xff]   ;;  %v3627_v28 = vld [vmem:[%s5080_s1 + $0x384] ss:$8 sps:$4 sm:$0xff]   ;;  %v3651_v54 = vld [vmem:[%s5080_s1 + $0x540] ss:$8 sps:$4 sm:$0xff]  }
  0x2a   : > { %1208 = vmatprep.subr.bf16.mxu1 %v3581_v29  ;;  %v495_v22 = vrot.slane %v494_v14, 2  ;;  %v3645_v49 = vld [vmem:[%s5080_s1 + $0x550] ss:$8 sps:$4 sm:$0xff]   ;;  %v3659_v57 = vld [vmem:[%s5080_s1 + $0x534] ss:$8 sps:$4 sm:$0xff]   ;;  %v504_v62 = vrot.slane %v502_v55, 6 }
  0x2b   : > { %v523_v23 = vrot.slane %v522_v19, 2  ;;  %v3648_v50 = vld [vmem:[%s5080_s1 + $0x50] ss:$8 sps:$4 sm:$0xff]   ;;  %v3662_v59 = vld [vmem:[%s5080_s1 + $0x34] ss:$8 sps:$4 sm:$0xff]   ;;  %v507_v1 = vrot.slane %v505_v58, 7 }
  0x2c   : > { %1168 = vmatpush1.bf16.msra.mxu0 %v3583_v30  ;;  %v500_v25 = vsel %vm4265_vm6, %v495_v22, %v499_v15  ;;  %v3629_v30 = vld [vmem:[%s5080_s1 + $0x484] ss:$8 sps:$4 sm:$0xff]   ;;  %v3660_v63 = vld [vmem:[%s5080_s1 + $0x30] ss:$8 sps:$4 sm:$0xff]   ;;  %v3663_v52 = vld [vmem:[%s5080_s1 + $0x520] ss:$8 sps:$4 sm:$0xff]  }
  0x2d   : > { %1209 = vmatpush1.bf16.msra.mxu1 %v3584_v31  ;;  %1169 = vmatprep.subr.bf16.mxu0 %v3585_v32  ;;  %v528_v29 = vsel %vm4265_vm6, %v523_v23, %v527_v20  ;;  %v3665_v0 = vld [vmem:[%s5080_s1 + $0x524] ss:$8 sps:$4 sm:$0xff]   ;;  %v511_v3 = vshll.u32 %v452_v61, 16  ;;  %v3666_v4 = vld [vmem:[%s5080_s1 + $0x20] ss:$8 sps:$4 sm:$0xff]   ;;  %vm2003_vm8 = vcmask 1042434  }
  0x2e   : > { %1210 = vmatprep.subr.bf16.mxu1 %v3587_v33  ;;  %v640_v31 = vcombine.low %v500_v25, %v528_v29  ;;  %v641_v32 = vcombine.high %v500_v25, %v528_v29  ;;  %v3631_v33 = vld [vmem:[%s5080_s1 + $0x380] ss:$8 sps:$4 sm:$0xff]   ;;  %v3671_v5 = vld [vmem:[%s5080_s1 + $0x514] ss:$8 sps:$4 sm:$0xff]   ;;  %v3669_v8 = vld [vmem:[%s5080_s1 + $0x510] ss:$8 sps:$4 sm:$0xff]  }
  0x2f   : > { %v3674_v7 = vld [vmem:[%s5080_s1 + $0x14] ss:$8 sps:$4 sm:$0xff]   ;;  %v3672_v9 = vld [vmem:[%s5080_s1 + $0x10] ss:$8 sps:$4 sm:$0xff]   ;;  %v513_v10 = vrot.slane %v511_v3, 7  ;;  %vm2004_vm9 = vmor %vm2002_vm7, %vm2003_vm8  ;;  %vm2005_vm10 = vcmask 1044484  }
  0x30   : > { %1170 = vmatpush2.bf16.msra.mxu0 %v3589_v34  ;;  %v648_v34 = vrot.slane %v640_v31, %v4278_v26  ;;  %v3488_v15 = vld.sshfl [vmem:[%s4208_s7 + $0x18] sm:$0x5f pattern:$0x76325410]  ;;  %v3678_v23 = vld [vmem:[%s5080_s1] ss:$8 sps:$4 sm:$0xff]   ;;  %vm2006_vm11 = vmor %vm2004_vm9, %vm2005_vm10 }
  0x31   : > { %1211 = vmatpush2.bf16.msra.mxu1 %v3590_v35  ;;  %1171 = vmatprep.subr.bf16.mxu0 %v3591_v36  ;;  %v655_v35 = vrot.slane %v641_v32, %v4278_v26  ;;  %v3632_v36 = vld [vmem:[%s5080_s1 + $0x480] ss:$8 sps:$4 sm:$0xff]   ;;  %v479_v16 = vcombine.high %v3488_v15, %v3488_v15  ;;  %v533_v19 = vshll.u32 %v3488_v15, 16  ;;  %v3683_v29 = vld [vmem:[%s5080_s1 + $0x5f4] ss:$8 sps:$4 sm:$0xff]   ;;  %vm2007_vm12 = vcmask 1046534  }
  0x32   : > { %1212 = vmatprep.subr.bf16.mxu1 %v3593_v37  ;;  %v3635_v37 = vld [vmem:[%s5080_s1 + $0x574] ss:$8 sps:$4 sm:$0xff]   ;;  %v3477_v20 = vld.sshfl [vmem:[%s4208_s7] sm:$0xf pattern:$0x76325410]  ;;  %vm4706_vm13 = vmor %vm2006_vm11, %vm2007_vm12 }
  0x33   : > { %v4399_v22 = vld.sshfl [vmem:[%s4208_s7 + $0x8] sm:$0xf pattern:$0x76325410]  ;;  %v535_v25 = vrot.slane %v533_v19, 7  ;;  %s2922_s25 = sshll.u32 %s5100_s13, 3 }
  0x34   : > { %1172 = vmatpush2.bf16.msra.mxu0 %v3595_v38  ;;  %v656_v38 = vcombine.high %v648_v34, %v648_v34  ;;  %v3698_v18 = vld [vmem:[%s5080_s1 + $0xd4] ss:$8 sps:$4 sm:$0xff]   ;;  %v3708_v58 = vld [vmem:[%s5080_s1 + $0xb0] ss:$8 sps:$4 sm:$0xff]   ;;  %v3711_v61 = vld [vmem:[%s5080_s1 + $0x5a0] ss:$8 sps:$4 sm:$0xff]   ;;  %s192_s12 = sadd.s32 %s2922_s25, %s2921_s24 }
  0x35   : > { %1213 = vmatpush2.bf16.msra.mxu1 %v3596_v39  ;;  %1173 = vmatprep.subr.bf16.mxu0 %v3597_v40  ;;  %v657_v39 = vcombine.high %v655_v35, %v655_v35  ;;  %v3638_v40 = vld [vmem:[%s5080_s1 + $0x74] ss:$8 sps:$4 sm:$0xff]   ;;  %v3728_v3 = vld [vmem:[%s5080_s1 + $0x84] ss:$8 sps:$4 sm:$0xff]   ;;  %v3741_v19 = vld [vmem:[%s5080_s1 + $0x150] ss:$8 sps:$4 sm:$0xff]  }
  0x36   : > { %1214 = vmatprep.subr.bf16.mxu1 %v3599_v41  ;;  %1185 = vmatprep.mubr.bf16.mxu0 %v656_v38  ;;  %v3633_v41 = vld [vmem:[%s5080_s1 + $0x570] ss:$8 sps:$4 sm:$0xff]   ;;  %v3707_v55 = vld [vmem:[%s5080_s1 + $0x5b4] ss:$8 sps:$4 sm:$0xff]   ;;  %s2923_s26 = sshll.u32 %s192_s12, 1 }
  0x37   : > { %1226 = vmatprep.mubr.bf16.mxu1 %v657_v39  ;;  %v3689_v39 = vld [vmem:[%s5080_s1 + $0x5e4] ss:$8 sps:$4 sm:$0xff]  }
  0x38   : > { %1174 = vmatpush2.bf16.msra.mxu0 %v3601_v42  ;;  %v3636_v42 = vld [vmem:[%s5080_s1 + $0x70] ss:$8 sps:$4 sm:$0xff]  }
  0x39   : > { %1215 = vmatpush2.bf16.msra.mxu1 %v3602_v43  ;;  %1175 = vmatprep.subr.bf16.mxu0 %v3603_v44  ;;  %v3641_v43 = vld [vmem:[%s5080_s1 + $0x564] ss:$8 sps:$4 sm:$0xff]  }
  0x3a   : > { %1216 = vmatprep.subr.bf16.mxu1 %v3605_v45  ;;  %v3644_v44 = vld [vmem:[%s5080_s1 + $0x64] ss:$8 sps:$4 sm:$0xff]   ;;  %v3639_v45 = vld [vmem:[%s5080_s1 + $0x560] ss:$8 sps:$4 sm:$0xff]  }
  0x3c   : > { %1176 = vmatpush2.bf16.msra.mxu0 %v3607_v46  ;;  %v3642_v46 = vld [vmem:[%s5080_s1 + $0x60] ss:$8 sps:$4 sm:$0xff]  }
  0x3d   : > { %1217 = vmatpush2.bf16.msra.mxu1 %v3608_v47  ;;  %1177 = vmatprep.subr.bf16.mxu0 %v3609_v48  ;;  %v3647_v47 = vld [vmem:[%s5080_s1 + $0x554] ss:$8 sps:$4 sm:$0xff]  }
  0x3e   : > { %1218 = vmatprep.subr.bf16.mxu1 %v3611_v51  ;;  %v3650_v48 = vld [vmem:[%s5080_s1 + $0x54] ss:$8 sps:$4 sm:$0xff]   ;;  %v3653_v51 = vld [vmem:[%s5080_s1 + $0x544] ss:$8 sps:$4 sm:$0xff]  }
  0x40   : > { %1178 = vmatpush2.bf16.msra.mxu0 %v3613_v56  ;;  %v3654_v56 = vld [vmem:[%s5080_s1 + $0x40] ss:$8 sps:$4 sm:$0xff]  }
  0x41   : > { %1219 = vmatpush2.bf16.msra.mxu1 %v3614_v60  ;;  %1179 = vmatprep.subr.bf16.mxu0 %v3615_v2  ;;  %v3657_v60 = vld [vmem:[%s5080_s1 + $0x530] ss:$8 sps:$4 sm:$0xff]   ;;  %v3668_v2 = vld [vmem:[%s5080_s1 + $0x24] ss:$8 sps:$4 sm:$0xff]  }
  0x42   : > { %1220 = vmatprep.subr.bf16.mxu1 %v3617_v6  ;;  %v508_v6 = vor.u32 %v507_v1, %v504_v62  ;;  %v3714_v62 = vld [vmem:[%s5080_s1 + $0xa0] ss:$8 sps:$4 sm:$0xff]   ;;  %v3717_v1 = vld [vmem:[%s5080_s1 + $0x590] ss:$8 sps:$4 sm:$0xff]  }
  0x44   : > { %1180 = vmatpush2.bf16.msra.mxu0 %v3619_v12  ;;  %v3677_v12 = vld [vmem:[%s5080_s1 + $0x504] ss:$8 sps:$4 sm:$0xff]   ;;  %v509_v14 = vrot.slane %v508_v6, 2  ;;  %v3731_v6 = vld [vmem:[%s5080_s1 + $0x174] ss:$8 sps:$4 sm:$0xff]  }
  0x45   : > { %1221 = vmatpush2.bf16.msra.mxu1 %v3620_v13  ;;  %1181 = vmatprep.subr.bf16.mxu0 %v3621_v17  ;;  %v3680_v13 = vld [vmem:[%s5080_s1 + $0x4] ss:$8 sps:$4 sm:$0xff]   ;;  %v530_v17 = vshrl.u32 %v3488_v15, 16  ;;  %v3743_v15 = vld [vmem:[%s5080_s1 + $0x154] ss:$8 sps:$4 sm:$0xff]  }
  0x46   : > { %1222 = vmatprep.subr.bf16.mxu1 %v3623_v21  ;;  %v3675_v21 = vld [vmem:[%s5080_s1 + $0x500] ss:$8 sps:$4 sm:$0xff]  }
  0x48   : > { %1182 = vmatpush2.bf16.msra.mxu0 %v3625_v24  ;;  %v532_v24 = vrot.slane %v530_v17, 6  ;;  %v3481_v17 = vld.sshfl [vmem:[%s4208_s7 + $0x10] sm:$0xf pattern:$0x76325410] }
  0x49   : > { %1223 = vmatpush2.bf16.msra.mxu1 %v3626_v27  ;;  %1183 = vmatprep.subr.bf16.mxu0 %v3627_v28  ;;  %v539_v27 = vshll.u32 %v479_v16, 16  ;;  %v3155_v28 = vcombine.low %v3477_v20, %v4399_v22  ;;  %v3746_v16 = vld [vmem:[%s5080_s1 + $0x254] ss:$8 sps:$4 sm:$0xff]   ;;  %v3156_v20 = vcombine.low %v4399_v22, %v3481_v17 }
  0x4a   : > { %1224 = vmatprep.subr.bf16.mxu1 %v3629_v30  ;;  %v3686_v30 = vld [vmem:[%s5080_s1 + $0xf4] ss:$8 sps:$4 sm:$0xff]   ;;  %v536_v31 = vor.u32 %v535_v25, %v532_v24  ;;  %v3749_v25 = vld [vmem:[%s5080_s1 + $0x144] ss:$8 sps:$4 sm:$0xff]  }
  0x4b   : > { %v541_v32 = vrot.slane %v539_v27, 7  ;;  %v3752_v27 = vld [vmem:[%s5080_s1 + $0x244] ss:$8 sps:$4 sm:$0xff]   ;;  %v4558_v22 = vrot.slane %v3156_v20, %v4278_v26 }
  0x4c   : > { %1184 = vmatpush2.bf16.msra.mxu0 %v3631_v33  ;;  %v4412_v33 = vrot.slane %v3155_v28, %v4278_v26 }
  0x4d   : > { %1225 = vmatpush2.bf16.msra.mxu1 %v3632_v36  ;;  %1235 = vmatprep.subr.bf16.mxu0 %v3635_v37  ;;  %v514_v36 = vsel %vm4265_vm6, %v509_v14, %v513_v10  ;;  %v537_v37 = vrot.slane %v536_v31, 2  ;;  %v3737_v10 = vld [vmem:[%s5080_s1 + $0x164] ss:$8 sps:$4 sm:$0xff]   ;;  %v3738_v14 = vld [vmem:[%s5080_s1 + $0x260] ss:$8 sps:$4 sm:$0xff]  }
  0x4e   : > { %1789 = vmatprep.subr.bf16.mxu1 %v3638_v40  ;;  %v1292_v38 = vcombine.high %v4412_v33, %v4412_v33  ;;  %v3692_v40 = vld [vmem:[%s5080_s1 + $0xe4] ss:$8 sps:$4 sm:$0xff]   ;;  %v3750_v31 = vld [vmem:[%s5080_s1 + $0x240] ss:$8 sps:$4 sm:$0xff]  }
  0x4f   : > { %1186 = vmatmul.mubr.bf16.vlgmr.msra.gmra.mxu0 %v648_v34  ;;  %v3681_v34 = vld [vmem:[%s5080_s1 + $0x5f0] ss:$8 sps:$4 sm:$0xff]  }
  0x50   : > { %1227 = vmatmul.mubr.bf16.vlgmr.msra.gmra.mxu1 %v655_v35  ;;  %1236 = vmatpush1.bf16.msra.mxu0 %v3633_v41  ;;  %v3684_v35 = vld [vmem:[%s5080_s1 + $0xf0] ss:$8 sps:$4 sm:$0xff]   ;;  %v542_v41 = vsel %vm4265_vm6, %v537_v37, %v541_v32  ;;  %v3761_v37 = vld [vmem:[%s5080_s1 + $0x124] ss:$8 sps:$4 sm:$0xff]  }
  0x51   : > { %1790 = vmatpush1.bf16.msra.mxu1 %v3636_v42  ;;  %1237 = vmatprep.subr.bf16.mxu0 %v3641_v43  ;;  %v658_v42 = vcombine.low %v514_v36, %v542_v41  ;;  %v3687_v43 = vld [vmem:[%s5080_s1 + $0x5e0] ss:$8 sps:$4 sm:$0xff]   ;;  %v3756_v36 = vld [vmem:[%s5080_s1 + $0x230] ss:$8 sps:$4 sm:$0xff]   ;;  %v3767_v41 = vld [vmem:[%s5080_s1 + $0x114] ss:$8 sps:$4 sm:$0xff]  }
  0x52   : > { %1791 = vmatprep.subr.bf16.mxu1 %v3644_v44  ;;  %1821 = vmatprep.mubr.bf16.mxu1 %v1292_v38  ;;  %v3690_v44 = vld [vmem:[%s5080_s1 + $0xe0] ss:$8 sps:$4 sm:$0xff]   ;;  %v3764_v38 = vld [vmem:[%s5080_s1 + $0x224] ss:$8 sps:$4 sm:$0xff]  }
  0x54   : > { %1238 = vmatpush1.bf16.msra.mxu0 %v3639_v45  ;;  %v3695_v45 = vld [vmem:[%s5080_s1 + $0x5d4] ss:$8 sps:$4 sm:$0xff]  }
  0x55   : > { %1792 = vmatpush1.bf16.msra.mxu1 %v3642_v46  ;;  %1239 = vmatprep.subr.bf16.mxu0 %v3647_v47  ;;  %v665_v46 = vrot.slane %v658_v42, %v4278_v26  ;;  %v3770_v42 = vld [vmem:[%s5080_s1 + $0x214] ss:$8 sps:$4 sm:$0xff]  }
  0x56   : > { %1793 = vmatprep.subr.bf16.mxu1 %v3650_v48  ;;  %v3693_v48 = vld [vmem:[%s5080_s1 + $0x5d0] ss:$8 sps:$4 sm:$0xff]  }
  0x57   : > { %v666_v47 = vcombine.high %v665_v46, %v665_v46 }
  0x58   : > { %1240 = vmatpush1.bf16.msra.mxu0 %v3645_v49  ;;  %v3696_v49 = vld [vmem:[%s5080_s1 + $0xd0] ss:$8 sps:$4 sm:$0xff]  }
  0x59   : > { %1794 = vmatpush1.bf16.msra.mxu1 %v3648_v50  ;;  %1241 = vmatprep.subr.bf16.mxu0 %v3653_v51  ;;  %v3701_v50 = vld [vmem:[%s5080_s1 + $0x5c4] ss:$8 sps:$4 sm:$0xff]  }
  0x5a   : > { %1795 = vmatprep.subr.bf16.mxu1 %v3656_v53  ;;  %v3704_v51 = vld [vmem:[%s5080_s1 + $0xc4] ss:$8 sps:$4 sm:$0xff]   ;;  %1267 = vmatprep.mubr.bf16.mxu0 %v666_v47  ;;  %v3699_v53 = vld [vmem:[%s5080_s1 + $0x5c0] ss:$8 sps:$4 sm:$0xff]  }
  0x5b   : > { %v3774_v47 = vld [vmem:[%s5080_s1 + $0x200] ss:$8 sps:$4 sm:$0xff]  }
  0x5c   : > { %1242 = vmatpush1.bf16.msra.mxu0 %v3651_v54  ;;  %v3702_v54 = vld [vmem:[%s5080_s1 + $0xc0] ss:$8 sps:$4 sm:$0xff]  }
  0x5d   : > { %1796 = vmatpush1.bf16.msra.mxu1 %v3654_v56  ;;  %1243 = vmatprep.subr.bf16.mxu0 %v3659_v57  ;;  %v3710_v56 = vld [vmem:[%s5080_s1 + $0xb4] ss:$8 sps:$4 sm:$0xff]   ;;  %v3705_v57 = vld [vmem:[%s5080_s1 + $0x5b0] ss:$8 sps:$4 sm:$0xff]  }
  0x5e   : > { %1797 = vmatprep.subr.bf16.mxu1 %v3662_v59  ;;  %v3713_v59 = vld [vmem:[%s5080_s1 + $0x5a4] ss:$8 sps:$4 sm:$0xff]  }
  0x60   : > { %1244 = vmatpush1.bf16.msra.mxu0 %v3657_v60  ;;  %v3716_v60 = vld [vmem:[%s5080_s1 + $0xa4] ss:$8 sps:$4 sm:$0xff]  }
  0x61   : > { %1798 = vmatpush1.bf16.msra.mxu1 %v3660_v63  ;;  %1245 = vmatprep.subr.bf16.mxu0 %v3665_v0  ;;  %v3719_v63 = vld [vmem:[%s5080_s1 + $0x594] ss:$8 sps:$4 sm:$0xff]  }
  0x62   : > { %1799 = vmatprep.subr.bf16.mxu1 %v3668_v2  ;;  %v3722_v0 = vld [vmem:[%s5080_s1 + $0x94] ss:$8 sps:$4 sm:$0xff]   ;;  %v3720_v2 = vld [vmem:[%s5080_s1 + $0x90] ss:$8 sps:$4 sm:$0xff]  }
  0x64   : > { %1246 = vmatpush1.bf16.msra.mxu0 %v3663_v52  ;;  %v3725_v52 = vld [vmem:[%s5080_s1 + $0x584] ss:$8 sps:$4 sm:$0xff]  }
  0x65   : > { %1800 = vmatpush1.bf16.msra.mxu1 %v3666_v4  ;;  %1247 = vmatprep.subr.bf16.mxu0 %v3671_v5  ;;  %v3723_v4 = vld [vmem:[%s5080_s1 + $0x580] ss:$8 sps:$4 sm:$0xff]  }
  0x66   : > { %1801 = vmatprep.subr.bf16.mxu1 %v3674_v7  ;;  %v3726_v5 = vld [vmem:[%s5080_s1 + $0x80] ss:$8 sps:$4 sm:$0xff]   ;;  %v3734_v7 = vld [vmem:[%s5080_s1 + $0x274] ss:$8 sps:$4 sm:$0xff]  }
  0x68   : > { %1248 = vmatpush1.bf16.msra.mxu0 %v3669_v8  ;;  %v3729_v8 = vld [vmem:[%s5080_s1 + $0x170] ss:$8 sps:$4 sm:$0xff]  }
  0x69   : > { %1802 = vmatpush1.bf16.msra.mxu1 %v3672_v9  ;;  %1249 = vmatprep.subr.bf16.mxu0 %v3677_v12  ;;  %v3732_v9 = vld [vmem:[%s5080_s1 + $0x270] ss:$8 sps:$4 sm:$0xff]   ;;  %v3740_v12 = vld [vmem:[%s5080_s1 + $0x264] ss:$8 sps:$4 sm:$0xff]  }
  0x6a   : > { %1803 = vmatprep.subr.bf16.mxu1 %v3680_v13  ;;  %v3735_v13 = vld [vmem:[%s5080_s1 + $0x160] ss:$8 sps:$4 sm:$0xff]  }
  0x6c   : > { %1250 = vmatpush1.bf16.msra.mxu0 %v3675_v21  ;;  %v3482_v21 = vld.sshfl [vmem:[%s4208_s7 + $0x18] sm:$0xf pattern:$0x76325410] }
  0x6d   : > { %1804 = vmatpush1.bf16.msra.mxu1 %v3678_v23  ;;  %1251 = vmatprep.subr.bf16.mxu0 %v3683_v29  ;;  %v3744_v23 = vld [vmem:[%s5080_s1 + $0x250] ss:$8 sps:$4 sm:$0xff]   ;;  %v1294_v24 = vcombine.low %v3481_v17, %v3482_v21  ;;  %v3747_v29 = vld [vmem:[%s5080_s1 + $0x140] ss:$8 sps:$4 sm:$0xff]  }
  0x6e   : > { %1805 = vmatprep.subr.bf16.mxu1 %v3686_v30  ;;  %v1293_v30 = vcombine.high %v4558_v22, %v4558_v22 }
  0x6f   : > { %v4561_v28 = vrot.slane %v1294_v24, %v4278_v26  ;;  %v3816_v24 = vld [vmem:[%s5080_s1 + $0x290] ss:$8 sps:$4 sm:$0xff]  }
  0x70   : > { %1252 = vmatpush2.bf16.msra.mxu0 %v3681_v34  ;;  %v3758_v34 = vld [vmem:[%s5080_s1 + $0x234] ss:$8 sps:$4 sm:$0xff]  }
  0x71   : > { %1806 = vmatpush2.bf16.msra.mxu1 %v3684_v35  ;;  %1253 = vmatprep.subr.bf16.mxu0 %v3689_v39  ;;  %v1302_v32 = vcombine.high %v4561_v28, %v4561_v28  ;;  %v3753_v35 = vld [vmem:[%s5080_s1 + $0x130] ss:$8 sps:$4 sm:$0xff]   ;;  %v3759_v39 = vld [vmem:[%s5080_s1 + $0x120] ss:$8 sps:$4 sm:$0xff]  }
  0x72   : > { %1807 = vmatprep.subr.bf16.mxu1 %v3692_v40  ;;  %v3762_v40 = vld [vmem:[%s5080_s1 + $0x220] ss:$8 sps:$4 sm:$0xff]  }
  0x74   : > { %1254 = vmatpush2.bf16.msra.mxu0 %v3687_v43  ;;  %v3765_v43 = vld [vmem:[%s5080_s1 + $0x110] ss:$8 sps:$4 sm:$0xff]  }
  0x75   : > { %1808 = vmatpush2.bf16.msra.mxu1 %v3690_v44  ;;  %1255 = vmatprep.subr.bf16.mxu0 %v3695_v45  ;;  %v3768_v44 = vld [vmem:[%s5080_s1 + $0x210] ss:$8 sps:$4 sm:$0xff]   ;;  %v3773_v45 = vld [vmem:[%s5080_s1 + $0x104] ss:$8 sps:$4 sm:$0xff]  }
  0x76   : > { %1809 = vmatprep.subr.bf16.mxu1 %v3698_v18  ;;  %v3776_v18 = vld [vmem:[%s5080_s1 + $0x204] ss:$8 sps:$4 sm:$0xff]  }
  0x78   : > { %1256 = vmatpush2.bf16.msra.mxu0 %v3693_v48  ;;  %v3779_v48 = vld [vmem:[%s5080_s1 + $0x1f4] ss:$8 sps:$4 sm:$0xff]  }
  0x79   : > { %1810 = vmatpush2.bf16.msra.mxu1 %v3696_v49  ;;  %1257 = vmatprep.subr.bf16.mxu0 %v3701_v50  ;;  %v3782_v49 = vld [vmem:[%s5080_s1 + $0x2f4] ss:$8 sps:$4 sm:$0xff]   ;;  %v3777_v50 = vld [vmem:[%s5080_s1 + $0x1f0] ss:$8 sps:$4 sm:$0xff]  }
  0x7a   : > { %1811 = vmatprep.subr.bf16.mxu1 %v3704_v51  ;;  %v3780_v51 = vld [vmem:[%s5080_s1 + $0x2f0] ss:$8 sps:$4 sm:$0xff]  }
  0x7c   : > { %1258 = vmatpush2.bf16.msra.mxu0 %v3699_v53  ;;  %v3785_v53 = vld [vmem:[%s5080_s1 + $0x1e4] ss:$8 sps:$4 sm:$0xff]  }
  0x7d   : > { %1812 = vmatpush2.bf16.msra.mxu1 %v3702_v54  ;;  %1259 = vmatprep.subr.bf16.mxu0 %v3707_v55  ;;  %v3788_v54 = vld [vmem:[%s5080_s1 + $0x2e4] ss:$8 sps:$4 sm:$0xff]   ;;  %v3783_v55 = vld [vmem:[%s5080_s1 + $0x1e0] ss:$8 sps:$4 sm:$0xff]  }
  0x7e   : > { %1813 = vmatprep.subr.bf16.mxu1 %v3710_v56  ;;  %v3786_v56 = vld [vmem:[%s5080_s1 + $0x2e0] ss:$8 sps:$4 sm:$0xff]  }
  0x80   : > { %1260 = vmatpush2.bf16.msra.mxu0 %v3705_v57  ;;  %v3791_v57 = vld [vmem:[%s5080_s1 + $0x1d4] ss:$8 sps:$4 sm:$0xff]  }
  0x81   : > { %1814 = vmatpush2.bf16.msra.mxu1 %v3708_v58  ;;  %1261 = vmatprep.subr.bf16.mxu0 %v3713_v59  ;;  %v3794_v58 = vld [vmem:[%s5080_s1 + $0x2d4] ss:$8 sps:$4 sm:$0xff]   ;;  %v3789_v59 = vld [vmem:[%s5080_s1 + $0x1d0] ss:$8 sps:$4 sm:$0xff]  }
  0x82   : > { %1815 = vmatprep.subr.bf16.mxu1 %v3716_v60  ;;  %v3792_v60 = vld [vmem:[%s5080_s1 + $0x2d0] ss:$8 sps:$4 sm:$0xff]  }
  0x84   : > { %1262 = vmatpush2.bf16.msra.mxu0 %v3711_v61  ;;  %v3797_v61 = vld [vmem:[%s5080_s1 + $0x1c4] ss:$8 sps:$4 sm:$0xff]  }
  0x85   : > { %1816 = vmatpush2.bf16.msra.mxu1 %v3714_v62  ;;  %1263 = vmatprep.subr.bf16.mxu0 %v3719_v63  ;;  %v3800_v62 = vld [vmem:[%s5080_s1 + $0x2c4] ss:$8 sps:$4 sm:$0xff]   ;;  %v3795_v63 = vld [vmem:[%s5080_s1 + $0x1c0] ss:$8 sps:$4 sm:$0xff]  }
  0x86   : > { %1817 = vmatprep.subr.bf16.mxu1 %v3722_v0  ;;  %v3798_v0 = vld [vmem:[%s5080_s1 + $0x2c0] ss:$8 sps:$4 sm:$0xff]  }
  0x88   : > { %1264 = vmatpush2.bf16.msra.mxu0 %v3717_v1  ;;  %v3803_v1 = vld [vmem:[%s5080_s1 + $0x1b4] ss:$8 sps:$4 sm:$0xff]  }
  0x89   : > { %1818 = vmatpush2.bf16.msra.mxu1 %v3720_v2  ;;  %1265 = vmatprep.subr.bf16.mxu0 %v3725_v52  ;;  %v3806_v2 = vld [vmem:[%s5080_s1 + $0x2b4] ss:$8 sps:$4 sm:$0xff]   ;;  %v3801_v52 = vld [vmem:[%s5080_s1 + $0x1b0] ss:$8 sps:$4 sm:$0xff]  }
  0x8a   : > { %1819 = vmatprep.subr.bf16.mxu1 %v3728_v3  ;;  %v3804_v3 = vld [vmem:[%s5080_s1 + $0x2b0] ss:$8 sps:$4 sm:$0xff]  }
  0x8c   : > { %1266 = vmatpush2.bf16.msra.mxu0 %v3723_v4  ;;  %v3809_v4 = vld [vmem:[%s5080_s1 + $0x1a4] ss:$8 sps:$4 sm:$0xff]  }
  0x8d   : > { %1820 = vmatpush2.bf16.msra.mxu1 %v3726_v5  ;;  %1830 = vmatprep.subr.bf16.mxu0 %v3731_v6  ;;  %v3812_v5 = vld [vmem:[%s5080_s1 + $0x2a4] ss:$8 sps:$4 sm:$0xff]   ;;  %v3807_v6 = vld [vmem:[%s5080_s1 + $0x1a0] ss:$8 sps:$4 sm:$0xff]  }
  0x8e   : > { %1871 = vmatprep.subr.bf16.mxu1 %v3734_v7  ;;  %v3810_v7 = vld [vmem:[%s5080_s1 + $0x2a0] ss:$8 sps:$4 sm:$0xff]  }
  0x8f   : > { %1268 = vmatmul.mubr.bf16.vlgmr.msra.gmra.mxu0 %v665_v46  ;;  %v3771_v46 = vld [vmem:[%s5080_s1 + $0x100] ss:$8 sps:$4 sm:$0xff]  }
  0x90   : > { %1822 = vmatmul.mubr.bf16.vlgmr.msra.gmra.mxu1 %v4412_v33  ;;  %1831 = vmatpush1.bf16.msra.mxu0 %v3729_v8  ;;  %v3755_v33 = vld [vmem:[%s5080_s1 + $0x134] ss:$8 sps:$4 sm:$0xff]   ;;  %v3489_v8 = vld.sshfl [vmem:[%s4208_s7] sm:$0x5a pattern:$0x76325410] }
  0x91   : > { %1872 = vmatpush1.bf16.msra.mxu1 %v3732_v9  ;;  %1832 = vmatprep.subr.bf16.mxu0 %v3737_v10  ;;  %v3492_v9 = vld.sshfl [vmem:[%s4208_s7 + $0x8] sm:$0x5a pattern:$0x76325410]  ;;  %v3815_v10 = vld [vmem:[%s5080_s1 + $0x194] ss:$8 sps:$4 sm:$0xff]  }
  0x92   : > { %1873 = vmatprep.subr.bf16.mxu1 %v3740_v12  ;;  %1862 = vmatprep.mubr.bf16.mxu0 %v1293_v30  ;;  %v4699_v12 = vld.sshfl [vmem:[%s4208_s7 + $0x10] sm:$0x5a pattern:$0x76325410] }
  0x93   : > { %1903 = vmatprep.mubr.bf16.mxu1 %v1302_v32  ;;  %v1992_v17 = vcombine.high %v3492_v9, %v4699_v12 }
  0x94   : > { %1833 = vmatpush1.bf16.msra.mxu0 %v3735_v13  ;;  %v1964_v13 = vcombine.low %v3489_v8, %v3492_v9 }
  0x95   : > { %1874 = vmatpush1.bf16.msra.mxu1 %v3738_v14  ;;  %1834 = vmatprep.subr.bf16.mxu0 %v3743_v15  ;;  %v1965_v14 = vcombine.high %v3489_v8, %v3492_v9  ;;  %v3818_v15 = vld [vmem:[%s5080_s1 + $0x294] ss:$8 sps:$4 sm:$0xff]   ;;  %v3873_v8 = vld [vmem:[%s5080_s1 + $0x6f0] ss:$8 sps:$4 sm:$0xff]  }
  0x96   : > { %1875 = vmatprep.subr.bf16.mxu1 %v3746_v16  ;;  %v1991_v16 = vcombine.low %v3492_v9, %v4699_v12  ;;  %v3269_v20 = vrot.slane %v1964_v13, 9  ;;  %v3876_v9 = vld [vmem:[%s5080_s1 + $0x7f0] ss:$8 sps:$4 sm:$0xff]   ;;  %v3884_v13 = vld [vmem:[%s5080_s1 + $0x7e4] ss:$8 sps:$4 sm:$0xff]  }
  0x97   : > { %v2011_v21 = vrot.slane %v1965_v14, 7  ;;  %v3879_v14 = vld [vmem:[%s5080_s1 + $0x6e0] ss:$8 sps:$4 sm:$0xff]  }
  0x98   : > { %1835 = vmatpush1.bf16.msra.mxu0 %v3741_v19  ;;  %v3920_v19 = vld [vmem:[%s5080_s1 + $0x784] ss:$8 sps:$4 sm:$0xff]  }
  0x99   : > { %1876 = vmatpush1.bf16.msra.mxu1 %v3744_v23  ;;  %1836 = vmatprep.subr.bf16.mxu0 %v3749_v25  ;;  %v3813_v23 = vld [vmem:[%s5080_s1 + $0x190] ss:$8 sps:$4 sm:$0xff]   ;;  %v3271_v25 = vrot.slane %v1991_v16, 9  ;;  %v2012_v30 = vsel %vm4706_vm13, %v3269_v20, %v2011_v21  ;;  %v3887_v16 = vld [vmem:[%s5080_s1 + $0x6d4] ss:$8 sps:$4 sm:$0xff]  }
  0x9a   : > { %1877 = vmatprep.subr.bf16.mxu1 %v3752_v27  ;;  %v2019_v27 = vrot.slane %v1992_v17, 7  ;;  %v3890_v17 = vld [vmem:[%s5080_s1 + $0x7d4] ss:$8 sps:$4 sm:$0xff]   ;;  %v3885_v20 = vld [vmem:[%s5080_s1 + $0x6d0] ss:$8 sps:$4 sm:$0xff]  }
  0x9b   : > { %v3888_v21 = vld [vmem:[%s5080_s1 + $0x7d0] ss:$8 sps:$4 sm:$0xff]  }
  0x9c   : > { %1837 = vmatpush1.bf16.msra.mxu0 %v3747_v29  ;;  %v3821_v29 = vld [vmem:[%s5080_s1 + $0x184] ss:$8 sps:$4 sm:$0xff]   ;;  %v2020_v32 = vsel %vm4706_vm13, %v3271_v25, %v2019_v27  ;;  %v3494_v25 = vld.sshfl [vmem:[%s4208_s7 + $0x18] sm:$0x5a pattern:$0x76325410]  ;;  %s194_s7 = scalar_lea.vmem %s5082_s3, %s2923_s26 }
  0x9d   : > { %1878 = vmatpush1.bf16.msra.mxu1 %v3750_v31  ;;  %1838 = vmatprep.subr.bf16.mxu0 %v3755_v33  ;;  %v3824_v31 = vld [vmem:[%s5080_s1 + $0x284] ss:$8 sps:$4 sm:$0xff]   ;;  %v2122_v33 = vcombine.low %v2012_v30, %v2020_v32  ;;  %v3891_v27 = vld [vmem:[%s5080_s1 + $0x6c0] ss:$8 sps:$4 sm:$0xff]  }
  0x9e   : > { %1879 = vmatprep.subr.bf16.mxu1 %v3758_v34  ;;  %v2123_v34 = vcombine.high %v2012_v30, %v2020_v32  ;;  %v3899_v30 = vld [vmem:[%s5080_s1 + $0x6b4] ss:$8 sps:$4 sm:$0xff]   ;;  %v1974_v32 = vcombine.high %v4699_v12, %v4699_v12 }
  0xa0   : > { %1839 = vmatpush1.bf16.msra.mxu0 %v3753_v35  ;;  %v3819_v35 = vld [vmem:[%s5080_s1 + $0x180] ss:$8 sps:$4 sm:$0xff]  }
  0xa1   : > { %1880 = vmatpush1.bf16.msra.mxu1 %v3756_v36  ;;  %1840 = vmatprep.subr.bf16.mxu0 %v3761_v37  ;;  %v3822_v36 = vld [vmem:[%s5080_s1 + $0x280] ss:$8 sps:$4 sm:$0xff]   ;;  %v3827_v37 = vld [vmem:[%s5080_s1 + $0x674] ss:$8 sps:$4 sm:$0xff]  }
  0xa2   : > { %1881 = vmatprep.subr.bf16.mxu1 %v3764_v38  ;;  %v3830_v38 = vld [vmem:[%s5080_s1 + $0x774] ss:$8 sps:$4 sm:$0xff]  }
  0xa4   : > { %1841 = vmatpush1.bf16.msra.mxu0 %v3759_v39  ;;  %v4739_v39 = vrot.slane %v2122_v33, %v4278_v26  ;;  %v2001_v33 = vcombine.high %v3494_v25, %v3494_v25 }
  0xa5   : > { %1882 = vmatpush1.bf16.msra.mxu1 %v3762_v40  ;;  %1842 = vmatprep.subr.bf16.mxu0 %v3767_v41  ;;  %v4742_v40 = vrot.slane %v2123_v34, %v4278_v26  ;;  %v3825_v41 = vld [vmem:[%s5080_s1 + $0x670] ss:$8 sps:$4 sm:$0xff]  }
  0xa6   : > { %1883 = vmatprep.subr.bf16.mxu1 %v3770_v42  ;;  %v3828_v42 = vld [vmem:[%s5080_s1 + $0x770] ss:$8 sps:$4 sm:$0xff]  }
  0xa7   : > { %v3897_v34 = vld [vmem:[%s5080_s1 + $0x6b0] ss:$8 sps:$4 sm:$0xff]  }
  0xa8   : > { %1843 = vmatpush1.bf16.msra.mxu0 %v3765_v43  ;;  %v3833_v43 = vld [vmem:[%s5080_s1 + $0x664] ss:$8 sps:$4 sm:$0xff]  }
  0xa9   : > { %1884 = vmatpush1.bf16.msra.mxu1 %v3768_v44  ;;  %1844 = vmatprep.subr.bf16.mxu0 %v3773_v45  ;;  %v3836_v44 = vld [vmem:[%s5080_s1 + $0x764] ss:$8 sps:$4 sm:$0xff]   ;;  %v2138_v45 = vcombine.high %v4739_v39, %v4739_v39 }
  0xaa   : > { %1885 = vmatprep.subr.bf16.mxu1 %v3776_v18  ;;  %v2139_v18 = vcombine.high %v4742_v40, %v4742_v40 }
  0xac   : > { %1845 = vmatpush1.bf16.msra.mxu0 %v3771_v46  ;;  %v3831_v46 = vld [vmem:[%s5080_s1 + $0x660] ss:$8 sps:$4 sm:$0xff]  }
  0xad   : > { %1886 = vmatpush1.bf16.msra.mxu1 %v3774_v47  ;;  %1846 = vmatprep.subr.bf16.mxu0 %v3779_v48  ;;  %v3834_v47 = vld [vmem:[%s5080_s1 + $0x760] ss:$8 sps:$4 sm:$0xff]   ;;  %v3839_v48 = vld [vmem:[%s5080_s1 + $0x654] ss:$8 sps:$4 sm:$0xff]  }
  0xae   : > { %1887 = vmatprep.subr.bf16.mxu1 %v3782_v49  ;;  %v3840_v49 = vld [vmem:[%s5080_s1 + $0x750] ss:$8 sps:$4 sm:$0xff]  }
  0xb0   : > { %1847 = vmatpush2.bf16.msra.mxu0 %v3777_v50  ;;  %v3845_v50 = vld [vmem:[%s5080_s1 + $0x644] ss:$8 sps:$4 sm:$0xff]  }
  0xb1   : > { %1888 = vmatpush2.bf16.msra.mxu1 %v3780_v51  ;;  %1848 = vmatprep.subr.bf16.mxu0 %v3785_v53  ;;  %v3848_v51 = vld [vmem:[%s5080_s1 + $0x744] ss:$8 sps:$4 sm:$0xff]   ;;  %v3843_v53 = vld [vmem:[%s5080_s1 + $0x640] ss:$8 sps:$4 sm:$0xff]  }
  0xb2   : > { %1889 = vmatprep.subr.bf16.mxu1 %v3788_v54  ;;  %v3846_v54 = vld [vmem:[%s5080_s1 + $0x740] ss:$8 sps:$4 sm:$0xff]  }
  0xb4   : > { %1849 = vmatpush2.bf16.msra.mxu0 %v3783_v55  ;;  %v3851_v55 = vld [vmem:[%s5080_s1 + $0x634] ss:$8 sps:$4 sm:$0xff]  }
  0xb5   : > { %1890 = vmatpush2.bf16.msra.mxu1 %v3786_v56  ;;  %1850 = vmatprep.subr.bf16.mxu0 %v3791_v57  ;;  %v3854_v56 = vld [vmem:[%s5080_s1 + $0x734] ss:$8 sps:$4 sm:$0xff]   ;;  %v3849_v57 = vld [vmem:[%s5080_s1 + $0x630] ss:$8 sps:$4 sm:$0xff]  }
  0xb6   : > { %1891 = vmatprep.subr.bf16.mxu1 %v3794_v58  ;;  %v3852_v58 = vld [vmem:[%s5080_s1 + $0x730] ss:$8 sps:$4 sm:$0xff]  }
  0xb8   : > { %1851 = vmatpush2.bf16.msra.mxu0 %v3789_v59  ;;  %v3857_v59 = vld [vmem:[%s5080_s1 + $0x624] ss:$8 sps:$4 sm:$0xff]  }
  0xb9   : > { %1892 = vmatpush2.bf16.msra.mxu1 %v3792_v60  ;;  %1852 = vmatprep.subr.bf16.mxu0 %v3797_v61  ;;  %v3860_v60 = vld [vmem:[%s5080_s1 + $0x724] ss:$8 sps:$4 sm:$0xff]   ;;  %v3855_v61 = vld [vmem:[%s5080_s1 + $0x620] ss:$8 sps:$4 sm:$0xff]  }
  0xba   : > { %1893 = vmatprep.subr.bf16.mxu1 %v3800_v62  ;;  %v3858_v62 = vld [vmem:[%s5080_s1 + $0x720] ss:$8 sps:$4 sm:$0xff]  }
  0xbc   : > { %1853 = vmatpush2.bf16.msra.mxu0 %v3795_v63  ;;  %v3863_v63 = vld [vmem:[%s5080_s1 + $0x614] ss:$8 sps:$4 sm:$0xff]  }
  0xbd   : > { %1894 = vmatpush2.bf16.msra.mxu1 %v3798_v0  ;;  %1854 = vmatprep.subr.bf16.mxu0 %v3803_v1  ;;  %v3866_v0 = vld [vmem:[%s5080_s1 + $0x714] ss:$8 sps:$4 sm:$0xff]   ;;  %v3861_v1 = vld [vmem:[%s5080_s1 + $0x610] ss:$8 sps:$4 sm:$0xff]  }
  0xbe   : > { %1895 = vmatprep.subr.bf16.mxu1 %v3806_v2  ;;  %v3864_v2 = vld [vmem:[%s5080_s1 + $0x710] ss:$8 sps:$4 sm:$0xff]  }
  0xc0   : > { %1855 = vmatpush2.bf16.msra.mxu0 %v3801_v52  ;;  %v3869_v52 = vld [vmem:[%s5080_s1 + $0x604] ss:$8 sps:$4 sm:$0xff]  }
  0xc1   : > { %1896 = vmatpush2.bf16.msra.mxu1 %v3804_v3  ;;  %1856 = vmatprep.subr.bf16.mxu0 %v3809_v4  ;;  %v3872_v3 = vld [vmem:[%s5080_s1 + $0x704] ss:$8 sps:$4 sm:$0xff]   ;;  %v3867_v4 = vld [vmem:[%s5080_s1 + $0x600] ss:$8 sps:$4 sm:$0xff]  }
  0xc2   : > { %1897 = vmatprep.subr.bf16.mxu1 %v3812_v5  ;;  %v3870_v5 = vld [vmem:[%s5080_s1 + $0x700] ss:$8 sps:$4 sm:$0xff]  }
  0xc4   : > { %1857 = vmatpush2.bf16.msra.mxu0 %v3807_v6  ;;  %v3875_v6 = vld [vmem:[%s5080_s1 + $0x6f4] ss:$8 sps:$4 sm:$0xff]  }
  0xc5   : > { %1898 = vmatpush2.bf16.msra.mxu1 %v3810_v7  ;;  %1858 = vmatprep.subr.bf16.mxu0 %v3815_v10  ;;  %v3878_v7 = vld [vmem:[%s5080_s1 + $0x7f4] ss:$8 sps:$4 sm:$0xff]   ;;  %v3881_v10 = vld [vmem:[%s5080_s1 + $0x6e4] ss:$8 sps:$4 sm:$0xff]  }
  0xc6   : > { %1899 = vmatprep.subr.bf16.mxu1 %v3818_v15  ;;  %v3882_v15 = vld [vmem:[%s5080_s1 + $0x7e0] ss:$8 sps:$4 sm:$0xff]  }
  0xc8   : > { %1859 = vmatpush2.bf16.msra.mxu0 %v3813_v23  ;;  %v3893_v23 = vld [vmem:[%s5080_s1 + $0x6c4] ss:$8 sps:$4 sm:$0xff]  }
  0xc9   : > { %1900 = vmatpush2.bf16.msra.mxu1 %v3816_v24  ;;  %1860 = vmatprep.subr.bf16.mxu0 %v3821_v29  ;;  %v3896_v24 = vld [vmem:[%s5080_s1 + $0x7c4] ss:$8 sps:$4 sm:$0xff]   ;;  %v3894_v29 = vld [vmem:[%s5080_s1 + $0x7c0] ss:$8 sps:$4 sm:$0xff]  }
  0xca   : > { %1901 = vmatprep.subr.bf16.mxu1 %v3824_v31  ;;  %v3902_v31 = vld [vmem:[%s5080_s1 + $0x7b4] ss:$8 sps:$4 sm:$0xff]  }
  0xcc   : > { %1861 = vmatpush2.bf16.msra.mxu0 %v3819_v35  ;;  %v3900_v35 = vld [vmem:[%s5080_s1 + $0x7b0] ss:$8 sps:$4 sm:$0xff]  }
  0xcd   : > { %1902 = vmatpush2.bf16.msra.mxu1 %v3822_v36  ;;  %2635 = vmatprep.subr.bf16.mxu0 %v3827_v37  ;;  %v3905_v36 = vld [vmem:[%s5080_s1 + $0x6a4] ss:$8 sps:$4 sm:$0xff]  }
  0xce   : > { %2676 = vmatprep.subr.bf16.mxu1 %v3830_v38  ;;  %v3908_v37 = vld [vmem:[%s5080_s1 + $0x7a4] ss:$8 sps:$4 sm:$0xff]   ;;  %v3270_v38 = vrot.slane %v4699_v12, 9  ;;  %v3914_v12 = vld [vmem:[%s5080_s1 + $0x794] ss:$8 sps:$4 sm:$0xff]  }
  0xcf   : > { %1863 = vmatmul.mubr.bf16.vlgmr.msra.gmra.mxu0 %v4558_v22  ;;  %v3842_v22 = vld [vmem:[%s5080_s1 + $0x754] ss:$8 sps:$4 sm:$0xff]  }
  0xd0   : > { %1904 = vmatmul.mubr.bf16.vlgmr.msra.gmra.mxu1 %v4561_v28  ;;  %2636 = vmatpush1.bf16.msra.mxu0 %v3825_v41  ;;  %v3837_v28 = vld [vmem:[%s5080_s1 + $0x650] ss:$8 sps:$4 sm:$0xff]   ;;  %v2015_v41 = vrot.slane %v1974_v32, 7  ;;  %v3965_v32 = vld [vmem:[%s5080_s1 + $0x894] ss:$8 sps:$4 sm:$0xff]  }
  0xd1   : > { %2677 = vmatpush1.bf16.msra.mxu1 %v3828_v42  ;;  %2637 = vmatprep.subr.bf16.mxu0 %v3833_v43  ;;  %v3272_v42 = vrot.slane %v3494_v25, 9  ;;  %v2023_v43 = vrot.slane %v2001_v33, 7  ;;  %v3954_v25 = vld [vmem:[%s5080_s1 + $0x8c0] ss:$8 sps:$4 sm:$0xff]   ;;  %v3963_v33 = vld [vmem:[%s5080_s1 + $0x890] ss:$8 sps:$4 sm:$0xff]  }
  0xd2   : > { %2678 = vmatprep.subr.bf16.mxu1 %v3836_v44  ;;  %2667 = vmatprep.mubr.bf16.mxu0 %v2138_v45  ;;  %v3903_v44 = vld [vmem:[%s5080_s1 + $0x6a0] ss:$8 sps:$4 sm:$0xff]  }
  0xd3   : > { %2708 = vmatprep.mubr.bf16.mxu1 %v2139_v18  ;;  %v3906_v45 = vld [vmem:[%s5080_s1 + $0x7a0] ss:$8 sps:$4 sm:$0xff]   ;;  %v3911_v18 = vld [vmem:[%s5080_s1 + $0x694] ss:$8 sps:$4 sm:$0xff]  }
  0xd4   : > { %2638 = vmatpush1.bf16.msra.mxu0 %v3831_v46  ;;  %v2016_v46 = vsel %vm4706_vm13, %v3270_v38, %v2015_v41 }
  0xd5   : > { %2679 = vmatpush1.bf16.msra.mxu1 %v3834_v47  ;;  %2639 = vmatprep.subr.bf16.mxu0 %v3839_v48  ;;  %v2024_v47 = vsel %vm4706_vm13, %v3272_v42, %v2023_v43  ;;  %v3909_v48 = vld [vmem:[%s5080_s1 + $0x690] ss:$8 sps:$4 sm:$0xff]  }
  0xd6   : > { %2680 = vmatprep.subr.bf16.mxu1 %v3842_v22  ;;  %v3912_v22 = vld [vmem:[%s5080_s1 + $0x790] ss:$8 sps:$4 sm:$0xff]  }
  0xd8   : > { %2640 = vmatpush1.bf16.msra.mxu0 %v3837_v28  ;;  %v2140_v28 = vcombine.low %v2016_v46, %v2024_v47 }
  0xd9   : > { %2681 = vmatpush1.bf16.msra.mxu1 %v3840_v49  ;;  %2641 = vmatprep.subr.bf16.mxu0 %v3845_v50  ;;  %v3917_v49 = vld [vmem:[%s5080_s1 + $0x684] ss:$8 sps:$4 sm:$0xff]   ;;  %v3915_v50 = vld [vmem:[%s5080_s1 + $0x680] ss:$8 sps:$4 sm:$0xff]  }
  0xda   : > { %2682 = vmatprep.subr.bf16.mxu1 %v3848_v51  ;;  %v3918_v51 = vld [vmem:[%s5080_s1 + $0x780] ss:$8 sps:$4 sm:$0xff]  }
  0xdc   : > { %2642 = vmatpush1.bf16.msra.mxu0 %v3843_v53  ;;  %v4945_v53 = vrot.slane %v2140_v28, %v4278_v26  ;;  %v3926_v26 = vld [vmem:[%s5080_s1 + $0x864] ss:$8 sps:$4 sm:$0xff]  }
  0xdd   : > { %2683 = vmatpush1.bf16.msra.mxu1 %v3846_v54  ;;  %2643 = vmatprep.subr.bf16.mxu0 %v3851_v55  ;;  %v3923_v54 = vld [vmem:[%s5080_s1 + $0x874] ss:$8 sps:$4 sm:$0xff]   ;;  %v3921_v55 = vld [vmem:[%s5080_s1 + $0x870] ss:$8 sps:$4 sm:$0xff]  }
  0xde   : > { %2684 = vmatprep.subr.bf16.mxu1 %v3854_v56  ;;  %v2148_v56 = vcombine.high %v4945_v53, %v4945_v53 }
  0xe0   : > { %2644 = vmatpush1.bf16.msra.mxu0 %v3849_v57 }
  0xe1   : > { %2685 = vmatpush1.bf16.msra.mxu1 %v3852_v58  ;;  %2645 = vmatprep.subr.bf16.mxu0 %v3857_v59 }
  0xe2   : > { %2686 = vmatprep.subr.bf16.mxu1 %v3860_v60  ;;  %v3924_v60 = vld [vmem:[%s5080_s1 + $0x860] ss:$8 sps:$4 sm:$0xff]  }
  0xe4   : > { %2646 = vmatpush1.bf16.msra.mxu0 %v3855_v61 }
  0xe5   : > { %2687 = vmatpush1.bf16.msra.mxu1 %v3858_v62  ;;  %2647 = vmatprep.subr.bf16.mxu0 %v3863_v63  ;;  %v3929_v63 = vld [vmem:[%s5080_s1 + $0x854] ss:$8 sps:$4 sm:$0xff]  }
  0xe6   : > { %2688 = vmatprep.subr.bf16.mxu1 %v3866_v0 }
  0xe8   : > { %2648 = vmatpush1.bf16.msra.mxu0 %v3861_v1 }
  0xe9   : > { %2689 = vmatpush1.bf16.msra.mxu1 %v3864_v2  ;;  %2649 = vmatprep.subr.bf16.mxu0 %v3869_v52  ;;  %v3932_v52 = vld [vmem:[%s5080_s1 + $0x844] ss:$8 sps:$4 sm:$0xff]  }
  0xea   : > { %2690 = vmatprep.subr.bf16.mxu1 %v3872_v3 }
  0xec   : > { %2650 = vmatpush1.bf16.msra.mxu0 %v3867_v4  ;;  %v3930_v4 = vld [vmem:[%s5080_s1 + $0x840] ss:$8 sps:$4 sm:$0xff]  }
  0xed   : > { %2691 = vmatpush1.bf16.msra.mxu1 %v3870_v5  ;;  %2651 = vmatprep.subr.bf16.mxu0 %v3875_v6  ;;  %v3935_v5 = vld [vmem:[%s5080_s1 + $0x834] ss:$8 sps:$4 sm:$0xff]   ;;  %v3933_v6 = vld [vmem:[%s5080_s1 + $0x830] ss:$8 sps:$4 sm:$0xff]  }
  0xee   : > { %2692 = vmatprep.subr.bf16.mxu1 %v3878_v7  ;;  %v3938_v7 = vld [vmem:[%s5080_s1 + $0x824] ss:$8 sps:$4 sm:$0xff]  }
  0xf0   : > { %2652 = vmatpush2.bf16.msra.mxu0 %v3873_v8  ;;  %v3936_v8 = vld [vmem:[%s5080_s1 + $0x820] ss:$8 sps:$4 sm:$0xff]  }
  0xf1   : > { %2693 = vmatpush2.bf16.msra.mxu1 %v3876_v9  ;;  %2653 = vmatprep.subr.bf16.mxu0 %v3881_v10  ;;  %v3941_v9 = vld [vmem:[%s5080_s1 + $0x814] ss:$8 sps:$4 sm:$0xff]   ;;  %v3939_v10 = vld [vmem:[%s5080_s1 + $0x810] ss:$8 sps:$4 sm:$0xff]  }
  0xf2   : > { %2694 = vmatprep.subr.bf16.mxu1 %v3884_v13  ;;  %v3944_v13 = vld [vmem:[%s5080_s1 + $0x804] ss:$8 sps:$4 sm:$0xff]  }
  0xf4   : > { %2654 = vmatpush2.bf16.msra.mxu0 %v3879_v14  ;;  %v3942_v14 = vld [vmem:[%s5080_s1 + $0x800] ss:$8 sps:$4 sm:$0xff]  }
  0xf5   : > { %2695 = vmatpush2.bf16.msra.mxu1 %v3882_v15  ;;  %2655 = vmatprep.subr.bf16.mxu0 %v3887_v16  ;;  %v3947_v15 = vld [vmem:[%s5080_s1 + $0x8f4] ss:$8 sps:$4 sm:$0xff]   ;;  %v3945_v16 = vld [vmem:[%s5080_s1 + $0x8f0] ss:$8 sps:$4 sm:$0xff]  }
  0xf6   : > { %2696 = vmatprep.subr.bf16.mxu1 %v3890_v17  ;;  %v3950_v17 = vld [vmem:[%s5080_s1 + $0x8e4] ss:$8 sps:$4 sm:$0xff]  }
  0xf8   : > { %2656 = vmatpush2.bf16.msra.mxu0 %v3885_v20  ;;  %v3948_v20 = vld [vmem:[%s5080_s1 + $0x8e0] ss:$8 sps:$4 sm:$0xff]  }
  0xf9   : > { %2697 = vmatpush2.bf16.msra.mxu1 %v3888_v21  ;;  %2657 = vmatprep.subr.bf16.mxu0 %v3893_v23  ;;  %v3953_v21 = vld [vmem:[%s5080_s1 + $0x8d4] ss:$8 sps:$4 sm:$0xff]   ;;  %v3951_v23 = vld [vmem:[%s5080_s1 + $0x8d0] ss:$8 sps:$4 sm:$0xff]  }
  0xfa   : > { %2698 = vmatprep.subr.bf16.mxu1 %v3896_v24  ;;  %v3956_v24 = vld [vmem:[%s5080_s1 + $0x8c4] ss:$8 sps:$4 sm:$0xff]  }
  0xfc   : > { %2658 = vmatpush2.bf16.msra.mxu0 %v3891_v27  ;;  %v3959_v27 = vld [vmem:[%s5080_s1 + $0x8b4] ss:$8 sps:$4 sm:$0xff]  }
  0xfd   : > { %2699 = vmatpush2.bf16.msra.mxu1 %v3894_v29  ;;  %2659 = vmatprep.subr.bf16.mxu0 %v3899_v30  ;;  %v3957_v29 = vld [vmem:[%s5080_s1 + $0x8b0] ss:$8 sps:$4 sm:$0xff]   ;;  %v3962_v30 = vld [vmem:[%s5080_s1 + $0x8a4] ss:$8 sps:$4 sm:$0xff]  }
  0xfe   : > { %2700 = vmatprep.subr.bf16.mxu1 %v3902_v31  ;;  %v3960_v31 = vld [vmem:[%s5080_s1 + $0x8a0] ss:$8 sps:$4 sm:$0xff]  }
 0x100   : > { %2660 = vmatpush2.bf16.msra.mxu0 %v3897_v34  ;;  %v3968_v34 = vld [vmem:[%s5080_s1 + $0x884] ss:$8 sps:$4 sm:$0xff]  }
 0x101   : > { %2701 = vmatpush2.bf16.msra.mxu1 %v3900_v35  ;;  %2661 = vmatprep.subr.bf16.mxu0 %v3905_v36  ;;  %v3966_v35 = vld [vmem:[%s5080_s1 + $0x880] ss:$8 sps:$4 sm:$0xff]  }
 0x102   : > { %2702 = vmatprep.subr.bf16.mxu1 %v3908_v37 }
 0x104   : > { %2662 = vmatpush2.bf16.msra.mxu0 %v3903_v44 }
 0x105   : > { %2703 = vmatpush2.bf16.msra.mxu1 %v3906_v45  ;;  %2663 = vmatprep.subr.bf16.mxu0 %v3911_v18 }
 0x106   : > { %2704 = vmatprep.subr.bf16.mxu1 %v3914_v12 }
 0x108   : > { %2664 = vmatpush2.bf16.msra.mxu0 %v3909_v48 }
 0x109   : > { %2705 = vmatpush2.bf16.msra.mxu1 %v3912_v22  ;;  %2665 = vmatprep.subr.bf16.mxu0 %v3917_v49 }
 0x10a   : > { %2706 = vmatprep.subr.bf16.mxu1 %v3920_v19 }
 0x10c   : > { %2666 = vmatpush2.bf16.msra.mxu0 %v3915_v50 }
 0x10d   : > { %2707 = vmatpush2.bf16.msra.mxu1 %v3918_v51  ;;  %2717 = vmatprep.subr.bf16.mxu0 %v3923_v54 }
 0x10f   : > { %v1187_v57 = vpop.f32.mrf.mxu0  ;;  %2668 = vmatmul.mubr.bf16.vlgmr.msra.gmra.mxu0 %v4739_v39 }
 0x110   : > { %v1228_v58 = vpop.f32.mrf.mxu1  ;;  %2709 = vmatmul.mubr.bf16.vlgmr.msra.gmra.mxu1 %v4742_v40  ;;  %2718 = vmatpush1.bf16.msra.mxu0 %v3921_v55  ;;  %v3927_v40 = vld [vmem:[%s5080_s1 + $0x850] ss:$8 sps:$4 sm:$0xff]  }
 0x111   : > { %v4960_v59 = vadd.f32 %v1228_v58, %v1187_v57  ;;  %2749 = vmatprep.mubr.bf16.mxu0 %v2148_v56  ;;  %v1189_v61 = vpop.f32.mrf.mxu0  ;;  %2719 = vmatprep.subr.bf16.mxu0 %v3926_v26 }
 0x112   : > { %v1230_v62 = vpop.f32.mrf.mxu1 }
 0x113   : > { %v4968_v0 = vadd.f32 %v1230_v62, %v1189_v61  ;;  %v1191_v39 = vpop.f32.mrf.mxu0 }
 0x114   : > { %v1232_v1 = vpop.f32.mrf.mxu1  ;;  %2720 = vmatpush1.bf16.msra.mxu0 %v3924_v60 }
 0x115   : > { %v1192_v2 = vpop.f32.mrf.mxu0  ;;  %2721 = vmatprep.subr.bf16.mxu0 %v3929_v63  ;;  %v2764_v1 = vsub.s32 0, %v4253_v11 }
 0x116   : > { %v1233_v3 = vpop.f32.mrf.mxu1  ;;  %v2768_v2 = vsub.s32 1, %v4253_v11 }
 0x118   : > { %2722 = vmatpush1.bf16.msra.mxu0 %v3927_v40  ;;  %v2760_v40 = vld [vmem:[%s5081_s2] sm:$0x3] }
 0x119   : > { %2723 = vmatprep.subr.bf16.mxu0 %v3932_v52 }
 0x11c   : > { %2724 = vmatpush1.bf16.msra.mxu0 %v3930_v4 }
 0x11d   : > { %2725 = vmatprep.subr.bf16.mxu0 %v3935_v5  ;;  %v2765_v5 = vrot.slane %v2760_v40, %v2764_v1 }
 0x120   : > { %2726 = vmatpush1.bf16.msra.mxu0 %v3933_v6 }
 0x121   : > { %2727 = vmatprep.subr.bf16.mxu0 %v3938_v7 }
 0x124   : > { %2728 = vmatpush1.bf16.msra.mxu0 %v3936_v8 }
 0x125   : > { %2729 = vmatprep.subr.bf16.mxu0 %v3941_v9  ;;  %v2769_v9 = vrot.slane %v2760_v40, %v2768_v2 }
 0x128   : > { %2730 = vmatpush1.bf16.msra.mxu0 %v3939_v10 }
 0x129   : > { %2731 = vmatprep.subr.bf16.mxu0 %v3944_v13 }
 0x12c   : > { %2732 = vmatpush1.bf16.msra.mxu0 %v3942_v14 }
 0x12d   : > { %2733 = vmatprep.subr.bf16.mxu0 %v3947_v15 }
 0x130   : > { %2734 = vmatpush2.bf16.msra.mxu0 %v3945_v16 }
 0x131   : > { %2735 = vmatprep.subr.bf16.mxu0 %v3950_v17 }
 0x134   : > { %2736 = vmatpush2.bf16.msra.mxu0 %v3948_v20 }
 0x135   : > { %2737 = vmatprep.subr.bf16.mxu0 %v3953_v21 }
 0x138   : > { %2738 = vmatpush2.bf16.msra.mxu0 %v3951_v23 }
 0x139   : > { %2739 = vmatprep.subr.bf16.mxu0 %v3956_v24 }
 0x13c   : > { %2740 = vmatpush2.bf16.msra.mxu0 %v3954_v25 }
 0x13d   : > { %2741 = vmatprep.subr.bf16.mxu0 %v3959_v27 }
 0x140   : > { %2742 = vmatpush2.bf16.msra.mxu0 %v3957_v29 }
 0x141   : > { %2743 = vmatprep.subr.bf16.mxu0 %v3962_v30 }
 0x144   : > { %2744 = vmatpush2.bf16.msra.mxu0 %v3960_v31 }
 0x145   : > { %2745 = vmatprep.subr.bf16.mxu0 %v3965_v32 }
 0x148   : > { %2746 = vmatpush2.bf16.msra.mxu0 %v3963_v33 }
 0x149   : > { %2747 = vmatprep.subr.bf16.mxu0 %v3968_v34 }
 0x14c   : > { %2748 = vmatpush2.bf16.msra.mxu0 %v3966_v35 }
 0x14f   : > { %v1269_v36 = vpop.f32.mrf.mxu0  ;;  %2750 = vmatmul.mubr.bf16.vlgmr.msra.gmra.mxu0 %v4945_v53 }
 0x150   : > { %v1823_v37 = vpop.f32.mrf.mxu1  ;;  %v1270_v38 = vadd.f32 %v1269_v36, %v4960_v59 }
 0x151   : > { %v1271_v41 = vpop.f32.mrf.mxu0 }
 0x152   : > { %v1825_v42 = vpop.f32.mrf.mxu1  ;;  %v1272_v43 = vadd.f32 %v1271_v41, %v4968_v0  ;;  %v1824_v44 = vadd.f32 %v1823_v37, %v1270_v38 }
 0x153   : > { %v1273_v45 = vpop.f32.mrf.mxu0 }
 0x154   : > { %v1827_v18 = vpop.f32.mrf.mxu1  ;;  %v1826_v12 = vadd.f32 %v1825_v42, %v1272_v43 }
 0x155   : > { %v1274_v46 = vpop.f32.mrf.mxu0 }
 0x156   : > { %v1828_v47 = vpop.f32.mrf.mxu1 }
 0x18f   : > { %v1864_v48 = vpop.f32.mrf.mxu0 }
 0x190   : > { %v1905_v22 = vpop.f32.mrf.mxu1  ;;  %v1865_v28 = vadd.f32 %v1864_v48, %v1824_v44 }
 0x191   : > { %v1866_v49 = vpop.f32.mrf.mxu0 }
 0x192   : > { %v1907_v19 = vpop.f32.mrf.mxu1  ;;  %v1867_v50 = vadd.f32 %v1866_v49, %v1826_v12  ;;  %v1906_v51 = vadd.f32 %v1905_v22, %v1865_v28 }
 0x193   : > { %v1868_v53 = vpop.f32.mrf.mxu0 }
 0x194   : > { %v1909_v54 = vpop.f32.mrf.mxu1  ;;  %v1908_v55 = vadd.f32 %v1907_v19, %v1867_v50 }
 0x195   : > { %v1869_v56 = vpop.f32.mrf.mxu0 }
 0x196   : > { %v1910_v26 = vpop.f32.mrf.mxu1 }
 0x1cf   : > { %v2669_v57 = vpop.f32.mrf.mxu0 }
 0x1d0   : > { %v2710_v58 = vpop.f32.mrf.mxu1 }
 0x1d1   : > { %v2711_v59 = vadd.f32 %v2710_v58, %v2669_v57  ;;  %v2671_v60 = vpop.f32.mrf.mxu0 }
 0x1d2   : > { %v2712_v61 = vpop.f32.mrf.mxu1 }
 0x1d3   : > { %v2673_v62 = vpop.f32.mrf.mxu0  ;;  %v2713_v3 = vadd.f32 %v2712_v61, %v2671_v60 }
 0x1d4   : > { %v2714_v63 = vpop.f32.mrf.mxu1 }
 0x1d5   : > { %v2674_v0 = vpop.f32.mrf.mxu0 }
 0x1d6   : > { %v2715_v39 = vpop.f32.mrf.mxu1 }
 0x20f   : > { %v2751_v52 = vpop.f32.mrf.mxu0 }
 0x210   : > { %v2752_v4 = vadd.f32 %v2751_v52, %v2711_v59 }
 0x211   : > { %v2753_v6 = vpop.f32.mrf.mxu0 }
 0x212   : > { %v2758_v7 = vadd.f32 %v2752_v4, %v1906_v51  ;;  %v2754_v8 = vadd.f32 %v2753_v6, %v2713_v3 }
 0x213   : > { %v2755_v10 = vpop.f32.mrf.mxu0 }
 0x214   : > { %v2772_v13 = vadd.f32 %v2765_v5, %v2758_v7  ;;  %v2759_v14 = vadd.f32 %v2754_v8, %v1908_v55 }
 0x215   : > { %v2756_v15 = vpop.f32.mrf.mxu0 }
 0x216   : > { %v2773_v16 = vadd.f32 %v2769_v9, %v2759_v14  ;;  %v2774_v17 = vmax.f32 %v2772_v13, 0.0 }
 0x218   : > { %v2775_v20 = vmax.f32 %v2773_v16, 0.0 }
 0x21a   : > { %v2778_v11 = vcombine.low %v2774_v17, %v2775_v20  ;;  %v2779_v21 = vcombine.high %v2774_v17, %v2775_v20  ;;  %v3465_v23 = vcombine.low %v2775_v20, %v2775_v20  ;;  %v3466_v24 = vcombine.high %v2775_v20, %v2775_v20 }
 0x21c   : > { %v3467_v25 = vpack.c.bf16 %v3465_v23, %v2778_v11  ;;  %v3468_v27 = vpack.c.bf16 %v3466_v24, %v2779_v21 }
 0x21e   : > { %3469 = vst.sshfl [vmem:[%s194_s7] sm:$0x33 pattern:$0x76325410] %v3467_v25 }
 0x21f   : > { %3470 = vst.sshfl [vmem:[%s194_s7 + $0x4] sm:$0x33 pattern:$0x76325410] %v3468_v27 }
 0x220 PF: > { %s13_s16 = sadd.s32 1, %s4007_s16   ;;  %s5089_s12 = smov %s3999_s14 }
 0x221   : > { %p10_p7 = scmp.ge.s32.totalorder %s13_s16, 10   ;;  %s5090_s13 = smov %s4003_s15 }
 0x222   : > { %s5091_s14 = smov %s5094_s17  ;;  %s5092_s15 = smov %s5098_s18 }
 0x223   :  { %12 = sbr.rel (!%p10_p7) target bundleno = 3 (0x3), region = 67 }

// kernel: perceptual_loss_forward.13
= control target key start
LH: loop header
LB: loop body
LE: loop exit
PB: predicated region body
PF: predicated region fallthrough
CT: control target
= control target key end

     0   :  { %s4034_s12 = smov 0   ;;  %s4036_s13 = smov 0   ;;  %s5101_s0 = inlined_call_operand.vmem [shape: bf16[4,6,6,256], index: 0, kind: input, shape index: {}]   ;;  %s5102_s1 = inlined_call_operand.vmem [shape: bf16[3,768,256], index: 1, kind: input, shape index: {}]   ;;  %s5103_s2 = inlined_call_operand.vmem [shape: f32[1,256], index: 2, kind: input, shape index: {}]   ;;  %s5104_s3 = inlined_call_operand.vmem [shape: bf16[4,6,6,256], index: 3, kind: output, shape index: {}]  }
   0x1   :  { %s4038_s14 = smov 0   ;;  %s4040_s15 = smov 0  }
   0x2   :  { %s4042_s16 = smov 0  }
   0x3 LB: > { %s22_s17 = sadd.s32 1, %s4002_s14  ;;  %s25_s18 = sadd.s32 1, %s4006_s15  ;;  %s4010_s16 = sphi %s4042_s16, %s13_s16   ;;  %s4006_s15 = sphi %s4040_s15, %s5116_s15   ;;  %s4002_s14 = sphi %s4038_s14, %s5115_s14   ;;  %s3998_s13 = sphi %s4036_s13, %s5114_s13   ;;  %s3994_s12 = sphi %s4034_s12, %s5113_s12  }
   0x4   : > { %p23_p0 = scmp.ge.s32.totalorder %s22_s17, 2  ;;  %p2915_p1 = scmp.ge.s32.totalorder %s4010_s16, 1 }
   0x5   : > { %p149_p2 = scmp.lt.s32.totalorder %s4010_s16, 9 }
   0x6   : > { %s5118_s17 = smov (%p23_p0, %s22_s17), 0  ;;  %s5120_s18 = smov (!%p23_p0, %s25_s18), %s4006_s15 }
   0x7   : > { %p150_p3 = pnand %p2915_p1, %p149_p2  ;;  %p27_p4 = scmp.ge.s32.totalorder %s5120_s18, 4 }
   0x8   : > { %p173_p5 = scmp.lt.s32.totalorder (!%p150_p3), %s3998_s13, 3  ;;  %s3473_s10 = sshll.u32 (!%p150_p3), %s3994_s12, 4 }
   0x9   : > { %s5122_s18 = smov (%p27_p4, %s5120_s18), 0  ;;  %153 = sbr.rel (%p150_p3) target bundleno = 556 (0x22c), region = 32 }
   0xa   : > { %p3459_p6 = scmp.ne.s32.totalorder (!%p150_p3), %s3994_s12, 0 }
   0xe   : > { %v3540_v0 = vld [vmem:[%s5102_s1 + $0x374] ss:$8 sps:$4 sm:$0xff]   ;;  %v3544_v2 = vld [vmem:[%s5102_s1 + $0x370] ss:$8 sps:$4 sm:$0xff]   ;;  %s5124_s13 = smov (!%p173_p5, %s3998_s13), 3  ;;  %v633_v55 = vlaneseq  ;;  %vm1990_vm7 = vcmask 1040384  }
   0xf   : > { %v3542_v1 = vld [vmem:[%s5102_s1 + $0x474] ss:$8 sps:$4 sm:$0xff]   ;;  %1141 = vmatprep.subr.bf16.mxu0 %v3540_v0  ;;  %v3545_v3 = vld [vmem:[%s5102_s1 + $0x470] ss:$8 sps:$4 sm:$0xff]   ;;  %v3546_v4 = vld [vmem:[%s5102_s1 + $0x364] ss:$8 sps:$4 sm:$0xff]  }
  0x10   : > { %1182 = vmatprep.subr.bf16.mxu1 %v3542_v1  ;;  %1142 = vmatpush1.bf16.msra.mxu0 %v3544_v2  ;;  %v3548_v5 = vld [vmem:[%s5102_s1 + $0x464] ss:$8 sps:$4 sm:$0xff]   ;;  %v3550_v6 = vld [vmem:[%s5102_s1 + $0x360] ss:$8 sps:$4 sm:$0xff]   ;;  %s3497_s6 = smul.u32 48, %s5124_s13  ;;  %vm1991_vm8 = vcmask 1042434  }
  0x11   : > { %1183 = vmatpush1.bf16.msra.mxu1 %v3545_v3  ;;  %1143 = vmatprep.subr.bf16.mxu0 %v3546_v4  ;;  %v3551_v7 = vld [vmem:[%s5102_s1 + $0x460] ss:$8 sps:$4 sm:$0xff]   ;;  %v3552_v8 = vld [vmem:[%s5102_s1 + $0x354] ss:$8 sps:$4 sm:$0xff]   ;;  %v3556_v10 = vld [vmem:[%s5102_s1 + $0x350] ss:$8 sps:$4 sm:$0xff]  }
  0x12   : > { %1184 = vmatprep.subr.bf16.mxu1 %v3548_v5  ;;  %s4101_s20 = scalar_lea.vmem %s5104_s3, %s3497_s6  ;;  %v3554_v9 = vld [vmem:[%s5102_s1 + $0x454] ss:$8 sps:$4 sm:$0xff]   ;;  %v3557_v11 = vld [vmem:[%s5102_s1 + $0x450] ss:$8 sps:$4 sm:$0xff]   ;;  %v3558_v12 = vld [vmem:[%s5102_s1 + $0x344] ss:$8 sps:$4 sm:$0xff]   ;;  %s177_s9 = scalar_lea.vmem %s5101_s0, %s3497_s6 }
  0x13   : > { %v3560_v13 = vld [vmem:[%s5102_s1 + $0x444] ss:$8 sps:$4 sm:$0xff]   ;;  %v3562_v14 = vld [vmem:[%s5102_s1 + $0x340] ss:$8 sps:$4 sm:$0xff]   ;;  %v3564_v16 = vld [vmem:[%s5102_s1 + $0x334] ss:$8 sps:$4 sm:$0xff]   ;;  %s4219_s13 = scalar_lea.vmem %s177_s9, %s3473_s10 }
  0x14   : > { %1144 = vmatpush1.bf16.msra.mxu0 %v3550_v6  ;;  %v3563_v15 = vld [vmem:[%s5102_s1 + $0x440] ss:$8 sps:$4 sm:$0xff]   ;;  %v3566_v17 = vld [vmem:[%s5102_s1 + $0x434] ss:$8 sps:$4 sm:$0xff]   ;;  %v3568_v18 = vld [vmem:[%s5102_s1 + $0x330] ss:$8 sps:$4 sm:$0xff]  }
  0x15   : > { %1185 = vmatpush1.bf16.msra.mxu1 %v3551_v7  ;;  %1145 = vmatprep.subr.bf16.mxu0 %v3552_v8  ;;  %v3569_v19 = vld [vmem:[%s5102_s1 + $0x430] ss:$8 sps:$4 sm:$0xff]   ;;  %v3570_v20 = vld [vmem:[%s5102_s1 + $0x324] ss:$8 sps:$4 sm:$0xff]   ;;  %v3574_v22 = vld [vmem:[%s5102_s1 + $0x320] ss:$8 sps:$4 sm:$0xff]  }
  0x16   : > { %1186 = vmatprep.subr.bf16.mxu1 %v3554_v9  ;;  %v3572_v21 = vld [vmem:[%s5102_s1 + $0x424] ss:$8 sps:$4 sm:$0xff]   ;;  %v3575_v23 = vld [vmem:[%s5102_s1 + $0x420] ss:$8 sps:$4 sm:$0xff]   ;;  %v3576_v24 = vld [vmem:[%s5102_s1 + $0x314] ss:$8 sps:$4 sm:$0xff]  }
  0x17   : > { %v3578_v25 = vld [vmem:[%s5102_s1 + $0x414] ss:$8 sps:$4 sm:$0xff]   ;;  %v3580_v26 = vld [vmem:[%s5102_s1 + $0x310] ss:$8 sps:$4 sm:$0xff]   ;;  %v3582_v28 = vld [vmem:[%s5102_s1 + $0x304] ss:$8 sps:$4 sm:$0xff]  }
  0x18   : > { %1146 = vmatpush1.bf16.msra.mxu0 %v3556_v10  ;;  %v3581_v27 = vld [vmem:[%s5102_s1 + $0x410] ss:$8 sps:$4 sm:$0xff]   ;;  %v3584_v29 = vld [vmem:[%s5102_s1 + $0x404] ss:$8 sps:$4 sm:$0xff]   ;;  %v3586_v30 = vld [vmem:[%s5102_s1 + $0x300] ss:$8 sps:$4 sm:$0xff]  }
  0x19   : > { %1187 = vmatpush1.bf16.msra.mxu1 %v3557_v11  ;;  %1147 = vmatprep.subr.bf16.mxu0 %v3558_v12  ;;  %v3587_v31 = vld [vmem:[%s5102_s1 + $0x400] ss:$8 sps:$4 sm:$0xff]   ;;  %v3588_v32 = vld [vmem:[%s5102_s1 + $0x3f4] ss:$8 sps:$4 sm:$0xff]   ;;  %v3592_v34 = vld [vmem:[%s5102_s1 + $0x3f0] ss:$8 sps:$4 sm:$0xff]  }
  0x1a   : > { %1188 = vmatprep.subr.bf16.mxu1 %v3560_v13  ;;  %v3590_v33 = vld [vmem:[%s5102_s1 + $0x4f4] ss:$8 sps:$4 sm:$0xff]   ;;  %v3593_v35 = vld [vmem:[%s5102_s1 + $0x4f0] ss:$8 sps:$4 sm:$0xff]   ;;  %v3594_v36 = vld [vmem:[%s5102_s1 + $0x3e4] ss:$8 sps:$4 sm:$0xff]  }
  0x1b   : > { %v3596_v37 = vld [vmem:[%s5102_s1 + $0x4e4] ss:$8 sps:$4 sm:$0xff]   ;;  %v3598_v38 = vld [vmem:[%s5102_s1 + $0x3e0] ss:$8 sps:$4 sm:$0xff]   ;;  %v3600_v40 = vld [vmem:[%s5102_s1 + $0x3d4] ss:$8 sps:$4 sm:$0xff]  }
  0x1c   : > { %1148 = vmatpush1.bf16.msra.mxu0 %v3562_v14  ;;  %v3599_v39 = vld [vmem:[%s5102_s1 + $0x4e0] ss:$8 sps:$4 sm:$0xff]   ;;  %v3602_v41 = vld [vmem:[%s5102_s1 + $0x4d4] ss:$8 sps:$4 sm:$0xff]   ;;  %v3604_v42 = vld [vmem:[%s5102_s1 + $0x3d0] ss:$8 sps:$4 sm:$0xff]  }
  0x1d   : > { %1189 = vmatpush1.bf16.msra.mxu1 %v3563_v15  ;;  %1149 = vmatprep.subr.bf16.mxu0 %v3564_v16  ;;  %v3605_v43 = vld [vmem:[%s5102_s1 + $0x4d0] ss:$8 sps:$4 sm:$0xff]   ;;  %v3606_v44 = vld [vmem:[%s5102_s1 + $0x3c4] ss:$8 sps:$4 sm:$0xff]   ;;  %vm468_vm0 = vsmask.f32 1280  ;;  %vm1992_vm9 = vmor %vm1990_vm7, %vm1991_vm8 }
  0x1e   : > { %1190 = vmatprep.subr.bf16.mxu1 %v3566_v17  ;;  %v3608_v45 = vld [vmem:[%s5102_s1 + $0x4c4] ss:$8 sps:$4 sm:$0xff]   ;;  %vm469_vm1 = vsmask.f32 3336  ;;  %v3610_v46 = vld [vmem:[%s5102_s1 + $0x3c0] ss:$8 sps:$4 sm:$0xff]  }
  0x1f   : > { %v3611_v47 = vld [vmem:[%s5102_s1 + $0x4c0] ss:$8 sps:$4 sm:$0xff]   ;;  %v3612_v48 = vld [vmem:[%s5102_s1 + $0x3b4] ss:$8 sps:$4 sm:$0xff]   ;;  %v3616_v56 = vld [vmem:[%s5102_s1 + $0x3b0] ss:$8 sps:$4 sm:$0xff]  }
  0x20   : > { %1150 = vmatpush1.bf16.msra.mxu0 %v3568_v18  ;;  %v3485_v49 = vld.sshfl [vmem:[%s4219_s13] sm:$0x5f pattern:$0x76325410]  ;;  %v3614_v51 = vld [vmem:[%s5102_s1 + $0x4b4] ss:$8 sps:$4 sm:$0xff]   ;;  %vm4248_vm2 = vmor %vm468_vm0, %vm469_vm1 }
  0x21   : > { %1191 = vmatpush1.bf16.msra.mxu1 %v3569_v19  ;;  %1151 = vmatprep.subr.bf16.mxu0 %v3570_v20  ;;  %v3488_v50 = vld.sshfl [vmem:[%s4219_s13 + $0x8] sm:$0x5f pattern:$0x76325410]  ;;  %vm471_vm3 = vsmask.f32 5392 }
  0x22   : > { %1192 = vmatprep.subr.bf16.mxu1 %v3572_v21  ;;  %v4239_v52 = vld.sshfl [vmem:[%s4219_s13 + $0x10] sm:$0x5f pattern:$0x76325410]  ;;  %v430_v53 = vcombine.low %v3485_v49, %v3488_v50  ;;  %v431_v54 = vcombine.high %v3485_v49, %v3488_v50  ;;  %vm473_vm4 = vsmask.f32 7448  ;;  %vm472_vm5 = vmor %vm4248_vm2, %vm471_vm3 }
  0x23   : > { %v457_v57 = vcombine.low %v3488_v50, %v4239_v52  ;;  %v458_v58 = vcombine.high %v3488_v50, %v4239_v52  ;;  %v3617_v60 = vld [vmem:[%s5102_s1 + $0x4b0] ss:$8 sps:$4 sm:$0xff]   ;;  %v4012_v0 = vmov 1983009808   ;;  %v3618_v2 = vld [vmem:[%s5102_s1 + $0x3a4] ss:$8 sps:$4 sm:$0xff]   ;;  %vm4276_vm6 = vmor %vm472_vm5, %vm473_vm4 }
  0x24   : > { %1152 = vmatpush1.bf16.msra.mxu0 %v3574_v22  ;;  %v476_v61 = vshrl.u32 %v430_v53, 16  ;;  %v479_v62 = vshll.u32 %v430_v53, 16  ;;  %v485_v63 = vshll.u32 %v431_v54, 16  ;;  %v631_v1 = vunpack.c.l.s4 %v4012_v0  ;;  %v3620_v6 = vld [vmem:[%s5102_s1 + $0x4a4] ss:$8 sps:$4 sm:$0xff]  }
  0x25   : > { %1193 = vmatpush1.bf16.msra.mxu1 %v3575_v23  ;;  %1153 = vmatprep.subr.bf16.mxu0 %v3576_v24  ;;  %v504_v3 = vshrl.u32 %v457_v57, 16  ;;  %v507_v4 = vshll.u32 %v457_v57, 16  ;;  %v513_v5 = vshll.u32 %v458_v58, 16  ;;  %v4264_v11 = vshrl.u32 %v633_v55, 7  ;;  %v3622_v12 = vld [vmem:[%s5102_s1 + $0x3a0] ss:$8 sps:$4 sm:$0xff]  }
  0x26   : > { %1194 = vmatprep.subr.bf16.mxu1 %v3578_v25  ;;  %v478_v7 = vrot.slane %v476_v61, 6  ;;  %v481_v8 = vrot.slane %v479_v62, 7  ;;  %v3623_v13 = vld [vmem:[%s5102_s1 + $0x4a0] ss:$8 sps:$4 sm:$0xff]   ;;  %v487_v15 = vrot.slane %v485_v63, 7  ;;  %v632_v16 = vunpack.c.0.s8 %v631_v1 }
  0x27   : > { %v506_v9 = vrot.slane %v504_v3, 6  ;;  %v509_v10 = vrot.slane %v507_v4, 7  ;;  %v3624_v17 = vld [vmem:[%s5102_s1 + $0x394] ss:$8 sps:$4 sm:$0xff]   ;;  %v515_v20 = vrot.slane %v513_v5, 7  ;;  %v490_v55 = vshrl.u32 %v4239_v52, 16 }
  0x28   : > { %1154 = vmatpush1.bf16.msra.mxu0 %v3580_v26  ;;  %v482_v14 = vor.u32 %v481_v8, %v478_v7  ;;  %v3626_v21 = vld [vmem:[%s5102_s1 + $0x494] ss:$8 sps:$4 sm:$0xff]   ;;  %v3628_v24 = vld [vmem:[%s5102_s1 + $0x390] ss:$8 sps:$4 sm:$0xff]   ;;  %v4289_v26 = vsub.s32 %v632_v16, %v4264_v11  ;;  %v3659_v53 = vld [vmem:[%s5102_s1 + $0x44] ss:$8 sps:$4 sm:$0xff]   ;;  %v440_v61 = vcombine.high %v4239_v52, %v4239_v52 }
  0x29   : > { %1195 = vmatpush1.bf16.msra.mxu1 %v3581_v27  ;;  %1155 = vmatprep.subr.bf16.mxu0 %v3582_v28  ;;  %v510_v19 = vor.u32 %v509_v10, %v506_v9  ;;  %v3629_v27 = vld [vmem:[%s5102_s1 + $0x490] ss:$8 sps:$4 sm:$0xff]   ;;  %v3630_v28 = vld [vmem:[%s5102_s1 + $0x384] ss:$8 sps:$4 sm:$0xff]   ;;  %v3654_v54 = vld [vmem:[%s5102_s1 + $0x540] ss:$8 sps:$4 sm:$0xff]  }
  0x2a   : > { %1196 = vmatprep.subr.bf16.mxu1 %v3584_v29  ;;  %v483_v22 = vrot.slane %v482_v14, 2  ;;  %v3648_v49 = vld [vmem:[%s5102_s1 + $0x550] ss:$8 sps:$4 sm:$0xff]   ;;  %v3662_v57 = vld [vmem:[%s5102_s1 + $0x534] ss:$8 sps:$4 sm:$0xff]   ;;  %v493_v58 = vshll.u32 %v4239_v52, 16 }
  0x2b   : > { %v511_v23 = vrot.slane %v510_v19, 2  ;;  %v3651_v50 = vld [vmem:[%s5102_s1 + $0x50] ss:$8 sps:$4 sm:$0xff]   ;;  %v3665_v59 = vld [vmem:[%s5102_s1 + $0x34] ss:$8 sps:$4 sm:$0xff]   ;;  %v492_v62 = vrot.slane %v490_v55, 6 }
  0x2c   : > { %1156 = vmatpush1.bf16.msra.mxu0 %v3586_v30  ;;  %v488_v25 = vsel %vm4276_vm6, %v483_v22, %v487_v15  ;;  %v3632_v30 = vld [vmem:[%s5102_s1 + $0x484] ss:$8 sps:$4 sm:$0xff]   ;;  %v3663_v63 = vld [vmem:[%s5102_s1 + $0x30] ss:$8 sps:$4 sm:$0xff]   ;;  %v495_v1 = vrot.slane %v493_v58, 7  ;;  %v499_v3 = vshll.u32 %v440_v61, 16 }
  0x2d   : > { %1197 = vmatpush1.bf16.msra.mxu1 %v3587_v31  ;;  %1157 = vmatprep.subr.bf16.mxu0 %v3588_v32  ;;  %v516_v29 = vsel %vm4276_vm6, %v511_v23, %v515_v20  ;;  %v3668_v0 = vld [vmem:[%s5102_s1 + $0x524] ss:$8 sps:$4 sm:$0xff]   ;;  %v3666_v52 = vld [vmem:[%s5102_s1 + $0x520] ss:$8 sps:$4 sm:$0xff]   ;;  %v3674_v5 = vld [vmem:[%s5102_s1 + $0x514] ss:$8 sps:$4 sm:$0xff]  }
  0x2e   : > { %1198 = vmatprep.subr.bf16.mxu1 %v3590_v33  ;;  %v628_v31 = vcombine.low %v488_v25, %v516_v29  ;;  %v629_v32 = vcombine.high %v488_v25, %v516_v29  ;;  %v3634_v33 = vld [vmem:[%s5102_s1 + $0x380] ss:$8 sps:$4 sm:$0xff]   ;;  %v3677_v7 = vld [vmem:[%s5102_s1 + $0x14] ss:$8 sps:$4 sm:$0xff]   ;;  %v3672_v8 = vld [vmem:[%s5102_s1 + $0x510] ss:$8 sps:$4 sm:$0xff]  }
  0x2f   : > { %v3669_v4 = vld [vmem:[%s5102_s1 + $0x20] ss:$8 sps:$4 sm:$0xff]   ;;  %v3675_v9 = vld [vmem:[%s5102_s1 + $0x10] ss:$8 sps:$4 sm:$0xff]   ;;  %v501_v10 = vrot.slane %v499_v3, 7  ;;  %vm1993_vm10 = vcmask 1044484  }
  0x30   : > { %1158 = vmatpush2.bf16.msra.mxu0 %v3592_v34  ;;  %v636_v34 = vrot.slane %v628_v31, %v4289_v26  ;;  %v3490_v15 = vld.sshfl [vmem:[%s4219_s13 + $0x18] sm:$0x5f pattern:$0x76325410]  ;;  %v3681_v23 = vld [vmem:[%s5102_s1] ss:$8 sps:$4 sm:$0xff]   ;;  %vm1994_vm11 = vmor %vm1992_vm9, %vm1993_vm10 }
  0x31   : > { %1199 = vmatpush2.bf16.msra.mxu1 %v3593_v35  ;;  %1159 = vmatprep.subr.bf16.mxu0 %v3594_v36  ;;  %v643_v35 = vrot.slane %v629_v32, %v4289_v26  ;;  %v3635_v36 = vld [vmem:[%s5102_s1 + $0x480] ss:$8 sps:$4 sm:$0xff]   ;;  %v467_v16 = vcombine.high %v3490_v15, %v3490_v15  ;;  %v521_v19 = vshll.u32 %v3490_v15, 16  ;;  %v3686_v29 = vld [vmem:[%s5102_s1 + $0x5f4] ss:$8 sps:$4 sm:$0xff]   ;;  %vm1995_vm12 = vcmask 1046534  }
  0x32   : > { %1200 = vmatprep.subr.bf16.mxu1 %v3596_v37  ;;  %v3638_v37 = vld [vmem:[%s5102_s1 + $0x574] ss:$8 sps:$4 sm:$0xff]   ;;  %v3479_v20 = vld.sshfl [vmem:[%s4219_s13] sm:$0xf pattern:$0x76325410]  ;;  %vm4717_vm13 = vmor %vm1994_vm11, %vm1995_vm12 }
  0x33   : > { %v4410_v22 = vld.sshfl [vmem:[%s4219_s13 + $0x8] sm:$0xf pattern:$0x76325410]  ;;  %v523_v25 = vrot.slane %v521_v19, 7 }
  0x34   : > { %1160 = vmatpush2.bf16.msra.mxu0 %v3598_v38  ;;  %v644_v38 = vcombine.high %v636_v34, %v636_v34  ;;  %v3701_v18 = vld [vmem:[%s5102_s1 + $0xd4] ss:$8 sps:$4 sm:$0xff]   ;;  %v3711_v58 = vld [vmem:[%s5102_s1 + $0xb0] ss:$8 sps:$4 sm:$0xff]   ;;  %v3714_v61 = vld [vmem:[%s5102_s1 + $0x5a0] ss:$8 sps:$4 sm:$0xff]  }
  0x35   : > { %1201 = vmatpush2.bf16.msra.mxu1 %v3599_v39  ;;  %1161 = vmatprep.subr.bf16.mxu0 %v3600_v40  ;;  %v645_v39 = vcombine.high %v643_v35, %v643_v35  ;;  %v3641_v40 = vld [vmem:[%s5102_s1 + $0x74] ss:$8 sps:$4 sm:$0xff]   ;;  %v3731_v3 = vld [vmem:[%s5102_s1 + $0x84] ss:$8 sps:$4 sm:$0xff]   ;;  %v3744_v19 = vld [vmem:[%s5102_s1 + $0x150] ss:$8 sps:$4 sm:$0xff]  }
  0x36   : > { %1202 = vmatprep.subr.bf16.mxu1 %v3602_v41  ;;  %1173 = vmatprep.mubr.bf16.mxu0 %v644_v38  ;;  %v3636_v41 = vld [vmem:[%s5102_s1 + $0x570] ss:$8 sps:$4 sm:$0xff]   ;;  %v3710_v55 = vld [vmem:[%s5102_s1 + $0x5b4] ss:$8 sps:$4 sm:$0xff]  }
  0x37   : > { %1214 = vmatprep.mubr.bf16.mxu1 %v645_v39  ;;  %v3692_v39 = vld [vmem:[%s5102_s1 + $0x5e4] ss:$8 sps:$4 sm:$0xff]  }
  0x38   : > { %1162 = vmatpush2.bf16.msra.mxu0 %v3604_v42  ;;  %v3639_v42 = vld [vmem:[%s5102_s1 + $0x70] ss:$8 sps:$4 sm:$0xff]  }
  0x39   : > { %1203 = vmatpush2.bf16.msra.mxu1 %v3605_v43  ;;  %1163 = vmatprep.subr.bf16.mxu0 %v3606_v44  ;;  %v3644_v43 = vld [vmem:[%s5102_s1 + $0x564] ss:$8 sps:$4 sm:$0xff]  }
  0x3a   : > { %1204 = vmatprep.subr.bf16.mxu1 %v3608_v45  ;;  %v3647_v44 = vld [vmem:[%s5102_s1 + $0x64] ss:$8 sps:$4 sm:$0xff]   ;;  %v3642_v45 = vld [vmem:[%s5102_s1 + $0x560] ss:$8 sps:$4 sm:$0xff]  }
  0x3c   : > { %1164 = vmatpush2.bf16.msra.mxu0 %v3610_v46  ;;  %v3645_v46 = vld [vmem:[%s5102_s1 + $0x60] ss:$8 sps:$4 sm:$0xff]  }
  0x3d   : > { %1205 = vmatpush2.bf16.msra.mxu1 %v3611_v47  ;;  %1165 = vmatprep.subr.bf16.mxu0 %v3612_v48  ;;  %v3650_v47 = vld [vmem:[%s5102_s1 + $0x554] ss:$8 sps:$4 sm:$0xff]  }
  0x3e   : > { %1206 = vmatprep.subr.bf16.mxu1 %v3614_v51  ;;  %v3653_v48 = vld [vmem:[%s5102_s1 + $0x54] ss:$8 sps:$4 sm:$0xff]   ;;  %v3656_v51 = vld [vmem:[%s5102_s1 + $0x544] ss:$8 sps:$4 sm:$0xff]  }
  0x40   : > { %1166 = vmatpush2.bf16.msra.mxu0 %v3616_v56  ;;  %v3657_v56 = vld [vmem:[%s5102_s1 + $0x40] ss:$8 sps:$4 sm:$0xff]  }
  0x41   : > { %1207 = vmatpush2.bf16.msra.mxu1 %v3617_v60  ;;  %1167 = vmatprep.subr.bf16.mxu0 %v3618_v2  ;;  %v3660_v60 = vld [vmem:[%s5102_s1 + $0x530] ss:$8 sps:$4 sm:$0xff]   ;;  %v3671_v2 = vld [vmem:[%s5102_s1 + $0x24] ss:$8 sps:$4 sm:$0xff]  }
  0x42   : > { %1208 = vmatprep.subr.bf16.mxu1 %v3620_v6  ;;  %v496_v6 = vor.u32 %v495_v1, %v492_v62  ;;  %v3717_v62 = vld [vmem:[%s5102_s1 + $0xa0] ss:$8 sps:$4 sm:$0xff]   ;;  %v3720_v1 = vld [vmem:[%s5102_s1 + $0x590] ss:$8 sps:$4 sm:$0xff]  }
  0x44   : > { %1168 = vmatpush2.bf16.msra.mxu0 %v3622_v12  ;;  %v3680_v12 = vld [vmem:[%s5102_s1 + $0x504] ss:$8 sps:$4 sm:$0xff]   ;;  %v497_v14 = vrot.slane %v496_v6, 2  ;;  %v3734_v6 = vld [vmem:[%s5102_s1 + $0x174] ss:$8 sps:$4 sm:$0xff]  }
  0x45   : > { %1209 = vmatpush2.bf16.msra.mxu1 %v3623_v13  ;;  %1169 = vmatprep.subr.bf16.mxu0 %v3624_v17  ;;  %v3683_v13 = vld [vmem:[%s5102_s1 + $0x4] ss:$8 sps:$4 sm:$0xff]   ;;  %v518_v17 = vshrl.u32 %v3490_v15, 16  ;;  %v3746_v15 = vld [vmem:[%s5102_s1 + $0x154] ss:$8 sps:$4 sm:$0xff]  }
  0x46   : > { %1210 = vmatprep.subr.bf16.mxu1 %v3626_v21  ;;  %v3678_v21 = vld [vmem:[%s5102_s1 + $0x500] ss:$8 sps:$4 sm:$0xff]  }
  0x48   : > { %1170 = vmatpush2.bf16.msra.mxu0 %v3628_v24  ;;  %v520_v24 = vrot.slane %v518_v17, 6  ;;  %v3483_v17 = vld.sshfl [vmem:[%s4219_s13 + $0x10] sm:$0xf pattern:$0x76325410] }
  0x49   : > { %1211 = vmatpush2.bf16.msra.mxu1 %v3629_v27  ;;  %1171 = vmatprep.subr.bf16.mxu0 %v3630_v28  ;;  %v527_v27 = vshll.u32 %v467_v16, 16  ;;  %v3149_v28 = vcombine.low %v3479_v20, %v4410_v22  ;;  %v3749_v16 = vld [vmem:[%s5102_s1 + $0x254] ss:$8 sps:$4 sm:$0xff]   ;;  %v3150_v20 = vcombine.low %v4410_v22, %v3483_v17 }
  0x4a   : > { %1212 = vmatprep.subr.bf16.mxu1 %v3632_v30  ;;  %v3689_v30 = vld [vmem:[%s5102_s1 + $0xf4] ss:$8 sps:$4 sm:$0xff]   ;;  %v524_v31 = vor.u32 %v523_v25, %v520_v24  ;;  %v3752_v25 = vld [vmem:[%s5102_s1 + $0x144] ss:$8 sps:$4 sm:$0xff]  }
  0x4b   : > { %v529_v32 = vrot.slane %v527_v27, 7  ;;  %v3755_v27 = vld [vmem:[%s5102_s1 + $0x244] ss:$8 sps:$4 sm:$0xff]   ;;  %v4569_v22 = vrot.slane %v3150_v20, %v4289_v26 }
  0x4c   : > { %1172 = vmatpush2.bf16.msra.mxu0 %v3634_v33  ;;  %v4423_v33 = vrot.slane %v3149_v28, %v4289_v26 }
  0x4d   : > { %1213 = vmatpush2.bf16.msra.mxu1 %v3635_v36  ;;  %1223 = vmatprep.subr.bf16.mxu0 %v3638_v37  ;;  %v502_v36 = vsel %vm4276_vm6, %v497_v14, %v501_v10  ;;  %v525_v37 = vrot.slane %v524_v31, 2  ;;  %v3740_v10 = vld [vmem:[%s5102_s1 + $0x164] ss:$8 sps:$4 sm:$0xff]   ;;  %v3741_v14 = vld [vmem:[%s5102_s1 + $0x260] ss:$8 sps:$4 sm:$0xff]  }
  0x4e   : > { %1777 = vmatprep.subr.bf16.mxu1 %v3641_v40  ;;  %v1280_v38 = vcombine.high %v4423_v33, %v4423_v33  ;;  %v3695_v40 = vld [vmem:[%s5102_s1 + $0xe4] ss:$8 sps:$4 sm:$0xff]   ;;  %v3753_v31 = vld [vmem:[%s5102_s1 + $0x240] ss:$8 sps:$4 sm:$0xff]  }
  0x4f   : > { %1174 = vmatmul.mubr.bf16.vlgmr.msra.gmra.mxu0 %v636_v34  ;;  %v3684_v34 = vld [vmem:[%s5102_s1 + $0x5f0] ss:$8 sps:$4 sm:$0xff]  }
  0x50   : > { %1215 = vmatmul.mubr.bf16.vlgmr.msra.gmra.mxu1 %v643_v35  ;;  %1224 = vmatpush1.bf16.msra.mxu0 %v3636_v41  ;;  %v3687_v35 = vld [vmem:[%s5102_s1 + $0xf0] ss:$8 sps:$4 sm:$0xff]   ;;  %v530_v41 = vsel %vm4276_vm6, %v525_v37, %v529_v32  ;;  %v3764_v37 = vld [vmem:[%s5102_s1 + $0x124] ss:$8 sps:$4 sm:$0xff]  }
  0x51   : > { %1778 = vmatpush1.bf16.msra.mxu1 %v3639_v42  ;;  %1225 = vmatprep.subr.bf16.mxu0 %v3644_v43  ;;  %v646_v42 = vcombine.low %v502_v36, %v530_v41  ;;  %v3690_v43 = vld [vmem:[%s5102_s1 + $0x5e0] ss:$8 sps:$4 sm:$0xff]   ;;  %v3759_v36 = vld [vmem:[%s5102_s1 + $0x230] ss:$8 sps:$4 sm:$0xff]   ;;  %v3770_v41 = vld [vmem:[%s5102_s1 + $0x114] ss:$8 sps:$4 sm:$0xff]  }
  0x52   : > { %1779 = vmatprep.subr.bf16.mxu1 %v3647_v44  ;;  %1809 = vmatprep.mubr.bf16.mxu1 %v1280_v38  ;;  %v3693_v44 = vld [vmem:[%s5102_s1 + $0xe0] ss:$8 sps:$4 sm:$0xff]   ;;  %v3767_v38 = vld [vmem:[%s5102_s1 + $0x224] ss:$8 sps:$4 sm:$0xff]  }
  0x54   : > { %1226 = vmatpush1.bf16.msra.mxu0 %v3642_v45  ;;  %v3698_v45 = vld [vmem:[%s5102_s1 + $0x5d4] ss:$8 sps:$4 sm:$0xff]  }
  0x55   : > { %1780 = vmatpush1.bf16.msra.mxu1 %v3645_v46  ;;  %1227 = vmatprep.subr.bf16.mxu0 %v3650_v47  ;;  %v653_v46 = vrot.slane %v646_v42, %v4289_v26  ;;  %v3773_v42 = vld [vmem:[%s5102_s1 + $0x214] ss:$8 sps:$4 sm:$0xff]  }
  0x56   : > { %1781 = vmatprep.subr.bf16.mxu1 %v3653_v48  ;;  %v3696_v48 = vld [vmem:[%s5102_s1 + $0x5d0] ss:$8 sps:$4 sm:$0xff]  }
  0x57   : > { %v654_v47 = vcombine.high %v653_v46, %v653_v46 }
  0x58   : > { %1228 = vmatpush1.bf16.msra.mxu0 %v3648_v49  ;;  %v3699_v49 = vld [vmem:[%s5102_s1 + $0xd0] ss:$8 sps:$4 sm:$0xff]  }
  0x59   : > { %1782 = vmatpush1.bf16.msra.mxu1 %v3651_v50  ;;  %1229 = vmatprep.subr.bf16.mxu0 %v3656_v51  ;;  %v3704_v50 = vld [vmem:[%s5102_s1 + $0x5c4] ss:$8 sps:$4 sm:$0xff]  }
  0x5a   : > { %1783 = vmatprep.subr.bf16.mxu1 %v3659_v53  ;;  %v3707_v51 = vld [vmem:[%s5102_s1 + $0xc4] ss:$8 sps:$4 sm:$0xff]   ;;  %1255 = vmatprep.mubr.bf16.mxu0 %v654_v47  ;;  %v3702_v53 = vld [vmem:[%s5102_s1 + $0x5c0] ss:$8 sps:$4 sm:$0xff]  }
  0x5b   : > { %v3777_v47 = vld [vmem:[%s5102_s1 + $0x200] ss:$8 sps:$4 sm:$0xff]  }
  0x5c   : > { %1230 = vmatpush1.bf16.msra.mxu0 %v3654_v54  ;;  %v3705_v54 = vld [vmem:[%s5102_s1 + $0xc0] ss:$8 sps:$4 sm:$0xff]  }
  0x5d   : > { %1784 = vmatpush1.bf16.msra.mxu1 %v3657_v56  ;;  %1231 = vmatprep.subr.bf16.mxu0 %v3662_v57  ;;  %v3713_v56 = vld [vmem:[%s5102_s1 + $0xb4] ss:$8 sps:$4 sm:$0xff]   ;;  %v3708_v57 = vld [vmem:[%s5102_s1 + $0x5b0] ss:$8 sps:$4 sm:$0xff]  }
  0x5e   : > { %1785 = vmatprep.subr.bf16.mxu1 %v3665_v59  ;;  %v3716_v59 = vld [vmem:[%s5102_s1 + $0x5a4] ss:$8 sps:$4 sm:$0xff]  }
  0x60   : > { %1232 = vmatpush1.bf16.msra.mxu0 %v3660_v60  ;;  %v3719_v60 = vld [vmem:[%s5102_s1 + $0xa4] ss:$8 sps:$4 sm:$0xff]  }
  0x61   : > { %1786 = vmatpush1.bf16.msra.mxu1 %v3663_v63  ;;  %1233 = vmatprep.subr.bf16.mxu0 %v3668_v0  ;;  %v3722_v63 = vld [vmem:[%s5102_s1 + $0x594] ss:$8 sps:$4 sm:$0xff]  }
  0x62   : > { %1787 = vmatprep.subr.bf16.mxu1 %v3671_v2  ;;  %v3725_v0 = vld [vmem:[%s5102_s1 + $0x94] ss:$8 sps:$4 sm:$0xff]   ;;  %v3723_v2 = vld [vmem:[%s5102_s1 + $0x90] ss:$8 sps:$4 sm:$0xff]  }
  0x64   : > { %1234 = vmatpush1.bf16.msra.mxu0 %v3666_v52  ;;  %v3728_v52 = vld [vmem:[%s5102_s1 + $0x584] ss:$8 sps:$4 sm:$0xff]  }
  0x65   : > { %1788 = vmatpush1.bf16.msra.mxu1 %v3669_v4  ;;  %1235 = vmatprep.subr.bf16.mxu0 %v3674_v5  ;;  %v3726_v4 = vld [vmem:[%s5102_s1 + $0x580] ss:$8 sps:$4 sm:$0xff]  }
  0x66   : > { %1789 = vmatprep.subr.bf16.mxu1 %v3677_v7  ;;  %v3729_v5 = vld [vmem:[%s5102_s1 + $0x80] ss:$8 sps:$4 sm:$0xff]   ;;  %v3737_v7 = vld [vmem:[%s5102_s1 + $0x274] ss:$8 sps:$4 sm:$0xff]  }
  0x68   : > { %1236 = vmatpush1.bf16.msra.mxu0 %v3672_v8  ;;  %v3732_v8 = vld [vmem:[%s5102_s1 + $0x170] ss:$8 sps:$4 sm:$0xff]  }
  0x69   : > { %1790 = vmatpush1.bf16.msra.mxu1 %v3675_v9  ;;  %1237 = vmatprep.subr.bf16.mxu0 %v3680_v12  ;;  %v3735_v9 = vld [vmem:[%s5102_s1 + $0x270] ss:$8 sps:$4 sm:$0xff]   ;;  %v3743_v12 = vld [vmem:[%s5102_s1 + $0x264] ss:$8 sps:$4 sm:$0xff]  }
  0x6a   : > { %1791 = vmatprep.subr.bf16.mxu1 %v3683_v13  ;;  %v3738_v13 = vld [vmem:[%s5102_s1 + $0x160] ss:$8 sps:$4 sm:$0xff]  }
  0x6c   : > { %1238 = vmatpush1.bf16.msra.mxu0 %v3678_v21  ;;  %v3484_v21 = vld.sshfl [vmem:[%s4219_s13 + $0x18] sm:$0xf pattern:$0x76325410] }
  0x6d   : > { %1792 = vmatpush1.bf16.msra.mxu1 %v3681_v23  ;;  %1239 = vmatprep.subr.bf16.mxu0 %v3686_v29  ;;  %v3747_v23 = vld [vmem:[%s5102_s1 + $0x250] ss:$8 sps:$4 sm:$0xff]   ;;  %v1282_v24 = vcombine.low %v3483_v17, %v3484_v21  ;;  %v3750_v29 = vld [vmem:[%s5102_s1 + $0x140] ss:$8 sps:$4 sm:$0xff]  }
  0x6e   : > { %1793 = vmatprep.subr.bf16.mxu1 %v3689_v30  ;;  %v1281_v30 = vcombine.high %v4569_v22, %v4569_v22 }
  0x6f   : > { %v4572_v28 = vrot.slane %v1282_v24, %v4289_v26  ;;  %v3819_v24 = vld [vmem:[%s5102_s1 + $0x290] ss:$8 sps:$4 sm:$0xff]  }
  0x70   : > { %1240 = vmatpush2.bf16.msra.mxu0 %v3684_v34  ;;  %v3761_v34 = vld [vmem:[%s5102_s1 + $0x234] ss:$8 sps:$4 sm:$0xff]  }
  0x71   : > { %1794 = vmatpush2.bf16.msra.mxu1 %v3687_v35  ;;  %1241 = vmatprep.subr.bf16.mxu0 %v3692_v39  ;;  %v1290_v32 = vcombine.high %v4572_v28, %v4572_v28  ;;  %v3756_v35 = vld [vmem:[%s5102_s1 + $0x130] ss:$8 sps:$4 sm:$0xff]   ;;  %v3762_v39 = vld [vmem:[%s5102_s1 + $0x120] ss:$8 sps:$4 sm:$0xff]  }
  0x72   : > { %1795 = vmatprep.subr.bf16.mxu1 %v3695_v40  ;;  %v3765_v40 = vld [vmem:[%s5102_s1 + $0x220] ss:$8 sps:$4 sm:$0xff]  }
  0x74   : > { %1242 = vmatpush2.bf16.msra.mxu0 %v3690_v43  ;;  %v3768_v43 = vld [vmem:[%s5102_s1 + $0x110] ss:$8 sps:$4 sm:$0xff]  }
  0x75   : > { %1796 = vmatpush2.bf16.msra.mxu1 %v3693_v44  ;;  %1243 = vmatprep.subr.bf16.mxu0 %v3698_v45  ;;  %v3771_v44 = vld [vmem:[%s5102_s1 + $0x210] ss:$8 sps:$4 sm:$0xff]   ;;  %v3776_v45 = vld [vmem:[%s5102_s1 + $0x104] ss:$8 sps:$4 sm:$0xff]  }
  0x76   : > { %1797 = vmatprep.subr.bf16.mxu1 %v3701_v18  ;;  %v3779_v18 = vld [vmem:[%s5102_s1 + $0x204] ss:$8 sps:$4 sm:$0xff]  }
  0x78   : > { %1244 = vmatpush2.bf16.msra.mxu0 %v3696_v48  ;;  %v3782_v48 = vld [vmem:[%s5102_s1 + $0x1f4] ss:$8 sps:$4 sm:$0xff]  }
  0x79   : > { %1798 = vmatpush2.bf16.msra.mxu1 %v3699_v49  ;;  %1245 = vmatprep.subr.bf16.mxu0 %v3704_v50  ;;  %v3785_v49 = vld [vmem:[%s5102_s1 + $0x2f4] ss:$8 sps:$4 sm:$0xff]   ;;  %v3780_v50 = vld [vmem:[%s5102_s1 + $0x1f0] ss:$8 sps:$4 sm:$0xff]  }
  0x7a   : > { %1799 = vmatprep.subr.bf16.mxu1 %v3707_v51  ;;  %v3783_v51 = vld [vmem:[%s5102_s1 + $0x2f0] ss:$8 sps:$4 sm:$0xff]  }
  0x7c   : > { %1246 = vmatpush2.bf16.msra.mxu0 %v3702_v53  ;;  %v3788_v53 = vld [vmem:[%s5102_s1 + $0x1e4] ss:$8 sps:$4 sm:$0xff]  }
  0x7d   : > { %1800 = vmatpush2.bf16.msra.mxu1 %v3705_v54  ;;  %1247 = vmatprep.subr.bf16.mxu0 %v3710_v55  ;;  %v3791_v54 = vld [vmem:[%s5102_s1 + $0x2e4] ss:$8 sps:$4 sm:$0xff]   ;;  %v3786_v55 = vld [vmem:[%s5102_s1 + $0x1e0] ss:$8 sps:$4 sm:$0xff]  }
  0x7e   : > { %1801 = vmatprep.subr.bf16.mxu1 %v3713_v56  ;;  %v3789_v56 = vld [vmem:[%s5102_s1 + $0x2e0] ss:$8 sps:$4 sm:$0xff]  }
  0x80   : > { %1248 = vmatpush2.bf16.msra.mxu0 %v3708_v57  ;;  %v3794_v57 = vld [vmem:[%s5102_s1 + $0x1d4] ss:$8 sps:$4 sm:$0xff]  }
  0x81   : > { %1802 = vmatpush2.bf16.msra.mxu1 %v3711_v58  ;;  %1249 = vmatprep.subr.bf16.mxu0 %v3716_v59  ;;  %v3797_v58 = vld [vmem:[%s5102_s1 + $0x2d4] ss:$8 sps:$4 sm:$0xff]   ;;  %v3792_v59 = vld [vmem:[%s5102_s1 + $0x1d0] ss:$8 sps:$4 sm:$0xff]  }
  0x82   : > { %1803 = vmatprep.subr.bf16.mxu1 %v3719_v60  ;;  %v3795_v60 = vld [vmem:[%s5102_s1 + $0x2d0] ss:$8 sps:$4 sm:$0xff]  }
  0x84   : > { %1250 = vmatpush2.bf16.msra.mxu0 %v3714_v61  ;;  %v3800_v61 = vld [vmem:[%s5102_s1 + $0x1c4] ss:$8 sps:$4 sm:$0xff]  }
  0x85   : > { %1804 = vmatpush2.bf16.msra.mxu1 %v3717_v62  ;;  %1251 = vmatprep.subr.bf16.mxu0 %v3722_v63  ;;  %v3803_v62 = vld [vmem:[%s5102_s1 + $0x2c4] ss:$8 sps:$4 sm:$0xff]   ;;  %v3798_v63 = vld [vmem:[%s5102_s1 + $0x1c0] ss:$8 sps:$4 sm:$0xff]  }
  0x86   : > { %1805 = vmatprep.subr.bf16.mxu1 %v3725_v0  ;;  %v3801_v0 = vld [vmem:[%s5102_s1 + $0x2c0] ss:$8 sps:$4 sm:$0xff]  }
  0x88   : > { %1252 = vmatpush2.bf16.msra.mxu0 %v3720_v1  ;;  %v3806_v1 = vld [vmem:[%s5102_s1 + $0x1b4] ss:$8 sps:$4 sm:$0xff]  }
  0x89   : > { %1806 = vmatpush2.bf16.msra.mxu1 %v3723_v2  ;;  %1253 = vmatprep.subr.bf16.mxu0 %v3728_v52  ;;  %v3809_v2 = vld [vmem:[%s5102_s1 + $0x2b4] ss:$8 sps:$4 sm:$0xff]   ;;  %v3804_v52 = vld [vmem:[%s5102_s1 + $0x1b0] ss:$8 sps:$4 sm:$0xff]  }
  0x8a   : > { %1807 = vmatprep.subr.bf16.mxu1 %v3731_v3  ;;  %v3807_v3 = vld [vmem:[%s5102_s1 + $0x2b0] ss:$8 sps:$4 sm:$0xff]  }
  0x8c   : > { %1254 = vmatpush2.bf16.msra.mxu0 %v3726_v4  ;;  %v3812_v4 = vld [vmem:[%s5102_s1 + $0x1a4] ss:$8 sps:$4 sm:$0xff]  }
  0x8d   : > { %1808 = vmatpush2.bf16.msra.mxu1 %v3729_v5  ;;  %1818 = vmatprep.subr.bf16.mxu0 %v3734_v6  ;;  %v3815_v5 = vld [vmem:[%s5102_s1 + $0x2a4] ss:$8 sps:$4 sm:$0xff]   ;;  %v3810_v6 = vld [vmem:[%s5102_s1 + $0x1a0] ss:$8 sps:$4 sm:$0xff]  }
  0x8e   : > { %1859 = vmatprep.subr.bf16.mxu1 %v3737_v7  ;;  %v3813_v7 = vld [vmem:[%s5102_s1 + $0x2a0] ss:$8 sps:$4 sm:$0xff]  }
  0x8f   : > { %1256 = vmatmul.mubr.bf16.vlgmr.msra.gmra.mxu0 %v653_v46  ;;  %v3774_v46 = vld [vmem:[%s5102_s1 + $0x100] ss:$8 sps:$4 sm:$0xff]  }
  0x90   : > { %1810 = vmatmul.mubr.bf16.vlgmr.msra.gmra.mxu1 %v4423_v33  ;;  %1819 = vmatpush1.bf16.msra.mxu0 %v3732_v8  ;;  %v3758_v33 = vld [vmem:[%s5102_s1 + $0x134] ss:$8 sps:$4 sm:$0xff]   ;;  %v3491_v8 = vld.sshfl [vmem:[%s4219_s13] sm:$0x5a pattern:$0x76325410] }
  0x91   : > { %1860 = vmatpush1.bf16.msra.mxu1 %v3735_v9  ;;  %1820 = vmatprep.subr.bf16.mxu0 %v3740_v10  ;;  %v3494_v9 = vld.sshfl [vmem:[%s4219_s13 + $0x8] sm:$0x5a pattern:$0x76325410]  ;;  %v3818_v10 = vld [vmem:[%s5102_s1 + $0x194] ss:$8 sps:$4 sm:$0xff]  }
  0x92   : > { %1861 = vmatprep.subr.bf16.mxu1 %v3743_v12  ;;  %1850 = vmatprep.mubr.bf16.mxu0 %v1281_v30  ;;  %v4710_v12 = vld.sshfl [vmem:[%s4219_s13 + $0x10] sm:$0x5a pattern:$0x76325410] }
  0x93   : > { %1891 = vmatprep.mubr.bf16.mxu1 %v1290_v32  ;;  %v1980_v17 = vcombine.high %v3494_v9, %v4710_v12 }
  0x94   : > { %1821 = vmatpush1.bf16.msra.mxu0 %v3738_v13  ;;  %v1952_v13 = vcombine.low %v3491_v8, %v3494_v9 }
  0x95   : > { %1862 = vmatpush1.bf16.msra.mxu1 %v3741_v14  ;;  %1822 = vmatprep.subr.bf16.mxu0 %v3746_v15  ;;  %v1953_v14 = vcombine.high %v3491_v8, %v3494_v9  ;;  %v3821_v15 = vld [vmem:[%s5102_s1 + $0x294] ss:$8 sps:$4 sm:$0xff]   ;;  %v3876_v8 = vld [vmem:[%s5102_s1 + $0x6f0] ss:$8 sps:$4 sm:$0xff]  }
  0x96   : > { %1863 = vmatprep.subr.bf16.mxu1 %v3749_v16  ;;  %v1979_v16 = vcombine.low %v3494_v9, %v4710_v12  ;;  %v3263_v20 = vrot.slane %v1952_v13, 9  ;;  %v3879_v9 = vld [vmem:[%s5102_s1 + $0x7f0] ss:$8 sps:$4 sm:$0xff]   ;;  %v3887_v13 = vld [vmem:[%s5102_s1 + $0x7e4] ss:$8 sps:$4 sm:$0xff]  }
  0x97   : > { %v1999_v21 = vrot.slane %v1953_v14, 7  ;;  %v3882_v14 = vld [vmem:[%s5102_s1 + $0x6e0] ss:$8 sps:$4 sm:$0xff]  }
  0x98   : > { %1823 = vmatpush1.bf16.msra.mxu0 %v3744_v19  ;;  %v3923_v19 = vld [vmem:[%s5102_s1 + $0x784] ss:$8 sps:$4 sm:$0xff]  }
  0x99   : > { %1864 = vmatpush1.bf16.msra.mxu1 %v3747_v23  ;;  %1824 = vmatprep.subr.bf16.mxu0 %v3752_v25  ;;  %v3816_v23 = vld [vmem:[%s5102_s1 + $0x190] ss:$8 sps:$4 sm:$0xff]   ;;  %v3265_v25 = vrot.slane %v1979_v16, 9  ;;  %v2000_v30 = vsel %vm4717_vm13, %v3263_v20, %v1999_v21  ;;  %v3890_v16 = vld [vmem:[%s5102_s1 + $0x6d4] ss:$8 sps:$4 sm:$0xff]  }
  0x9a   : > { %1865 = vmatprep.subr.bf16.mxu1 %v3755_v27  ;;  %v2007_v27 = vrot.slane %v1980_v17, 7  ;;  %v3893_v17 = vld [vmem:[%s5102_s1 + $0x7d4] ss:$8 sps:$4 sm:$0xff]   ;;  %v3888_v20 = vld [vmem:[%s5102_s1 + $0x6d0] ss:$8 sps:$4 sm:$0xff]  }
  0x9b   : > { %v3891_v21 = vld [vmem:[%s5102_s1 + $0x7d0] ss:$8 sps:$4 sm:$0xff]  }
  0x9c   : > { %1825 = vmatpush1.bf16.msra.mxu0 %v3750_v29  ;;  %v3824_v29 = vld [vmem:[%s5102_s1 + $0x184] ss:$8 sps:$4 sm:$0xff]   ;;  %v2008_v32 = vsel %vm4717_vm13, %v3265_v25, %v2007_v27  ;;  %v3496_v25 = vld.sshfl [vmem:[%s4219_s13 + $0x18] sm:$0x5a pattern:$0x76325410] }
  0x9d   : > { %1866 = vmatpush1.bf16.msra.mxu1 %v3753_v31  ;;  %1826 = vmatprep.subr.bf16.mxu0 %v3758_v33  ;;  %v3827_v31 = vld [vmem:[%s5102_s1 + $0x284] ss:$8 sps:$4 sm:$0xff]   ;;  %v2110_v33 = vcombine.low %v2000_v30, %v2008_v32  ;;  %v3894_v27 = vld [vmem:[%s5102_s1 + $0x6c0] ss:$8 sps:$4 sm:$0xff]  }
  0x9e   : > { %1867 = vmatprep.subr.bf16.mxu1 %v3761_v34  ;;  %v2111_v34 = vcombine.high %v2000_v30, %v2008_v32  ;;  %v3902_v30 = vld [vmem:[%s5102_s1 + $0x6b4] ss:$8 sps:$4 sm:$0xff]   ;;  %v1962_v32 = vcombine.high %v4710_v12, %v4710_v12 }
  0xa0   : > { %1827 = vmatpush1.bf16.msra.mxu0 %v3756_v35  ;;  %v3822_v35 = vld [vmem:[%s5102_s1 + $0x180] ss:$8 sps:$4 sm:$0xff]  }
  0xa1   : > { %1868 = vmatpush1.bf16.msra.mxu1 %v3759_v36  ;;  %1828 = vmatprep.subr.bf16.mxu0 %v3764_v37  ;;  %v3825_v36 = vld [vmem:[%s5102_s1 + $0x280] ss:$8 sps:$4 sm:$0xff]   ;;  %v3830_v37 = vld [vmem:[%s5102_s1 + $0x674] ss:$8 sps:$4 sm:$0xff]  }
  0xa2   : > { %1869 = vmatprep.subr.bf16.mxu1 %v3767_v38  ;;  %v3833_v38 = vld [vmem:[%s5102_s1 + $0x774] ss:$8 sps:$4 sm:$0xff]  }
  0xa4   : > { %1829 = vmatpush1.bf16.msra.mxu0 %v3762_v39  ;;  %v4750_v39 = vrot.slane %v2110_v33, %v4289_v26  ;;  %v1989_v33 = vcombine.high %v3496_v25, %v3496_v25 }
  0xa5   : > { %1870 = vmatpush1.bf16.msra.mxu1 %v3765_v40  ;;  %1830 = vmatprep.subr.bf16.mxu0 %v3770_v41  ;;  %v4753_v40 = vrot.slane %v2111_v34, %v4289_v26  ;;  %v3828_v41 = vld [vmem:[%s5102_s1 + $0x670] ss:$8 sps:$4 sm:$0xff]  }
  0xa6   : > { %1871 = vmatprep.subr.bf16.mxu1 %v3773_v42  ;;  %v3831_v42 = vld [vmem:[%s5102_s1 + $0x770] ss:$8 sps:$4 sm:$0xff]  }
  0xa7   : > { %v3900_v34 = vld [vmem:[%s5102_s1 + $0x6b0] ss:$8 sps:$4 sm:$0xff]  }
  0xa8   : > { %1831 = vmatpush1.bf16.msra.mxu0 %v3768_v43  ;;  %v3836_v43 = vld [vmem:[%s5102_s1 + $0x664] ss:$8 sps:$4 sm:$0xff]  }
  0xa9   : > { %1872 = vmatpush1.bf16.msra.mxu1 %v3771_v44  ;;  %1832 = vmatprep.subr.bf16.mxu0 %v3776_v45  ;;  %v3839_v44 = vld [vmem:[%s5102_s1 + $0x764] ss:$8 sps:$4 sm:$0xff]   ;;  %v2126_v45 = vcombine.high %v4750_v39, %v4750_v39 }
  0xaa   : > { %1873 = vmatprep.subr.bf16.mxu1 %v3779_v18  ;;  %v2127_v18 = vcombine.high %v4753_v40, %v4753_v40 }
  0xac   : > { %1833 = vmatpush1.bf16.msra.mxu0 %v3774_v46  ;;  %v3834_v46 = vld [vmem:[%s5102_s1 + $0x660] ss:$8 sps:$4 sm:$0xff]  }
  0xad   : > { %1874 = vmatpush1.bf16.msra.mxu1 %v3777_v47  ;;  %1834 = vmatprep.subr.bf16.mxu0 %v3782_v48  ;;  %v3837_v47 = vld [vmem:[%s5102_s1 + $0x760] ss:$8 sps:$4 sm:$0xff]   ;;  %v3842_v48 = vld [vmem:[%s5102_s1 + $0x654] ss:$8 sps:$4 sm:$0xff]  }
  0xae   : > { %1875 = vmatprep.subr.bf16.mxu1 %v3785_v49  ;;  %v3843_v49 = vld [vmem:[%s5102_s1 + $0x750] ss:$8 sps:$4 sm:$0xff]  }
  0xb0   : > { %1835 = vmatpush2.bf16.msra.mxu0 %v3780_v50  ;;  %v3848_v50 = vld [vmem:[%s5102_s1 + $0x644] ss:$8 sps:$4 sm:$0xff]  }
  0xb1   : > { %1876 = vmatpush2.bf16.msra.mxu1 %v3783_v51  ;;  %1836 = vmatprep.subr.bf16.mxu0 %v3788_v53  ;;  %v3851_v51 = vld [vmem:[%s5102_s1 + $0x744] ss:$8 sps:$4 sm:$0xff]   ;;  %v3846_v53 = vld [vmem:[%s5102_s1 + $0x640] ss:$8 sps:$4 sm:$0xff]  }
  0xb2   : > { %1877 = vmatprep.subr.bf16.mxu1 %v3791_v54  ;;  %v3849_v54 = vld [vmem:[%s5102_s1 + $0x740] ss:$8 sps:$4 sm:$0xff]  }
  0xb4   : > { %1837 = vmatpush2.bf16.msra.mxu0 %v3786_v55  ;;  %v3854_v55 = vld [vmem:[%s5102_s1 + $0x634] ss:$8 sps:$4 sm:$0xff]  }
  0xb5   : > { %1878 = vmatpush2.bf16.msra.mxu1 %v3789_v56  ;;  %1838 = vmatprep.subr.bf16.mxu0 %v3794_v57  ;;  %v3857_v56 = vld [vmem:[%s5102_s1 + $0x734] ss:$8 sps:$4 sm:$0xff]   ;;  %v3852_v57 = vld [vmem:[%s5102_s1 + $0x630] ss:$8 sps:$4 sm:$0xff]  }
  0xb6   : > { %1879 = vmatprep.subr.bf16.mxu1 %v3797_v58  ;;  %v3855_v58 = vld [vmem:[%s5102_s1 + $0x730] ss:$8 sps:$4 sm:$0xff]  }
  0xb8   : > { %1839 = vmatpush2.bf16.msra.mxu0 %v3792_v59  ;;  %v3860_v59 = vld [vmem:[%s5102_s1 + $0x624] ss:$8 sps:$4 sm:$0xff]  }
  0xb9   : > { %1880 = vmatpush2.bf16.msra.mxu1 %v3795_v60  ;;  %1840 = vmatprep.subr.bf16.mxu0 %v3800_v61  ;;  %v3863_v60 = vld [vmem:[%s5102_s1 + $0x724] ss:$8 sps:$4 sm:$0xff]   ;;  %v3858_v61 = vld [vmem:[%s5102_s1 + $0x620] ss:$8 sps:$4 sm:$0xff]  }
  0xba   : > { %1881 = vmatprep.subr.bf16.mxu1 %v3803_v62  ;;  %v3861_v62 = vld [vmem:[%s5102_s1 + $0x720] ss:$8 sps:$4 sm:$0xff]  }
  0xbc   : > { %1841 = vmatpush2.bf16.msra.mxu0 %v3798_v63  ;;  %v3866_v63 = vld [vmem:[%s5102_s1 + $0x614] ss:$8 sps:$4 sm:$0xff]  }
  0xbd   : > { %1882 = vmatpush2.bf16.msra.mxu1 %v3801_v0  ;;  %1842 = vmatprep.subr.bf16.mxu0 %v3806_v1  ;;  %v3869_v0 = vld [vmem:[%s5102_s1 + $0x714] ss:$8 sps:$4 sm:$0xff]   ;;  %v3864_v1 = vld [vmem:[%s5102_s1 + $0x610] ss:$8 sps:$4 sm:$0xff]  }
  0xbe   : > { %1883 = vmatprep.subr.bf16.mxu1 %v3809_v2  ;;  %v3867_v2 = vld [vmem:[%s5102_s1 + $0x710] ss:$8 sps:$4 sm:$0xff]  }
  0xc0   : > { %1843 = vmatpush2.bf16.msra.mxu0 %v3804_v52  ;;  %v3872_v52 = vld [vmem:[%s5102_s1 + $0x604] ss:$8 sps:$4 sm:$0xff]  }
  0xc1   : > { %1884 = vmatpush2.bf16.msra.mxu1 %v3807_v3  ;;  %1844 = vmatprep.subr.bf16.mxu0 %v3812_v4  ;;  %v3875_v3 = vld [vmem:[%s5102_s1 + $0x704] ss:$8 sps:$4 sm:$0xff]   ;;  %v3870_v4 = vld [vmem:[%s5102_s1 + $0x600] ss:$8 sps:$4 sm:$0xff]  }
  0xc2   : > { %1885 = vmatprep.subr.bf16.mxu1 %v3815_v5  ;;  %v3873_v5 = vld [vmem:[%s5102_s1 + $0x700] ss:$8 sps:$4 sm:$0xff]  }
  0xc4   : > { %1845 = vmatpush2.bf16.msra.mxu0 %v3810_v6  ;;  %v3878_v6 = vld [vmem:[%s5102_s1 + $0x6f4] ss:$8 sps:$4 sm:$0xff]  }
  0xc5   : > { %1886 = vmatpush2.bf16.msra.mxu1 %v3813_v7  ;;  %1846 = vmatprep.subr.bf16.mxu0 %v3818_v10  ;;  %v3881_v7 = vld [vmem:[%s5102_s1 + $0x7f4] ss:$8 sps:$4 sm:$0xff]   ;;  %v3884_v10 = vld [vmem:[%s5102_s1 + $0x6e4] ss:$8 sps:$4 sm:$0xff]  }
  0xc6   : > { %1887 = vmatprep.subr.bf16.mxu1 %v3821_v15  ;;  %v3885_v15 = vld [vmem:[%s5102_s1 + $0x7e0] ss:$8 sps:$4 sm:$0xff]  }
  0xc8   : > { %1847 = vmatpush2.bf16.msra.mxu0 %v3816_v23  ;;  %v3896_v23 = vld [vmem:[%s5102_s1 + $0x6c4] ss:$8 sps:$4 sm:$0xff]  }
  0xc9   : > { %1888 = vmatpush2.bf16.msra.mxu1 %v3819_v24  ;;  %1848 = vmatprep.subr.bf16.mxu0 %v3824_v29  ;;  %v3899_v24 = vld [vmem:[%s5102_s1 + $0x7c4] ss:$8 sps:$4 sm:$0xff]   ;;  %v3897_v29 = vld [vmem:[%s5102_s1 + $0x7c0] ss:$8 sps:$4 sm:$0xff]  }
  0xca   : > { %1889 = vmatprep.subr.bf16.mxu1 %v3827_v31  ;;  %v3905_v31 = vld [vmem:[%s5102_s1 + $0x7b4] ss:$8 sps:$4 sm:$0xff]  }
  0xcc   : > { %1849 = vmatpush2.bf16.msra.mxu0 %v3822_v35  ;;  %v3903_v35 = vld [vmem:[%s5102_s1 + $0x7b0] ss:$8 sps:$4 sm:$0xff]  }
  0xcd   : > { %1890 = vmatpush2.bf16.msra.mxu1 %v3825_v36  ;;  %2623 = vmatprep.subr.bf16.mxu0 %v3830_v37  ;;  %v3908_v36 = vld [vmem:[%s5102_s1 + $0x6a4] ss:$8 sps:$4 sm:$0xff]  }
  0xce   : > { %2664 = vmatprep.subr.bf16.mxu1 %v3833_v38  ;;  %v3911_v37 = vld [vmem:[%s5102_s1 + $0x7a4] ss:$8 sps:$4 sm:$0xff]   ;;  %v3264_v38 = vrot.slane %v4710_v12, 9  ;;  %v3917_v12 = vld [vmem:[%s5102_s1 + $0x794] ss:$8 sps:$4 sm:$0xff]  }
  0xcf   : > { %1851 = vmatmul.mubr.bf16.vlgmr.msra.gmra.mxu0 %v4569_v22  ;;  %v3845_v22 = vld [vmem:[%s5102_s1 + $0x754] ss:$8 sps:$4 sm:$0xff]  }
  0xd0   : > { %1892 = vmatmul.mubr.bf16.vlgmr.msra.gmra.mxu1 %v4572_v28  ;;  %2624 = vmatpush1.bf16.msra.mxu0 %v3828_v41  ;;  %v3840_v28 = vld [vmem:[%s5102_s1 + $0x650] ss:$8 sps:$4 sm:$0xff]   ;;  %v2003_v41 = vrot.slane %v1962_v32, 7  ;;  %v3968_v32 = vld [vmem:[%s5102_s1 + $0x894] ss:$8 sps:$4 sm:$0xff]  }
  0xd1   : > { %2665 = vmatpush1.bf16.msra.mxu1 %v3831_v42  ;;  %2625 = vmatprep.subr.bf16.mxu0 %v3836_v43  ;;  %v3266_v42 = vrot.slane %v3496_v25, 9  ;;  %v2011_v43 = vrot.slane %v1989_v33, 7  ;;  %v3957_v25 = vld [vmem:[%s5102_s1 + $0x8c0] ss:$8 sps:$4 sm:$0xff]   ;;  %v3966_v33 = vld [vmem:[%s5102_s1 + $0x890] ss:$8 sps:$4 sm:$0xff]  }
  0xd2   : > { %2666 = vmatprep.subr.bf16.mxu1 %v3839_v44  ;;  %2655 = vmatprep.mubr.bf16.mxu0 %v2126_v45  ;;  %v3906_v44 = vld [vmem:[%s5102_s1 + $0x6a0] ss:$8 sps:$4 sm:$0xff]  }
  0xd3   : > { %2696 = vmatprep.mubr.bf16.mxu1 %v2127_v18  ;;  %v3909_v45 = vld [vmem:[%s5102_s1 + $0x7a0] ss:$8 sps:$4 sm:$0xff]   ;;  %v3914_v18 = vld [vmem:[%s5102_s1 + $0x694] ss:$8 sps:$4 sm:$0xff]  }
  0xd4   : > { %2626 = vmatpush1.bf16.msra.mxu0 %v3834_v46  ;;  %v2004_v46 = vsel %vm4717_vm13, %v3264_v38, %v2003_v41 }
  0xd5   : > { %2667 = vmatpush1.bf16.msra.mxu1 %v3837_v47  ;;  %2627 = vmatprep.subr.bf16.mxu0 %v3842_v48  ;;  %v2012_v47 = vsel %vm4717_vm13, %v3266_v42, %v2011_v43  ;;  %v3912_v48 = vld [vmem:[%s5102_s1 + $0x690] ss:$8 sps:$4 sm:$0xff]  }
  0xd6   : > { %2668 = vmatprep.subr.bf16.mxu1 %v3845_v22  ;;  %v3915_v22 = vld [vmem:[%s5102_s1 + $0x790] ss:$8 sps:$4 sm:$0xff]  }
  0xd8   : > { %2628 = vmatpush1.bf16.msra.mxu0 %v3840_v28  ;;  %v2128_v28 = vcombine.low %v2004_v46, %v2012_v47 }
  0xd9   : > { %2669 = vmatpush1.bf16.msra.mxu1 %v3843_v49  ;;  %2629 = vmatprep.subr.bf16.mxu0 %v3848_v50  ;;  %v3920_v49 = vld [vmem:[%s5102_s1 + $0x684] ss:$8 sps:$4 sm:$0xff]   ;;  %v3918_v50 = vld [vmem:[%s5102_s1 + $0x680] ss:$8 sps:$4 sm:$0xff]  }
  0xda   : > { %2670 = vmatprep.subr.bf16.mxu1 %v3851_v51  ;;  %v3921_v51 = vld [vmem:[%s5102_s1 + $0x780] ss:$8 sps:$4 sm:$0xff]  }
  0xdc   : > { %2630 = vmatpush1.bf16.msra.mxu0 %v3846_v53  ;;  %v4956_v53 = vrot.slane %v2128_v28, %v4289_v26  ;;  %v3929_v26 = vld [vmem:[%s5102_s1 + $0x864] ss:$8 sps:$4 sm:$0xff]  }
  0xdd   : > { %2671 = vmatpush1.bf16.msra.mxu1 %v3849_v54  ;;  %2631 = vmatprep.subr.bf16.mxu0 %v3854_v55  ;;  %v3926_v54 = vld [vmem:[%s5102_s1 + $0x874] ss:$8 sps:$4 sm:$0xff]   ;;  %v3924_v55 = vld [vmem:[%s5102_s1 + $0x870] ss:$8 sps:$4 sm:$0xff]  }
  0xde   : > { %2672 = vmatprep.subr.bf16.mxu1 %v3857_v56  ;;  %v2136_v56 = vcombine.high %v4956_v53, %v4956_v53 }
  0xe0   : > { %2632 = vmatpush1.bf16.msra.mxu0 %v3852_v57 }
  0xe1   : > { %2673 = vmatpush1.bf16.msra.mxu1 %v3855_v58  ;;  %2633 = vmatprep.subr.bf16.mxu0 %v3860_v59 }
  0xe2   : > { %2674 = vmatprep.subr.bf16.mxu1 %v3863_v60  ;;  %v3927_v60 = vld [vmem:[%s5102_s1 + $0x860] ss:$8 sps:$4 sm:$0xff]  }
  0xe4   : > { %2634 = vmatpush1.bf16.msra.mxu0 %v3858_v61 }
  0xe5   : > { %2675 = vmatpush1.bf16.msra.mxu1 %v3861_v62  ;;  %2635 = vmatprep.subr.bf16.mxu0 %v3866_v63  ;;  %v3932_v63 = vld [vmem:[%s5102_s1 + $0x854] ss:$8 sps:$4 sm:$0xff]  }
  0xe6   : > { %2676 = vmatprep.subr.bf16.mxu1 %v3869_v0 }
  0xe8   : > { %2636 = vmatpush1.bf16.msra.mxu0 %v3864_v1 }
  0xe9   : > { %2677 = vmatpush1.bf16.msra.mxu1 %v3867_v2  ;;  %2637 = vmatprep.subr.bf16.mxu0 %v3872_v52  ;;  %v3935_v52 = vld [vmem:[%s5102_s1 + $0x844] ss:$8 sps:$4 sm:$0xff]  }
  0xea   : > { %2678 = vmatprep.subr.bf16.mxu1 %v3875_v3 }
  0xec   : > { %2638 = vmatpush1.bf16.msra.mxu0 %v3870_v4  ;;  %v3933_v4 = vld [vmem:[%s5102_s1 + $0x840] ss:$8 sps:$4 sm:$0xff]  }
  0xed   : > { %2679 = vmatpush1.bf16.msra.mxu1 %v3873_v5  ;;  %2639 = vmatprep.subr.bf16.mxu0 %v3878_v6  ;;  %v3938_v5 = vld [vmem:[%s5102_s1 + $0x834] ss:$8 sps:$4 sm:$0xff]   ;;  %v3936_v6 = vld [vmem:[%s5102_s1 + $0x830] ss:$8 sps:$4 sm:$0xff]  }
  0xee   : > { %2680 = vmatprep.subr.bf16.mxu1 %v3881_v7  ;;  %v3941_v7 = vld [vmem:[%s5102_s1 + $0x824] ss:$8 sps:$4 sm:$0xff]  }
  0xf0   : > { %2640 = vmatpush2.bf16.msra.mxu0 %v3876_v8  ;;  %v3939_v8 = vld [vmem:[%s5102_s1 + $0x820] ss:$8 sps:$4 sm:$0xff]  }
  0xf1   : > { %2681 = vmatpush2.bf16.msra.mxu1 %v3879_v9  ;;  %2641 = vmatprep.subr.bf16.mxu0 %v3884_v10  ;;  %v3944_v9 = vld [vmem:[%s5102_s1 + $0x814] ss:$8 sps:$4 sm:$0xff]   ;;  %v3942_v10 = vld [vmem:[%s5102_s1 + $0x810] ss:$8 sps:$4 sm:$0xff]  }
  0xf2   : > { %2682 = vmatprep.subr.bf16.mxu1 %v3887_v13  ;;  %v3947_v13 = vld [vmem:[%s5102_s1 + $0x804] ss:$8 sps:$4 sm:$0xff]  }
  0xf4   : > { %2642 = vmatpush2.bf16.msra.mxu0 %v3882_v14  ;;  %v3945_v14 = vld [vmem:[%s5102_s1 + $0x800] ss:$8 sps:$4 sm:$0xff]  }
  0xf5   : > { %2683 = vmatpush2.bf16.msra.mxu1 %v3885_v15  ;;  %2643 = vmatprep.subr.bf16.mxu0 %v3890_v16  ;;  %v3950_v15 = vld [vmem:[%s5102_s1 + $0x8f4] ss:$8 sps:$4 sm:$0xff]   ;;  %v3948_v16 = vld [vmem:[%s5102_s1 + $0x8f0] ss:$8 sps:$4 sm:$0xff]  }
  0xf6   : > { %2684 = vmatprep.subr.bf16.mxu1 %v3893_v17  ;;  %v3953_v17 = vld [vmem:[%s5102_s1 + $0x8e4] ss:$8 sps:$4 sm:$0xff]  }
  0xf8   : > { %2644 = vmatpush2.bf16.msra.mxu0 %v3888_v20  ;;  %v3951_v20 = vld [vmem:[%s5102_s1 + $0x8e0] ss:$8 sps:$4 sm:$0xff]  }
  0xf9   : > { %2685 = vmatpush2.bf16.msra.mxu1 %v3891_v21  ;;  %2645 = vmatprep.subr.bf16.mxu0 %v3896_v23  ;;  %v3956_v21 = vld [vmem:[%s5102_s1 + $0x8d4] ss:$8 sps:$4 sm:$0xff]   ;;  %v3954_v23 = vld [vmem:[%s5102_s1 + $0x8d0] ss:$8 sps:$4 sm:$0xff]  }
  0xfa   : > { %2686 = vmatprep.subr.bf16.mxu1 %v3899_v24  ;;  %v3959_v24 = vld [vmem:[%s5102_s1 + $0x8c4] ss:$8 sps:$4 sm:$0xff]  }
  0xfc   : > { %2646 = vmatpush2.bf16.msra.mxu0 %v3894_v27  ;;  %v3962_v27 = vld [vmem:[%s5102_s1 + $0x8b4] ss:$8 sps:$4 sm:$0xff]  }
  0xfd   : > { %2687 = vmatpush2.bf16.msra.mxu1 %v3897_v29  ;;  %2647 = vmatprep.subr.bf16.mxu0 %v3902_v30  ;;  %v3960_v29 = vld [vmem:[%s5102_s1 + $0x8b0] ss:$8 sps:$4 sm:$0xff]   ;;  %v3965_v30 = vld [vmem:[%s5102_s1 + $0x8a4] ss:$8 sps:$4 sm:$0xff]  }
  0xfe   : > { %2688 = vmatprep.subr.bf16.mxu1 %v3905_v31  ;;  %v3963_v31 = vld [vmem:[%s5102_s1 + $0x8a0] ss:$8 sps:$4 sm:$0xff]  }
 0x100   : > { %2648 = vmatpush2.bf16.msra.mxu0 %v3900_v34  ;;  %v3971_v34 = vld [vmem:[%s5102_s1 + $0x884] ss:$8 sps:$4 sm:$0xff]  }
 0x101   : > { %2689 = vmatpush2.bf16.msra.mxu1 %v3903_v35  ;;  %2649 = vmatprep.subr.bf16.mxu0 %v3908_v36  ;;  %v3969_v35 = vld [vmem:[%s5102_s1 + $0x880] ss:$8 sps:$4 sm:$0xff]  }
 0x102   : > { %2690 = vmatprep.subr.bf16.mxu1 %v3911_v37 }
 0x104   : > { %2650 = vmatpush2.bf16.msra.mxu0 %v3906_v44 }
 0x105   : > { %2691 = vmatpush2.bf16.msra.mxu1 %v3909_v45  ;;  %2651 = vmatprep.subr.bf16.mxu0 %v3914_v18 }
 0x106   : > { %2692 = vmatprep.subr.bf16.mxu1 %v3917_v12 }
 0x108   : > { %2652 = vmatpush2.bf16.msra.mxu0 %v3912_v48 }
 0x109   : > { %2693 = vmatpush2.bf16.msra.mxu1 %v3915_v22  ;;  %2653 = vmatprep.subr.bf16.mxu0 %v3920_v49 }
 0x10a   : > { %2694 = vmatprep.subr.bf16.mxu1 %v3923_v19 }
 0x10c   : > { %2654 = vmatpush2.bf16.msra.mxu0 %v3918_v50 }
 0x10d   : > { %2695 = vmatpush2.bf16.msra.mxu1 %v3921_v51  ;;  %2705 = vmatprep.subr.bf16.mxu0 %v3926_v54 }
 0x10f   : > { %v1175_v57 = vpop.f32.mrf.mxu0  ;;  %2656 = vmatmul.mubr.bf16.vlgmr.msra.gmra.mxu0 %v4750_v39 }
 0x110   : > { %v1216_v58 = vpop.f32.mrf.mxu1  ;;  %2697 = vmatmul.mubr.bf16.vlgmr.msra.gmra.mxu1 %v4753_v40  ;;  %2706 = vmatpush1.bf16.msra.mxu0 %v3924_v55  ;;  %v3930_v40 = vld [vmem:[%s5102_s1 + $0x850] ss:$8 sps:$4 sm:$0xff]  }
 0x111   : > { %v4971_v59 = vadd.f32 %v1216_v58, %v1175_v57  ;;  %2737 = vmatprep.mubr.bf16.mxu0 %v2136_v56  ;;  %v1177_v61 = vpop.f32.mrf.mxu0  ;;  %2707 = vmatprep.subr.bf16.mxu0 %v3929_v26 }
 0x112   : > { %v1218_v62 = vpop.f32.mrf.mxu1 }
 0x113   : > { %v4979_v0 = vadd.f32 %v1218_v62, %v1177_v61  ;;  %v1179_v39 = vpop.f32.mrf.mxu0 }
 0x114   : > { %v1220_v1 = vpop.f32.mrf.mxu1  ;;  %2708 = vmatpush1.bf16.msra.mxu0 %v3927_v60 }
 0x115   : > { %v1180_v2 = vpop.f32.mrf.mxu0  ;;  %2709 = vmatprep.subr.bf16.mxu0 %v3932_v63  ;;  %v2752_v1 = vsub.s32 0, %v4264_v11 }
 0x116   : > { %v1221_v3 = vpop.f32.mrf.mxu1  ;;  %v2756_v2 = vsub.s32 1, %v4264_v11 }
 0x118   : > { %2710 = vmatpush1.bf16.msra.mxu0 %v3930_v40  ;;  %v2748_v40 = vld [vmem:[%s5103_s2] sm:$0x3] }
 0x119   : > { %2711 = vmatprep.subr.bf16.mxu0 %v3935_v52 }
 0x11c   : > { %2712 = vmatpush1.bf16.msra.mxu0 %v3933_v4 }
 0x11d   : > { %2713 = vmatprep.subr.bf16.mxu0 %v3938_v5  ;;  %v2753_v5 = vrot.slane %v2748_v40, %v2752_v1 }
 0x120   : > { %2714 = vmatpush1.bf16.msra.mxu0 %v3936_v6 }
 0x121   : > { %2715 = vmatprep.subr.bf16.mxu0 %v3941_v7 }
 0x124   : > { %2716 = vmatpush1.bf16.msra.mxu0 %v3939_v8 }
 0x125   : > { %2717 = vmatprep.subr.bf16.mxu0 %v3944_v9  ;;  %v2757_v9 = vrot.slane %v2748_v40, %v2756_v2 }
 0x128   : > { %2718 = vmatpush1.bf16.msra.mxu0 %v3942_v10 }
 0x129   : > { %2719 = vmatprep.subr.bf16.mxu0 %v3947_v13 }
 0x12c   : > { %2720 = vmatpush1.bf16.msra.mxu0 %v3945_v14 }
 0x12d   : > { %2721 = vmatprep.subr.bf16.mxu0 %v3950_v15 }
 0x130   : > { %2722 = vmatpush2.bf16.msra.mxu0 %v3948_v16 }
 0x131   : > { %2723 = vmatprep.subr.bf16.mxu0 %v3953_v17 }
 0x134   : > { %2724 = vmatpush2.bf16.msra.mxu0 %v3951_v20 }
 0x135   : > { %2725 = vmatprep.subr.bf16.mxu0 %v3956_v21 }
 0x138   : > { %2726 = vmatpush2.bf16.msra.mxu0 %v3954_v23 }
 0x139   : > { %2727 = vmatprep.subr.bf16.mxu0 %v3959_v24 }
 0x13c   : > { %2728 = vmatpush2.bf16.msra.mxu0 %v3957_v25 }
 0x13d   : > { %2729 = vmatprep.subr.bf16.mxu0 %v3962_v27 }
 0x140   : > { %2730 = vmatpush2.bf16.msra.mxu0 %v3960_v29 }
 0x141   : > { %2731 = vmatprep.subr.bf16.mxu0 %v3965_v30 }
 0x144   : > { %2732 = vmatpush2.bf16.msra.mxu0 %v3963_v31 }
 0x145   : > { %2733 = vmatprep.subr.bf16.mxu0 %v3968_v32 }
 0x148   : > { %2734 = vmatpush2.bf16.msra.mxu0 %v3966_v33 }
 0x149   : > { %2735 = vmatprep.subr.bf16.mxu0 %v3971_v34 }
 0x14c   : > { %2736 = vmatpush2.bf16.msra.mxu0 %v3969_v35 }
 0x14f   : > { %v1257_v36 = vpop.f32.mrf.mxu0  ;;  %2738 = vmatmul.mubr.bf16.vlgmr.msra.gmra.mxu0 %v4956_v53 }
 0x150   : > { %v1811_v37 = vpop.f32.mrf.mxu1  ;;  %v1258_v38 = vadd.f32 %v1257_v36, %v4971_v59 }
 0x151   : > { %v1259_v41 = vpop.f32.mrf.mxu0 }
 0x152   : > { %v1813_v42 = vpop.f32.mrf.mxu1  ;;  %v1260_v43 = vadd.f32 %v1259_v41, %v4979_v0  ;;  %v1812_v44 = vadd.f32 %v1811_v37, %v1258_v38 }
 0x153   : > { %v1261_v45 = vpop.f32.mrf.mxu0 }
 0x154   : > { %v1815_v18 = vpop.f32.mrf.mxu1  ;;  %v1814_v12 = vadd.f32 %v1813_v42, %v1260_v43 }
 0x155   : > { %v1262_v46 = vpop.f32.mrf.mxu0 }
 0x156   : > { %v1816_v47 = vpop.f32.mrf.mxu1 }
 0x18f   : > { %v1852_v48 = vpop.f32.mrf.mxu0 }
 0x190   : > { %v1893_v22 = vpop.f32.mrf.mxu1  ;;  %v1853_v28 = vadd.f32 %v1852_v48, %v1812_v44 }
 0x191   : > { %v1854_v49 = vpop.f32.mrf.mxu0 }
 0x192   : > { %v1895_v19 = vpop.f32.mrf.mxu1  ;;  %v1855_v50 = vadd.f32 %v1854_v49, %v1814_v12  ;;  %v1894_v51 = vadd.f32 %v1893_v22, %v1853_v28 }
 0x193   : > { %v1856_v53 = vpop.f32.mrf.mxu0 }
 0x194   : > { %v1897_v54 = vpop.f32.mrf.mxu1  ;;  %v1896_v55 = vadd.f32 %v1895_v19, %v1855_v50 }
 0x195   : > { %v1857_v56 = vpop.f32.mrf.mxu0 }
 0x196   : > { %v1898_v26 = vpop.f32.mrf.mxu1 }
 0x1cf   : > { %v2657_v57 = vpop.f32.mrf.mxu0 }
 0x1d0   : > { %v2698_v58 = vpop.f32.mrf.mxu1 }
 0x1d1   : > { %v2699_v59 = vadd.f32 %v2698_v58, %v2657_v57  ;;  %v2659_v60 = vpop.f32.mrf.mxu0 }
 0x1d2   : > { %v2700_v61 = vpop.f32.mrf.mxu1 }
 0x1d3   : > { %v2661_v62 = vpop.f32.mrf.mxu0  ;;  %v2701_v3 = vadd.f32 %v2700_v61, %v2659_v60 }
 0x1d4   : > { %v2702_v63 = vpop.f32.mrf.mxu1 }
 0x1d5   : > { %v2662_v0 = vpop.f32.mrf.mxu0 }
 0x1d6   : > { %v2703_v39 = vpop.f32.mrf.mxu1 }
 0x20f   : > { %v2739_v52 = vpop.f32.mrf.mxu0 }
 0x210   : > { %v2740_v4 = vadd.f32 %v2739_v52, %v2699_v59 }
 0x211   : > { %v2741_v6 = vpop.f32.mrf.mxu0 }
 0x212   : > { %v2746_v7 = vadd.f32 %v2740_v4, %v1894_v51  ;;  %v2742_v8 = vadd.f32 %v2741_v6, %v2701_v3 }
 0x213   : > { %v2743_v10 = vpop.f32.mrf.mxu0 }
 0x214   : > { %v2760_v13 = vadd.f32 %v2753_v5, %v2746_v7  ;;  %v2747_v14 = vadd.f32 %v2742_v8, %v1896_v55 }
 0x215   : > { %v2744_v15 = vpop.f32.mrf.mxu0 }
 0x216   : > { %v2761_v16 = vadd.f32 %v2757_v9, %v2747_v14  ;;  %v2762_v17 = vmax.f32 %v2760_v13, 0.0  ;;  %2773 = sbr.rel (%p3459_p6) target bundleno = 543 (0x21f), region = 36 }
 0x218   : > { %v2763_v20 = vmax.f32 %v2761_v16, 0.0 }
 0x21a   : > { %v2766_v21 = vcombine.low %v2762_v17, %v2763_v20  ;;  %v2767_v23 = vcombine.high %v2762_v17, %v2763_v20 }
 0x21b   : > { %v4013_v11 = vmov 0  }
 0x21c   : > { %2774 = vst [vmem:[%s4101_s20] sm:$0x77] %v4013_v11  ;;  %2775 = vst [vmem:[%s4101_s20 + $0x8] sm:$0x77] %v4013_v11 }
 0x21d   : > { %2776 = vst [vmem:[%s4101_s20 + $0x10] sm:$0x77] %v4013_v11  ;;  %2777 = vst [vmem:[%s4101_s20 + $0x18] sm:$0x77] %v4013_v11 }
 0x21e   : > { %2778 = vst [vmem:[%s4101_s20 + $0x20] sm:$0x77] %v4013_v11  ;;  %2779 = vst [vmem:[%s4101_s20 + $0x28] sm:$0x77] %v4013_v11 }
 0x21f PF: > { %v3460_v24 = vcombine.low %v2763_v20, %v2763_v20  ;;  %vm2818_vm14 = vcmask 1042432   ;;  %vm2819_vm15 = vsmask.f32 2306  ;;  %vm2821_vm0 = vcmask 1046532   ;;  %s2874_s22 = scalar_lea.vmem %s4101_s20, %s3473_s10 }
 0x220   : > { %vm2822_vm1 = vsmask.f32 6418  ;;  %v3461_v25 = vcombine.high %v2763_v20, %v2763_v20  ;;  %vm5077_vm2 = vmand %vm2818_vm14, %vm2819_vm15 }
 0x221   : > { %v3476_v27 = vpack.c.bf16 %v3460_v24, %v2766_v21  ;;  %vm2823_vm3 = vmand %vm2821_vm0, %vm2822_vm1 }
 0x222   : > { %v3477_v30 = vpack.c.bf16 %v3461_v25, %v2767_v23  ;;  %vm2824_vm4 = vmor %vm2823_vm3, %vm5077_vm2 }
 0x223   : > { %v2800_v31 = vshrl.u32 %v3476_v27, 16  ;;  %v2803_v32 = vshll.u32 %v3476_v27, 16 }
 0x224   : > { %v2807_v33 = vshrl.u32 %v3477_v30, 16  ;;  %v2810_v34 = vshll.u32 %v3477_v30, 16 }
 0x225   : > { %v2802_v35 = vrot.slane %v2800_v31, 7  ;;  %v3466_v36 = vld [vmem:[%s2874_s22 + $0x8] sm:$0x77]  ;;  %v3468_v41 = vld [vmem:[%s2874_s22 + $0x10] sm:$0x77] }
 0x226   : > { %v2809_v37 = vrot.slane %v2807_v33, 7 }
 0x227   : > { %v2805_v38 = vor.u32 %v2803_v32, %v2802_v35 }
 0x228   : > { %v2812_v42 = vor.u32 %v2810_v34, %v2809_v37 }
 0x229   : > { %v2826_v43 = vsel %vm2824_vm4, %v2805_v38, %v3466_v36 }
 0x22a   : > { %3467 = vst [vmem:[%s2874_s22 + $0x8] sm:$0x77] %v2826_v43  ;;  %v2829_v44 = vsel %vm2824_vm4, %v2812_v42, %v3468_v41 }
 0x22b   : > { %3469 = vst [vmem:[%s2874_s22 + $0x10] sm:$0x77] %v2829_v44 }
 0x22c PF: > { %s13_s16 = sadd.s32 1, %s4010_s16   ;;  %s5113_s12 = smov %s4002_s14 }
 0x22d   : > { %p10_p7 = scmp.ge.s32.totalorder %s13_s16, 10   ;;  %s5114_s13 = smov %s4006_s15 }
 0x22e   : > { %s5115_s14 = smov %s5118_s17  ;;  %s5116_s15 = smov %s5122_s18 }
 0x22f   :  { %12 = sbr.rel (!%p10_p7) target bundleno = 3 (0x3), region = 72 }

</bundles_post_ra>
